<compile_context>
chip_gen: v7x
topology: tpu7x:2x2x1
jax: 0.10.0
libtpu: 0.0.40
codegen_flags: <defaults>
</compile_context>

<pallas_src>
import numpy as np
import jax
import jax.numpy as jnp
from jax.experimental import pallas as pl
from jax.experimental.pallas import tpu as pltpu


# ----------------------------------------------------------------------------
# Static geometry / constant builders (trace-time Python + numpy only)
# ----------------------------------------------------------------------------
def _geometry(h, w):
    h1, w1 = (h - 3) // 2 + 1, (w - 3) // 2 + 1      # conv1: 3x3 /2 valid
    h2, w2 = h1 - 2, w1 - 2                          # conv2: 3x3 /1 valid (conv3 same-size)
    h4, w4 = (h2 - 3) // 2 + 1, (w2 - 3) // 2 + 1    # maxpool1: 3x3 /2 (conv4/5 same-size)
    h7, w7 = (h4 - 3) // 2 + 1, (w4 - 3) // 2 + 1    # maxpool2: 3x3 /2
    return h1, w1, h2, w2, h4, w4, h7, w7


def _border_mask(wp, off, nrows, h_real, w_real):
    """(nrows, 1) f32 0/1 mask: 1 where stored row `off + d` lands on a real
    (non-border) pixel of a padded grid with row pitch `wp`."""
    d = np.arange(nrows) + off
    r, c = np.divmod(d, wp)
    m = ((r >= 1) & (r <= h_real) & (c >= 1) & (c <= w_real)).astype(np.float32)
    return jnp.asarray(m[:, None])


def _even_select(n_out):
    """(n_out, 2*n_out - 1) one-hot picking every other position (exact)."""
    s = np.zeros((n_out, 2 * n_out - 1), np.float32)
    s[np.arange(n_out), 2 * np.arange(n_out)] = 1.0
    return jnp.asarray(s)


def _const_spec(arr):
    """Constant operand: block index never changes -> single-buffer it."""
    zeros = (0,) * arr.ndim
    return pl.BlockSpec(arr.shape, lambda b, _z=zeros: _z,
                        pipeline_mode=pl.Buffered(1))


# ----------------------------------------------------------------------------
# The fused stem kernel (one grid step = one image, everything VMEM-resident)
# ----------------------------------------------------------------------------
def _make_stem_kernel(wp1, ld1, wp4, ld4, h4, w4, h7, w7):
    start1 = wp1 + 1
    start4 = wp4 + 1

    def kernel(x_ref,
               w1_ref, b1_ref, m1_ref,
               w2_ref, b2_ref, m2_ref,
               w3_ref, b3_ref, m3_ref,
               w4_ref, b4_ref, m4_ref,
               w5_ref, b5_ref, m5_ref,
               cs1_ref, cs2_ref,
               out_ref,
               s13, s2, s4, s15):
        # Scratch reuse (review item): s13 holds a1 (lanes :32) then a3 (all 64
        # lanes); s15 holds p1 (lanes :64) then a5 (all 192 lanes).

        def epilogue(dense_f32, b_ref, m_ref):
            # bias + ReLU on the f32 accumulator, exact 0/1 border mask, one
            # bf16 cast at the store.
            a = jnp.maximum(dense_f32 + b_ref[...], 0.0) * m_ref[...]
            return a.astype(jnp.bfloat16)

        def taps9(src_ref, wp, ld, ncol):
            # 9 statically shifted slices of the flat padded grid, fused into
            # one (ld, 9*ncol) operand so the conv is a single K=9*Cin matmul.
            start = wp + 1
            pieces = []
            for di in (-1, 0, 1):
                for dj in (-1, 0, 1):
                    s0 = start + di * wp + dj
                    pieces.append(src_ref[s0:s0 + ld, :ncol])
            return jnp.concatenate(pieces, axis=1)

        def maxpool_rows(src_ref, wp_in, h_out, w_out, ncol, cs, emit_row):
            # 3x3 /2 valid max-pool: f32 row/col maxima per output row + exact
            # one-hot column-select matmul (stride-2 subsample, no big regrid).
            ws = 2 * w_out + 1
            for oh in range(h_out):
                base = (2 * oh + 1) * wp_in + 1
                r0 = src_ref[base:base + ws, :ncol].astype(jnp.float32)
                r1 = src_ref[base + wp_in:base + wp_in + ws, :ncol].astype(jnp.float32)
                r2 = src_ref[base + 2 * wp_in:base + 2 * wp_in + ws, :ncol].astype(jnp.float32)
                seg = jnp.maximum(jnp.maximum(r0, r1), r2)              # (ws, C) f32
                cm = jnp.maximum(jnp.maximum(seg[0:ws - 2], seg[1:ws - 1]), seg[2:ws])
                emit_row(oh, jnp.dot(cs, cm, preferred_element_type=jnp.float32))

        # ---- conv1: 3x3 /2 valid (im2col done in the wrapper) --------------
        d1 = jnp.dot(x_ref[...], w1_ref[...], preferred_element_type=jnp.float32)
        s13[:, :32] = epilogue(d1, b1_ref, m1_ref)                      # a1

        # ---- conv2: 3x3 /1 valid, single K=288 matmul -----------------------
        d2 = jnp.dot(taps9(s13, wp1, ld1, 32), w2_ref[...],
                     preferred_element_type=jnp.float32)
        s2[...] = jnp.zeros_like(s2)
        s2[0:ld1, :] = epilogue(d2, b2_ref, m2_ref)                     # a2

        # ---- conv3: 3x3 /1 same, single K=288 matmul ------------------------
        d3 = jnp.dot(taps9(s2, wp1, ld1, 32), w3_ref[...],
                     preferred_element_type=jnp.float32)
        s13[...] = jnp.zeros_like(s13)                                  # a1 is dead
        s13[start1:start1 + ld1, :] = epilogue(d3, b3_ref, m3_ref)      # a3

        # ---- maxpool1: 3x3 /2 ----------------------------------------------
        s15[:, :64] = jnp.zeros((s15.shape[0], 64), s15.dtype)
        cs1 = cs1_ref[...]

        def emit_p1(oh, row):
            q0 = (oh + 1) * wp4 + 1
            s15[q0:q0 + w4, :64] = row.astype(jnp.bfloat16)             # p1

        maxpool_rows(s13, wp1, h4, w4, 64, cs1, emit_p1)

        # ---- conv4: 1x1 ------------------------------------------------------
        d4 = jnp.dot(s15[:, :64], w4_ref[...], preferred_element_type=jnp.float32)
        s4[...] = epilogue(d4, b4_ref, m4_ref)                          # a4

        # ---- conv5: 3x3 /1 same, single K=720 matmul ------------------------
        d5 = jnp.dot(taps9(s4, wp4, ld4, 80), w5_ref[...],
                     preferred_element_type=jnp.float32)
        s15[...] = jnp.zeros_like(s15)                                  # p1 is dead
        s15[start4:start4 + ld4, :] = epilogue(d5, b5_ref, m5_ref)      # a5

        # ---- maxpool2: 3x3 /2 -> final output, already cropped (no border) --
        cs2 = cs2_ref[...]

        def emit_out(oh, row):
            out_ref[oh * w7:(oh + 1) * w7, :] = row                     # f32

        maxpool_rows(s15, wp4, h7, w7, 192, cs2, emit_out)

    return kernel


# ----------------------------------------------------------------------------
# Wrapper: layout plumbing + the single pallas_call
# ----------------------------------------------------------------------------
@jax.jit
def stem_block_forward(x_nchw, params):
    n, c, h, w = x_nchw.shape
    h1, w1, h2, w2, h4, w4, h7, w7 = _geometry(h, w)
    hp1, wp1 = h1 + 2, w1 + 2
    hp4, wp4 = h4 + 2, w4 + 2
    lp1, lp4 = hp1 * wp1, hp4 * wp4
    ld1 = lp1 - 2 * (wp1 + 1)
    ld4 = lp4 - 2 * (wp4 + 1)
    k1 = 32                                   # 9 taps * 3 channels = 27, padded to 32

    # --- conv1 im2col in the wrapper (lane-denser input, stride-2 handled here)
    x = jnp.transpose(x_nchw, (0, 2, 3, 1)).astype(jnp.float32)        # NHWC
    taps = []
    for di in range(3):
        for dj in range(3):
            taps.append(x[:, di:di + 2 * h1 - 1:2, dj:dj + 2 * w1 - 1:2, :])
    col = jnp.concatenate(taps, axis=-1)                               # (n,h1,w1,27)
    col = jnp.pad(col, ((0, 0), (1, 1), (1, 1), (0, k1 - 9 * c)))      # zero border + K pad
    x_col = col.reshape(n, lp1, k1).astype(jnp.bfloat16)

    # --- weights: fold eval-mode BN scale, lay out as (9*Cin, Cout) bf16 ------
    def prep3(p):
        co, ci, kh, kw = p["w"].shape
        wt = jnp.transpose(p["w"], (2, 3, 1, 0)) * p["scale"][None, None, None, :]
        return (wt.reshape(kh * kw * ci, co).astype(jnp.bfloat16),
                p["bias"].reshape(1, co).astype(jnp.float32))

    def prep1(p):
        co, ci, _, _ = p["w"].shape
        wt = p["w"].reshape(co, ci).T * p["scale"][None, :]
        return wt.astype(jnp.bfloat16), p["bias"].reshape(1, co).astype(jnp.float32)

    w1t, b1 = prep3(params["conv1"])
    w1t = jnp.pad(w1t, ((0, k1 - 9 * c), (0, 0)))                      # (32, 32)
    w2t, b2 = prep3(params["conv2"])                                   # (288, 32)
    w3t, b3 = prep3(params["conv3"])                                   # (288, 64)
    w4t, b4 = prep1(params["conv4"])                                   # (64, 80)
    w5t, b5 = prep3(params["conv5"])                                   # (720, 192)

    # --- tiny per-stage 0/1 border masks and pool column-select matrices -----
    m1 = _border_mask(wp1, 0, lp1, h1, w1)
    m2 = _border_mask(wp1, 0, ld1, h2, w2)
    m3 = _border_mask(wp1, wp1 + 1, ld1, h2, w2)
    m4 = _border_mask(wp4, 0, lp4, h4, w4)
    m5 = _border_mask(wp4, wp4 + 1, ld4, h4, w4)
    cs1 = _even_select(w4)
    cs2 = _even_select(w7)

    kernel = _make_stem_kernel(wp1, ld1, wp4, ld4, h4, w4, h7, w7)

    in_specs = [
        pl.BlockSpec((None, lp1, k1), lambda b: (b, 0, 0)),
        _const_spec(w1t), _const_spec(b1), _const_spec(m1),
        _const_spec(w2t), _const_spec(b2), _const_spec(m2),
        _const_spec(w3t), _const_spec(b3), _const_spec(m3),
        _const_spec(w4t), _const_spec(b4), _const_spec(m4),
        _const_spec(w5t), _const_spec(b5), _const_spec(m5),
        _const_spec(cs1), _const_spec(cs2),
    ]
    scratch = [
        pltpu.VMEM((lp1, 64), jnp.bfloat16),    # s13: a1 (lanes :32) then a3
        pltpu.VMEM((lp1, 32), jnp.bfloat16),    # s2 : a2
        pltpu.VMEM((lp4, 80), jnp.bfloat16),    # s4 : a4
        pltpu.VMEM((lp4, 192), jnp.bfloat16),   # s15: p1 (lanes :64) then a5
    ]

    consts = [w1t, b1, m1, w2t, b2, m2, w3t, b3, m3, w4t, b4, m4,
              w5t, b5, m5, cs1, cs2]
    flops = 2 * n * (lp1 * k1 * 32 + ld1 * 288 * 32 + ld1 * 288 * 64
                     + lp4 * 64 * 80 + ld4 * 720 * 192)
    bytes_accessed = (x_col.size * 2
                      + sum(a.size * a.dtype.itemsize for a in consts)
                      + n * h7 * w7 * 192 * 4)

    out_flat = pl.pallas_call(
        kernel,
        out_shape=jax.ShapeDtypeStruct((n, h7 * w7, 192), jnp.float32),
        grid=(n,),
        in_specs=in_specs,
        out_specs=pl.BlockSpec((None, h7 * w7, 192), lambda b: (b, 0, 0)),
        scratch_shapes=scratch,
        compiler_params=pltpu.CompilerParams(
            dimension_semantics=("parallel",),
            vmem_limit_bytes=48 * 1024 * 1024),      # safe on v5e/v6e/v7x
        cost_estimate=pl.CostEstimate(flops=int(flops), transcendentals=0,
                                      bytes_accessed=int(bytes_accessed)),
    )(x_col, *consts)

    out = out_flat.reshape(n, h7, w7, 192)
    return jnp.transpose(out, (0, 3, 1, 2))          # NCHW like PyTorch


# ----------------------------------------------------------------------------
# Pure-JAX reference (independent of the kernel path) for a tolerance check
# ----------------------------------------------------------------------------
@jax.jit
def _stem_reference(x_nchw, params):
    x = jnp.transpose(x_nchw, (0, 2, 3, 1)).astype(jnp.float32)

    def cbr(y, p, stride, pad):
        wt = jnp.transpose(p["w"], (2, 3, 1, 0))              # HWIO
        y = jax.lax.conv_general_dilated(
            y, wt, window_strides=(stride, stride),
            padding=[(pad, pad), (pad, pad)],
            dimension_numbers=("NHWC", "HWIO", "NHWC"))
        return jnp.maximum(y * p["scale"] + p["bias"], 0.0)

    def pool(y):
        return jax.lax.reduce_window(y, -jnp.inf, jax.lax.max,
                                     (1, 3, 3, 1), (1, 2, 2, 1), "VALID")

    x = cbr(x, params["conv1"], 2, 0)
    x = cbr(x, params["conv2"], 1, 0)
    x = cbr(x, params["conv3"], 1, 1)
    x = pool(x)
    x = cbr(x, params["conv4"], 1, 0)
    x = cbr(x, params["conv5"], 1, 1)
    x = pool(x)
    return jnp.transpose(x, (0, 3, 1, 2))


# ----------------------------------------------------------------------------
# Parameters (deterministic synthetic weights, eval-mode BN folded)
# ----------------------------------------------------------------------------
def _make_conv_bn_params(key, cin, cout, k, eps=1e-5):
    kw_, kg, kb, km, kv = jax.random.split(key, 5)
    w = jax.random.normal(kw_, (cout, cin, k, k), jnp.float32) * 0.1
    gamma = 1.0 + 0.1 * jax.random.normal(kg, (cout,), jnp.float32)
    beta = 0.1 * jax.random.normal(kb, (cout,), jnp.float32)
    running_mean = 0.05 * jax.random.normal(km, (cout,), jnp.float32)
    running_var = 1.0 + 0.1 * jax.random.uniform(kv, (cout,), jnp.float32)
    scale = gamma / jnp.sqrt(running_var + eps)
    bias = beta - running_mean * scale
    return {"w": w, "scale": scale, "bias": bias}


def make_stem_params(key):
    ks = jax.random.split(key, 5)
    return {
        "conv1": _make_conv_bn_params(ks[0], 3, 32, 3),
        "conv2": _make_conv_bn_params(ks[1], 32, 32, 3),
        "conv3": _make_conv_bn_params(ks[2], 32, 64, 3),
        "conv4": _make_conv_bn_params(ks[3], 64, 80, 1),
        "conv5": _make_conv_bn_params(ks[4], 80, 192, 3),
    }


# ----------------------------------------------------------------------------
# Main
# ----------------------------------------------------------------------------
if __name__ == "__main__":
    key = jax.random.PRNGKey(0)
    k_params, k_x = jax.random.split(key)
    params = make_stem_params(k_params)

    # 32x32 input so every stage (incl. both 3x3/2 maxpools) is non-empty:
    # 32 -> 15 -> 13 -> 13 -> 6 -> 6 -> 6 -> 2
    x = jax.random.normal(k_x, (2, 3, 32, 32), jnp.float32)   # NCHW like PyTorch

    out = jax.block_until_ready(stem_block_forward(x, params))
    assert out.shape == (2, 192, 2, 2), out.shape
    assert bool(jnp.all(jnp.isfinite(out)))

    # Tolerance check vs. pure-JAX f32 reference (kernel uses bf16 operands).
    ref = jax.block_until_ready(_stem_reference(x, params))
    np.testing.assert_allclose(np.asarray(out), np.asarray(ref),
                               rtol=5e-2, atol=5e-2)

    print("KERNEL_OK")
</pallas_src>

<mosaic_0001>
module attributes {stable_mosaic.version = 11 : i64} {
  func.func @kernel(%arg0: i32, %arg1: memref<1x289x32xbf16, #tpu.memory_space<vmem>>, %arg2: memref<32x32xbf16, #tpu.memory_space<vmem>>, %arg3: memref<1x32xf32, #tpu.memory_space<vmem>>, %arg4: memref<289x1xf32, #tpu.memory_space<vmem>>, %arg5: memref<288x32xbf16, #tpu.memory_space<vmem>>, %arg6: memref<1x32xf32, #tpu.memory_space<vmem>>, %arg7: memref<253x1xf32, #tpu.memory_space<vmem>>, %arg8: memref<288x64xbf16, #tpu.memory_space<vmem>>, %arg9: memref<1x64xf32, #tpu.memory_space<vmem>>, %arg10: memref<253x1xf32, #tpu.memory_space<vmem>>, %arg11: memref<64x80xbf16, #tpu.memory_space<vmem>>, %arg12: memref<1x80xf32, #tpu.memory_space<vmem>>, %arg13: memref<64x1xf32, #tpu.memory_space<vmem>>, %arg14: memref<720x192xbf16, #tpu.memory_space<vmem>>, %arg15: memref<1x192xf32, #tpu.memory_space<vmem>>, %arg16: memref<46x1xf32, #tpu.memory_space<vmem>>, %arg17: memref<6x11xf32, #tpu.memory_space<vmem>>, %arg18: memref<2x3xf32, #tpu.memory_space<vmem>>, %arg19: memref<1x4x192xf32, #tpu.memory_space<vmem>>, %arg20: memref<289x64xbf16, #tpu.memory_space<vmem>>, %arg21: memref<289x32xbf16, #tpu.memory_space<vmem>>, %arg22: memref<64x80xbf16, #tpu.memory_space<vmem>>, %arg23: memref<64x192xbf16, #tpu.memory_space<vmem>>) attributes {dimension_semantics = [#tpu.dimension_semantics<parallel>], iteration_bounds = array<i64: 2>, scalar_prefetch = 0 : i64, scratch_operands = 4 : i64, tpu.core_type = #tpu.core_type<tc>, window_params = [{transform_indices = @transform_0, window_bounds = array<i64: 1, 289, 32>}, {pipeline_mode = #tpu.pipeline_mode<synchronous>, transform_indices = @transform_1, window_bounds = array<i64: 32, 32>}, {pipeline_mode = #tpu.pipeline_mode<synchronous>, transform_indices = @transform_2, window_bounds = array<i64: 1, 32>}, {pipeline_mode = #tpu.pipeline_mode<synchronous>, transform_indices = @transform_3, window_bounds = array<i64: 289, 1>}, {pipeline_mode = #tpu.pipeline_mode<synchronous>, transform_indices = @transform_4, window_bounds = array<i64: 288, 32>}, {pipeline_mode = #tpu.pipeline_mode<synchronous>, transform_indices = @transform_5, window_bounds = array<i64: 1, 32>}, {pipeline_mode = #tpu.pipeline_mode<synchronous>, transform_indices = @transform_6, window_bounds = array<i64: 253, 1>}, {pipeline_mode = #tpu.pipeline_mode<synchronous>, transform_indices = @transform_7, window_bounds = array<i64: 288, 64>}, {pipeline_mode = #tpu.pipeline_mode<synchronous>, transform_indices = @transform_8, window_bounds = array<i64: 1, 64>}, {pipeline_mode = #tpu.pipeline_mode<synchronous>, transform_indices = @transform_9, window_bounds = array<i64: 253, 1>}, {pipeline_mode = #tpu.pipeline_mode<synchronous>, transform_indices = @transform_10, window_bounds = array<i64: 64, 80>}, {pipeline_mode = #tpu.pipeline_mode<synchronous>, transform_indices = @transform_11, window_bounds = array<i64: 1, 80>}, {pipeline_mode = #tpu.pipeline_mode<synchronous>, transform_indices = @transform_12, window_bounds = array<i64: 64, 1>}, {pipeline_mode = #tpu.pipeline_mode<synchronous>, transform_indices = @transform_13, window_bounds = array<i64: 720, 192>}, {pipeline_mode = #tpu.pipeline_mode<synchronous>, transform_indices = @transform_14, window_bounds = array<i64: 1, 192>}, {pipeline_mode = #tpu.pipeline_mode<synchronous>, transform_indices = @transform_15, window_bounds = array<i64: 46, 1>}, {pipeline_mode = #tpu.pipeline_mode<synchronous>, transform_indices = @transform_16, window_bounds = array<i64: 6, 11>}, {pipeline_mode = #tpu.pipeline_mode<synchronous>, transform_indices = @transform_17, window_bounds = array<i64: 2, 3>}, {transform_indices = @transform_18, window_bounds = array<i64: 1, 4, 192>}]} {
    %c0 = arith.constant 0 : index
    %c0_0 = arith.constant 0 : index
    %c0_1 = arith.constant 0 : index
    %0 = vector.load %arg1[%c0, %c0_0, %c0_1] : memref<1x289x32xbf16, #tpu.memory_space<vmem>>, vector<1x289x32xbf16>
    %1 = vector.shape_cast %0 : vector<1x289x32xbf16> to vector<289x32xbf16>
    %c0_2 = arith.constant 0 : index
    %c0_3 = arith.constant 0 : index
    %2 = vector.load %arg2[%c0_2, %c0_3] : memref<32x32xbf16, #tpu.memory_space<vmem>>, vector<32x32xbf16>
    %cst = arith.constant dense<0.000000e+00> : vector<289x32xf32>
    %3 = tpu.matmul %1, %2, %cst {dimension_numbers = #tpu.dot_dimension_numbers<[1], [0], [0], [1], [0, 0, 1, 1], [], []>} : vector<289x32xbf16>, vector<32x32xbf16>, vector<289x32xf32> -> vector<289x32xf32>
    %c0_4 = arith.constant 0 : index
    %c0_5 = arith.constant 0 : index
    %4 = vector.load %arg3[%c0_4, %c0_5] : memref<1x32xf32, #tpu.memory_space<vmem>>, vector<1x32xf32>
    %5 = vector.broadcast %4 : vector<1x32xf32> to vector<289x32xf32>
    %6 = arith.addf %3, %5 : vector<289x32xf32>
    %cst_6 = arith.constant 0.000000e+00 : f32
    %7 = vector.broadcast %cst_6 : f32 to vector<289x32xf32>
    %8 = arith.maximumf %6, %7 : vector<289x32xf32>
    %c0_7 = arith.constant 0 : index
    %c0_8 = arith.constant 0 : index
    %9 = vector.load %arg4[%c0_7, %c0_8] : memref<289x1xf32, #tpu.memory_space<vmem>>, vector<289x1xf32>
    %10 = vector.broadcast %9 : vector<289x1xf32> to vector<289x32xf32>
    %11 = arith.mulf %8, %10 : vector<289x32xf32>
    %12 = arith.truncf %11 : vector<289x32xf32> to vector<289x32xbf16>
    %c0_9 = arith.constant 0 : index
    %c0_10 = arith.constant 0 : index
    %13 = vector.load %arg20[%c0_9, %c0_10] : memref<289x64xbf16, #tpu.memory_space<vmem>>, vector<289x32xbf16>
    tpu.vector_store %arg20[%c0_9, %c0_10], %12 {strides = array<i32>} : memref<289x64xbf16, #tpu.memory_space<vmem>>, vector<289x32xbf16>,
    %c0_11 = arith.constant 0 : index
    %c0_12 = arith.constant 0 : index
    %14 = vector.load %arg20[%c0_11, %c0_12] : memref<289x64xbf16, #tpu.memory_space<vmem>>, vector<253x32xbf16>
    %c1 = arith.constant 1 : index
    %c0_13 = arith.constant 0 : index
    %15 = vector.load %arg20[%c1, %c0_13] : memref<289x64xbf16, #tpu.memory_space<vmem>>, vector<253x32xbf16>
    %c2 = arith.constant 2 : index
    %c0_14 = arith.constant 0 : index
    %16 = vector.load %arg20[%c2, %c0_14] : memref<289x64xbf16, #tpu.memory_space<vmem>>, vector<253x32xbf16>
    %c17 = arith.constant 17 : index
    %c0_15 = arith.constant 0 : index
    %17 = vector.load %arg20[%c17, %c0_15] : memref<289x64xbf16, #tpu.memory_space<vmem>>, vector<253x32xbf16>
    %c18 = arith.constant 18 : index
    %c0_16 = arith.constant 0 : index
    %18 = vector.load %arg20[%c18, %c0_16] : memref<289x64xbf16, #tpu.memory_space<vmem>>, vector<253x32xbf16>
    %c19 = arith.constant 19 : index
    %c0_17 = arith.constant 0 : index
    %19 = vector.load %arg20[%c19, %c0_17] : memref<289x64xbf16, #tpu.memory_space<vmem>>, vector<253x32xbf16>
    %c34 = arith.constant 34 : index
    %c0_18 = arith.constant 0 : index
    %20 = vector.load %arg20[%c34, %c0_18] : memref<289x64xbf16, #tpu.memory_space<vmem>>, vector<253x32xbf16>
    %c35 = arith.constant 35 : index
    %c0_19 = arith.constant 0 : index
    %21 = vector.load %arg20[%c35, %c0_19] : memref<289x64xbf16, #tpu.memory_space<vmem>>, vector<253x32xbf16>
    %c36 = arith.constant 36 : index
    %c0_20 = arith.constant 0 : index
    %22 = vector.load %arg20[%c36, %c0_20] : memref<289x64xbf16, #tpu.memory_space<vmem>>, vector<253x32xbf16>
    %23 = tpu.concatenate %14, %15, %16, %17, %18, %19, %20, %21, %22 in 1 : vector<253x32xbf16>, vector<253x32xbf16>, vector<253x32xbf16>, vector<253x32xbf16>, vector<253x32xbf16>, vector<253x32xbf16>, vector<253x32xbf16>, vector<253x32xbf16>, vector<253x32xbf16> -> vector<253x288xbf16>
    %c0_21 = arith.constant 0 : index
    %c0_22 = arith.constant 0 : index
    %24 = vector.load %arg5[%c0_21, %c0_22] : memref<288x32xbf16, #tpu.memory_space<vmem>>, vector<288x32xbf16>
    %cst_23 = arith.constant dense<0.000000e+00> : vector<253x32xf32>
    %25 = tpu.matmul %23, %24, %cst_23 {dimension_numbers = #tpu.dot_dimension_numbers<[1], [0], [0], [1], [0, 0, 1, 1], [], []>} : vector<253x288xbf16>, vector<288x32xbf16>, vector<253x32xf32> -> vector<253x32xf32>
    %cst_24 = arith.constant 0.000000e+00 : bf16
    %26 = vector.broadcast %cst_24 : bf16 to vector<289x32xbf16>
    %c0_25 = arith.constant 0 : index
    %c0_26 = arith.constant 0 : index
    %27 = vector.load %arg21[%c0_25, %c0_26] : memref<289x32xbf16, #tpu.memory_space<vmem>>, vector<289x32xbf16>
    tpu.vector_store %arg21[%c0_25, %c0_26], %26 {strides = array<i32>} : memref<289x32xbf16, #tpu.memory_space<vmem>>, vector<289x32xbf16>,
    %c0_27 = arith.constant 0 : index
    %c0_28 = arith.constant 0 : index
    %28 = vector.load %arg6[%c0_27, %c0_28] : memref<1x32xf32, #tpu.memory_space<vmem>>, vector<1x32xf32>
    %29 = vector.broadcast %28 : vector<1x32xf32> to vector<253x32xf32>
    %30 = arith.addf %25, %29 : vector<253x32xf32>
    %cst_29 = arith.constant 0.000000e+00 : f32
    %31 = vector.broadcast %cst_29 : f32 to vector<253x32xf32>
    %32 = arith.maximumf %30, %31 : vector<253x32xf32>
    %c0_30 = arith.constant 0 : index
    %c0_31 = arith.constant 0 : index
    %33 = vector.load %arg7[%c0_30, %c0_31] : memref<253x1xf32, #tpu.memory_space<vmem>>, vector<253x1xf32>
    %34 = vector.broadcast %33 : vector<253x1xf32> to vector<253x32xf32>
    %35 = arith.mulf %32, %34 : vector<253x32xf32>
    %36 = arith.truncf %35 : vector<253x32xf32> to vector<253x32xbf16>
    %c0_32 = arith.constant 0 : index
    %c0_33 = arith.constant 0 : index
    %37 = vector.load %arg21[%c0_32, %c0_33] : memref<289x32xbf16, #tpu.memory_space<vmem>>, vector<253x32xbf16>
    tpu.vector_store %arg21[%c0_32, %c0_33], %36 {strides = array<i32>} : memref<289x32xbf16, #tpu.memory_space<vmem>>, vector<253x32xbf16>,
    %c0_34 = arith.constant 0 : index
    %c0_35 = arith.constant 0 : index
    %38 = vector.load %arg21[%c0_34, %c0_35] : memref<289x32xbf16, #tpu.memory_space<vmem>>, vector<253x32xbf16>
    %c1_36 = arith.constant 1 : index
    %c0_37 = arith.constant 0 : index
    %39 = vector.load %arg21[%c1_36, %c0_37] : memref<289x32xbf16, #tpu.memory_space<vmem>>, vector<253x32xbf16>
    %c2_38 = arith.constant 2 : index
    %c0_39 = arith.constant 0 : index
    %40 = vector.load %arg21[%c2_38, %c0_39] : memref<289x32xbf16, #tpu.memory_space<vmem>>, vector<253x32xbf16>
    %c17_40 = arith.constant 17 : index
    %c0_41 = arith.constant 0 : index
    %41 = vector.load %arg21[%c17_40, %c0_41] : memref<289x32xbf16, #tpu.memory_space<vmem>>, vector<253x32xbf16>
    %c18_42 = arith.constant 18 : index
    %c0_43 = arith.constant 0 : index
    %42 = vector.load %arg21[%c18_42, %c0_43] : memref<289x32xbf16, #tpu.memory_space<vmem>>, vector<253x32xbf16>
    %c19_44 = arith.constant 19 : index
    %c0_45 = arith.constant 0 : index
    %43 = vector.load %arg21[%c19_44, %c0_45] : memref<289x32xbf16, #tpu.memory_space<vmem>>, vector<253x32xbf16>
    %c34_46 = arith.constant 34 : index
    %c0_47 = arith.constant 0 : index
    %44 = vector.load %arg21[%c34_46, %c0_47] : memref<289x32xbf16, #tpu.memory_space<vmem>>, vector<253x32xbf16>
    %c35_48 = arith.constant 35 : index
    %c0_49 = arith.constant 0 : index
    %45 = vector.load %arg21[%c35_48, %c0_49] : memref<289x32xbf16, #tpu.memory_space<vmem>>, vector<253x32xbf16>
    %c36_50 = arith.constant 36 : index
    %c0_51 = arith.constant 0 : index
    %46 = vector.load %arg21[%c36_50, %c0_51] : memref<289x32xbf16, #tpu.memory_space<vmem>>, vector<253x32xbf16>
    %47 = tpu.concatenate %38, %39, %40, %41, %42, %43, %44, %45, %46 in 1 : vector<253x32xbf16>, vector<253x32xbf16>, vector<253x32xbf16>, vector<253x32xbf16>, vector<253x32xbf16>, vector<253x32xbf16>, vector<253x32xbf16>, vector<253x32xbf16>, vector<253x32xbf16> -> vector<253x288xbf16>
    %c0_52 = arith.constant 0 : index
    %c0_53 = arith.constant 0 : index
    %48 = vector.load %arg8[%c0_52, %c0_53] : memref<288x64xbf16, #tpu.memory_space<vmem>>, vector<288x64xbf16>
    %cst_54 = arith.constant dense<0.000000e+00> : vector<253x64xf32>
    %49 = tpu.matmul %47, %48, %cst_54 {dimension_numbers = #tpu.dot_dimension_numbers<[1], [0], [0], [1], [0, 0, 1, 1], [], []>} : vector<253x288xbf16>, vector<288x64xbf16>, vector<253x64xf32> -> vector<253x64xf32>
    %cst_55 = arith.constant 0.000000e+00 : bf16
    %50 = vector.broadcast %cst_55 : bf16 to vector<289x64xbf16>
    %c0_56 = arith.constant 0 : index
    %c0_57 = arith.constant 0 : index
    %51 = vector.load %arg20[%c0_56, %c0_57] : memref<289x64xbf16, #tpu.memory_space<vmem>>, vector<289x64xbf16>
    tpu.vector_store %arg20[%c0_56, %c0_57], %50 {strides = array<i32>} : memref<289x64xbf16, #tpu.memory_space<vmem>>, vector<289x64xbf16>,
    %c0_58 = arith.constant 0 : index
    %c0_59 = arith.constant 0 : index
    %52 = vector.load %arg9[%c0_58, %c0_59] : memref<1x64xf32, #tpu.memory_space<vmem>>, vector<1x64xf32>
    %53 = vector.broadcast %52 : vector<1x64xf32> to vector<253x64xf32>
    %54 = arith.addf %49, %53 : vector<253x64xf32>
    %cst_60 = arith.constant 0.000000e+00 : f32
    %55 = vector.broadcast %cst_60 : f32 to vector<253x64xf32>
    %56 = arith.maximumf %54, %55 : vector<253x64xf32>
    %c0_61 = arith.constant 0 : index
    %c0_62 = arith.constant 0 : index
    %57 = vector.load %arg10[%c0_61, %c0_62] : memref<253x1xf32, #tpu.memory_space<vmem>>, vector<253x1xf32>
    %58 = vector.broadcast %57 : vector<253x1xf32> to vector<253x64xf32>
    %59 = arith.mulf %56, %58 : vector<253x64xf32>
    %60 = arith.truncf %59 : vector<253x64xf32> to vector<253x64xbf16>
    %c18_63 = arith.constant 18 : index
    %c0_64 = arith.constant 0 : index
    %61 = vector.load %arg20[%c18_63, %c0_64] : memref<289x64xbf16, #tpu.memory_space<vmem>>, vector<253x64xbf16>
    tpu.vector_store %arg20[%c18_63, %c0_64], %60 {strides = array<i32>} : memref<289x64xbf16, #tpu.memory_space<vmem>>, vector<253x64xbf16>,
    %cst_65 = arith.constant 0.000000e+00 : bf16
    %62 = vector.broadcast %cst_65 : bf16 to vector<64x64xbf16>
    %c0_66 = arith.constant 0 : index
    %c0_67 = arith.constant 0 : index
    %63 = vector.load %arg23[%c0_66, %c0_67] : memref<64x192xbf16, #tpu.memory_space<vmem>>, vector<64x64xbf16>
    tpu.vector_store %arg23[%c0_66, %c0_67], %62 {strides = array<i32>} : memref<64x192xbf16, #tpu.memory_space<vmem>>, vector<64x64xbf16>,
    %c0_68 = arith.constant 0 : index
    %c0_69 = arith.constant 0 : index
    %64 = vector.load %arg17[%c0_68, %c0_69] : memref<6x11xf32, #tpu.memory_space<vmem>>, vector<6x11xf32>
    %c18_70 = arith.constant 18 : index
    %c0_71 = arith.constant 0 : index
    %65 = vector.load %arg20[%c18_70, %c0_71] : memref<289x64xbf16, #tpu.memory_space<vmem>>, vector<13x64xbf16>
    %66 = arith.extf %65 : vector<13x64xbf16> to vector<13x64xf32>
    %c35_72 = arith.constant 35 : index
    %c0_73 = arith.constant 0 : index
    %67 = vector.load %arg20[%c35_72, %c0_73] : memref<289x64xbf16, #tpu.memory_space<vmem>>, vector<13x64xbf16>
    %68 = arith.extf %67 : vector<13x64xbf16> to vector<13x64xf32>
    %c52 = arith.constant 52 : index
    %c0_74 = arith.constant 0 : index
    %69 = vector.load %arg20[%c52, %c0_74] : memref<289x64xbf16, #tpu.memory_space<vmem>>, vector<13x64xbf16>
    %70 = arith.extf %69 : vector<13x64xbf16> to vector<13x64xf32>
    %71 = arith.maximumf %66, %68 : vector<13x64xf32>
    %72 = arith.maximumf %71, %70 : vector<13x64xf32>
    %73 = vector.extract_strided_slice %72 {offsets = [0, 0], sizes = [11, 64], strides = [1, 1]} : vector<13x64xf32> to vector<11x64xf32>
    %74 = vector.extract_strided_slice %72 {offsets = [1, 0], sizes = [11, 64], strides = [1, 1]} : vector<13x64xf32> to vector<11x64xf32>
    %75 = arith.maximumf %73, %74 : vector<11x64xf32>
    %76 = vector.extract_strided_slice %72 {offsets = [2, 0], sizes = [11, 64], strides = [1, 1]} : vector<13x64xf32> to vector<11x64xf32>
    %77 = arith.maximumf %75, %76 : vector<11x64xf32>
    %cst_75 = arith.constant dense<0.000000e+00> : vector<6x64xf32>
    %78 = tpu.matmul %64, %77, %cst_75 {dimension_numbers = #tpu.dot_dimension_numbers<[1], [0], [0], [1], [0, 0, 1, 1], [], []>} : vector<6x11xf32>, vector<11x64xf32>, vector<6x64xf32> -> vector<6x64xf32>
    %79 = arith.truncf %78 : vector<6x64xf32> to vector<6x64xbf16>
    %c9 = arith.constant 9 : index
    %c0_76 = arith.constant 0 : index
    %80 = vector.load %arg23[%c9, %c0_76] : memref<64x192xbf16, #tpu.memory_space<vmem>>, vector<6x64xbf16>
    tpu.vector_store %arg23[%c9, %c0_76], %79 {strides = array<i32>} : memref<64x192xbf16, #tpu.memory_space<vmem>>, vector<6x64xbf16>,
    %c52_77 = arith.constant 52 : index
    %c0_78 = arith.constant 0 : index
    %81 = vector.load %arg20[%c52_77, %c0_78] : memref<289x64xbf16, #tpu.memory_space<vmem>>, vector<13x64xbf16>
    %82 = arith.extf %81 : vector<13x64xbf16> to vector<13x64xf32>
    %c69 = arith.constant 69 : index
    %c0_79 = arith.constant 0 : index
    %83 = vector.load %arg20[%c69, %c0_79] : memref<289x64xbf16, #tpu.memory_space<vmem>>, vector<13x64xbf16>
    %84 = arith.extf %83 : vector<13x64xbf16> to vector<13x64xf32>
    %c86 = arith.constant 86 : index
    %c0_80 = arith.constant 0 : index
    %85 = vector.load %arg20[%c86, %c0_80] : memref<289x64xbf16, #tpu.memory_space<vmem>>, vector<13x64xbf16>
    %86 = arith.extf %85 : vector<13x64xbf16> to vector<13x64xf32>
    %87 = arith.maximumf %82, %84 : vector<13x64xf32>
    %88 = arith.maximumf %87, %86 : vector<13x64xf32>
    %89 = vector.extract_strided_slice %88 {offsets = [0, 0], sizes = [11, 64], strides = [1, 1]} : vector<13x64xf32> to vector<11x64xf32>
    %90 = vector.extract_strided_slice %88 {offsets = [1, 0], sizes = [11, 64], strides = [1, 1]} : vector<13x64xf32> to vector<11x64xf32>
    %91 = arith.maximumf %89, %90 : vector<11x64xf32>
    %92 = vector.extract_strided_slice %88 {offsets = [2, 0], sizes = [11, 64], strides = [1, 1]} : vector<13x64xf32> to vector<11x64xf32>
    %93 = arith.maximumf %91, %92 : vector<11x64xf32>
    %cst_81 = arith.constant dense<0.000000e+00> : vector<6x64xf32>
    %94 = tpu.matmul %64, %93, %cst_81 {dimension_numbers = #tpu.dot_dimension_numbers<[1], [0], [0], [1], [0, 0, 1, 1], [], []>} : vector<6x11xf32>, vector<11x64xf32>, vector<6x64xf32> -> vector<6x64xf32>
    %95 = arith.truncf %94 : vector<6x64xf32> to vector<6x64xbf16>
    %c17_82 = arith.constant 17 : index
    %c0_83 = arith.constant 0 : index
    %96 = vector.load %arg23[%c17_82, %c0_83] : memref<64x192xbf16, #tpu.memory_space<vmem>>, vector<6x64xbf16>
    tpu.vector_store %arg23[%c17_82, %c0_83], %95 {strides = array<i32>} : memref<64x192xbf16, #tpu.memory_space<vmem>>, vector<6x64xbf16>,
    %c86_84 = arith.constant 86 : index
    %c0_85 = arith.constant 0 : index
    %97 = vector.load %arg20[%c86_84, %c0_85] : memref<289x64xbf16, #tpu.memory_space<vmem>>, vector<13x64xbf16>
    %98 = arith.extf %97 : vector<13x64xbf16> to vector<13x64xf32>
    %c103 = arith.constant 103 : index
    %c0_86 = arith.constant 0 : index
    %99 = vector.load %arg20[%c103, %c0_86] : memref<289x64xbf16, #tpu.memory_space<vmem>>, vector<13x64xbf16>
    %100 = arith.extf %99 : vector<13x64xbf16> to vector<13x64xf32>
    %c120 = arith.constant 120 : index
    %c0_87 = arith.constant 0 : index
    %101 = vector.load %arg20[%c120, %c0_87] : memref<289x64xbf16, #tpu.memory_space<vmem>>, vector<13x64xbf16>
    %102 = arith.extf %101 : vector<13x64xbf16> to vector<13x64xf32>
    %103 = arith.maximumf %98, %100 : vector<13x64xf32>
    %104 = arith.maximumf %103, %102 : vector<13x64xf32>
    %105 = vector.extract_strided_slice %104 {offsets = [0, 0], sizes = [11, 64], strides = [1, 1]} : vector<13x64xf32> to vector<11x64xf32>
    %106 = vector.extract_strided_slice %104 {offsets = [1, 0], sizes = [11, 64], strides = [1, 1]} : vector<13x64xf32> to vector<11x64xf32>
    %107 = arith.maximumf %105, %106 : vector<11x64xf32>
    %108 = vector.extract_strided_slice %104 {offsets = [2, 0], sizes = [11, 64], strides = [1, 1]} : vector<13x64xf32> to vector<11x64xf32>
    %109 = arith.maximumf %107, %108 : vector<11x64xf32>
    %cst_88 = arith.constant dense<0.000000e+00> : vector<6x64xf32>
    %110 = tpu.matmul %64, %109, %cst_88 {dimension_numbers = #tpu.dot_dimension_numbers<[1], [0], [0], [1], [0, 0, 1, 1], [], []>} : vector<6x11xf32>, vector<11x64xf32>, vector<6x64xf32> -> vector<6x64xf32>
    %111 = arith.truncf %110 : vector<6x64xf32> to vector<6x64xbf16>
    %c25 = arith.constant 25 : index
    %c0_89 = arith.constant 0 : index
    %112 = vector.load %arg23[%c25, %c0_89] : memref<64x192xbf16, #tpu.memory_space<vmem>>, vector<6x64xbf16>
    tpu.vector_store %arg23[%c25, %c0_89], %111 {strides = array<i32>} : memref<64x192xbf16, #tpu.memory_space<vmem>>, vector<6x64xbf16>,
    %c120_90 = arith.constant 120 : index
    %c0_91 = arith.constant 0 : index
    %113 = vector.load %arg20[%c120_90, %c0_91] : memref<289x64xbf16, #tpu.memory_space<vmem>>, vector<13x64xbf16>
    %114 = arith.extf %113 : vector<13x64xbf16> to vector<13x64xf32>
    %c137 = arith.constant 137 : index
    %c0_92 = arith.constant 0 : index
    %115 = vector.load %arg20[%c137, %c0_92] : memref<289x64xbf16, #tpu.memory_space<vmem>>, vector<13x64xbf16>
    %116 = arith.extf %115 : vector<13x64xbf16> to vector<13x64xf32>
    %c154 = arith.constant 154 : index
    %c0_93 = arith.constant 0 : index
    %117 = vector.load %arg20[%c154, %c0_93] : memref<289x64xbf16, #tpu.memory_space<vmem>>, vector<13x64xbf16>
    %118 = arith.extf %117 : vector<13x64xbf16> to vector<13x64xf32>
    %119 = arith.maximumf %114, %116 : vector<13x64xf32>
    %120 = arith.maximumf %119, %118 : vector<13x64xf32>
    %121 = vector.extract_strided_slice %120 {offsets = [0, 0], sizes = [11, 64], strides = [1, 1]} : vector<13x64xf32> to vector<11x64xf32>
    %122 = vector.extract_strided_slice %120 {offsets = [1, 0], sizes = [11, 64], strides = [1, 1]} : vector<13x64xf32> to vector<11x64xf32>
    %123 = arith.maximumf %121, %122 : vector<11x64xf32>
    %124 = vector.extract_strided_slice %120 {offsets = [2, 0], sizes = [11, 64], strides = [1, 1]} : vector<13x64xf32> to vector<11x64xf32>
    %125 = arith.maximumf %123, %124 : vector<11x64xf32>
    %cst_94 = arith.constant dense<0.000000e+00> : vector<6x64xf32>
    %126 = tpu.matmul %64, %125, %cst_94 {dimension_numbers = #tpu.dot_dimension_numbers<[1], [0], [0], [1], [0, 0, 1, 1], [], []>} : vector<6x11xf32>, vector<11x64xf32>, vector<6x64xf32> -> vector<6x64xf32>
    %127 = arith.truncf %126 : vector<6x64xf32> to vector<6x64xbf16>
    %c33 = arith.constant 33 : index
    %c0_95 = arith.constant 0 : index
    %128 = vector.load %arg23[%c33, %c0_95] : memref<64x192xbf16, #tpu.memory_space<vmem>>, vector<6x64xbf16>
    tpu.vector_store %arg23[%c33, %c0_95], %127 {strides = array<i32>} : memref<64x192xbf16, #tpu.memory_space<vmem>>, vector<6x64xbf16>,
    %c154_96 = arith.constant 154 : index
    %c0_97 = arith.constant 0 : index
    %129 = vector.load %arg20[%c154_96, %c0_97] : memref<289x64xbf16, #tpu.memory_space<vmem>>, vector<13x64xbf16>
    %130 = arith.extf %129 : vector<13x64xbf16> to vector<13x64xf32>
    %c171 = arith.constant 171 : index
    %c0_98 = arith.constant 0 : index
    %131 = vector.load %arg20[%c171, %c0_98] : memref<289x64xbf16, #tpu.memory_space<vmem>>, vector<13x64xbf16>
    %132 = arith.extf %131 : vector<13x64xbf16> to vector<13x64xf32>
    %c188 = arith.constant 188 : index
    %c0_99 = arith.constant 0 : index
    %133 = vector.load %arg20[%c188, %c0_99] : memref<289x64xbf16, #tpu.memory_space<vmem>>, vector<13x64xbf16>
    %134 = arith.extf %133 : vector<13x64xbf16> to vector<13x64xf32>
    %135 = arith.maximumf %130, %132 : vector<13x64xf32>
    %136 = arith.maximumf %135, %134 : vector<13x64xf32>
    %137 = vector.extract_strided_slice %136 {offsets = [0, 0], sizes = [11, 64], strides = [1, 1]} : vector<13x64xf32> to vector<11x64xf32>
    %138 = vector.extract_strided_slice %136 {offsets = [1, 0], sizes = [11, 64], strides = [1, 1]} : vector<13x64xf32> to vector<11x64xf32>
    %139 = arith.maximumf %137, %138 : vector<11x64xf32>
    %140 = vector.extract_strided_slice %136 {offsets = [2, 0], sizes = [11, 64], strides = [1, 1]} : vector<13x64xf32> to vector<11x64xf32>
    %141 = arith.maximumf %139, %140 : vector<11x64xf32>
    %cst_100 = arith.constant dense<0.000000e+00> : vector<6x64xf32>
    %142 = tpu.matmul %64, %141, %cst_100 {dimension_numbers = #tpu.dot_dimension_numbers<[1], [0], [0], [1], [0, 0, 1, 1], [], []>} : vector<6x11xf32>, vector<11x64xf32>, vector<6x64xf32> -> vector<6x64xf32>
    %143 = arith.truncf %142 : vector<6x64xf32> to vector<6x64xbf16>
    %c41 = arith.constant 41 : index
    %c0_101 = arith.constant 0 : index
    %144 = vector.load %arg23[%c41, %c0_101] : memref<64x192xbf16, #tpu.memory_space<vmem>>, vector<6x64xbf16>
    tpu.vector_store %arg23[%c41, %c0_101], %143 {strides = array<i32>} : memref<64x192xbf16, #tpu.memory_space<vmem>>, vector<6x64xbf16>,
    %c188_102 = arith.constant 188 : index
    %c0_103 = arith.constant 0 : index
    %145 = vector.load %arg20[%c188_102, %c0_103] : memref<289x64xbf16, #tpu.memory_space<vmem>>, vector<13x64xbf16>
    %146 = arith.extf %145 : vector<13x64xbf16> to vector<13x64xf32>
    %c205 = arith.constant 205 : index
    %c0_104 = arith.constant 0 : index
    %147 = vector.load %arg20[%c205, %c0_104] : memref<289x64xbf16, #tpu.memory_space<vmem>>, vector<13x64xbf16>
    %148 = arith.extf %147 : vector<13x64xbf16> to vector<13x64xf32>
    %c222 = arith.constant 222 : index
    %c0_105 = arith.constant 0 : index
    %149 = vector.load %arg20[%c222, %c0_105] : memref<289x64xbf16, #tpu.memory_space<vmem>>, vector<13x64xbf16>
    %150 = arith.extf %149 : vector<13x64xbf16> to vector<13x64xf32>
    %151 = arith.maximumf %146, %148 : vector<13x64xf32>
    %152 = arith.maximumf %151, %150 : vector<13x64xf32>
    %153 = vector.extract_strided_slice %152 {offsets = [0, 0], sizes = [11, 64], strides = [1, 1]} : vector<13x64xf32> to vector<11x64xf32>
    %154 = vector.extract_strided_slice %152 {offsets = [1, 0], sizes = [11, 64], strides = [1, 1]} : vector<13x64xf32> to vector<11x64xf32>
    %155 = arith.maximumf %153, %154 : vector<11x64xf32>
    %156 = vector.extract_strided_slice %152 {offsets = [2, 0], sizes = [11, 64], strides = [1, 1]} : vector<13x64xf32> to vector<11x64xf32>
    %157 = arith.maximumf %155, %156 : vector<11x64xf32>
    %cst_106 = arith.constant dense<0.000000e+00> : vector<6x64xf32>
    %158 = tpu.matmul %64, %157, %cst_106 {dimension_numbers = #tpu.dot_dimension_numbers<[1], [0], [0], [1], [0, 0, 1, 1], [], []>} : vector<6x11xf32>, vector<11x64xf32>, vector<6x64xf32> -> vector<6x64xf32>
    %159 = arith.truncf %158 : vector<6x64xf32> to vector<6x64xbf16>
    %c49 = arith.constant 49 : index
    %c0_107 = arith.constant 0 : index
    %160 = vector.load %arg23[%c49, %c0_107] : memref<64x192xbf16, #tpu.memory_space<vmem>>, vector<6x64xbf16>
    tpu.vector_store %arg23[%c49, %c0_107], %159 {strides = array<i32>} : memref<64x192xbf16, #tpu.memory_space<vmem>>, vector<6x64xbf16>,
    %c0_108 = arith.constant 0 : index
    %c0_109 = arith.constant 0 : index
    %161 = vector.load %arg23[%c0_108, %c0_109] : memref<64x192xbf16, #tpu.memory_space<vmem>>, vector<64x64xbf16>
    %c0_110 = arith.constant 0 : index
    %c0_111 = arith.constant 0 : index
    %162 = vector.load %arg11[%c0_110, %c0_111] : memref<64x80xbf16, #tpu.memory_space<vmem>>, vector<64x80xbf16>
    %cst_112 = arith.constant dense<0.000000e+00> : vector<64x80xf32>
    %163 = tpu.matmul %161, %162, %cst_112 {dimension_numbers = #tpu.dot_dimension_numbers<[1], [0], [0], [1], [0, 0, 1, 1], [], []>} : vector<64x64xbf16>, vector<64x80xbf16>, vector<64x80xf32> -> vector<64x80xf32>
    %c0_113 = arith.constant 0 : index
    %c0_114 = arith.constant 0 : index
    %164 = vector.load %arg12[%c0_113, %c0_114] : memref<1x80xf32, #tpu.memory_space<vmem>>, vector<1x80xf32>
    %165 = vector.broadcast %164 : vector<1x80xf32> to vector<64x80xf32>
    %166 = arith.addf %163, %165 : vector<64x80xf32>
    %cst_115 = arith.constant 0.000000e+00 : f32
    %167 = vector.broadcast %cst_115 : f32 to vector<64x80xf32>
    %168 = arith.maximumf %166, %167 : vector<64x80xf32>
    %c0_116 = arith.constant 0 : index
    %c0_117 = arith.constant 0 : index
    %169 = vector.load %arg13[%c0_116, %c0_117] : memref<64x1xf32, #tpu.memory_space<vmem>>, vector<64x1xf32>
    %170 = vector.broadcast %169 : vector<64x1xf32> to vector<64x80xf32>
    %171 = arith.mulf %168, %170 : vector<64x80xf32>
    %172 = arith.truncf %171 : vector<64x80xf32> to vector<64x80xbf16>
    %c0_118 = arith.constant 0 : index
    %c0_119 = arith.constant 0 : index
    %173 = vector.load %arg22[%c0_118, %c0_119] : memref<64x80xbf16, #tpu.memory_space<vmem>>, vector<64x80xbf16>
    tpu.vector_store %arg22[%c0_118, %c0_119], %172 {strides = array<i32>} : memref<64x80xbf16, #tpu.memory_space<vmem>>, vector<64x80xbf16>,
    %c0_120 = arith.constant 0 : index
    %c0_121 = arith.constant 0 : index
    %174 = vector.load %arg22[%c0_120, %c0_121] : memref<64x80xbf16, #tpu.memory_space<vmem>>, vector<46x80xbf16>
    %c1_122 = arith.constant 1 : index
    %c0_123 = arith.constant 0 : index
    %175 = vector.load %arg22[%c1_122, %c0_123] : memref<64x80xbf16, #tpu.memory_space<vmem>>, vector<46x80xbf16>
    %c2_124 = arith.constant 2 : index
    %c0_125 = arith.constant 0 : index
    %176 = vector.load %arg22[%c2_124, %c0_125] : memref<64x80xbf16, #tpu.memory_space<vmem>>, vector<46x80xbf16>
    %c8 = arith.constant 8 : index
    %c0_126 = arith.constant 0 : index
    %177 = vector.load %arg22[%c8, %c0_126] : memref<64x80xbf16, #tpu.memory_space<vmem>>, vector<46x80xbf16>
    %c9_127 = arith.constant 9 : index
    %c0_128 = arith.constant 0 : index
    %178 = vector.load %arg22[%c9_127, %c0_128] : memref<64x80xbf16, #tpu.memory_space<vmem>>, vector<46x80xbf16>
    %c10 = arith.constant 10 : index
    %c0_129 = arith.constant 0 : index
    %179 = vector.load %arg22[%c10, %c0_129] : memref<64x80xbf16, #tpu.memory_space<vmem>>, vector<46x80xbf16>
    %c16 = arith.constant 16 : index
    %c0_130 = arith.constant 0 : index
    %180 = vector.load %arg22[%c16, %c0_130] : memref<64x80xbf16, #tpu.memory_space<vmem>>, vector<46x80xbf16>
    %c17_131 = arith.constant 17 : index
    %c0_132 = arith.constant 0 : index
    %181 = vector.load %arg22[%c17_131, %c0_132] : memref<64x80xbf16, #tpu.memory_space<vmem>>, vector<46x80xbf16>
    %c18_133 = arith.constant 18 : index
    %c0_134 = arith.constant 0 : index
    %182 = vector.load %arg22[%c18_133, %c0_134] : memref<64x80xbf16, #tpu.memory_space<vmem>>, vector<46x80xbf16>
    %183 = tpu.concatenate %174, %175, %176, %177, %178, %179, %180, %181, %182 in 1 : vector<46x80xbf16>, vector<46x80xbf16>, vector<46x80xbf16>, vector<46x80xbf16>, vector<46x80xbf16>, vector<46x80xbf16>, vector<46x80xbf16>, vector<46x80xbf16>, vector<46x80xbf16> -> vector<46x720xbf16>
    %c0_135 = arith.constant 0 : index
    %c0_136 = arith.constant 0 : index
    %184 = vector.load %arg14[%c0_135, %c0_136] : memref<720x192xbf16, #tpu.memory_space<vmem>>, vector<720x192xbf16>
    %cst_137 = arith.constant dense<0.000000e+00> : vector<46x192xf32>
    %185 = tpu.matmul %183, %184, %cst_137 {dimension_numbers = #tpu.dot_dimension_numbers<[1], [0], [0], [1], [0, 0, 1, 1], [], []>} : vector<46x720xbf16>, vector<720x192xbf16>, vector<46x192xf32> -> vector<46x192xf32>
    %cst_138 = arith.constant 0.000000e+00 : bf16
    %186 = vector.broadcast %cst_138 : bf16 to vector<64x192xbf16>
    %c0_139 = arith.constant 0 : index
    %c0_140 = arith.constant 0 : index
    %187 = vector.load %arg23[%c0_139, %c0_140] : memref<64x192xbf16, #tpu.memory_space<vmem>>, vector<64x192xbf16>
    tpu.vector_store %arg23[%c0_139, %c0_140], %186 {strides = array<i32>} : memref<64x192xbf16, #tpu.memory_space<vmem>>, vector<64x192xbf16>,
    %c0_141 = arith.constant 0 : index
    %c0_142 = arith.constant 0 : index
    %188 = vector.load %arg15[%c0_141, %c0_142] : memref<1x192xf32, #tpu.memory_space<vmem>>, vector<1x192xf32>
    %189 = vector.broadcast %188 : vector<1x192xf32> to vector<46x192xf32>
    %190 = arith.addf %185, %189 : vector<46x192xf32>
    %cst_143 = arith.constant 0.000000e+00 : f32
    %191 = vector.broadcast %cst_143 : f32 to vector<46x192xf32>
    %192 = arith.maximumf %190, %191 : vector<46x192xf32>
    %c0_144 = arith.constant 0 : index
    %c0_145 = arith.constant 0 : index
    %193 = vector.load %arg16[%c0_144, %c0_145] : memref<46x1xf32, #tpu.memory_space<vmem>>, vector<46x1xf32>
    %194 = vector.broadcast %193 : vector<46x1xf32> to vector<46x192xf32>
    %195 = arith.mulf %192, %194 : vector<46x192xf32>
    %196 = arith.truncf %195 : vector<46x192xf32> to vector<46x192xbf16>
    %c9_146 = arith.constant 9 : index
    %c0_147 = arith.constant 0 : index
    %197 = vector.load %arg23[%c9_146, %c0_147] : memref<64x192xbf16, #tpu.memory_space<vmem>>, vector<46x192xbf16>
    tpu.vector_store %arg23[%c9_146, %c0_147], %196 {strides = array<i32>} : memref<64x192xbf16, #tpu.memory_space<vmem>>, vector<46x192xbf16>,
    %c0_148 = arith.constant 0 : index
    %c0_149 = arith.constant 0 : index
    %198 = vector.load %arg18[%c0_148, %c0_149] : memref<2x3xf32, #tpu.memory_space<vmem>>, vector<2x3xf32>
    %c9_150 = arith.constant 9 : index
    %c0_151 = arith.constant 0 : index
    %199 = vector.load %arg23[%c9_150, %c0_151] : memref<64x192xbf16, #tpu.memory_space<vmem>>, vector<5x192xbf16>
    %200 = arith.extf %199 : vector<5x192xbf16> to vector<5x192xf32>
    %c17_152 = arith.constant 17 : index
    %c0_153 = arith.constant 0 : index
    %201 = vector.load %arg23[%c17_152, %c0_153] : memref<64x192xbf16, #tpu.memory_space<vmem>>, vector<5x192xbf16>
    %202 = arith.extf %201 : vector<5x192xbf16> to vector<5x192xf32>
    %c25_154 = arith.constant 25 : index
    %c0_155 = arith.constant 0 : index
    %203 = vector.load %arg23[%c25_154, %c0_155] : memref<64x192xbf16, #tpu.memory_space<vmem>>, vector<5x192xbf16>
    %204 = arith.extf %203 : vector<5x192xbf16> to vector<5x192xf32>
    %205 = arith.maximumf %200, %202 : vector<5x192xf32>
    %206 = arith.maximumf %205, %204 : vector<5x192xf32>
    %207 = vector.extract_strided_slice %206 {offsets = [0, 0], sizes = [3, 192], strides = [1, 1]} : vector<5x192xf32> to vector<3x192xf32>
    %208 = vector.extract_strided_slice %206 {offsets = [1, 0], sizes = [3, 192], strides = [1, 1]} : vector<5x192xf32> to vector<3x192xf32>
    %209 = arith.maximumf %207, %208 : vector<3x192xf32>
    %210 = vector.extract_strided_slice %206 {offsets = [2, 0], sizes = [3, 192], strides = [1, 1]} : vector<5x192xf32> to vector<3x192xf32>
    %211 = arith.maximumf %209, %210 : vector<3x192xf32>
    %cst_156 = arith.constant dense<0.000000e+00> : vector<2x192xf32>
    %212 = tpu.matmul %198, %211, %cst_156 {dimension_numbers = #tpu.dot_dimension_numbers<[1], [0], [0], [1], [0, 0, 1, 1], [], []>} : vector<2x3xf32>, vector<3x192xf32>, vector<2x192xf32> -> vector<2x192xf32>
    %c0_157 = arith.constant 0 : index
    %c0_158 = arith.constant 0 : index
    %c0_159 = arith.constant 0 : index
    %213 = vector.load %arg19[%c0_157, %c0_158, %c0_159] : memref<1x4x192xf32, #tpu.memory_space<vmem>>, vector<1x2x192xf32>
    %214 = vector.shape_cast %213 : vector<1x2x192xf32> to vector<2x192xf32>
    %215 = vector.shape_cast %212 : vector<2x192xf32> to vector<1x2x192xf32>
    tpu.vector_store %arg19[%c0_157, %c0_158, %c0_159], %215 {strides = array<i32>} : memref<1x4x192xf32, #tpu.memory_space<vmem>>, vector<1x2x192xf32>,
    %c25_160 = arith.constant 25 : index
    %c0_161 = arith.constant 0 : index
    %216 = vector.load %arg23[%c25_160, %c0_161] : memref<64x192xbf16, #tpu.memory_space<vmem>>, vector<5x192xbf16>
    %217 = arith.extf %216 : vector<5x192xbf16> to vector<5x192xf32>
    %c33_162 = arith.constant 33 : index
    %c0_163 = arith.constant 0 : index
    %218 = vector.load %arg23[%c33_162, %c0_163] : memref<64x192xbf16, #tpu.memory_space<vmem>>, vector<5x192xbf16>
    %219 = arith.extf %218 : vector<5x192xbf16> to vector<5x192xf32>
    %c41_164 = arith.constant 41 : index
    %c0_165 = arith.constant 0 : index
    %220 = vector.load %arg23[%c41_164, %c0_165] : memref<64x192xbf16, #tpu.memory_space<vmem>>, vector<5x192xbf16>
    %221 = arith.extf %220 : vector<5x192xbf16> to vector<5x192xf32>
    %222 = arith.maximumf %217, %219 : vector<5x192xf32>
    %223 = arith.maximumf %222, %221 : vector<5x192xf32>
    %224 = vector.extract_strided_slice %223 {offsets = [0, 0], sizes = [3, 192], strides = [1, 1]} : vector<5x192xf32> to vector<3x192xf32>
    %225 = vector.extract_strided_slice %223 {offsets = [1, 0], sizes = [3, 192], strides = [1, 1]} : vector<5x192xf32> to vector<3x192xf32>
    %226 = arith.maximumf %224, %225 : vector<3x192xf32>
    %227 = vector.extract_strided_slice %223 {offsets = [2, 0], sizes = [3, 192], strides = [1, 1]} : vector<5x192xf32> to vector<3x192xf32>
    %228 = arith.maximumf %226, %227 : vector<3x192xf32>
    %cst_166 = arith.constant dense<0.000000e+00> : vector<2x192xf32>
    %229 = tpu.matmul %198, %228, %cst_166 {dimension_numbers = #tpu.dot_dimension_numbers<[1], [0], [0], [1], [0, 0, 1, 1], [], []>} : vector<2x3xf32>, vector<3x192xf32>, vector<2x192xf32> -> vector<2x192xf32>
    %c0_167 = arith.constant 0 : index
    %c2_168 = arith.constant 2 : index
    %c0_169 = arith.constant 0 : index
    %230 = vector.load %arg19[%c0_167, %c2_168, %c0_169] : memref<1x4x192xf32, #tpu.memory_space<vmem>>, vector<1x2x192xf32>
    %231 = vector.shape_cast %230 : vector<1x2x192xf32> to vector<2x192xf32>
    %232 = vector.shape_cast %229 : vector<2x192xf32> to vector<1x2x192xf32>
    tpu.vector_store %arg19[%c0_167, %c2_168, %c0_169], %232 {strides = array<i32>} : memref<1x4x192xf32, #tpu.memory_space<vmem>>, vector<1x2x192xf32>,
    return
  }
  func.func @transform_0(%arg0: i32) -> (i32, i32, i32) {
    %c0_i32 = arith.constant 0 : i32
    %c0_i32_0 = arith.constant 0 : i32
    %c0_i32_1 = arith.constant 0 : i32
    return %arg0, %c0_i32, %c0_i32_0 : i32, i32, i32
  }
  func.func @transform_1(%arg0: i32) -> (i32, i32) {
    %c0_i32 = arith.constant 0 : i32
    %c0_i32_0 = arith.constant 0 : i32
    %c0_i32_1 = arith.constant 0 : i32
    return %c0_i32, %c0_i32_0 : i32, i32
  }
  func.func @transform_2(%arg0: i32) -> (i32, i32) {
    %c0_i32 = arith.constant 0 : i32
    %c0_i32_0 = arith.constant 0 : i32
    %c0_i32_1 = arith.constant 0 : i32
    return %c0_i32, %c0_i32_0 : i32, i32
  }
  func.func @transform_3(%arg0: i32) -> (i32, i32) {
    %c0_i32 = arith.constant 0 : i32
    %c0_i32_0 = arith.constant 0 : i32
    %c0_i32_1 = arith.constant 0 : i32
    return %c0_i32, %c0_i32_0 : i32, i32
  }
  func.func @transform_4(%arg0: i32) -> (i32, i32) {
    %c0_i32 = arith.constant 0 : i32
    %c0_i32_0 = arith.constant 0 : i32
    %c0_i32_1 = arith.constant 0 : i32
    return %c0_i32, %c0_i32_0 : i32, i32
  }
  func.func @transform_5(%arg0: i32) -> (i32, i32) {
    %c0_i32 = arith.constant 0 : i32
    %c0_i32_0 = arith.constant 0 : i32
    %c0_i32_1 = arith.constant 0 : i32
    return %c0_i32, %c0_i32_0 : i32, i32
  }
  func.func @transform_6(%arg0: i32) -> (i32, i32) {
    %c0_i32 = arith.constant 0 : i32
    %c0_i32_0 = arith.constant 0 : i32
    %c0_i32_1 = arith.constant 0 : i32
    return %c0_i32, %c0_i32_0 : i32, i32
  }
  func.func @transform_7(%arg0: i32) -> (i32, i32) {
    %c0_i32 = arith.constant 0 : i32
    %c0_i32_0 = arith.constant 0 : i32
    %c0_i32_1 = arith.constant 0 : i32
    return %c0_i32, %c0_i32_0 : i32, i32
  }
  func.func @transform_8(%arg0: i32) -> (i32, i32) {
    %c0_i32 = arith.constant 0 : i32
    %c0_i32_0 = arith.constant 0 : i32
    %c0_i32_1 = arith.constant 0 : i32
    return %c0_i32, %c0_i32_0 : i32, i32
  }
  func.func @transform_9(%arg0: i32) -> (i32, i32) {
    %c0_i32 = arith.constant 0 : i32
    %c0_i32_0 = arith.constant 0 : i32
    %c0_i32_1 = arith.constant 0 : i32
    return %c0_i32, %c0_i32_0 : i32, i32
  }
  func.func @transform_10(%arg0: i32) -> (i32, i32) {
    %c0_i32 = arith.constant 0 : i32
    %c0_i32_0 = arith.constant 0 : i32
    %c0_i32_1 = arith.constant 0 : i32
    return %c0_i32, %c0_i32_0 : i32, i32
  }
  func.func @transform_11(%arg0: i32) -> (i32, i32) {
    %c0_i32 = arith.constant 0 : i32
    %c0_i32_0 = arith.constant 0 : i32
    %c0_i32_1 = arith.constant 0 : i32
    return %c0_i32, %c0_i32_0 : i32, i32
  }
  func.func @transform_12(%arg0: i32) -> (i32, i32) {
    %c0_i32 = arith.constant 0 : i32
    %c0_i32_0 = arith.constant 0 : i32
    %c0_i32_1 = arith.constant 0 : i32
    return %c0_i32, %c0_i32_0 : i32, i32
  }
  func.func @transform_13(%arg0: i32) -> (i32, i32) {
    %c0_i32 = arith.constant 0 : i32
    %c0_i32_0 = arith.constant 0 : i32
    %c0_i32_1 = arith.constant 0 : i32
    return %c0_i32, %c0_i32_0 : i32, i32
  }
  func.func @transform_14(%arg0: i32) -> (i32, i32) {
    %c0_i32 = arith.constant 0 : i32
    %c0_i32_0 = arith.constant 0 : i32
    %c0_i32_1 = arith.constant 0 : i32
    return %c0_i32, %c0_i32_0 : i32, i32
  }
  func.func @transform_15(%arg0: i32) -> (i32, i32) {
    %c0_i32 = arith.constant 0 : i32
    %c0_i32_0 = arith.constant 0 : i32
    %c0_i32_1 = arith.constant 0 : i32
    return %c0_i32, %c0_i32_0 : i32, i32
  }
  func.func @transform_16(%arg0: i32) -> (i32, i32) {
    %c0_i32 = arith.constant 0 : i32
    %c0_i32_0 = arith.constant 0 : i32
    %c0_i32_1 = arith.constant 0 : i32
    return %c0_i32, %c0_i32_0 : i32, i32
  }
  func.func @transform_17(%arg0: i32) -> (i32, i32) {
    %c0_i32 = arith.constant 0 : i32
    %c0_i32_0 = arith.constant 0 : i32
    %c0_i32_1 = arith.constant 0 : i32
    return %c0_i32, %c0_i32_0 : i32, i32
  }
  func.func @transform_18(%arg0: i32) -> (i32, i32, i32) {
    %c0_i32 = arith.constant 0 : i32
    %c0_i32_0 = arith.constant 0 : i32
    %c0_i32_1 = arith.constant 0 : i32
    return %arg0, %c0_i32, %c0_i32_0 : i32, i32, i32
  }
}

</mosaic_0001>

<bundles_post_ra>
// kernel: stem_block_forward.1
= control target key start
LH: loop header
LB: loop body
LE: loop exit
PB: predicated region body
PF: predicated region fallthrough
CT: control target
= control target key end

     0   :  { %s9226_s27 = smov 0   ;;  %s12652_s0 = inlined_call_operand.vmem [shape: bf16[2,289,32], index: 0, kind: input, shape index: {}]   ;;  %s12653_s1 = inlined_call_operand.vmem [shape: bf16[32,32], index: 1, kind: input, shape index: {}]   ;;  %s12654_s2 = inlined_call_operand.vmem [shape: f32[1,32], index: 2, kind: input, shape index: {}]   ;;  %s12655_s3 = inlined_call_operand.vmem [shape: f32[289,1], index: 3, kind: input, shape index: {}]   ;;  %s12656_s4 = inlined_call_operand.vmem [shape: bf16[288,32], index: 4, kind: input, shape index: {}]   ;;  %s12657_s5 = inlined_call_operand.vmem [shape: f32[1,32], index: 5, kind: input, shape index: {}]   ;;  %s12658_s6 = inlined_call_operand.vmem [shape: f32[253,1], index: 6, kind: input, shape index: {}]   ;;  %s12659_s7 = inlined_call_operand.vmem [shape: bf16[288,64], index: 7, kind: input, shape index: {}]   ;;  %s12660_s8 = inlined_call_operand.vmem [shape: f32[1,64], index: 8, kind: input, shape index: {}]   ;;  %s12661_s9 = inlined_call_operand.vmem [shape: f32[253,1], index: 9, kind: input, shape index: {}]   ;;  %s12662_s10 = inlined_call_operand.vmem [shape: bf16[64,80], index: 10, kind: input, shape index: {}]   ;;  %s12663_s11 = inlined_call_operand.vmem [shape: f32[1,80], index: 11, kind: input, shape index: {}]   ;;  %s12664_s12 = inlined_call_operand.vmem [shape: f32[64,1], index: 12, kind: input, shape index: {}]   ;;  %s12665_s13 = inlined_call_operand.vmem [shape: bf16[720,192], index: 13, kind: input, shape index: {}]   ;;  %s12666_s14 = inlined_call_operand.vmem [shape: f32[1,192], index: 14, kind: input, shape index: {}]   ;;  %s12667_s15 = inlined_call_operand.vmem [shape: f32[46,1], index: 15, kind: input, shape index: {}]   ;;  %s12668_s16 = inlined_call_operand.vmem [shape: f32[6,11], index: 16, kind: input, shape index: {}]   ;;  %s12669_s17 = inlined_call_operand.vmem [shape: f32[2,3], index: 17, kind: input, shape index: {}]   ;;  %s12670_s18 = inlined_call_operand.vmem [shape: f32[2,4,192], index: 18, kind: output, shape index: {}]  }
   0x1   :  { %12686 = sst [smem:[#allocation6_spill]] %s12652_s0 }
   0x2   :  { %12687 = sst [smem:[#allocation7_spill]] %s12653_s1 }
   0x3   :  { %12688 = sst [smem:[#allocation8_spill]] %s12654_s2 }
   0x4 LB: > { %s7766_s28 = sadd.s32 4294967295, %s9117_s27   ;;  %p7770_p0 = scmp.ge.s32.totalorder %s9117_s27, 1  ;;  %s9117_s27 = sphi %s9226_s27, %s28_s27  }
   0x5   : > { %p512_p1 = scmp.lt.s32.totalorder %s9117_s27, 3 }
   0x7   : > { %p513_p2 = pnand %p7770_p0, %p512_p1 }
   0x8   : > { %s12689_s0 = sld [smem:[#allocation7_spill]] (!%p513_p2)  ;;  %v12673_v1 = vmov (!%p513_p2), 0.0   ;;  %vm9120_vm0 = vmmov (!%p513_p2), 0   ;;  %p566_p3 = scmp.lt.s32.totalorder (!%p513_p2), %s7766_s28, 1  ;;  %v1013_v3 = vld [vmem:[%s12655_s3 + $0x20] sm:$0xff] (!%p513_p2)  ;;  %v1011_v4 = vld [vmem:[%s12655_s3 + $0x10] sm:$0xff] (!%p513_p2) }
   0x9   : > { %516 = sbr.rel (%p513_p2) target bundleno = 2457 (0x999), region = 92  ;;  %8567 = vmatprep.subr.bf16.mxu0 (!%p513_p2), %v12673_v1  ;;  %8571 = vmatprep.mubr.msk.bf16.mxu0 (!%p513_p2), %vm9120_vm0, %v12673_v1  ;;  %v12675_v5 = vmov (!%p513_p2), 0   ;;  %v1014_v6 = vld [vmem:[%s12655_s3 + $0x28] sm:$0xff] (!%p513_p2)  ;;  %v1012_v7 = vld [vmem:[%s12655_s3 + $0x18] sm:$0xff] (!%p513_p2)  ;;  %s12690_s1 = sld [smem:[#allocation6_spill]] (!%p513_p2)  ;;  %vm730_vm1 = vcmask (!%p513_p2), 261120  }
   0xa   : > { %8875 = vset.pattern.permute.xlu1 (!%p513_p2), %v12675_v5  ;;  %8874 = vset.pattern.permute.xlu0 (!%p513_p2), %v12675_v5  ;;  %v1010_v8 = vld [vmem:[%s12655_s3 + $0x8] sm:$0xff] (!%p513_p2)  ;;  %v1009_v10 = vld [vmem:[%s12655_s3] sm:$0xff] (!%p513_p2)  ;;  %v1016_v11 = vld [vmem:[%s12655_s3 + $0x38] sm:$0xff] (!%p513_p2)  ;;  %vm1417_vm2 = vcmask (!%p513_p2), 257024   ;;  %vm4195_vm3 = vcmask (!%p513_p2), 519168   ;;  %vm2124_vm4 = vcmask (!%p513_p2), 523264  }
   0xb   : > { %1068 = vperm.xlu1 (!%p513_p2), %8875, %v1013_v3   ;;  %1058 = vperm.xlu0 (!%p513_p2), %8874, %v1011_v4   ;;  %v1015_v12 = vld [vmem:[%s12655_s3 + $0x30] sm:$0xff] (!%p513_p2)  ;;  %v1018_v14 = vld [vmem:[%s12655_s3 + $0x48] sm:$0xff] (!%p513_p2)  ;;  %v1017_v15 = vld [vmem:[%s12655_s3 + $0x40] sm:$0xff] (!%p513_p2)  ;;  %2358 = vst.msk [vmem:[#allocation3] sm:$0xf] (!%p513_p2), %vm1417_vm2, %v12675_v5  ;;  %vm1749_vm5 = vcmask (!%p513_p2), 1046528  }
   0xc   : > { %v1020_v16 = vld [vmem:[%s12655_s3 + $0x58] sm:$0xff] (!%p513_p2)  ;;  %v1019_v17 = vld [vmem:[%s12655_s3 + $0x50] sm:$0xff] (!%p513_p2)  ;;  %v1022_v19 = vld [vmem:[%s12655_s3 + $0x68] sm:$0xff] (!%p513_p2)  ;;  %2359 = vst.msk [vmem:[#allocation3 + $0x4] sm:$0xf] (!%p513_p2), %vm1417_vm2, %v12675_v5  ;;  %s12683_s22 = smov (!%p513_p2), 64  }
   0xd   : > { %v1021_v20 = vld [vmem:[%s12655_s3 + $0x60] sm:$0xff] (!%p513_p2)  ;;  %v1024_v21 = vld [vmem:[%s12655_s3 + $0x78] sm:$0xff] (!%p513_p2)  ;;  %v1023_v22 = vld [vmem:[%s12655_s3 + $0x70] sm:$0xff] (!%p513_p2)  ;;  %2360 = vst.msk [vmem:[#allocation3 + $0x8] sm:$0xf] (!%p513_p2), %vm1417_vm2, %v12675_v5  ;;  %s12681_s26 = smov (!%p513_p2), 32  }
   0xe   : > { %v8876_v0 = vld [vmem:[%s12689_s0] sm:$0xff] (!%p513_p2)   ;;  %v8877_v2 = vld [vmem:[%s12689_s0 + $0x8] sm:$0xff] (!%p513_p2)   ;;  %v1028_v26 = vld [vmem:[%s12655_s3 + $0x98] sm:$0xff] (!%p513_p2)  ;;  %2361 = vst.msk [vmem:[#allocation3 + $0xc] sm:$0xf] (!%p513_p2), %vm1417_vm2, %v12675_v5  ;;  %s12679_s21 = smov (!%p513_p2), 96  }
   0xf   : > { %8568 = vmatpush3.bf16.msra.mxu0 (!%p513_p2), %v8876_v0  ;;  %1073 = vperm.xlu1 (!%p513_p2), %8875, %v1014_v6   ;;  %v1026_v24 = vld [vmem:[%s12655_s3 + $0x88] sm:$0xff] (!%p513_p2)  ;;  %v1025_v25 = vld [vmem:[%s12655_s3 + $0x80] sm:$0xff] (!%p513_p2)  ;;  %v1027_v27 = vld [vmem:[%s12655_s3 + $0x90] sm:$0xff] (!%p513_p2)  ;;  %2362 = vst.msk [vmem:[#allocation3 + $0x10] sm:$0xf] (!%p513_p2), %vm1417_vm2, %v12675_v5  ;;  %vm2157_vm8 = vcmask (!%p513_p2), 785408  }
  0x10   : > { %8569 = vmatprep.subr.bf16.mxu0 %v12673_v1  ;;  %s12718_s28 = smov (!%p566_p3, %s7766_s28), 1  ;;  %1063 = vperm.xlu0 %8874, %v1012_v7   ;;  %v1030_v29 = vld [vmem:[%s12655_s3 + $0xa8] sm:$0xff]  ;;  %v1029_v30 = vld [vmem:[%s12655_s3 + $0xa0] sm:$0xff]  ;;  %v1032_v31 = vld [vmem:[%s12655_s3 + $0xb8] sm:$0xff]  ;;  %2363 = vst.msk [vmem:[#allocation3 + $0x14] sm:$0xf] %vm1417_vm2, %v12675_v5 }
  0x11   : > { %s8853_s25 = smul.u32 148, %s12718_s28  ;;  %v1031_v32 = vld [vmem:[%s12655_s3 + $0xb0] sm:$0xff]  ;;  %v1034_v34 = vld [vmem:[%s12655_s3 + $0xc8] sm:$0xff]  ;;  %v1033_v35 = vld [vmem:[%s12655_s3 + $0xc0] sm:$0xff]  ;;  %2364 = vst.msk [vmem:[#allocation3 + $0x18] sm:$0xf] %vm1417_vm2, %v12675_v5 }
  0x12   : > { %v1035_v36 = vld [vmem:[%s12655_s3 + $0xd0] sm:$0xff]  ;;  %v1036_v37 = vld [vmem:[%s12655_s3 + $0xd8] sm:$0xff]  ;;  %v1038_v39 = vld [vmem:[%s12655_s3 + $0xe8] sm:$0xff]  ;;  %2365 = vst.msk [vmem:[#allocation3 + $0x1c] sm:$0xf] %vm1417_vm2, %v12675_v5  ;;  %vm1454_vm9 = vcmask 253952  }
  0x13   : > { %8570 = vmatpush3.bf16.msra.mxu0 %v8877_v2  ;;  %s9264_s20 = scalar_lea.vmem %s12690_s1, %s8853_s25  ;;  %1053 = vperm.xlu1 %8875, %v1010_v8   ;;  %v1037_v40 = vld [vmem:[%s12655_s3 + $0xe0] sm:$0xff]  ;;  %2366 = vst.msk [vmem:[#allocation3 + $0x20] sm:$0xf] %vm1417_vm2, %v12675_v5  ;;  %2367 = vst.msk [vmem:[#allocation3 + $0x24] sm:$0xf] %vm1417_vm2, %v12675_v5  ;;  %s12691_s1 = sld [smem:[#allocation8_spill]] }
  0x14   : > { %v8878_v9 = vld [vmem:[%s9264_s20] sm:$0xff]   ;;  %1048 = vperm.xlu0 %8874, %v1009_v10   ;;  %v8879_v13 = vld [vmem:[%s9264_s20 + $0x8] sm:$0xff]   ;;  %v8880_v18 = vld [vmem:[%s9264_s20 + $0x10] sm:$0xff]   ;;  %2368 = vst.msk [vmem:[#allocation3 + $0x28] sm:$0xf] %vm1417_vm2, %v12675_v5  ;;  %vm2058_vm12 = vcmask 1045504  }
  0x15   : > { %v8881_v23 = vld [vmem:[%s9264_s20 + $0x18] sm:$0xff]   ;;  %v8882_v28 = vld [vmem:[%s9264_s20 + $0x20] sm:$0xff]   ;;  %v8883_v33 = vld [vmem:[%s9264_s20 + $0x28] sm:$0xff]   ;;  %2369 = vst.msk [vmem:[#allocation3 + $0x2c] sm:$0xf] %vm1417_vm2, %v12675_v5  ;;  %vm4232_vm13 = vcmask 516096  }
  0x16   : > { %8572 = vmatmul.mubr.msk.bf16.vlgmr.msra.gmra.mrb[0].mxu0 %vm730_vm1, %v8878_v9  ;;  %v8884_v38 = vld [vmem:[%s9264_s20 + $0x30] sm:$0xff]   ;;  %v8885_v41 = vld [vmem:[%s9264_s20 + $0x38] sm:$0xff]   ;;  %v8886_v42 = vld [vmem:[%s9264_s20 + $0x40] sm:$0xff]   ;;  %2370 = vst.msk [vmem:[#allocation3 + $0x30] sm:$0xf] %vm1417_vm2, %v12675_v5  ;;  %s12700_s29 = smov 96  }
  0x17   : > { %8575 = vmatprep.mubr.msk.bf16.mxu0 %vm9120_vm0, %v12673_v1  ;;  %1083 = vperm.xlu1 %8875, %v1016_v11   ;;  %v8887_v43 = vld [vmem:[%s9264_s20 + $0x48] sm:$0xff]   ;;  %v8888_v44 = vld [vmem:[%s9264_s20 + $0x50] sm:$0xff]   ;;  %v8889_v45 = vld [vmem:[%s9264_s20 + $0x58] sm:$0xff]   ;;  %2371 = vst.msk [vmem:[#allocation3 + $0x34] sm:$0xf] %vm1417_vm2, %v12675_v5  ;;  %vm3297_vm15 = vcmask 256000  }
  0x18   : > { %1078 = vperm.xlu0 %8874, %v1015_v12   ;;  %2372 = vst.msk [vmem:[#allocation3 + $0x38] sm:$0xf] %vm1417_vm2, %v12675_v5  ;;  %2373 = vst.msk [vmem:[#allocation3 + $0x3c] sm:$0xf] %vm1417_vm2, %v12675_v5  ;;  %v8890_v46 = vld [vmem:[%s9264_s20 + $0x60] sm:$0xff]   ;;  %v8891_v47 = vld [vmem:[%s9264_s20 + $0x68] sm:$0xff]  }
  0x19   : > { %2374 = vst.msk [vmem:[#allocation3 + $0x40] sm:$0xf] %vm1417_vm2, %v12675_v5  ;;  %2375 = vst.msk [vmem:[#allocation3 + $0x44] sm:$0xf] %vm1417_vm2, %v12675_v5  ;;  %v8892_v48 = vld [vmem:[%s9264_s20 + $0x70] sm:$0xff]   ;;  %v8895_v49 = vld [vmem:[%s9264_s20 + $0x78] sm:$0xff]  }
  0x1a   : > { %2376 = vst.msk [vmem:[#allocation3 + $0x48] sm:$0xf] %vm1417_vm2, %v12675_v5  ;;  %2377 = vst.msk [vmem:[#allocation3 + $0x4c] sm:$0xf] %vm1417_vm2, %v12675_v5  ;;  %v8896_v50 = vld [vmem:[%s9264_s20 + $0x80] sm:$0xff]   ;;  %v8897_v51 = vld [vmem:[%s9264_s20 + $0x88] sm:$0xff]  }
  0x1b   : > { %1093 = vperm.xlu1 %8875, %v1018_v14   ;;  %2378 = vst.msk [vmem:[#allocation3 + $0x50] sm:$0xf] %vm1417_vm2, %v12675_v5  ;;  %2379 = vst.msk [vmem:[#allocation3 + $0x54] sm:$0xf] %vm1417_vm2, %v12675_v5  ;;  %v9495_v56 = vld [vmem:[%s12691_s1] ss:$0 sm:$0xff] }
  0x1c   : > { %1088 = vperm.xlu0 %8874, %v1017_v15   ;;  %2380 = vst.msk [vmem:[#allocation3 + $0x58] sm:$0xf] %vm1417_vm2, %v12675_v5  ;;  %2381 = vst.msk [vmem:[#allocation3 + $0x5c] sm:$0xf] %vm1417_vm2, %v12675_v5  ;;  %v8900_v14 = vld [vmem:[%s12656_s4] sm:$0xff]   ;;  %s9127_s0 = smov 80  }
  0x1d   : > { %2382 = vst.msk [vmem:[#allocation3 + $0x60] sm:$0xf] %vm1417_vm2, %v12675_v5  ;;  %2383 = vst.msk [vmem:[#allocation3 + $0x64] sm:$0xf] %vm1417_vm2, %v12675_v5  ;;  %vm1583_vm6 = vsmask.f32 7424 }
  0x1e   : > { %8576 = vmatmul.mubr.msk.bf16.gmra.mrb[4].mxu0 %vm730_vm1, %v8879_v13  ;;  %2384 = vst.msk [vmem:[#allocation3 + $0x68] sm:$0xf] %vm1417_vm2, %v12675_v5  ;;  %2385 = vst.msk [vmem:[#allocation3 + $0x6c] sm:$0xf] %vm1417_vm2, %v12675_v5  ;;  %v8899_v13 = vld [vmem:[%s12656_s4 + $0x40] sm:$0xff]   ;;  %s9129_s30 = smov 16  }
  0x1f   : > { %8579 = vmatprep.mubr.msk.bf16.mxu0 %vm9120_vm0, %v12673_v1  ;;  %1103 = vperm.xlu1 %8875, %v1020_v16   ;;  %2386 = vst.msk [vmem:[#allocation3 + $0x70] sm:$0xf] %vm1417_vm2, %v12675_v5  ;;  %2387 = vst.msk [vmem:[#allocation3 + $0x74] sm:$0xf] %vm1417_vm2, %v12675_v5  ;;  %vm1876_vm7 = vsmask.f32 6400 }
  0x20   : > { %1098 = vperm.xlu0 %8874, %v1019_v17   ;;  %2388 = vst.msk [vmem:[#allocation3 + $0x78] sm:$0xf] %vm1417_vm2, %v12675_v5  ;;  %2389 = vst.msk [vmem:[#allocation3 + $0x7c] sm:$0xf] %vm1417_vm2, %v12675_v5  ;;  %8281 = vmatprep.subr.bf16.mxu0 %v8899_v13  ;;  %vm1455_vm10 = vsmask.f32 256 }
  0x21   : > { %2390 = vst.msk [vmem:[#allocation3 + $0x80] sm:$0xf] %vm1417_vm2, %v12675_v5  ;;  %2391 = vst.msk [vmem:[#allocation3 + $0x84] sm:$0xf] %vm1417_vm2, %v12675_v5  ;;  %8801 = vmatprep.subr.bf16.mxu1 %v8899_v13  ;;  %8282 = vmatpush3.bf16.msra.mxu0 %v8900_v14  ;;  %s12710_s19 = smov 64  }
  0x22   : > { %2392 = vst.msk [vmem:[#allocation3 + $0x88] sm:$0xf] %vm1417_vm2, %v12675_v5  ;;  %2393 = vst.msk [vmem:[#allocation3 + $0x8c] sm:$0xf] %vm1417_vm2, %v12675_v5  ;;  %8809 = vmatpush3.bf16.msra.mxu1 %v8900_v14 }
  0x23   : > { %1113 = vperm.xlu1 %8875, %v1022_v19   ;;  %v8898_v52 = vld [vmem:[%s9264_s20 + $0x90] ss:$0 sps:$4 sm:$0x11]   ;;  %5241 = vst.msk [vmem:[#allocation5] sm:$0xff] %vm2124_vm4, %v12675_v5  ;;  %5242 = vst.msk [vmem:[#allocation5 + $0x10] sm:$0xff] %vm2124_vm4, %v12675_v5 }
  0x24   : > { %1108 = vperm.xlu0 %8874, %v1021_v20   ;;  %5243 = vst.msk [vmem:[#allocation5 + $0x20] sm:$0xff] %vm2124_vm4, %v12675_v5  ;;  %5244 = vst.msk [vmem:[#allocation5 + $0x30] sm:$0xff] %vm2124_vm4, %v12675_v5 }
  0x25   : > { %6633 = vst.msk [vmem:[#allocation5 + $0x8] sm:$0xff] %vm2124_vm4, %v12675_v5  ;;  %6635 = vst.msk [vmem:[#allocation5 + $0x18] sm:$0xff] %vm2124_vm4, %v12675_v5 }
  0x26   : > { %8580 = vmatmul.mubr.msk.bf16.gmra.mrb[8].mxu0 %vm730_vm1, %v8880_v18  ;;  %6637 = vst.msk [vmem:[#allocation5 + $0x28] sm:$0xff] %vm2124_vm4, %v12675_v5  ;;  %6639 = vst.msk [vmem:[#allocation5 + $0x38] sm:$0xff] %vm2124_vm4, %v12675_v5 }
  0x27   : > { %8583 = vmatprep.mubr.msk.bf16.mxu0 %vm9120_vm0, %v12673_v1  ;;  %1123 = vperm.xlu1 %8875, %v1024_v21   ;;  %v8901_v21 = vld [vmem:[%s12656_s4 + $0x48] sm:$0xff]   ;;  %vm10092_vm11 = vmand %vm1454_vm9, %vm1455_vm10  ;;  %vm3298_vm9 = vsmask.f32 2304 }
  0x28   : > { %1118 = vperm.xlu0 %8874, %v1023_v22   ;;  %v8902_v22 = vld [vmem:[%s12656_s4 + $0x8] sm:$0xff]   ;;  %8283 = vmatprep.subr.bf16.mxu0 %v8901_v21  ;;  %vm10294_vm14 = vmand %vm4232_vm13, %vm1455_vm10 }
  0x29   : > { %8802 = vmatprep.subr.bf16.mxu1 %v8901_v21  ;;  %8284 = vmatpush3.bf16.msra.mxu0 %v8902_v22  ;;  %vm3299_vm10 = vmand %vm3297_vm15, %vm3298_vm9  ;;  %vm9126_vm15 = vmmov 1  }
  0x2a   : > { %8810 = vmatpush3.bf16.msra.mxu1 %v8902_v22 }
  0x2b   : > { %1133 = vperm.xlu1 %8875, %v1026_v24  }
  0x2c   : > { %1128 = vperm.xlu0 %8874, %v1025_v25  }
  0x2e   : > { %8584 = vmatmul.mubr.msk.bf16.gmra.mrb[12].mxu0 %vm730_vm1, %v8881_v23 }
  0x2f   : > { %8587 = vmatprep.mubr.msk.bf16.mxu0 %vm9120_vm0, %v12673_v1  ;;  %1143 = vperm.xlu1 %8875, %v1028_v26  }
  0x30   : > { %1138 = vperm.xlu0 %8874, %v1027_v27  }
  0x33   : > { %1153 = vperm.xlu1 %8875, %v1030_v29  }
  0x34   : > { %1148 = vperm.xlu0 %8874, %v1029_v30  }
  0x36   : > { %8588 = vmatmul.mubr.msk.bf16.gmra.mrb[16].mxu0 %vm730_vm1, %v8882_v28 }
  0x37   : > { %8591 = vmatprep.mubr.msk.bf16.mxu0 %vm9120_vm0, %v12673_v1  ;;  %1163 = vperm.xlu1 %8875, %v1032_v31   ;;  %v8903_v31 = vld [vmem:[%s12656_s4 + $0x50] sm:$0xff]  }
  0x38   : > { %1158 = vperm.xlu0 %8874, %v1031_v32   ;;  %v8904_v32 = vld [vmem:[%s12656_s4 + $0x10] sm:$0xff]   ;;  %8285 = vmatprep.subr.bf16.mxu0 %v8903_v31 }
  0x39   : > { %8803 = vmatprep.subr.bf16.mxu1 %v8903_v31  ;;  %8286 = vmatpush3.bf16.msra.mxu0 %v8904_v32 }
  0x3a   : > { %8811 = vmatpush3.bf16.msra.mxu1 %v8904_v32 }
  0x3b   : > { %1173 = vperm.xlu1 %8875, %v1034_v34  }
  0x3c   : > { %1168 = vperm.xlu0 %8874, %v1033_v35  }
  0x3e   : > { %8592 = vmatmul.mubr.msk.bf16.gmra.mrb[20].mxu0 %vm730_vm1, %v8883_v33 }
  0x3f   : > { %8595 = vmatprep.mubr.msk.bf16.mxu0 %vm9120_vm0, %v12673_v1  ;;  %1178 = vperm.xlu1 %8875, %v1035_v36  }
  0x40   : > { %1183 = vperm.xlu0 %8874, %v1036_v37  }
  0x43   : > { %1193 = vperm.xlu1 %8875, %v1038_v39  }
  0x44   : > { %1188 = vperm.xlu0 %8874, %v1037_v40  }
  0x46   : > { %8596 = vmatmul.mubr.msk.bf16.gmra.mrb[24].mxu0 %vm730_vm1, %v8884_v38 }
  0x47   : > { %8599 = vmatprep.mubr.msk.bf16.mxu0 %vm9120_vm0, %v12673_v1 }
  0x4e   : > { %8600 = vmatmul.mubr.msk.bf16.gmra.mrb[28].mxu0 %vm730_vm1, %v8885_v41  ;;  %v8905_v41 = vld [vmem:[%s12656_s4 + $0x58] sm:$0xff]  }
  0x4f   : > { %8603 = vmatprep.mubr.msk.bf16.mxu0 %vm9120_vm0, %v12673_v1  ;;  %8287 = vmatprep.subr.bf16.mxu0 %v8905_v41 }
  0x50   : > { %8804 = vmatprep.subr.bf16.mxu1 %v8905_v41 }
  0x56   : > { %8604 = vmatmul.mubr.msk.bf16.gmra.mrb[32].mxu0 %vm730_vm1, %v8886_v42  ;;  %v8906_v42 = vld [vmem:[%s12656_s4 + $0x18] sm:$0xff]  }
  0x57   : > { %8607 = vmatprep.mubr.msk.bf16.mxu0 %vm9120_vm0, %v12673_v1  ;;  %8288 = vmatpush3.bf16.msra.mxu0 %v8906_v42 }
  0x58   : > { %8812 = vmatpush3.bf16.msra.mxu1 %v8906_v42 }
  0x5e   : > { %8608 = vmatmul.mubr.msk.bf16.gmra.mrb[36].mxu0 %vm730_vm1, %v8887_v43 }
  0x5f   : > { %8611 = vmatprep.mubr.msk.bf16.mxu0 %vm9120_vm0, %v12673_v1 }
  0x66   : > { %8612 = vmatmul.mubr.msk.bf16.gmra.mrb[40].mxu0 %vm730_vm1, %v8888_v44 }
  0x67   : > { %8615 = vmatprep.mubr.msk.bf16.mxu0 %vm9120_vm0, %v12673_v1 }
  0x6e   : > { %8616 = vmatmul.mubr.msk.bf16.gmra.mrb[44].mxu0 %vm730_vm1, %v8889_v45 }
  0x6f   : > { %8619 = vmatprep.mubr.msk.bf16.mxu0 %vm9120_vm0, %v12673_v1 }
  0x76   : > { %8620 = vmatmul.mubr.msk.bf16.gmra.mrb[48].mxu0 %vm730_vm1, %v8890_v46 }
  0x77   : > { %8623 = vmatprep.mubr.msk.bf16.mxu0 %vm9120_vm0, %v12673_v1 }
  0x7e   : > { %8624 = vmatmul.mubr.msk.bf16.gmra.mrb[52].mxu0 %vm730_vm1, %v8891_v47 }
  0x7f   : > { %8627 = vmatprep.mubr.msk.bf16.mxu0 %vm9120_vm0, %v12673_v1 }
  0x86   : > { %8628 = vmatmul.mubr.msk.bf16.gmra.mrb[56].mxu0 %vm730_vm1, %v8892_v48 }
  0x87   : > { %8631 = vmatprep.mubr.msk.bf16.mxu0 %vm9120_vm0, %v12673_v1 }
  0x8a   : > { %v1059_v53 = vpop.permute.xlu0 %1058  ;;  %v9490_v54 = vpop.permute.xlu1 %1068 }
  0x8e   : > { %8632 = vmatmul.mubr.msk.bf16.gmra.mrb[60].mxu0 %vm730_vm1, %v8895_v49  ;;  %v9497_v57 = vpop.permute.xlu1 %1073 }
  0x8f   : > { %8635 = vmatprep.mubr.msk.bf16.mxu0 %vm9120_vm0, %v12673_v1  ;;  %v1064_v55 = vpop.permute.xlu0 %1063 }
  0x92   : > { %v1054_v6 = vpop.permute.xlu1 %1053 }
  0x93   : > { %v1049_v2 = vpop.permute.xlu0 %1048 }
  0x96   : > { %8636 = vmatmul.mubr.msk.bf16.gmra.mrb[64].mxu0 %vm730_vm1, %v8896_v50 }
  0x97   : > { %8639 = vmatprep.mubr.msk.bf16.mxu0 %vm9120_vm0, %v12673_v1 }
  0x9e   : > { %8640 = vmatmul.mubr.msk.bf16.gmra.mrb[68].mxu0 %vm730_vm1, %v8897_v51 }
  0x9f   : > { %8643 = vmatprep.mubr.msk.bf16.mxu0 %vm9120_vm0, %v12673_v1 }
  0xa6   : > { %8644 = vmatmul.mubr.msk.bf16.gmra.mrb[72].mxu0 %vm730_vm1, %v8898_v52 }
  0xe9   : > { %v822_v58 = vpop.f32.mrb[0].mxu0 }
  0xea   : > { %v823_v59 = vadd.f32 %v9495_v56, %v822_v58  ;;  %v8573_v60 = vpop.f32.mrb[1].mxu0 }
  0xeb   : > { %v825_v61 = vpop.f32.mrb[2].mxu0 }
  0xec   : > { %v972_v62 = vmax.f32 %v823_v59, 0.0  ;;  %v826_v63 = vadd.f32 %v9495_v56, %v825_v61  ;;  %v8574_v0 = vpop.f32.mrb[3].mxu0 }
  0xee   : > { %v1231_v3 = vmul.f32 %v1049_v2, %v972_v62  ;;  %v973_v4 = vmax.f32 %v826_v63, 0.0  ;;  %v1079_v62 = vpop.permute.xlu0 %1078 }
  0xf0   : > { %v8159_v7 = vpack.c.bf16 %v1231_v3, %v1231_v3  ;;  %v1232_v8 = vmul.f32 %v1054_v6, %v973_v4 }
  0xf1   : > { %v830_v9 = vpop.f32.mrb[4].mxu0 }
  0xf2   : > { %1418 = vst.msk [vmem:[#allocation2] sm:$0xf] %vm1417_vm2, %v8159_v7  ;;  %v8160_v10 = vpack.c.bf16 %v1232_v8, %v1232_v8  ;;  %v831_v11 = vadd.f32 %v9495_v56, %v830_v9  ;;  %v8577_v12 = vpop.f32.mrb[5].mxu0  ;;  %v8909_v8 = vld [vmem:[%s12656_s4 + $0x68] sm:$0xff]  }
  0xf3   : > { %v833_v15 = vpop.f32.mrb[6].mxu0  ;;  %v8910_v9 = vld [vmem:[%s12656_s4 + $0x28] sm:$0xff]  }
  0xf4   : > { %1419 = vst.msk [vmem:[#allocation2 + $0x4] sm:$0xf] %vm1417_vm2, %v8160_v10  ;;  %v974_v16 = vmax.f32 %v831_v11, 0.0  ;;  %v834_v17 = vadd.f32 %v9495_v56, %v833_v15  ;;  %v8578_v18 = vpop.f32.mrb[7].mxu0  ;;  %v1084_v10 = vpop.permute.xlu1 %1083 }
  0xf6   : > { %v1233_v19 = vmul.f32 %v1059_v53, %v974_v16  ;;  %v975_v20 = vmax.f32 %v834_v17, 0.0  ;;  %v8907_v53 = vld [vmem:[%s12656_s4 + $0x60] sm:$0xff]  }
  0xf7   : > { %8289 = vmatprep.subr.bf16.mxu0 %v8907_v53  ;;  %8805 = vmatprep.subr.bf16.mxu1 %v8907_v53 }
  0xf8   : > { %v8161_v23 = vpack.c.bf16 %v1233_v19, %v1233_v19  ;;  %v1234_v24 = vmul.f32 %v1064_v55, %v975_v20 }
  0xf9   : > { %v838_v25 = vpop.f32.mrb[8].mxu0  ;;  %v1460_v26 = vld [vmem:[#allocation2] sm:$0xf] }
  0xfa   : > { %v9517_v27 = vld [vmem:[#allocation2] sm:$0xe]  ;;  %1420 = vst.msk [vmem:[#allocation2 + $0x8] sm:$0xf] %vm1417_vm2, %v8161_v23  ;;  %v8162_v28 = vpack.c.bf16 %v1234_v24, %v1234_v24  ;;  %v839_v29 = vadd.f32 %v9495_v56, %v838_v25  ;;  %v8581_v30 = vpop.f32.mrb[9].mxu0  ;;  %v8911_v25 = vld [vmem:[%s12656_s4 + $0x70] sm:$0xff]  }
  0xfb   : > { %4196 = vst.msk [vmem:[#allocation2] sm:$0xf] %vm4195_vm3, %v12675_v5  ;;  %v841_v33 = vpop.f32.mrb[10].mxu0  ;;  %v1461_v34 = vld [vmem:[#allocation2 + $0x4] sm:$0xf] }
  0xfc   : > { %1421 = vst.msk [vmem:[#allocation2 + $0xc] sm:$0xf] %vm1417_vm2, %v8162_v28  ;;  %v976_v35 = vmax.f32 %v839_v29, 0.0  ;;  %v842_v36 = vadd.f32 %v9495_v56, %v841_v33  ;;  %v8582_v37 = vpop.f32.mrb[11].mxu0  ;;  %v9533_v38 = vcombine.low %v1460_v26, %v1461_v34  ;;  %v7868_v48 = vcombine.low %v9517_v27, %v1461_v34  ;;  %v8912_v28 = vld [vmem:[%s12656_s4 + $0x30] sm:$0xff]  }
  0xfd   : > { %4197 = vst.msk [vmem:[#allocation2 + $0x4] sm:$0xf] %vm4195_vm3, %v12675_v5 }
  0xfe   : > { %v1235_v39 = vmul.f32 %v9490_v54, %v976_v35  ;;  %v977_v40 = vmax.f32 %v842_v36, 0.0  ;;  %v1587_v49 = vshll.u32 %v9533_v38, 16  ;;  %v8908_v54 = vld [vmem:[%s12656_s4 + $0x20] sm:$0xff]   ;;  %v1750_v63 = vrot.slane %v7868_v48, 1  ;;  %v1089_v35 = vpop.permute.xlu0 %1088 }
  0xff   : > { %8290 = vmatpush3.bf16.msra.mxu0 %v8908_v54  ;;  %8813 = vmatpush3.bf16.msra.mxu1 %v8908_v54  ;;  %v1585_v11 = vshrl.u32 %v9533_v38, 16 }
 0x100   : > { %v8163_v43 = vpack.c.bf16 %v1235_v39, %v1235_v39  ;;  %v1236_v44 = vmul.f32 %v9497_v57, %v977_v40  ;;  %v1589_v0 = vrot.slane %v1587_v49, 1  ;;  %8291 = vmatprep.subr.bf16.mxu0 %v8909_v8  ;;  %8806 = vmatprep.subr.bf16.mxu1 %v8909_v8 }
 0x101   : > { %v1462_v45 = vld [vmem:[#allocation2 + $0x8] sm:$0xf]  ;;  %v846_v47 = vpop.f32.mrb[12].mxu0 }
 0x102   : > { %v1496_v46 = vld [vmem:[#allocation2 + $0x8] sm:$0xe]  ;;  %1422 = vst.msk [vmem:[#allocation2 + $0x10] sm:$0xf] %vm1417_vm2, %v8163_v43  ;;  %v8164_v50 = vpack.c.bf16 %v1236_v44, %v1236_v44  ;;  %v847_v51 = vadd.f32 %v9495_v56, %v846_v47  ;;  %v8585_v52 = vpop.f32.mrb[13].mxu0  ;;  %v1590_v22 = vor.u32 %v1589_v0, %v1585_v11  ;;  %v8913_v43 = vld [vmem:[%s12656_s4 + $0x78] sm:$0xff]  }
 0x103   : > { %4198 = vst.msk [vmem:[#allocation2 + $0x8] sm:$0xf] %vm4195_vm3, %v12675_v5  ;;  %v1463_v55 = vld [vmem:[#allocation2 + $0xc] sm:$0xf]  ;;  %v849_v57 = vpop.f32.mrb[14].mxu0  ;;  %8292 = vmatpush3.bf16.msra.mxu0 %v8910_v9  ;;  %8814 = vmatpush3.bf16.msra.mxu1 %v8910_v9  ;;  %v8914_v44 = vld [vmem:[%s12656_s4 + $0x38] sm:$0xff]  }
 0x104   : > { %4199 = vst.msk [vmem:[#allocation2 + $0xc] sm:$0xf] %vm4195_vm3, %v12675_v5  ;;  %v978_v58 = vmax.f32 %v847_v51, 0.0  ;;  %v850_v59 = vadd.f32 %v9495_v56, %v849_v57  ;;  %v8586_v60 = vpop.f32.mrb[15].mxu0  ;;  %v9575_v61 = vcombine.low %v1462_v45, %v1463_v55  ;;  %v9577_v2 = vcombine.low %v1496_v46, %v1463_v55  ;;  %8293 = vmatprep.subr.bf16.mxu0 %v8911_v25  ;;  %v1094_v45 = vpop.permute.xlu1 %1093 }
 0x105   : > { %1423 = vst.msk [vmem:[#allocation2 + $0x14] sm:$0xf] %vm1417_vm2, %v8164_v50  ;;  %8807 = vmatprep.subr.bf16.mxu1 %v8911_v25 }
 0x106   : > { %v1237_v3 = vmul.f32 %v1079_v62, %v978_v58  ;;  %v979_v4 = vmax.f32 %v850_v59, 0.0  ;;  %v1751_v6 = vrot.slane %v9575_v61, 1  ;;  %v1592_v7 = vshll.u32 %v9575_v61, 16 }
 0x107   : > { %v1878_v17 = vshrl.u32 %v9577_v2, 16  ;;  %v1881_v18 = vshll.u32 %v9577_v2, 16  ;;  %v1596_v36 = vshrl.u32 %v9575_v61, 16  ;;  %v1872_v37 = vrot.slane %v9577_v2, 1  ;;  %8294 = vmatpush3.bf16.msra.mxu0 %v8912_v28  ;;  %8815 = vmatpush3.bf16.msra.mxu1 %v8912_v28 }
 0x108   : > { %v8165_v12 = vpack.c.bf16 %v1237_v3, %v1237_v3  ;;  %v1238_v13 = vmul.f32 %v1084_v10, %v979_v4  ;;  %v1752_v14 = vsel %vm1749_vm5, %v1750_v63, %v1751_v6  ;;  %v9591_v15 = vrot.slane %v1592_v7, 1  ;;  %8295 = vmatprep.subr.bf16.mxu0 %v8913_v43  ;;  %8808 = vmatprep.subr.bf16.mxu1 %v8913_v43 }
 0x109   : > { %1781 = vrot.lane.b32.xlu1 %v1752_v14, %s12683_s22  ;;  %v854_v16 = vpop.f32.mrb[16].mxu0  ;;  %v1464_v23 = vld [vmem:[#allocation2 + $0x10] sm:$0xf]  ;;  %v1880_v47 = vrot.slane %v1878_v17, 1  ;;  %v1883_v48 = vrot.slane %v1881_v18, 2  ;;  %v1099_v14 = vpop.permute.xlu0 %1098 }
 0x10a   : > { %1424 = vst.msk [vmem:[#allocation2 + $0x18] sm:$0xf] %vm1417_vm2, %v8165_v12  ;;  %v8166_v19 = vpack.c.bf16 %v1238_v13, %v1238_v13  ;;  %v855_v20 = vadd.f32 %v9495_v56, %v854_v16  ;;  %v8589_v21 = vpop.f32.mrb[17].mxu0  ;;  %v1498_v24 = vld [vmem:[#allocation2 + $0x10] sm:$0xe]  ;;  %v1595_v32 = vsel %vm1583_vm6, %v1590_v22, %v9591_v15  ;;  %v1598_v0 = vor.u32 %v1596_v36, %v9591_v15 }
 0x10b   : > { %v857_v27 = vpop.f32.mrb[18].mxu0  ;;  %v9606_v29 = vld [vmem:[#allocation2 + $0x10] sm:$0xc]  ;;  %8296 = vmatpush3.bf16.msra.mxu0 %v8914_v44  ;;  %8816 = vmatpush3.bf16.msra.mxu1 %v8914_v44  ;;  %v1884_v4 = vor.u32 %v1883_v48, %v1880_v47  ;;  %v1104_v21 = vpop.permute.xlu1 %1103 }
 0x10c   : > { %v9601_v26 = vld [vmem:[#allocation2 + $0x14] sm:$0xf]  ;;  %1425 = vst.msk [vmem:[#allocation2 + $0x1c] sm:$0xf] %vm1417_vm2, %v8166_v19  ;;  %v980_v30 = vmax.f32 %v855_v20, 0.0  ;;  %v858_v31 = vadd.f32 %v9495_v56, %v857_v27  ;;  %v8590_v33 = vpop.f32.mrb[19].mxu0 }
 0x10d   : > { %4201 = vst.msk [vmem:[#allocation2 + $0x14] sm:$0xf] %vm4195_vm3, %v12675_v5  ;;  %v9615_v34 = vcombine.low %v1464_v23, %v9601_v26  ;;  %4200 = vst.msk [vmem:[#allocation2 + $0x10] sm:$0xf] %vm4195_vm3, %v12675_v5  ;;  %1711 = vrot.lane.b32.xlu1 %v1595_v32, %s12681_s26  ;;  %v7873_v49 = vcombine.low %v1498_v24, %v9601_v26 }
 0x10e   : > { %v1239_v39 = vmul.f32 %v1089_v35, %v980_v30  ;;  %v981_v40 = vmax.f32 %v858_v31, 0.0 }
 0x10f   : > { %v9623_v41 = vrot.slane %v9615_v34, 1  ;;  %v1600_v42 = vshll.u32 %v9615_v34, 16  ;;  %v1604_v46 = vshrl.u32 %v9615_v34, 16  ;;  %v2003_v7 = vshrl.u32 %v7873_v49, 16 }
 0x110   : > { %v8167_v50 = vpack.c.bf16 %v1239_v39, %v1239_v39  ;;  %v1240_v51 = vmul.f32 %v1094_v45, %v981_v40  ;;  %v2006_v8 = vshll.u32 %v7873_v49, 16  ;;  %v1990_v16 = vrot.slane %v7873_v49, 1 }
 0x111   : > { %v1754_v52 = vsel %vm1749_vm5, %v1751_v6, %v9623_v41  ;;  %v1886_v53 = vrot.slane %v1600_v42, 2  ;;  %v1466_v54 = vld [vmem:[#allocation2 + $0x18] sm:$0xf]  ;;  %v862_v55 = vpop.f32.mrb[20].mxu0  ;;  %v1885_v57 = vrot.slane %v1604_v46, 1  ;;  %v9641_v58 = vrot.slane %v1600_v42, 1 }
 0x112   : > { %1783 = vrot.lane.b32.xlu1 %v1754_v52, %s12683_s22  ;;  %v9645_v59 = vsel %vm1749_vm5, %v1872_v37, %v9623_v41  ;;  %4202 = vst.msk [vmem:[#allocation2 + $0x18] sm:$0xf] %vm4195_vm3, %v12675_v5  ;;  %v8168_v60 = vpack.c.bf16 %v1240_v51, %v1240_v51  ;;  %v863_v62 = vadd.f32 %v9495_v56, %v862_v55  ;;  %v8593_v63 = vpop.f32.mrb[21].mxu0  ;;  %v2005_v23 = vrot.slane %v2003_v7, 1  ;;  %v1109_v51 = vpop.permute.xlu0 %1108 }
 0x113   : > { %1426 = vst.msk [vmem:[#allocation2 + $0x20] sm:$0xf] %vm1417_vm2, %v8167_v50  ;;  %v1467_v2 = vld [vmem:[#allocation2 + $0x1c] sm:$0xf]  ;;  %v865_v3 = vpop.f32.mrb[22].mxu0  ;;  %v9652_v6 = vor.u32 %v1886_v53, %v1885_v57  ;;  %v1603_v12 = vsel %vm1583_vm6, %v1598_v0, %v9641_v58  ;;  %v2008_v24 = vrot.slane %v2006_v8, 2  ;;  %v1114_v57 = vpop.permute.xlu1 %1113 }
 0x114   : > { %v9654_v9 = vcombine.low %v1466_v54, %v1467_v2  ;;  %4203 = vst.msk [vmem:[#allocation2 + $0x1c] sm:$0xf] %vm4195_vm3, %v12675_v5  ;;  %v982_v10 = vmax.f32 %v863_v62, 0.0  ;;  %v866_v11 = vadd.f32 %v9495_v56, %v865_v3  ;;  %v8594_v13 = vpop.f32.mrb[23].mxu0  ;;  %v1606_v54 = vor.u32 %v1604_v46, %v9641_v58 }
 0x115   : > { %1427 = vst.msk [vmem:[#allocation2 + $0x24] sm:$0xf] %vm1417_vm2, %v8168_v60  ;;  %v1888_v15 = vsel %vm1876_vm7, %v1884_v4, %v9652_v6  ;;  %v2009_v44 = vor.u32 %v2008_v24, %v2005_v23 }
 0x116   : > { %1834 = vrot.lane.b32.xlu1 %v1603_v12, %s12679_s21  ;;  %v1241_v17 = vmul.f32 %v1099_v14, %v982_v10  ;;  %v983_v18 = vmax.f32 %v866_v11, 0.0  ;;  %1950 = vrot.lane.b32.xlu0 %v1888_v15, %s12681_s26  ;;  %v9667_v19 = vrot.slane %v9654_v9, 1  ;;  %v1608_v20 = vshll.u32 %v9654_v9, 16 }
 0x117   : > { %v1612_v22 = vshrl.u32 %v9654_v9, 16 }
 0x118   : > { %v8169_v25 = vpack.c.bf16 %v1241_v17, %v1241_v17  ;;  %v1242_v27 = vmul.f32 %v1104_v21, %v983_v18  ;;  %v1991_v28 = vsel %vm1749_vm5, %v1990_v16, %v9667_v19  ;;  %v1890_v33 = vrot.slane %v1608_v20, 2  ;;  %v1119_v18 = vpop.permute.xlu0 %1118 }
 0x119   : > { %v870_v31 = vpop.f32.mrb[24].mxu0  ;;  %v1889_v32 = vrot.slane %v1612_v22, 1  ;;  %v9684_v42 = vsel %vm1749_vm5, %v9623_v41, %v9667_v19  ;;  %v1610_v50 = vrot.slane %v1608_v20, 1 }
 0x11a   : > { %v1468_v30 = vld [vmem:[#allocation2 + $0x20] sm:$0xf]  ;;  %1713 = vrot.lane.b32.xlu1 %v1603_v12, %s12681_s26  ;;  %1428 = vst.msk [vmem:[#allocation2 + $0x28] sm:$0xf] %vm1417_vm2, %v8169_v25  ;;  %v8170_v35 = vpack.c.bf16 %v1242_v27, %v1242_v27  ;;  %1994 = vrot.lane.b32.xlu0 %v1991_v28, %s12683_s22  ;;  %v871_v36 = vadd.f32 %v9495_v56, %v870_v31  ;;  %v8597_v37 = vpop.f32.mrb[25].mxu0  ;;  %v1124_v27 = vpop.permute.xlu1 %1123 }
 0x11b   : > { %4204 = vst.msk [vmem:[#allocation2 + $0x20] sm:$0xf] %vm4195_vm3, %v12675_v5  ;;  %v873_v40 = vpop.f32.mrb[26].mxu0  ;;  %v1891_v43 = vor.u32 %v1890_v33, %v1889_v32  ;;  %v1611_v0 = vsel %vm1583_vm6, %v1606_v54, %v1610_v50  ;;  %v1614_v25 = vor.u32 %v1612_v22, %v1610_v50 }
 0x11c   : > { %v1469_v39 = vld [vmem:[#allocation2 + $0x24] sm:$0xf]  ;;  %1429 = vst.msk [vmem:[#allocation2 + $0x2c] sm:$0xf] %vm1417_vm2, %v8170_v35  ;;  %v984_v47 = vmax.f32 %v871_v36, 0.0  ;;  %v874_v48 = vadd.f32 %v9495_v56, %v873_v40  ;;  %v8598_v49 = vpop.f32.mrb[27].mxu0  ;;  %v1129_v50 = vpop.permute.xlu0 %1128 }
 0x11d   : > { %v9686_v45 = vcombine.low %v1468_v30, %v1469_v39  ;;  %4205 = vst.msk [vmem:[#allocation2 + $0x24] sm:$0xf] %vm4195_vm3, %v12675_v5  ;;  %v2010_v41 = vsel %vm1876_vm7, %v2009_v44, %v1891_v43  ;;  %v1892_v3 = vsel %vm1876_vm7, %v9652_v6, %v1891_v43 }
 0x11e   : > { %1785 = vrot.lane.b32.xlu1 %v9684_v42, %s12683_s22  ;;  %v1243_v52 = vmul.f32 %v1109_v51, %v984_v47  ;;  %v985_v53 = vmax.f32 %v874_v48, 0.0  ;;  %2020 = vrot.lane.b32.xlu0 %v2010_v41, %s12679_s21 }
 0x11f   : > { %v1616_v55 = vshll.u32 %v9686_v45, 16  ;;  %v1620_v60 = vshrl.u32 %v9686_v45, 16  ;;  %v1757_v7 = vrot.slane %v9686_v45, 1 }
 0x120   : > { %v8171_v62 = vpack.c.bf16 %v1243_v52, %v1243_v52  ;;  %v1244_v63 = vmul.f32 %v1114_v57, %v985_v53  ;;  %v1134_v57 = vpop.permute.xlu1 %1133 }
 0x121   : > { %v1470_v2 = vld [vmem:[#allocation2 + $0x28] sm:$0xf]  ;;  %v878_v4 = vpop.f32.mrb[28].mxu0  ;;  %v1893_v46 = vrot.slane %v1620_v60, 1  ;;  %v1894_v58 = vrot.slane %v1616_v55, 2  ;;  %v1618_v17 = vrot.slane %v1616_v55, 1  ;;  %v9724_v20 = vsel %vm1749_vm5, %v9667_v19, %v1757_v7 }
 0x122   : > { %1836 = vrot.lane.b32.xlu1 %v1611_v0, %s12679_s21  ;;  %4206 = vst.msk [vmem:[#allocation2 + $0x28] sm:$0xf] %vm4195_vm3, %v12675_v5  ;;  %v8172_v8 = vpack.c.bf16 %v1244_v63, %v1244_v63  ;;  %1952 = vrot.lane.b32.xlu0 %v1892_v3, %s12681_s26  ;;  %v879_v10 = vadd.f32 %v9495_v56, %v878_v4  ;;  %v8601_v6 = vpop.f32.mrb[29].mxu0 }
 0x123   : > { %1430 = vst.msk [vmem:[#allocation2 + $0x30] sm:$0xf] %vm1417_vm2, %v8171_v62  ;;  %v1471_v11 = vld [vmem:[#allocation2 + $0x2c] sm:$0xf]  ;;  %v881_v12 = vpop.f32.mrb[30].mxu0  ;;  %v9726_v21 = vor.u32 %v1894_v58, %v1893_v46  ;;  %v1619_v31 = vsel %vm1583_vm6, %v1614_v25, %v1618_v17 }
 0x124   : > { %v9713_v13 = vcombine.low %v1470_v2, %v1471_v11  ;;  %4207 = vst.msk [vmem:[#allocation2 + $0x2c] sm:$0xf] %vm4195_vm3, %v12675_v5  ;;  %v986_v14 = vmax.f32 %v879_v10, 0.0  ;;  %v882_v15 = vadd.f32 %v9495_v56, %v881_v12  ;;  %v8602_v16 = vpop.f32.mrb[31].mxu0 }
 0x125   : > { %1431 = vst.msk [vmem:[#allocation2 + $0x34] sm:$0xf] %vm1417_vm2, %v8172_v8  ;;  %v1896_v19 = vsel %vm1876_vm7, %v1891_v43, %v9726_v21 }
 0x126   : > { %1715 = vrot.lane.b32.xlu1 %v1611_v0, %s12681_s26  ;;  %v1245_v23 = vmul.f32 %v1119_v18, %v986_v14  ;;  %v987_v24 = vmax.f32 %v882_v15, 0.0  ;;  %1787 = vrot.lane.b32.xlu0 %v9724_v20, %s12683_s22  ;;  %v1624_v32 = vshll.u32 %v9713_v13, 16  ;;  %v1759_v51 = vrot.slane %v9713_v13, 1 }
 0x127   : > { %v1628_v41 = vshrl.u32 %v9713_v13, 16  ;;  %v1622_v15 = vor.u32 %v1620_v60, %v1618_v17  ;;  %v1144_v60 = vpop.permute.xlu1 %1143 }
 0x128   : > { %v8173_v28 = vpack.c.bf16 %v1245_v23, %v1245_v23  ;;  %v1246_v30 = vmul.f32 %v1124_v27, %v987_v24  ;;  %v1626_v49 = vrot.slane %v1624_v32, 1  ;;  %v9761_v4 = vsel %vm1749_vm5, %v1757_v7, %v1759_v51  ;;  %v1139_v27 = vpop.permute.xlu0 %1138 }
 0x129   : > { %v886_v35 = vpop.f32.mrb[32].mxu0  ;;  %v1897_v24 = vrot.slane %v1628_v41, 1  ;;  %v1898_v25 = vrot.slane %v1624_v32, 2 }
 0x12a   : > { %v1472_v33 = vld [vmem:[#allocation2 + $0x30] sm:$0xf]  ;;  %1838 = vrot.lane.b32.xlu1 %v1619_v31, %s12679_s21  ;;  %1432 = vst.msk [vmem:[#allocation2 + $0x38] sm:$0xf] %vm1417_vm2, %v8173_v28  ;;  %v8174_v22 = vpack.c.bf16 %v1246_v30, %v1246_v30  ;;  %2022 = vrot.lane.b32.xlu0 %v1896_v19, %s12679_s21  ;;  %v887_v36 = vadd.f32 %v9495_v56, %v886_v35  ;;  %v8605_v37 = vpop.f32.mrb[33].mxu0 }
 0x12b   : > { %4208 = vst.msk [vmem:[#allocation2 + $0x30] sm:$0xf] %vm4195_vm3, %v12675_v5  ;;  %v889_v40 = vpop.f32.mrb[34].mxu0  ;;  %v1630_v0 = vor.u32 %v1628_v41, %v1626_v49  ;;  %v1627_v28 = vsel %vm1583_vm6, %v1622_v15, %v1626_v49 }
 0x12c   : > { %v1473_v39 = vld [vmem:[#allocation2 + $0x34] sm:$0xf]  ;;  %1433 = vst.msk [vmem:[#allocation2 + $0x3c] sm:$0xf] %vm1417_vm2, %v8174_v22  ;;  %v988_v43 = vmax.f32 %v887_v36, 0.0  ;;  %v890_v47 = vadd.f32 %v9495_v56, %v889_v40  ;;  %v8606_v48 = vpop.f32.mrb[35].mxu0  ;;  %v1899_v22 = vor.u32 %v1898_v25, %v1897_v24 }
 0x12d   : > { %v9742_v44 = vcombine.low %v1472_v33, %v1473_v39  ;;  %4209 = vst.msk [vmem:[#allocation2 + $0x34] sm:$0xf] %vm4195_vm3, %v12675_v5 }
 0x12e   : > { %1717 = vrot.lane.b32.xlu1 %v1619_v31, %s12681_s26  ;;  %v1247_v52 = vmul.f32 %v1129_v50, %v988_v43  ;;  %v989_v53 = vmax.f32 %v890_v47, 0.0  ;;  %1954 = vrot.lane.b32.xlu0 %v1896_v19, %s12681_s26 }
 0x12f   : > { %v1632_v54 = vshll.u32 %v9742_v44, 16  ;;  %v1636_v55 = vshrl.u32 %v9742_v44, 16 }
 0x130   : > { %v8175_v62 = vpack.c.bf16 %v1247_v52, %v1247_v52  ;;  %v1248_v63 = vmul.f32 %v1134_v57, %v989_v53  ;;  %v1900_v57 = vsel %vm1876_vm7, %v9726_v21, %v1899_v22 }
 0x131   : > { %v9754_v2 = vrot.slane %v1632_v54, 1  ;;  %v1474_v3 = vld [vmem:[#allocation2 + $0x38] sm:$0xf]  ;;  %v894_v46 = vpop.f32.mrb[36].mxu0  ;;  %v1901_v58 = vrot.slane %v1636_v55, 1  ;;  %v1902_v11 = vrot.slane %v1632_v54, 2  ;;  %v1149_v54 = vpop.permute.xlu0 %1148 }
 0x132   : > { %4210 = vst.msk [vmem:[#allocation2 + $0x38] sm:$0xf] %vm4195_vm3, %v12675_v5  ;;  %v8176_v8 = vpack.c.bf16 %v1248_v63, %v1248_v63  ;;  %1789 = vrot.lane.b32.xlu0 %v9761_v4, %s12683_s22  ;;  %v895_v10 = vadd.f32 %v9495_v56, %v894_v46  ;;  %v8609_v6 = vpop.f32.mrb[37].mxu0  ;;  %v1154_v46 = vpop.permute.xlu1 %1153 }
 0x133   : > { %1434 = vst.msk [vmem:[#allocation2 + $0x40] sm:$0xf] %vm1417_vm2, %v8175_v62  ;;  %v1635_v7 = vsel %vm1583_vm6, %v1630_v0, %v9754_v2  ;;  %v1475_v12 = vld [vmem:[#allocation2 + $0x3c] sm:$0xf]  ;;  %v897_v14 = vpop.f32.mrb[38].mxu0  ;;  %v9782_v33 = vor.u32 %v1902_v11, %v1901_v58 }
 0x134   : > { %1842 = vrot.lane.b32.xlu1 %v1635_v7, %s12679_s21  ;;  %4211 = vst.msk [vmem:[#allocation2 + $0x3c] sm:$0xf] %vm4195_vm3, %v12675_v5  ;;  %v990_v16 = vmax.f32 %v895_v10, 0.0  ;;  %v898_v18 = vadd.f32 %v9495_v56, %v897_v14  ;;  %v8610_v23 = vpop.f32.mrb[39].mxu0  ;;  %v9785_v17 = vcombine.low %v1474_v3, %v1475_v12  ;;  %v1761_v10 = vrot.slane %v9742_v44, 1 }
 0x135   : > { %1435 = vst.msk [vmem:[#allocation2 + $0x44] sm:$0xf] %vm1417_vm2, %v8176_v8  ;;  %v1904_v43 = vsel %vm1876_vm7, %v1899_v22, %v9782_v33 }
 0x136   : > { %v1249_v30 = vmul.f32 %v1139_v27, %v990_v16  ;;  %v991_v31 = vmax.f32 %v898_v18, 0.0  ;;  %1840 = vrot.lane.b32.xlu0 %v1627_v28, %s12679_s21  ;;  %v1640_v53 = vshll.u32 %v9785_v17, 16  ;;  %v1763_v0 = vrot.slane %v9785_v17, 1 }
 0x137   : > { %v1644_v21 = vshrl.u32 %v9785_v17, 16 }
 0x138   : > { %1721 = vrot.lane.b32.xlu1 %v1635_v7, %s12681_s26  ;;  %v8177_v19 = vpack.c.bf16 %v1249_v30, %v1249_v30  ;;  %v1250_v35 = vmul.f32 %v1144_v60, %v991_v31  ;;  %v1642_v6 = vrot.slane %v1640_v53, 1  ;;  %v9819_v18 = vsel %vm1749_vm5, %v1761_v10, %v1763_v0  ;;  %v1159_v60 = vpop.permute.xlu0 %1158 }
 0x139   : > { %v902_v37 = vpop.f32.mrb[40].mxu0 }
 0x13a   : > { %v1476_v36 = vld [vmem:[#allocation2 + $0x40] sm:$0xf]  ;;  %1436 = vst.msk [vmem:[#allocation2 + $0x48] sm:$0xf] %vm1417_vm2, %v8177_v19  ;;  %v8178_v32 = vpack.c.bf16 %v1250_v35, %v1250_v35  ;;  %1719 = vrot.lane.b32.xlu0 %v1627_v28, %s12681_s26  ;;  %v903_v39 = vadd.f32 %v9495_v56, %v902_v37  ;;  %v8613_v40 = vpop.f32.mrb[41].mxu0  ;;  %v1646_v30 = vor.u32 %v1644_v21, %v1642_v6 }
 0x13b   : > { %4212 = vst.msk [vmem:[#allocation2 + $0x40] sm:$0xf] %vm4195_vm3, %v12675_v5  ;;  %v905_v48 = vpop.f32.mrb[42].mxu0  ;;  %v9832_v19 = vsel %vm1749_vm5, %v1759_v51, %v1761_v10  ;;  %v1638_v51 = vor.u32 %v1636_v55, %v9754_v2 }
 0x13c   : > { %v1477_v47 = vld [vmem:[#allocation2 + $0x44] sm:$0xf]  ;;  %2026 = vrot.lane.b32.xlu1 %v1904_v43, %s12679_s21  ;;  %1437 = vst.msk [vmem:[#allocation2 + $0x4c] sm:$0xf] %vm1417_vm2, %v8178_v32  ;;  %v992_v50 = vmax.f32 %v903_v39, 0.0  ;;  %v906_v41 = vadd.f32 %v9495_v56, %v905_v48  ;;  %v8614_v52 = vpop.f32.mrb[43].mxu0  ;;  %v1164_v39 = vpop.permute.xlu1 %1163 }
 0x13d   : > { %v9795_v49 = vcombine.low %v1476_v36, %v1477_v47  ;;  %4213 = vst.msk [vmem:[#allocation2 + $0x44] sm:$0xf] %vm4195_vm3, %v12675_v5  ;;  %v1905_v47 = vrot.slane %v1644_v21, 1  ;;  %v1906_v48 = vrot.slane %v1640_v53, 2  ;;  %v1169_v10 = vpop.permute.xlu0 %1168 }
 0x13e   : > { %v1251_v62 = vmul.f32 %v1149_v54, %v992_v50  ;;  %v993_v63 = vmax.f32 %v906_v41, 0.0  ;;  %2024 = vrot.lane.b32.xlu0 %v1900_v57, %s12679_s21  ;;  %v1643_v41 = vsel %vm1583_vm6, %v1638_v51, %v1642_v6 }
 0x13f   : > { %v1648_v3 = vshll.u32 %v9795_v49, 16  ;;  %v1652_v12 = vshrl.u32 %v9795_v49, 16 }
 0x140   : > { %1958 = vrot.lane.b32.xlu1 %v1904_v43, %s12681_s26  ;;  %v8179_v58 = vpack.c.bf16 %v1251_v62, %v1251_v62  ;;  %v1252_v8 = vmul.f32 %v1154_v46, %v993_v63 }
 0x141   : > { %v1478_v7 = vld [vmem:[#allocation2 + $0x48] sm:$0xf]  ;;  %v910_v11 = vpop.f32.mrb[44].mxu0  ;;  %v9821_v23 = vrot.slane %v1648_v3, 1  ;;  %v1909_v35 = vrot.slane %v1652_v12, 1  ;;  %v1910_v32 = vrot.slane %v1648_v3, 2 }
 0x142   : > { %4214 = vst.msk [vmem:[#allocation2 + $0x48] sm:$0xf] %vm4195_vm3, %v12675_v5  ;;  %v8180_v14 = vpack.c.bf16 %v1252_v8, %v1252_v8  ;;  %1956 = vrot.lane.b32.xlu0 %v1900_v57, %s12681_s26  ;;  %v911_v15 = vadd.f32 %v9495_v56, %v910_v11  ;;  %v8617_v16 = vpop.f32.mrb[45].mxu0 }
 0x143   : > { %1438 = vst.msk [vmem:[#allocation2 + $0x50] sm:$0xf] %vm1417_vm2, %v8179_v58  ;;  %v1479_v24 = vld [vmem:[#allocation2 + $0x4c] sm:$0xf]  ;;  %v913_v25 = vpop.f32.mrb[46].mxu0  ;;  %v1651_v37 = vsel %vm1583_vm6, %v1646_v30, %v9821_v23  ;;  %v9850_v55 = vor.u32 %v1910_v32, %v1909_v35  ;;  %v1907_v58 = vor.u32 %v1906_v48, %v1905_v47  ;;  %v1765_v32 = vrot.slane %v9795_v49, 1 }
 0x144   : > { %1793 = vrot.lane.b32.xlu1 %v9819_v18, %s12683_s22  ;;  %4215 = vst.msk [vmem:[#allocation2 + $0x4c] sm:$0xf] %vm4195_vm3, %v12675_v5  ;;  %v994_v27 = vmax.f32 %v911_v15, 0.0  ;;  %v914_v28 = vadd.f32 %v9495_v56, %v913_v25  ;;  %v8618_v31 = vpop.f32.mrb[47].mxu0  ;;  %v9853_v63 = vcombine.low %v1478_v7, %v1479_v24 }
 0x145   : > { %1439 = vst.msk [vmem:[#allocation2 + $0x54] sm:$0xf] %vm1417_vm2, %v8180_v14  ;;  %v1912_v7 = vsel %vm1876_vm7, %v1907_v58, %v9850_v55  ;;  %v1174_v14 = vpop.permute.xlu1 %1173 }
 0x146   : > { %v1253_v22 = vmul.f32 %v1159_v60, %v994_v27  ;;  %v995_v36 = vmax.f32 %v914_v28, 0.0  ;;  %1791 = vrot.lane.b32.xlu0 %v9832_v19, %s12683_s22  ;;  %v1656_v24 = vshll.u32 %v9853_v63, 16  ;;  %v1908_v27 = vsel %vm1876_vm7, %v9782_v33, %v1907_v58 }
 0x147   : > { %v1767_v30 = vrot.slane %v9853_v63, 1 }
 0x148   : > { %1846 = vrot.lane.b32.xlu1 %v1651_v37, %s12679_s21  ;;  %v8181_v40 = vpack.c.bf16 %v1253_v22, %v1253_v22  ;;  %v1254_v43 = vmul.f32 %v1164_v39, %v995_v36  ;;  %v1660_v39 = vshrl.u32 %v9853_v63, 16  ;;  %v1658_v47 = vrot.slane %v1656_v24, 1 }
 0x149   : > { %v918_v52 = vpop.f32.mrb[48].mxu0  ;;  %v1179_v48 = vpop.permute.xlu1 %1178 }
 0x14a   : > { %v1480_v50 = vld [vmem:[#allocation2 + $0x50] sm:$0xf]  ;;  %1440 = vst.msk [vmem:[#allocation2 + $0x58] sm:$0xf] %vm1417_vm2, %v8181_v40  ;;  %v8182_v54 = vpack.c.bf16 %v1254_v43, %v1254_v43  ;;  %1844 = vrot.lane.b32.xlu0 %v1643_v41, %s12679_s21  ;;  %v919_v57 = vadd.f32 %v9495_v56, %v918_v52  ;;  %v8621_v62 = vpop.f32.mrb[49].mxu0  ;;  %v1662_v58 = vor.u32 %v1660_v39, %v1658_v47 }
 0x14b   : > { %4216 = vst.msk [vmem:[#allocation2 + $0x50] sm:$0xf] %vm4195_vm3, %v12675_v5  ;;  %v921_v53 = vpop.f32.mrb[50].mxu0 }
 0x14c   : > { %v1481_v2 = vld [vmem:[#allocation2 + $0x54] sm:$0xf]  ;;  %1725 = vrot.lane.b32.xlu1 %v1651_v37, %s12681_s26  ;;  %1441 = vst.msk [vmem:[#allocation2 + $0x5c] sm:$0xf] %vm1417_vm2, %v8182_v54  ;;  %v996_v3 = vmax.f32 %v919_v57, 0.0  ;;  %v922_v46 = vadd.f32 %v9495_v56, %v921_v53  ;;  %v8622_v8 = vpop.f32.mrb[51].mxu0 }
 0x14d   : > { %4217 = vst.msk [vmem:[#allocation2 + $0x54] sm:$0xf] %vm4195_vm3, %v12675_v5  ;;  %v9859_v6 = vcombine.low %v1480_v50, %v1481_v2  ;;  %v9888_v50 = vsel %vm1749_vm5, %v1765_v32, %v1767_v30  ;;  %v1184_v2 = vpop.permute.xlu0 %1183  ;;  %v1913_v53 = vrot.slane %v1660_v39, 1  ;;  %v1914_v8 = vrot.slane %v1656_v24, 2 }
 0x14e   : > { %v1255_v11 = vmul.f32 %v1169_v10, %v996_v3  ;;  %v997_v21 = vmax.f32 %v922_v46, 0.0  ;;  %1723 = vrot.lane.b32.xlu0 %v1643_v41, %s12681_s26 }
 0x14f   : > { %v1664_v31 = vshll.u32 %v9859_v6, 16  ;;  %v1668_v36 = vshrl.u32 %v9859_v6, 16 }
 0x150   : > { %2030 = vrot.lane.b32.xlu1 %v1912_v7, %s12679_s21  ;;  %v8183_v15 = vpack.c.bf16 %v1255_v11, %v1255_v11  ;;  %v1256_v16 = vmul.f32 %v1174_v14, %v997_v21  ;;  %v9900_v11 = vsel %vm1749_vm5, %v1763_v0, %v1765_v32 }
 0x151   : > { %v9866_v25 = vld [vmem:[#allocation2 + $0x58] sm:$0xf]  ;;  %v926_v28 = vpop.f32.mrb[52].mxu0  ;;  %v9890_v41 = vrot.slane %v1664_v31, 1  ;;  %v1917_v57 = vrot.slane %v1668_v36, 1  ;;  %v1918_v62 = vrot.slane %v1664_v31, 2 }
 0x152   : > { %4218 = vst.msk [vmem:[#allocation2 + $0x58] sm:$0xf] %vm4195_vm3, %v12675_v5  ;;  %v8184_v60 = vpack.c.bf16 %v1256_v16, %v1256_v16  ;;  %2028 = vrot.lane.b32.xlu0 %v1908_v27, %s12679_s21  ;;  %v927_v35 = vadd.f32 %v9495_v56, %v926_v28  ;;  %v8625_v22 = vpop.f32.mrb[53].mxu0  ;;  %v1654_v28 = vor.u32 %v1652_v12, %v9821_v23  ;;  %v9922_v31 = vld [vmem:[%s12691_s1] ss:$0 sm:$0xff] }
 0x153   : > { %1442 = vst.msk [vmem:[#allocation2 + $0x60] sm:$0xf] %vm1417_vm2, %v8183_v15  ;;  %v1483_v37 = vld [vmem:[#allocation2 + $0x5c] sm:$0xf]  ;;  %v929_v33 = vpop.f32.mrb[54].mxu0  ;;  %v1667_v16 = vsel %vm1583_vm6, %v1662_v58, %v9890_v41  ;;  %v9910_v24 = vor.u32 %v1918_v62, %v1917_v57  ;;  %v1769_v57 = vrot.slane %v9859_v6, 1 }
 0x154   : > { %1962 = vrot.lane.b32.xlu1 %v1912_v7, %s12681_s26  ;;  %4219 = vst.msk [vmem:[#allocation2 + $0x5c] sm:$0xf] %vm4195_vm3, %v12675_v5  ;;  %v998_v51 = vmax.f32 %v927_v35, 0.0  ;;  %v930_v40 = vadd.f32 %v9495_v56, %v929_v33  ;;  %v8626_v43 = vpop.f32.mrb[55].mxu0  ;;  %v1915_v35 = vor.u32 %v1914_v8, %v1913_v53  ;;  %v1189_v33 = vpop.permute.xlu0 %1188  ;;  %v1659_v32 = vsel %vm1583_vm6, %v1654_v28, %v1658_v47  ;;  %v1039_v58 = vld [vmem:[%s12655_s3 + $0xf0] sm:$0xff] }
 0x155   : > { %1443 = vst.msk [vmem:[#allocation2 + $0x64] sm:$0xf] %vm1417_vm2, %v8184_v60  ;;  %v9927_v12 = vcombine.low %v9866_v25, %v1483_v37 }
 0x156   : > { %v1257_v52 = vmul.f32 %v1179_v48, %v998_v51  ;;  %v999_v54 = vmax.f32 %v930_v40, 0.0  ;;  %1960 = vrot.lane.b32.xlu0 %v1908_v27, %s12681_s26  ;;  %v1920_v51 = vsel %vm1876_vm7, %v1915_v35, %v9910_v24  ;;  %v1194_v40 = vpop.permute.xlu1 %1193  ;;  %v1916_v62 = vsel %vm1876_vm7, %v9850_v55, %v1915_v35 }
 0x157   : > { %v1771_v37 = vrot.slane %v9927_v12, 1  ;;  %v1672_v55 = vshll.u32 %v9927_v12, 16  ;;  %v1676_v8 = vshrl.u32 %v9927_v12, 16 }
 0x158   : > { %1797 = vrot.lane.b32.xlu1 %v9888_v50, %s12683_s22  ;;  %v8185_v3 = vpack.c.bf16 %v1257_v52, %v1257_v52  ;;  %v1258_v46 = vmul.f32 %v1184_v2, %v999_v54 }
 0x159   : > { %v934_v21 = vpop.f32.mrb[56].mxu0  ;;  %v9953_v2 = vsel %vm1749_vm5, %v1769_v57, %v1771_v37  ;;  %v1922_v28 = vrot.slane %v1672_v55, 2 }
 0x15a   : > { %v1484_v10 = vld [vmem:[#allocation2 + $0x60] sm:$0xf]  ;;  %1444 = vst.msk [vmem:[#allocation2 + $0x68] sm:$0xf] %vm1417_vm2, %v8185_v3  ;;  %v8186_v7 = vpack.c.bf16 %v1258_v46, %v1258_v46  ;;  %1795 = vrot.lane.b32.xlu0 %v9900_v11, %s12683_s22  ;;  %v935_v14 = vadd.f32 %v9495_v56, %v934_v21  ;;  %v8629_v15 = vpop.f32.mrb[57].mxu0 }
 0x15b   : > { %4220 = vst.msk [vmem:[#allocation2 + $0x60] sm:$0xf] %vm4195_vm3, %v12675_v5  ;;  %v937_v27 = vpop.f32.mrb[58].mxu0 }
 0x15c   : > { %v1485_v0 = vld [vmem:[#allocation2 + $0x64] sm:$0xf]  ;;  %1850 = vrot.lane.b32.xlu1 %v1667_v16, %s12679_s21  ;;  %1445 = vst.msk [vmem:[#allocation2 + $0x6c] sm:$0xf] %vm1417_vm2, %v8186_v7  ;;  %v1000_v56 = vmax.f32 %v935_v14, 0.0  ;;  %v938_v60 = vadd.f32 %v9922_v31, %v937_v27  ;;  %v8630_v22 = vpop.f32.mrb[59].mxu0 }
 0x15d   : > { %4221 = vst.msk [vmem:[#allocation2 + $0x64] sm:$0xf] %vm4195_vm3, %v12675_v5  ;;  %v9935_v54 = vcombine.low %v1484_v10, %v1485_v0  ;;  %v1921_v27 = vrot.slane %v1676_v8, 1 }
 0x15e   : > { %v1259_v23 = vmul.f32 %v1189_v33, %v1000_v56  ;;  %v1001_v39 = vmax.f32 %v938_v60, 0.0  ;;  %1848 = vrot.lane.b32.xlu0 %v1659_v32, %s12679_s21  ;;  %v9978_v56 = vsel %vm1749_vm5, %v1767_v30, %v1769_v57  ;;  %v1040_v33 = vld [vmem:[%s12655_s3 + $0xf8] sm:$0xff] }
 0x15f   : > { %v1680_v53 = vshll.u32 %v9935_v54, 16  ;;  %v12677_v3 = vshrl.u32 %v9935_v54, 16 }
 0x160   : > { %2034 = vrot.lane.b32.xlu1 %v1920_v51, %s12679_s21  ;;  %v8187_v43 = vpack.c.bf16 %v1259_v23, %v1259_v23  ;;  %v1260_v48 = vmul.f32 %v1194_v40, %v1001_v39  ;;  %v1923_v23 = vor.u32 %v1922_v28, %v1921_v27  ;;  %v1041_v40 = vld [vmem:[%s12655_s3 + $0x100] sm:$0xff] }
 0x161   : > { %v9933_v52 = vld [vmem:[#allocation2 + $0x68] sm:$0xf]  ;;  %v9959_v46 = vpop.f32.mrb[60].mxu0  ;;  %v1925_v7 = vrot.slane %v12677_v3, 1  ;;  %v1926_v14 = vrot.slane %v1680_v53, 2 }
 0x162   : > { %4222 = vst.msk [vmem:[#allocation2 + $0x68] sm:$0xf] %vm4195_vm3, %v12675_v5  ;;  %v8188_v25 = vpack.c.bf16 %v1260_v48, %v1260_v48  ;;  %1727 = vrot.lane.b32.xlu0 %v1659_v32, %s12681_s26  ;;  %v8633_v10 = vpop.f32.mrb[61].mxu0  ;;  %v1924_v48 = vsel %vm1876_vm7, %v9910_v24, %v1923_v23  ;;  %v1682_v24 = vrot.slane %v1680_v53, 1 }
 0x163   : > { %1446 = vst.msk [vmem:[#allocation2 + $0x70] sm:$0xf] %vm1417_vm2, %v8187_v43  ;;  %v9942_v47 = vld [vmem:[#allocation2 + $0x6c] sm:$0xf]  ;;  %v9982_v60 = vor.u32 %v1926_v14, %v1925_v7  ;;  %v9985_v22 = vpop.f32.mrb[62].mxu0  ;;  %v1674_v10 = vrot.slane %v1672_v55, 1 }
 0x164   : > { %1966 = vrot.lane.b32.xlu1 %v1920_v51, %s12681_s26  ;;  %4223 = vst.msk [vmem:[#allocation2 + $0x6c] sm:$0xf] %vm4195_vm3, %v12675_v5  ;;  %v8634_v32 = vpop.f32.mrb[63].mxu0  ;;  %v1773_v7 = vrot.slane %v9935_v54, 1 }
 0x165   : > { %1447 = vst.msk [vmem:[#allocation2 + $0x74] sm:$0xf] %vm1417_vm2, %v8188_v25  ;;  %v1928_v51 = vsel %vm1876_vm7, %v1923_v23, %v9982_v60  ;;  %v1678_v27 = vor.u32 %v1676_v8, %v1674_v10  ;;  %v1670_v32 = vor.u32 %v1668_v36, %v9890_v41  ;;  %v1045_v36 = vld [vmem:[%s12655_s3 + $0x120] sm:$0x1] }
 0x166   : > { %2032 = vrot.lane.b32.xlu0 %v1916_v62, %s12679_s21  ;;  %v10022_v28 = vsel %vm1749_vm5, %v1771_v37, %v1773_v7  ;;  %v8915_v37 = vld [vmem:[%s12656_s4 + $0x80] sm:$0xff]  }
 0x167   : > { %v1675_v53 = vsel %vm1583_vm6, %v1670_v32, %v1674_v10  ;;  %8647 = vmatprep.subr.bf16.mxu0 %v8915_v37 }
 0x168   : > { %1801 = vrot.lane.b32.xlu1 %v9953_v2, %s12683_s22 }
 0x169   : > { %v10007_v43 = vpop.f32.mrb[64].mxu0 }
 0x16a   : > { %v1488_v21 = vld [vmem:[#allocation2 + $0x70] sm:$0xf]  ;;  %1964 = vrot.lane.b32.xlu0 %v1916_v62, %s12681_s26  ;;  %v8637_v25 = vpop.f32.mrb[65].mxu0 }
 0x16b   : > { %4224 = vst.msk [vmem:[#allocation2 + $0x70] sm:$0xf] %vm4195_vm3, %v12675_v5  ;;  %v10012_v57 = vpop.f32.mrb[66].mxu0  ;;  %v10051_v25 = vcombine.low %v9933_v52, %v9942_v47 }
 0x16c   : > { %v1489_v15 = vld [vmem:[#allocation2 + $0x74] sm:$0xf]  ;;  %1198 = vperm.xlu1 %8875, %v1039_v58   ;;  %v8638_v62 = vpop.f32.mrb[67].mxu0 }
 0x16d   : > { %v9971_v0 = vcombine.low %v1488_v21, %v1489_v15  ;;  %4225 = vst.msk [vmem:[#allocation2 + $0x74] sm:$0xf] %vm4195_vm3, %v12675_v5  ;;  %v1043_v58 = vld [vmem:[%s12655_s3 + $0x110] sm:$0xff]  ;;  %v1688_v32 = vshll.u32 %v10051_v25, 16  ;;  %v1775_v1 = vrot.slane %v10051_v25, 1 }
 0x16e   : > { %1799 = vrot.lane.b32.xlu0 %v9978_v56, %s12683_s22 }
 0x16f   : > { %v1696_v35 = vshll.u32 %v9971_v0, 16  ;;  %v1700_v30 = vshrl.u32 %v9971_v0, 16 }
 0x170   : > { %1729 = vrot.lane.b32.xlu1 %v1667_v16, %s12681_s26 }
 0x171   : > { %v9994_v39 = vrot.slane %v1696_v35, 1  ;;  %v10017_v21 = vpop.f32.mrb[68].mxu0 }
 0x172   : > { %1203 = vperm.xlu0 %8874, %v1040_v33   ;;  %v8641_v14 = vpop.f32.mrb[69].mxu0  ;;  %v1683_v33 = vsel %vm1583_vm6, %v1678_v27, %v1682_v24 }
 0x173   : > { %v10001_v16 = vor.u32 %v1700_v30, %v9994_v39  ;;  %v10033_v8 = vpop.f32.mrb[70].mxu0  ;;  %v1044_v14 = vld [vmem:[%s12655_s3 + $0x118] sm:$0xff] }
 0x174   : > { %2038 = vrot.lane.b32.xlu1 %v1928_v51, %s12679_s21 }
 0x176   : > { %2036 = vrot.lane.b32.xlu0 %v1924_v48, %s12679_s21 }
 0x178   : > { %1208 = vperm.xlu1 %8875, %v1041_v40   ;;  %v1042_v40 = vld [vmem:[%s12655_s3 + $0x108] sm:$0xff] }
 0x17a   : > { %1968 = vrot.lane.b32.xlu0 %v1924_v48, %s12681_s26  ;;  %v8642_v48 = vpop.f32.mrb[71].mxu0 }
 0x17b   : > { %v1782_v15 = vpop.permute.xlu1 %1781  ;;  %v10047_v41 = vpop.f32.mrb[72].mxu0  ;;  %v12678_v48 = vshrl.u32 %v10051_v25, 16 }
 0x17c   : > { %1218 = vperm.xlu1 %8875, %v1043_v58   ;;  %v8645_v62 = vpop.f32.mrb[73].mxu0 }
 0x17d   : > { %v969_v58 = vpop.f32.mrb[74].mxu0  ;;  %v1930_v62 = vrot.slane %v1688_v32, 2 }
 0x17e   : > { %1803 = vrot.lane.b32.xlu0 %v10022_v28, %s12683_s22  ;;  %v8646_v27 = vpop.f32.mrb[75].mxu0 }
 0x17f   : > { %v1712_v55 = vpop.permute.xlu1 %1711  ;;  %v10066_v27 = vsel %vm1749_vm5, %v1773_v7, %v1775_v1 }
 0x180   : > { %1854 = vrot.lane.b32.xlu1 %v1683_v33, %s12679_s21  ;;  %v2093_v58 = vsel %vm730_vm1, %v9533_v38, %v1712_v55  ;;  %v12692_v38 = vshrl.u32 %v9935_v54, 16 }
 0x182   : > { %1852 = vrot.lane.b32.xlu0 %v1675_v53, %s12679_s21  ;;  %v1686_v55 = vor.u32 %v12692_v38, %v1682_v24 }
 0x184   : > { %v10038_v23 = vpop.permute.xlu1 %1783  ;;  %1733 = vrot.lane.b32.xlu1 %v1683_v33, %s12681_s26 }
 0x186   : > { %1213 = vperm.xlu0 %8874, %v1042_v40   ;;  %v1690_v40 = vrot.slane %v1688_v32, 1 }
 0x188   : > { %v1835_v10 = vpop.permute.xlu1 %1834  ;;  %1228 = vperm.xlu1 %8875, %v1045_v36   ;;  %v1951_v33 = vpop.permute.xlu0 %1950  ;;  %v1929_v36 = vrot.slane %v12678_v48, 1  ;;  %v1691_v32 = vsel %vm1583_vm6, %v1686_v55, %v1690_v40 }
 0x189   : > { %v2208_v5 = vsel %vm730_vm1, %v9645_v59, %v1951_v33  ;;  %v8916_v33 = vld [vmem:[%s12656_s4 + $0x88] sm:$0xff]  }
 0x18a   : > { %1223 = vperm.xlu0 %8874, %v1044_v14   ;;  %v1933_v14 = vrot.slane %v1700_v30, 1  ;;  %v2126_v30 = vsel %vm2124_vm4, %v2093_v58, %v1782_v15  ;;  %v1931_v59 = vor.u32 %v1930_v62, %v1929_v36  ;;  %v2394_v15 = vld [vmem:[#allocation3 + $0x90] sm:$0x1] }
 0x18b   : > { %v2159_v48 = vsel %vm2157_vm8, %v2126_v30, %v1835_v10  ;;  %v2395_v36 = vsel %vm10092_vm11, 0, %v2394_v15 }
 0x18c   : > { %v1714_v52 = vpop.permute.xlu1 %1713  ;;  %1970 = vrot.lane.b32.xlu1 %v1928_v51, %s12681_s26  ;;  %v1995_v47 = vpop.permute.xlu0 %1994  ;;  %v1934_v51 = vrot.slane %v1696_v35, 2  ;;  %2396 = vst [vmem:[#allocation3 + $0x90] sm:$0x1] %v2395_v36  ;;  %v1932_v10 = vsel %vm1876_vm7, %v9982_v60, %v1931_v59 }
 0x18d   : > { %v2255_v7 = vsel %vm2124_vm4, %v2208_v5, %v1995_v47  ;;  %v2066_v5 = vrot.slane %v9742_v44, 2 }
 0x18e   : > { %1731 = vrot.lane.b32.xlu0 %v1675_v53, %s12681_s26  ;;  %v10089_v24 = vor.u32 %v1934_v51, %v1933_v14  ;;  %v1777_v51 = vrot.slane %v9971_v0, 1 }
 0x190   : > { %v10074_v3 = vpop.permute.xlu1 %1785  ;;  %1805 = vrot.lane.b32.xlu1 %v10066_v27, %s12683_s22  ;;  %v2021_v53 = vpop.permute.xlu0 %2020  ;;  %v1936_v58 = vsel %vm1876_vm7, %v1931_v59, %v10089_v24  ;;  %v10116_v30 = vsel %vm1749_vm5, %v1775_v1, %v1777_v51 }
 0x191   : > { %v2275_v35 = vsel %vm2157_vm8, %v2255_v7, %v2021_v53 }
 0x192   : > { %2592 = vmatprep.mubr.bf16.mxu0 %v2275_v35  ;;  %1856 = vrot.lane.b32.xlu0 %v1691_v32, %s12679_s21 }
 0x193   : > { %2593 = vmatmul.mubr.bf16.vlgmr.msra.gmra.mrb[76].mxu0 %v2159_v48 }
 0x194   : > { %v1837_v47 = vpop.permute.xlu1 %1836  ;;  %1735 = vrot.lane.b32.xlu1 %v1691_v32, %s12681_s26  ;;  %v1953_v62 = vpop.permute.xlu0 %1952  ;;  %8648 = vmatpush3.bf16.msra.mxu0 %v8915_v37  ;;  %v2095_v37 = vsel %vm730_vm1, %v9575_v61, %v1714_v52 }
 0x195   : > { %8649 = vmatprep.subr.bf16.mxu0 %v8916_v33  ;;  %v2211_v60 = vsel %vm730_vm1, %v9684_v42, %v1953_v62  ;;  %v2128_v35 = vsel %vm2124_vm4, %v2095_v37, %v10038_v23  ;;  %v12695_v42 = vshrl.u32 %v10051_v25, 16 }
 0x196   : > { %2040 = vrot.lane.b32.xlu0 %v1932_v10, %s12679_s21  ;;  %v2162_v61 = vsel %vm2157_vm8, %v2128_v35, %v1837_v47 }
 0x197   : > { %v1694_v52 = vor.u32 %v12695_v42, %v1690_v40 }
 0x198   : > { %v1716_v14 = vpop.permute.xlu1 %1715  ;;  %2042 = vrot.lane.b32.xlu1 %v1936_v58, %s12679_s21  ;;  %v1788_v48 = vpop.permute.xlu0 %1787  ;;  %8650 = vmatpush3.bf16.msra.mxu0 %v8916_v33 }
 0x199   : > { %v2256_v55 = vsel %vm2124_vm4, %v2211_v60, %v1788_v48  ;;  %v1699_v33 = vsel %vm1583_vm6, %v1694_v52, %v9994_v39  ;;  %v2097_v40 = vsel %vm730_vm1, %v9615_v34, %v1716_v14 }
 0x19a   : > { %1972 = vrot.lane.b32.xlu0 %v1932_v10, %s12681_s26 }
 0x19c   : > { %v1839_v38 = vpop.permute.xlu1 %1838  ;;  %v2023_v7 = vpop.permute.xlu0 %2022 }
 0x19d   : > { %v2278_v53 = vsel %vm2157_vm8, %v2256_v55, %v2023_v7  ;;  %v2130_v7 = vsel %vm2124_vm4, %v2097_v40, %v10074_v3 }
 0x19e   : > { %2600 = vmatprep.mubr.bf16.mxu0 %v2278_v53  ;;  %1807 = vrot.lane.b32.xlu0 %v10116_v30, %s12683_s22 }
 0x19f   : > { %2601 = vmatmul.mubr.bf16.gmra.mrb[80].mxu0 %v2162_v61 }
 0x1a0   : > { %v1955_v32 = vpop.permute.xlu0 %1954  ;;  %v1718_v59 = vpop.permute.xlu1 %1717 }
 0x1a1   : > { %v2214_v10 = vsel %vm730_vm1, %v9724_v20, %v1955_v32  ;;  %v2099_v34 = vsel %vm730_vm1, %v9654_v9, %v1718_v59 }
 0x1a2   : > { %1858 = vrot.lane.b32.xlu0 %v1699_v33, %s12679_s21  ;;  %v2132_v3 = vsel %vm2124_vm4, %v2099_v34, %v1788_v48 }
 0x1a4   : > { %v1790_v1 = vpop.permute.xlu0 %1789 }
 0x1a5   : > { %v2257_v39 = vsel %vm2124_vm4, %v2214_v10, %v1790_v1 }
 0x1a6   : > { %v1843_v15 = vpop.permute.xlu1 %1842  ;;  %1737 = vrot.lane.b32.xlu0 %v1699_v33, %s12681_s26 }
 0x1a8   : > { %v1841_v23 = vpop.permute.xlu0 %1840 }
 0x1aa   : > { %v1722_v36 = vpop.permute.xlu1 %1721  ;;  %1974 = vrot.lane.b32.xlu0 %v1936_v58, %s12681_s26  ;;  %v2165_v58 = vsel %vm2157_vm8, %v2130_v7, %v1839_v38  ;;  %v2168_v38 = vsel %vm2157_vm8, %v2132_v3, %v1841_v23 }
 0x1ac   : > { %v1720_v47 = vpop.permute.xlu0 %1719 }
 0x1ad   : > { %v2101_v59 = vsel %vm730_vm1, %v9686_v45, %v1720_v47 }
 0x1ae   : > { %v2027_v62 = vpop.permute.xlu1 %2026 }
 0x1b0   : > { %v2025_v37 = vpop.permute.xlu0 %2024 }
 0x1b1   : > { %v2281_v60 = vsel %vm2157_vm8, %v2257_v39, %v2025_v37  ;;  %v2134_v39 = vsel %vm2124_vm4, %v2101_v59, %v1790_v1 }
 0x1b2   : > { %v1959_v55 = vpop.permute.xlu1 %1958  ;;  %2608 = vmatprep.mubr.bf16.mxu0 %v2281_v60  ;;  %v2171_v23 = vsel %vm2157_vm8, %v2134_v39, %v1843_v15 }
 0x1b3   : > { %2609 = vmatmul.mubr.bf16.gmra.mrb[84].mxu0 %v2165_v58 }
 0x1b4   : > { %v1957_v53 = vpop.permute.xlu0 %1956 }
 0x1b5   : > { %v2217_v20 = vsel %vm730_vm1, %v9761_v4, %v1957_v53  ;;  %v2220_v4 = vsel %vm730_vm1, %v9832_v19, %v1959_v55  ;;  %v2103_v19 = vsel %vm730_vm1, %v9713_v13, %v1722_v36 }
 0x1b6   : > { %v1794_v35 = vpop.permute.xlu1 %1793 }
 0x1b8   : > { %v1792_v14 = vpop.permute.xlu0 %1791 }
 0x1b9   : > { %v2258_v61 = vsel %vm2124_vm4, %v2217_v20, %v1792_v14  ;;  %v2136_v55 = vsel %vm2124_vm4, %v2103_v19, %v1792_v14 }
 0x1ba   : > { %v1847_v42 = vpop.permute.xlu1 %1846  ;;  %v2284_v52 = vsel %vm2157_vm8, %v2258_v61, %v2027_v62  ;;  %v2259_v62 = vsel %vm2124_vm4, %v2220_v4, %v1794_v35 }
 0x1bb   : > { %2616 = vmatprep.mubr.bf16.mxu0 %v2284_v52 }
 0x1bc   : > { %2617 = vmatmul.mubr.bf16.gmra.mrb[88].mxu0 %v2168_v38  ;;  %v1845_v32 = vpop.permute.xlu0 %1844 }
 0x1bd   : > { %v2174_v15 = vsel %vm2157_vm8, %v2136_v55, %v1845_v32  ;;  %v951_v55 = vadd.f32 %v9922_v31, %v10007_v43 }
 0x1be   : > { %v1726_v33 = vpop.permute.xlu1 %1725 }
 0x1c0   : > { %v1724_v40 = vpop.permute.xlu0 %1723 }
 0x1c1   : > { %v2105_v61 = vsel %vm730_vm1, %v9742_v44, %v1724_v40 }
 0x1c2   : > { %v2031_v10 = vpop.permute.xlu1 %2030  ;;  %v2138_v3 = vsel %vm2124_vm4, %v2105_v61, %v1794_v35  ;;  %v1004_v61 = vmax.f32 %v951_v55, 0.0 }
 0x1c3   : > { %v2177_v32 = vsel %vm2157_vm8, %v2138_v3, %v1847_v42 }
 0x1c4   : > { %v2029_v37 = vpop.permute.xlu0 %2028 }
 0x1c5   : > { %v2287_v48 = vsel %vm2157_vm8, %v2259_v62, %v2029_v37 }
 0x1c6   : > { %2624 = vmatprep.mubr.bf16.mxu0 %v2287_v48  ;;  %v1963_v60 = vpop.permute.xlu1 %1962 }
 0x1c7   : > { %2625 = vmatmul.mubr.bf16.gmra.mrb[92].mxu0 %v2171_v23  ;;  %v2226_v36 = vsel %vm730_vm1, %v9900_v11, %v1963_v60  ;;  %v2107_v11 = vsel %vm730_vm1, %v9785_v17, %v1726_v33  ;;  %v943_v23 = vadd.f32 %v9922_v31, %v9959_v46  ;;  %v946_v33 = vadd.f32 %v9922_v31, %v9985_v22 }
 0x1c8   : > { %v1961_v7 = vpop.permute.xlu0 %1960 }
 0x1c9   : > { %v2223_v47 = vsel %vm730_vm1, %v9819_v18, %v1961_v7  ;;  %v1002_v60 = vmax.f32 %v943_v23, 0.0 }
 0x1ca   : > { %v1798_v53 = vpop.permute.xlu1 %1797 }
 0x1cb   : > { %v2261_v14 = vsel %vm2124_vm4, %v2226_v36, %v1798_v53  ;;  %v959_v36 = vadd.f32 %v9922_v31, %v10017_v21 }
 0x1cc   : > { %v1796_v58 = vpop.permute.xlu0 %1795 }
 0x1cd   : > { %v2260_v1 = vsel %vm2124_vm4, %v2223_v47, %v1796_v58  ;;  %v2140_v37 = vsel %vm2124_vm4, %v2107_v11, %v1796_v58 }
 0x1ce   : > { %v2290_v34 = vsel %vm2157_vm8, %v2260_v1, %v2031_v10  ;;  %v1851_v18 = vpop.permute.xlu1 %1850  ;;  %v1003_v1 = vmax.f32 %v946_v33, 0.0 }
 0x1cf   : > { %2632 = vmatprep.mubr.bf16.mxu0 %v2290_v34 }
 0x1d0   : > { %2633 = vmatmul.mubr.bf16.gmra.mrb[96].mxu0 %v2174_v15  ;;  %v1849_v20 = vpop.permute.xlu0 %1848 }
 0x1d1   : > { %v2180_v42 = vsel %vm2157_vm8, %v2140_v37, %v1849_v20 }
 0x1d2   : > { %v2035_v10 = vpop.permute.xlu1 %2034 }
 0x1d4   : > { %v1728_v52 = vpop.permute.xlu0 %1727 }
 0x1d5   : > { %v2109_v46 = vsel %vm730_vm1, %v9795_v49, %v1728_v52 }
 0x1d6   : > { %v1967_v39 = vpop.permute.xlu1 %1966 }
 0x1d7   : > { %v2232_v22 = vsel %vm730_vm1, %v9978_v56, %v1967_v39  ;;  %v1006_v56 = vmax.f32 %v959_v36, 0.0 }
 0x1d8   : > { %v2033_v38 = vpop.permute.xlu0 %2032 }
 0x1d9   : > { %v2293_v59 = vsel %vm2157_vm8, %v2261_v14, %v2033_v38  ;;  %v2142_v14 = vsel %vm2124_vm4, %v2109_v46, %v1798_v53 }
 0x1da   : > { %2640 = vmatprep.mubr.bf16.mxu0 %v2293_v59 }
 0x1db   : > { %2641 = vmatmul.mubr.bf16.gmra.mrb[100].mxu0 %v2177_v32  ;;  %v12696_v32 = vmov 0  }
 0x1dc   : > { %v1965_v4 = vpop.permute.xlu0 %1964 }
 0x1dd   : > { %v2229_v40 = vsel %vm730_vm1, %v9888_v50, %v1965_v4  ;;  %v10184_v50 = vpop.permute.xlu1 %1801  ;;  %v2183_v4 = vsel %vm2157_vm8, %v2142_v14, %v1851_v18 }
 0x1de   : > { %v2263_v38 = vsel %vm2124_vm4, %v2232_v22, %v10184_v50 }
 0x1e0   : > { %v10173_v62 = vpop.permute.xlu0 %1799 }
 0x1e1   : > { %v2262_v35 = vsel %vm2124_vm4, %v2229_v40, %v10173_v62 }
 0x1e2   : > { %v2296_v48 = vsel %vm2157_vm8, %v2262_v35, %v2035_v10 }
 0x1e3   : > { %2648 = vmatprep.mubr.bf16.mxu0 %v2296_v48 }
 0x1e4   : > { %2649 = vmatmul.mubr.bf16.gmra.mrb[104].mxu0 %v2180_v42 }
 0x1eb   : > { %v1199_v7 = vpop.permute.xlu1 %1198 }
 0x1ec   : > { %v1261_v47 = vmul.f32 %v1199_v7, %v1002_v60  ;;  %v7875_v60 = vcombine.low %v9606_v29, %v9601_v26  ;;  %v967_v26 = vadd.f32 %v9922_v31, %v10047_v41  ;;  %v2060_v29 = vrot.slane %v9654_v9, 2 }
 0x1ee   : > { %v8189_v19 = vpack.c.bf16 %v1261_v47, %v1261_v47 }
 0x1ef   : > { %v1730_v58 = vpop.permute.xlu1 %1729 }
 0x1f0   : > { %1448 = vst.msk [vmem:[#allocation2 + $0x78] sm:$0xf] %vm1417_vm2, %v8189_v19  ;;  %v2111_v18 = vsel %vm730_vm1, %v9853_v63, %v1730_v58  ;;  %v954_v19 = vadd.f32 %v9922_v31, %v10012_v57 }
 0x1f1   : > { %v1204_v34 = vpop.permute.xlu0 %1203  ;;  %v2144_v41 = vsel %vm2124_vm4, %v2111_v18, %v10173_v62 }
 0x1f2   : > { %v1262_v15 = vmul.f32 %v1204_v34, %v1003_v1  ;;  %v962_v34 = vadd.f32 %v9922_v31, %v10033_v8  ;;  %v1008_v8 = vmax.f32 %v967_v26, 0.0  ;;  %v2068_v26 = vrot.slane %v9785_v17, 2 }
 0x1f3   : > { %v2039_v20 = vpop.permute.xlu1 %2038 }
 0x1f4   : > { %v8190_v3 = vpack.c.bf16 %v1262_v15, %v1262_v15  ;;  %v2059_v15 = vrot.slane %v7875_v60, 2 }
 0x1f5   : > { %v2037_v43 = vpop.permute.xlu0 %2036 }
 0x1f6   : > { %1449 = vst.msk [vmem:[#allocation2 + $0x7c] sm:$0xf] %vm1417_vm2, %v8190_v3  ;;  %v2299_v52 = vsel %vm2157_vm8, %v2263_v38, %v2037_v43  ;;  %v2061_v62 = vsel %vm2058_vm12, %v2059_v15, %v2060_v29  ;;  %v1005_v3 = vmax.f32 %v954_v19, 0.0 }
 0x1f7   : > { %v10200_v59 = vld [vmem:[#allocation2 + $0x78] sm:$0xf]  ;;  %v1209_v10 = vpop.permute.xlu1 %1208  ;;  %2656 = vmatprep.mubr.bf16.mxu0 %v2299_v52  ;;  %v1007_v52 = vmax.f32 %v962_v34, 0.0 }
 0x1f8   : > { %4226 = vst.msk [vmem:[#allocation2 + $0x78] sm:$0xf] %vm4195_vm3, %v12696_v32  ;;  %v1263_v21 = vmul.f32 %v1209_v10, %v1004_v61  ;;  %2657 = vmatmul.mubr.bf16.gmra.mrb[108].mxu0 %v2183_v4 }
 0x1f9   : > { %v1969_v39 = vpop.permute.xlu0 %1968 }
 0x1fa   : > { %v8191_v53 = vpack.c.bf16 %v1263_v21, %v1263_v21  ;;  %v2235_v48 = vsel %vm730_vm1, %v9953_v2, %v1969_v39 }
 0x1fb   : > { %v1219_v40 = vpop.permute.xlu1 %1218 }
 0x1fc   : > { %1450 = vst.msk [vmem:[#allocation2 + $0x80] sm:$0xf] %vm1417_vm2, %v8191_v53  ;;  %v1265_v11 = vmul.f32 %v1219_v40, %v1006_v56  ;;  %v2062_v56 = vrot.slane %v9686_v45, 2  ;;  %v2064_v53 = vrot.slane %v9713_v13, 2  ;;  %v1457_v40 = vld [vmem:[#allocation2 + $0x90] sm:$0x1] }
 0x1fd   : > { %v10208_v35 = vld [vmem:[#allocation2 + $0x7c] sm:$0x7]  ;;  %v10212_v23 = vpop.permute.xlu0 %1803 }
 0x1fe   : > { %v1493_v37 = vld [vmem:[#allocation2 + $0x7c] sm:$0xf]  ;;  %v8193_v42 = vpack.c.bf16 %v1265_v11, %v1265_v11  ;;  %v2264_v7 = vsel %vm2124_vm4, %v2235_v48, %v10212_v23  ;;  %v2063_v45 = vsel %vm2058_vm12, %v2060_v29, %v2062_v56  ;;  %v2065_v13 = vsel %vm2058_vm12, %v2062_v56, %v2064_v53 }
 0x1ff   : > { %4227 = vst.msk [vmem:[#allocation2 + $0x7c] sm:$0xf] %vm4195_vm3, %v12696_v32  ;;  %v10222_v33 = vpop.permute.xlu1 %1854  ;;  %v10225_v47 = vcombine.low %v10200_v59, %v1493_v37  ;;  %v2302_v2 = vsel %vm2157_vm8, %v2264_v7, %v2039_v20  ;;  %v2067_v17 = vsel %vm2058_vm12, %v2064_v53, %v2066_v5 }
 0x200   : > { %1452 = vst.msk [vmem:[#allocation2 + $0x88] sm:$0xf] %vm1417_vm2, %v8193_v42  ;;  %2664 = vmatprep.mubr.bf16.mxu0 %v2302_v2  ;;  %v10286_v2 = vcombine.low %v10200_v59, %v10208_v35 }
 0x201   : > { %v10235_v1 = vrot.slane %v10225_v47, 1  ;;  %v1819_v58 = vshll.u32 %v10225_v47, 16  ;;  %v1823_v55 = vshrl.u32 %v10225_v47, 16  ;;  %v1853_v46 = vpop.permute.xlu0 %1852 }
 0x202   : > { %v2186_v20 = vsel %vm2157_vm8, %v2144_v41, %v1853_v46  ;;  %v1704_v59 = vshll.u32 %v10286_v2, 16 }
 0x203   : > { %v1494_v9 = vld [vmem:[#allocation2 + $0x80] sm:$0xf]  ;;  %v10244_v57 = vpop.permute.xlu1 %1733  ;;  %v10250_v61 = vsel %vm1749_vm5, %v1777_v51, %v10235_v1  ;;  %v10252_v36 = vrot.slane %v1819_v58, 1  ;;  %v1937_v31 = vrot.slane %v1823_v55, 1  ;;  %2665 = vmatmul.mubr.bf16.gmra.mrb[112].mxu0 %v2186_v20  ;;  %v1938_v22 = vrot.slane %v1819_v58, 2 }
 0x204   : > { %4228 = vst.msk [vmem:[#allocation2 + $0x80] sm:$0xf] %vm4195_vm3, %v12696_v32  ;;  %1809 = vrot.lane.b32.xlu0 %v10250_v61, %s12683_s22  ;;  %8651 = vmatprep.mubr.msk.bf16.mxu0 %vm730_vm1, %v2061_v62  ;;  %v2070_v62 = vrot.slane %v9795_v49, 2 }
 0x205   : > { %v1822_v51 = vsel %vm1583_vm6, %v10001_v16, %v10252_v36  ;;  %v1214_v14 = vpop.permute.xlu0 %1213  ;;  %v10266_v38 = vor.u32 %v1938_v22, %v1937_v31  ;;  %v2069_v31 = vsel %vm2058_vm12, %v2066_v5, %v2068_v26  ;;  %v1825_v49 = vor.u32 %v1823_v55, %v10252_v36 }
 0x206   : > { %1860 = vrot.lane.b32.xlu1 %v1822_v51, %s12679_s21  ;;  %v1264_v10 = vmul.f32 %v1214_v14, %v1005_v3  ;;  %v2072_v36 = vrot.slane %v9853_v63, 2 }
 0x207   : > { %v1499_v43 = vld [vmem:[#allocation2 + $0x88] sm:$0xf]  ;;  %v1229_v21 = vpop.permute.xlu1 %1228  ;;  %v1940_v11 = vsel %vm1876_vm7, %v10089_v24, %v10266_v38 }
 0x208   : > { %4230 = vst.msk [vmem:[#allocation2 + $0x88] sm:$0xf] %vm4195_vm3, %v12696_v32  ;;  %v1267_v4 = vmul.f32 %v1229_v21, %v1008_v8  ;;  %v8192_v39 = vpack.c.bf16 %v1264_v10, %v1264_v10 }
 0x209   : > { %v1224_v48 = vpop.permute.xlu0 %1223 }
 0x20a   : > { %v8195_v37 = vpack.c.bf16 %v1267_v4, %v1267_v4  ;;  %2044 = vrot.lane.b32.xlu1 %v1940_v11, %s12679_s21  ;;  %1451 = vst.msk [vmem:[#allocation2 + $0x84] sm:$0xf] %vm1417_vm2, %v8192_v39  ;;  %v1266_v42 = vmul.f32 %v1224_v48, %v1007_v52 }
 0x20b   : > { %8652 = vmatmul.mubr.msk.bf16.vlgmr.msra.gmra.mrb[116].mxu0 %vm730_vm1, %v2063_v45  ;;  %v1971_v7 = vpop.permute.xlu1 %1970 }
 0x20c   : > { %v1458_v60 = vsel %vm10092_vm11, %v8195_v37, %v1457_v40  ;;  %v8194_v18 = vpack.c.bf16 %v1266_v42, %v1266_v42  ;;  %8655 = vmatprep.mubr.msk.bf16.mxu0 %vm730_vm1, %v2065_v13  ;;  %v2238_v20 = vsel %vm730_vm1, %v10022_v28, %v1971_v7  ;;  %v2073_v7 = vsel %vm2058_vm12, %v2070_v62, %v2072_v36 }
 0x20d   : > { %1459 = vst [vmem:[#allocation2 + $0x90] sm:$0x1] %v1458_v60  ;;  %v1732_v24 = vpop.permute.xlu0 %1731  ;;  %vm5203_vm11 = vcmask 519169  }
 0x20e   : > { %1976 = vrot.lane.b32.xlu1 %v1940_v11, %s12681_s26  ;;  %1453 = vst.msk [vmem:[#allocation2 + $0x8c] sm:$0xf] %vm1417_vm2, %v8194_v18  ;;  %v2113_v29 = vsel %vm730_vm1, %v9859_v6, %v1732_v24  ;;  %v2115_v24 = vsel %vm730_vm1, %v9927_v12, %v10244_v57 }
 0x20f   : > { %v10303_v44 = vpop.permute.xlu1 %1805  ;;  %v2146_v8 = vsel %vm2124_vm4, %v2113_v29, %v10184_v50  ;;  %v1706_v50 = vrot.slane %v1704_v59, 1 }
 0x210   : > { %v2265_v52 = vsel %vm2124_vm4, %v2238_v20, %v10303_v44  ;;  %v2189_v55 = vsel %vm2157_vm8, %v2146_v8, %v10222_v33  ;;  %v2071_v33 = vsel %vm2058_vm12, %v2068_v26, %v2070_v62  ;;  %v2078_v20 = vrot.slane %v9935_v54, 2 }
 0x211   : > { %v1495_v19 = vld [vmem:[#allocation2 + $0x84] sm:$0x7]  ;;  %v10298_v34 = vpop.permute.xlu0 %1856  ;;  %v1707_v63 = vsel %vm1583_vm6, %v10001_v16, %v1706_v50  ;;  %v2080_v8 = vrot.slane %v10051_v25, 2 }
 0x212   : > { %v1497_v58 = vld [vmem:[#allocation2 + $0x84] sm:$0xf]  ;;  %v10308_v41 = vcombine.low %v1494_v9, %v1495_v19 }
 0x213   : > { %4229 = vst.msk [vmem:[#allocation2 + $0x84] sm:$0xf] %vm4195_vm3, %v12696_v32  ;;  %v10306_v35 = vcombine.low %v1494_v9, %v1497_v58  ;;  %8656 = vmatmul.mubr.msk.bf16.gmra.mrb[120].mxu0 %vm730_vm1, %v2067_v17  ;;  %v10350_v11 = vpop.permute.xlu1 %1735  ;;  %v2074_v58 = vrot.slane %v9859_v6, 2 }
 0x214   : > { %v4234_v15 = vld [vmem:[#allocation2 + $0x90] sm:$0x1]  ;;  %8659 = vmatprep.mubr.msk.bf16.mxu0 %vm730_vm1, %v2069_v31  ;;  %v1827_v3 = vshll.u32 %v10308_v41, 16 }
 0x215   : > { %v4235_v22 = vsel %vm10294_vm14, 0, %v4234_v15  ;;  %v10321_v9 = vrot.slane %v10306_v35, 1  ;;  %v1942_v28 = vshrl.u32 %v10306_v35, 16  ;;  %v1500_v51 = vld [vmem:[#allocation2 + $0x8c] sm:$0xf]  ;;  %v2041_v14 = vpop.permute.xlu0 %2040  ;;  %v1945_v10 = vshll.u32 %v10306_v35, 16 }
 0x216   : > { %v10331_v21 = vcombine.low %v1499_v43, %v1500_v51  ;;  %4231 = vst.msk [vmem:[#allocation2 + $0x8c] sm:$0xf] %vm4195_vm3, %v12696_v32  ;;  %v2305_v56 = vsel %vm2157_vm8, %v2265_v52, %v2041_v14  ;;  %v10341_v53 = vrot.slane %v1827_v3, 1  ;;  %v10343_v39 = vld [vmem:[#allocation2 + $0x90] ss:$0 sps:$4 sm:$0x11]   ;;  %v2075_v6 = vsel %vm2058_vm12, %v2072_v36, %v2074_v58 }
 0x217   : > { %v10339_v4 = vsel %vm1749_vm5, %v10235_v1, %v10321_v9  ;;  %2672 = vmatprep.mubr.bf16.mxu1 %v2305_v56  ;;  %v1944_v43 = vrot.slane %v1942_v28, 1  ;;  %v1947_v40 = vrot.slane %v1945_v10, 2  ;;  %4236 = vst [vmem:[#allocation2 + $0x90] sm:$0x1] %v4235_v22  ;;  %v2043_v29 = vpop.permute.xlu1 %2042  ;;  %v2081_v22 = vsel %vm2058_vm12, %v2078_v20, %v2080_v8  ;;  %v2916_v3 = vld [vmem:[%s12658_s6 + $0x10] sm:$0xff]  ;;  %v2919_v10 = vld [vmem:[%s12658_s6 + $0x28] sm:$0xff] }
 0x218   : > { %1996 = vrot.lane.b32.xlu1 %v10339_v4, %s12683_s22  ;;  %2673 = vmatmul.mubr.bf16.vlgmr.msra.gmra.mrb[0].mxu1 %v2189_v55  ;;  %v1830_v37 = vsel %vm1583_vm6, %v1825_v49, %v10341_v53  ;;  %v2012_v48 = vshrl.u32 %v10331_v21, 16  ;;  %v2015_v42 = vshll.u32 %v10331_v21, 16  ;;  %v1992_v17 = vrot.slane %v10331_v21, 1  ;;  %v2918_v49 = vld [vmem:[%s12658_s6 + $0x20] sm:$0xff]  ;;  %v2920_v55 = vld [vmem:[%s12658_s6 + $0x30] sm:$0xff] }
 0x219   : > { %v1973_v45 = vpop.permute.xlu0 %1972  ;;  %1862 = vrot.lane.b32.xlu0 %v1830_v37, %s12679_s21  ;;  %v1948_v60 = vor.u32 %v1947_v40, %v1944_v43  ;;  %v1831_v28 = vshrl.u32 %v10308_v41, 16  ;;  %v2082_v51 = vrot.slane %v9971_v0, 2  ;;  %v2084_v52 = vrot.slane %v10225_v47, 2  ;;  %v2914_v47 = vld [vmem:[%s12658_s6] sm:$0xff]  ;;  %v2915_v43 = vld [vmem:[%s12658_s6 + $0x8] sm:$0xff]  ;;  %v2924_v37 = vld [vmem:[%s12658_s6 + $0x50] sm:$0xff] }
 0x21a   : > { %v2014_v13 = vrot.slane %v2012_v48, 1  ;;  %v2017_v18 = vrot.slane %v2015_v42, 2  ;;  %v2241_v16 = vsel %vm730_vm1, %v10066_v27, %v1973_v45  ;;  %v2076_v27 = vrot.slane %v9927_v12, 2  ;;  %v2923_v45 = vld [vmem:[%s12658_s6 + $0x48] sm:$0xff] }
 0x21b   : > { %8660 = vmatmul.mubr.msk.bf16.gmra.mrb[124].mxu0 %vm730_vm1, %v2071_v33  ;;  %v1949_v5 = vsel %vm1876_vm7, %v10266_v38, %v1948_v60  ;;  %v2148_v38 = vsel %vm2124_vm4, %v2115_v24, %v10212_v23  ;;  %v1993_v12 = vsel %vm1749_vm5, %v10321_v9, %v1992_v17  ;;  %v1833_v14 = vor.u32 %v1831_v28, %v10341_v53  ;;  %v2925_v33 = vld [vmem:[%s12658_s6 + $0x58] sm:$0xff]  ;;  %v2931_v24 = vld [vmem:[%s12658_s6 + $0x88] sm:$0xff] }
 0x21c   : > { %1739 = vrot.lane.b32.xlu1 %v1707_v63, %s12681_s26  ;;  %8663 = vmatprep.mubr.msk.bf16.mxu0 %vm730_vm1, %v2073_v7  ;;  %v2018_v46 = vor.u32 %v2017_v18, %v2014_v13  ;;  %v2192_v59 = vsel %vm2157_vm8, %v2148_v38, %v10298_v34  ;;  %v2077_v23 = vsel %vm2058_vm12, %v2074_v58, %v2076_v27  ;;  %v1708_v34 = vshrl.u32 %v10286_v2, 16  ;;  %v2927_v63 = vld [vmem:[%s12658_s6 + $0x68] sm:$0xff]  ;;  %v2930_v13 = vld [vmem:[%s12658_s6 + $0x80] sm:$0xff]  ;;  %v2929_v18 = vld [vmem:[%s12658_s6 + $0x78] sm:$0xff] }
 0x21d   : > { %v10371_v26 = vpop.permute.xlu0 %1807  ;;  %2046 = vrot.lane.b32.xlu0 %v1949_v5, %s12679_s21  ;;  %v2079_v62 = vsel %vm2058_vm12, %v2076_v27, %v2078_v20  ;;  %v2085_v41 = vsel %vm2058_vm12, %v2082_v51, %v2084_v52  ;;  %v2086_v56 = vrot.slane %v10306_v35, 2  ;;  %v2088_v53 = vrot.slane %v10331_v21, 2  ;;  %v2922_v35 = vld [vmem:[%s12658_s6 + $0x40] sm:$0xff]  ;;  %v2921_v21 = vld [vmem:[%s12658_s6 + $0x38] sm:$0xff]  ;;  %v2932_v7 = vld [vmem:[%s12658_s6 + $0x90] sm:$0xff] }
 0x21e   : > { %v2266_v19 = vsel %vm2124_vm4, %v2241_v16, %v10371_v26  ;;  %v2019_v15 = vsel %vm1876_vm7, %v1948_v60, %v2018_v46  ;;  %v1710_v31 = vor.u32 %v1708_v34, %v1706_v50  ;;  %v2083_v50 = vsel %vm2058_vm12, %v2080_v8, %v2082_v51  ;;  %v2933_v16 = vld [vmem:[%s12658_s6 + $0x98] sm:$0xff]  ;;  %v2938_v58 = vld [vmem:[%s12658_s6 + $0xc0] sm:$0xff]  ;;  %v2939_v38 = vld [vmem:[%s12658_s6 + $0xc8] sm:$0xff] }
 0x21f   : > { %v2308_v57 = vsel %vm2157_vm8, %v2266_v19, %v2043_v29  ;;  %v2087_v36 = vsel %vm2058_vm12, %v2084_v52, %v2086_v56  ;;  %v2089_v40 = vsel %vm2058_vm12, %v2086_v56, %v2088_v53  ;;  %v2090_v48 = vrot.slane %v10343_v39, 2  ;;  %v2928_v39 = vld [vmem:[%s12658_s6 + $0x70] sm:$0xff]  ;;  %v2935_v19 = vld [vmem:[%s12658_s6 + $0xa8] sm:$0xff]  ;;  %v2942_v27 = vld [vmem:[%s12658_s6 + $0xe0] sm:$0xff] }
 0x220   : > { %1980 = vrot.lane.b32.xlu1 %v1948_v60, %s12681_s26  ;;  %2680 = vmatprep.mubr.bf16.mxu1 %v2308_v57  ;;  %v2926_v60 = vld [vmem:[%s12658_s6 + $0x60] sm:$0xff]  ;;  %v2936_v29 = vld [vmem:[%s12658_s6 + $0xb0] sm:$0xff]  ;;  %vm5309_vm14 = vcmask 1042432  }
 0x221   : > { %2681 = vmatmul.mubr.bf16.gmra.mrb[4].mxu1 %v2192_v59  ;;  %1978 = vrot.lane.b32.xlu0 %v1949_v5, %s12681_s26  ;;  %v2091_v42 = vsel %vm2058_vm12, %v2088_v53, %v2090_v48  ;;  %v2934_v5 = vld [vmem:[%s12658_s6 + $0xa0] sm:$0xff]  ;;  %v2940_v57 = vld [vmem:[%s12658_s6 + $0xd0] sm:$0xff]  ;;  %vm11857_vm9 = vmpackc.low %vm5309_vm14, %vm9126_vm15  ;;  %vm5551_vm15 = vsmask.f32 3330 }
 0x223   : > { %8664 = vmatmul.mubr.msk.bf16.gmra.mrb[128].mxu0 %vm730_vm1, %v2075_v6 }
 0x224   : > { %2048 = vrot.lane.b32.xlu1 %v2019_v15, %s12679_s21  ;;  %8667 = vmatprep.mubr.msk.bf16.mxu0 %vm730_vm1, %v2077_v23  ;;  %v1859_v15 = vpop.permute.xlu0 %1858 }
 0x225   : > { %1998 = vrot.lane.b32.xlu0 %v1993_v12, %s12683_s22 }
 0x228   : > { %2000 = vrot.lane.b32.xlu1 %v1992_v17, %s12683_s22  ;;  %v2941_v17 = vld [vmem:[%s12658_s6 + $0xd8] sm:$0xff]  ;;  %v1738_v8 = vpop.permute.xlu0 %1737 }
 0x229   : > { %1741 = vrot.lane.b32.xlu0 %v1710_v31, %s12681_s26  ;;  %v2943_v31 = vld [vmem:[%s12658_s6 + $0xe8] sm:$0xff]  ;;  %s12699_s26 = smov 32  }
 0x22b   : > { %8668 = vmatmul.mubr.msk.bf16.gmra.mrb[132].mxu0 %vm730_vm1, %v2079_v62  ;;  %v2945_v62 = vld [vmem:[%s12658_s6 + $0xf8] sm:$0x1f] }
 0x22c   : > { %2050 = vrot.lane.b32.xlu1 %v2018_v46, %s12679_s21  ;;  %8671 = vmatprep.mubr.msk.bf16.mxu0 %vm730_vm1, %v2081_v22  ;;  %v2937_v46 = vld [vmem:[%s12658_s6 + $0xb8] sm:$0xff]  ;;  %v1975_v51 = vpop.permute.xlu0 %1974 }
 0x22d   : > { %1811 = vrot.lane.b32.xlu0 %v10235_v1, %s12683_s22  ;;  %v2917_v1 = vld [vmem:[%s12658_s6 + $0x18] sm:$0xff] }
 0x230   : > { %2958 = vperm.xlu1 %8875, %v2916_v3   ;;  %v2944_v3 = vld [vmem:[%s12658_s6 + $0xf0] sm:$0xff] }
 0x231   : > { %1864 = vrot.lane.b32.xlu0 %v1833_v14, %s12679_s21 }
 0x233   : > { %8672 = vmatmul.mubr.msk.bf16.gmra.mrb[136].mxu0 %vm730_vm1, %v2083_v50 }
 0x234   : > { %2968 = vperm.xlu1 %8875, %v2918_v49   ;;  %8675 = vmatprep.mubr.msk.bf16.mxu0 %vm730_vm1, %v2085_v41 }
 0x235   : > { %2963 = vperm.xlu0 %8874, %v2917_v1  }
 0x238   : > { %2948 = vperm.xlu1 %8875, %v2914_v47   ;;  %v2117_v47 = vsel %vm730_vm1, %v9935_v54, %v10350_v11  ;;  %v8926_v54 = vld [vmem:[%s12659_s7 + $0x88] sm:$0xff]  }
 0x239   : > { %2973 = vperm.xlu0 %8874, %v2919_v10   ;;  %v2244_v10 = vsel %vm730_vm1, %v10116_v30, %v1975_v51 }
 0x23b   : > { %8676 = vmatmul.mubr.msk.bf16.gmra.mrb[140].mxu0 %vm730_vm1, %v2087_v36  ;;  %v2150_v36 = vsel %vm2124_vm4, %v2117_v47, %v10303_v44 }
 0x23c   : > { %2978 = vperm.xlu1 %8875, %v2920_v55   ;;  %8679 = vmatprep.mubr.msk.bf16.mxu0 %vm730_vm1, %v2089_v40  ;;  %v8921_v40 = vld [vmem:[%s12659_s7 + $0x80] sm:$0xff]  }
 0x23d   : > { %2953 = vperm.xlu0 %8874, %v2915_v43   ;;  %v2195_v43 = vsel %vm2157_vm8, %v2150_v36, %v1859_v15  ;;  %8683 = vmatprep.subr.bf16.mxu0 %v8921_v40 }
 0x23e   : > { %8684 = vmatpush3.bf16.msra.mxu0 %v8921_v40 }
 0x23f   : > { %8685 = vmatprep.subr.bf16.mxu0 %v8926_v54 }
 0x240   : > { %2988 = vperm.xlu1 %8875, %v2922_v35  }
 0x241   : > { %2983 = vperm.xlu0 %8874, %v2921_v21  }
 0x242   : > { %8686 = vmatpush3.bf16.msra.mxu0 %v8926_v54 }
 0x243   : > { %8680 = vmatmul.mubr.msk.bf16.gmra.mrb[144].mxu0 %vm730_vm1, %v2091_v42 }
 0x244   : > { %2998 = vperm.xlu1 %8875, %v2924_v37  }
 0x245   : > { %2993 = vperm.xlu0 %8874, %v2923_v45  }
 0x248   : > { %3008 = vperm.xlu1 %8875, %v2926_v60   ;;  %v2119_v60 = vsel %vm730_vm1, %v10051_v25, %v1738_v8 }
 0x249   : > { %3003 = vperm.xlu0 %8874, %v2925_v33  }
 0x24c   : > { %3018 = vperm.xlu1 %8875, %v2928_v39  }
 0x24d   : > { %3013 = vperm.xlu0 %8874, %v2927_v63  }
 0x250   : > { %3028 = vperm.xlu1 %8875, %v2930_v13  }
 0x251   : > { %3023 = vperm.xlu0 %8874, %v2929_v18  }
 0x254   : > { %3038 = vperm.xlu1 %8875, %v2932_v7  }
 0x255   : > { %3033 = vperm.xlu0 %8874, %v2931_v24  }
 0x258   : > { %3048 = vperm.xlu1 %8875, %v2934_v5   ;;  %v2152_v5 = vsel %vm2124_vm4, %v2119_v60, %v10371_v26 }
 0x259   : > { %3043 = vperm.xlu0 %8874, %v2933_v16  }
 0x25c   : > { %3058 = vperm.xlu1 %8875, %v2936_v29  }
 0x25d   : > { %3053 = vperm.xlu0 %8874, %v2935_v19  }
 0x260   : > { %3068 = vperm.xlu1 %8875, %v2938_v58  }
 0x261   : > { %3063 = vperm.xlu0 %8874, %v2937_v46  }
 0x264   : > { %3078 = vperm.xlu1 %8875, %v2940_v57  }
 0x265   : > { %3073 = vperm.xlu0 %8874, %v2939_v38  }
 0x266   : > { %v8297_v59 = vpop.f32.mrb[76].mxu0 }
 0x267   : > { %v8298_v6 = vpop.f32.mrb[77].mxu0 }
 0x268   : > { %3088 = vperm.xlu1 %8875, %v2942_v27   ;;  %v10512_v23 = vadd.f32 %v8298_v6, %v8297_v59  ;;  %v8300_v12 = vpop.f32.mrb[78].mxu0 }
 0x269   : > { %3083 = vperm.xlu0 %8874, %v2941_v17   ;;  %v8301_v34 = vpop.f32.mrb[79].mxu0 }
 0x26a   : > { %v10514_v20 = vadd.f32 %v8301_v34, %v8300_v12 }
 0x26d   : > { %3093 = vperm.xlu0 %8874, %v2943_v31  }
 0x271   : > { %3103 = vperm.xlu0 %8874, %v2945_v62  }
 0x272   : > { %v8303_v22 = vpop.f32.mrb[80].mxu0 }
 0x273   : > { %v8304_v28 = vpop.f32.mrb[81].mxu0 }
 0x274   : > { %v10525_v14 = vadd.f32 %v8304_v28, %v8303_v22  ;;  %v8306_v52 = vpop.f32.mrb[82].mxu0 }
 0x275   : > { %3098 = vperm.xlu0 %8874, %v2944_v3   ;;  %v8307_v49 = vpop.f32.mrb[83].mxu0 }
 0x276   : > { %v10527_v50 = vadd.f32 %v8307_v49, %v8306_v52  ;;  %v1810_v41 = vpop.permute.xlu0 %1809 }
 0x277   : > { %v2267_v56 = vsel %vm2124_vm4, %v2244_v10, %v1810_v41 }
 0x278   : > { %v1861_v1 = vpop.permute.xlu1 %1860 }
 0x279   : > { %v2198_v25 = vsel %vm2157_vm8, %v2152_v5, %v1861_v1 }
 0x27c   : > { %v2045_v53 = vpop.permute.xlu1 %2044 }
 0x27d   : > { %v2311_v55 = vsel %vm2157_vm8, %v2267_v56, %v2045_v53 }
 0x27e   : > { %2688 = vmatprep.mubr.bf16.mxu1 %v2311_v55 }
 0x27f   : > { %2689 = vmatmul.mubr.bf16.gmra.mrb[8].mxu1 %v2195_v43 }
 0x280   : > { %v1977_v30 = vpop.permute.xlu1 %1976 }
 0x281   : > { %v2247_v39 = vsel %vm730_vm1, %v10250_v61, %v1977_v30 }
 0x286   : > { %v8309_v11 = vpop.f32.mrb[84].mxu0 }
 0x287   : > { %v8310_v35 = vpop.f32.mrb[85].mxu0 }
 0x288   : > { %v10545_v44 = vadd.f32 %v8310_v35, %v8309_v11  ;;  %v8312_v21 = vpop.f32.mrb[86].mxu0 }
 0x289   : > { %v8313_v48 = vpop.f32.mrb[87].mxu0 }
 0x28a   : > { %v1997_v37 = vpop.permute.xlu1 %1996  ;;  %v10547_v42 = vadd.f32 %v8313_v48, %v8312_v21 }
 0x28b   : > { %v1863_v45 = vpop.permute.xlu0 %1862  ;;  %v2269_v63 = vsel %vm2124_vm4, %v2247_v39, %v1997_v37 }
 0x28e   : > { %v1740_v33 = vpop.permute.xlu1 %1739 }
 0x28f   : > { %v2047_v13 = vpop.permute.xlu0 %2046  ;;  %v8315_v18 = vpop.f32.mrb[88].mxu0  ;;  %v2121_v57 = vsel %vm730_vm1, %v9971_v0, %v1740_v33 }
 0x290   : > { %v8316_v7 = vpop.f32.mrb[89].mxu0  ;;  %v2314_v24 = vsel %vm2157_vm8, %v2269_v63, %v2047_v13  ;;  %v2154_v59 = vsel %vm2124_vm4, %v2121_v57, %v1810_v41 }
 0x291   : > { %v10557_v16 = vadd.f32 %v8316_v7, %v8315_v18  ;;  %v8318_v19 = vpop.f32.mrb[90].mxu0  ;;  %2696 = vmatprep.mubr.bf16.mxu1 %v2314_v24  ;;  %v2201_v34 = vsel %vm2157_vm8, %v2154_v59, %v1863_v45 }
 0x292   : > { %v1981_v29 = vpop.permute.xlu1 %1980  ;;  %v8319_v58 = vpop.f32.mrb[91].mxu0  ;;  %2697 = vmatmul.mubr.bf16.gmra.mrb[12].mxu1 %v2198_v25 }
 0x293   : > { %v10560_v61 = vadd.f32 %v8319_v58, %v8318_v19  ;;  %v1979_v46 = vpop.permute.xlu0 %1978  ;;  %v2253_v0 = vsel %vm730_vm1, %v10321_v9, %v1981_v29 }
 0x294   : > { %v2250_v27 = vsel %vm730_vm1, %v10339_v4, %v1979_v46 }
 0x296   : > { %v2049_v38 = vpop.permute.xlu1 %2048 }
 0x297   : > { %v1999_v26 = vpop.permute.xlu0 %1998 }
 0x298   : > { %v2271_v17 = vsel %vm2124_vm4, %v2250_v27, %v1999_v26 }
 0x299   : > { %v2317_v15 = vsel %vm2157_vm8, %v2271_v17, %v2049_v38 }
 0x29a   : > { %v2001_v6 = vpop.permute.xlu1 %2000  ;;  %v8321_v12 = vpop.f32.mrb[92].mxu0  ;;  %2704 = vmatprep.mubr.bf16.mxu1 %v2317_v15  ;;  %v10609_v15 = vld [vmem:[%s12657_s5] ss:$0 sm:$0xff] }
 0x29b   : > { %2705 = vmatmul.mubr.bf16.gmra.mrb[16].mxu1 %v2201_v34  ;;  %v1742_v31 = vpop.permute.xlu0 %1741  ;;  %v8322_v8 = vpop.f32.mrb[93].mxu0  ;;  %v2273_v22 = vsel %vm2124_vm4, %v2253_v0, %v2001_v6  ;;  %v2603_v34 = vadd.f32 %v10525_v14, %v10609_v15 }
 0x29c   : > { %v10572_v62 = vadd.f32 %v8322_v8, %v8321_v12  ;;  %v8324_v4 = vpop.f32.mrb[94].mxu0  ;;  %v2123_v1 = vsel %vm730_vm1, %v10286_v2, %v1742_v31  ;;  %v2595_v8 = vadd.f32 %v10512_v23, %v10609_v15 }
 0x29d   : > { %v8325_v28 = vpop.f32.mrb[95].mxu0 }
 0x29e   : > { %v2051_v3 = vpop.permute.xlu1 %2050  ;;  %v10575_v51 = vadd.f32 %v8325_v28, %v8324_v4 }
 0x29f   : > { %v2320_v52 = vsel %vm2157_vm8, %v2273_v22, %v2051_v3  ;;  %v1812_v49 = vpop.permute.xlu0 %1811  ;;  %v2606_v22 = vadd.f32 %v10527_v50, %v10609_v15  ;;  %v8935_v50 = vld [vmem:[%s12659_s7 + $0x40] sm:$0xff]  }
 0x2a0   : > { %2712 = vmatprep.mubr.bf16.mxu1 %v2320_v52  ;;  %v2156_v41 = vsel %vm2124_vm4, %v2123_v1, %v1812_v49  ;;  %v2598_v49 = vadd.f32 %v10514_v20, %v10609_v15  ;;  %8411 = vmatprep.subr.bf16.mxu1 %v8935_v50 }
 0x2a3   : > { %v1865_v47 = vpop.permute.xlu0 %1864  ;;  %v8327_v9 = vpop.f32.mrb[96].mxu0 }
 0x2a4   : > { %v8328_v10 = vpop.f32.mrb[97].mxu0  ;;  %v2204_v56 = vsel %vm2157_vm8, %v2156_v41, %v1865_v47 }
 0x2a5   : > { %v10582_v53 = vadd.f32 %v8328_v10, %v8327_v9  ;;  %v8330_v55 = vpop.f32.mrb[98].mxu0  ;;  %2713 = vmatmul.mubr.bf16.gmra.mrb[20].mxu1 %v2204_v56 }
 0x2a6   : > { %v8331_v36 = vpop.f32.mrb[99].mxu0 }
 0x2a7   : > { %v10584_v43 = vadd.f32 %v8331_v36, %v8330_v55 }
 0x2ae   : > { %v8333_v40 = vpop.f32.mrb[100].mxu0 }
 0x2af   : > { %v8334_v54 = vpop.f32.mrb[101].mxu0  ;;  %v2959_v39 = vpop.permute.xlu1 %2958 }
 0x2b0   : > { %v10586_v30 = vadd.f32 %v8334_v54, %v8333_v40  ;;  %v8336_v11 = vpop.f32.mrb[102].mxu0  ;;  %v8936_v40 = vld [vmem:[%s12659_s7] sm:$0xff]  }
 0x2b1   : > { %v8337_v2 = vpop.f32.mrb[103].mxu0  ;;  %8412 = vmatpush3.bf16.msra.mxu1 %v8936_v40 }
 0x2b2   : > { %v10588_v35 = vadd.f32 %v8337_v2, %v8336_v11  ;;  %v2619_v11 = vadd.f32 %v10557_v16, %v10609_v15 }
 0x2b3   : > { %v10596_v5 = vpop.permute.xlu1 %2968 }
 0x2b4   : > { %v2964_v63 = vpop.permute.xlu0 %2963 }
 0x2b7   : > { %v8339_v21 = vpop.f32.mrb[104].mxu0  ;;  %v2949_v58 = vpop.permute.xlu1 %2948 }
 0x2b8   : > { %v8340_v37 = vpop.f32.mrb[105].mxu0  ;;  %v10600_v25 = vpop.permute.xlu0 %2973 }
 0x2b9   : > { %v10590_v48 = vadd.f32 %v8340_v37, %v8339_v21  ;;  %v8342_v45 = vpop.f32.mrb[106].mxu0 }
 0x2ba   : > { %v8343_v60 = vpop.f32.mrb[107].mxu0 }
 0x2bb   : > { %v10592_v33 = vadd.f32 %v8343_v60, %v8342_v45  ;;  %v2979_v17 = vpop.permute.xlu1 %2978  ;;  %v2611_v60 = vadd.f32 %v10545_v44, %v10609_v15  ;;  %v8937_v44 = vld [vmem:[%s12659_s7 + $0x48] sm:$0xff]  }
 0x2bc   : > { %v2954_v57 = vpop.permute.xlu0 %2953  ;;  %8413 = vmatprep.subr.bf16.mxu1 %v8937_v44 }
 0x2bf   : > { %v10619_v3 = vpop.permute.xlu1 %2988 }
 0x2c0   : > { %v10611_v12 = vpop.permute.xlu0 %2983 }
 0x2c3   : > { %v10633_v2 = vpop.permute.xlu1 %2998 }
 0x2c4   : > { %v10623_v10 = vpop.permute.xlu0 %2993 }
 0x2cb   : > { %v8345_v13 = vpop.f32.mrb[108].mxu0 }
 0x2cc   : > { %v8346_v18 = vpop.f32.mrb[109].mxu0 }
 0x2cd   : > { %v10594_v7 = vadd.f32 %v8346_v18, %v8345_v13  ;;  %v8348_v24 = vpop.f32.mrb[110].mxu0 }
 0x2ce   : > { %v8349_v29 = vpop.f32.mrb[111].mxu0 }
 0x2cf   : > { %v10598_v19 = vadd.f32 %v8349_v29, %v8348_v24 }
 0x2d6   : > { %v8351_v46 = vpop.f32.mrb[112].mxu0 }
 0x2d7   : > { %v8352_v38 = vpop.f32.mrb[113].mxu0 }
 0x2d8   : > { %v10602_v27 = vadd.f32 %v8352_v38, %v8351_v46  ;;  %v8354_v26 = vpop.f32.mrb[114].mxu0  ;;  %v8938_v46 = vld [vmem:[%s12659_s7 + $0x8] sm:$0xff]  }
 0x2d9   : > { %v8355_v59 = vpop.f32.mrb[115].mxu0  ;;  %8414 = vmatpush3.bf16.msra.mxu1 %v8938_v46 }
 0x2da   : > { %v10604_v6 = vadd.f32 %v8355_v59, %v8354_v26 }
 0x2de   : > { %v8653_v31 = vpop.f32.mrb[116].mxu0 }
 0x2df   : > { %v2764_v0 = vadd.f32 %v8653_v31, %v2603_v34  ;;  %v2755_v4 = vpop.f32.mrb[117].mxu0  ;;  %v2630_v31 = vadd.f32 %v10575_v51, %v10609_v15  ;;  %v10666_v51 = vadd.f32 %v10586_v30, %v10609_v15  ;;  %v10681_v30 = vadd.f32 %v10590_v48, %v10609_v15 }
 0x2e0   : > { %v2756_v28 = vadd.f32 %v2755_v4, %v2595_v8  ;;  %v8654_v52 = vpop.f32.mrb[118].mxu0 }
 0x2e1   : > { %v2884_v1 = vmax.f32 %v2764_v0, 0.0  ;;  %v2767_v41 = vadd.f32 %v8654_v52, %v2606_v22  ;;  %v2758_v47 = vpop.f32.mrb[119].mxu0  ;;  %v2635_v22 = vadd.f32 %v10582_v53, %v10609_v15  ;;  %v10661_v52 = vpop.permute.xlu1 %3008  ;;  %v8939_v53 = vld [vmem:[%s12659_s7 + $0x50] sm:$0xff]  }
 0x2e2   : > { %v2882_v14 = vmax.f32 %v2756_v28, 0.0  ;;  %v2759_v9 = vadd.f32 %v2758_v47, %v2598_v49  ;;  %v2638_v28 = vadd.f32 %v10584_v43, %v10609_v15  ;;  %v8940_v43 = vld [vmem:[%s12659_s7 + $0x10] sm:$0xff]   ;;  %8415 = vmatprep.subr.bf16.mxu1 %v8939_v53  ;;  %v8943_v53 = vld [vmem:[%s12659_s7 + $0x60] sm:$0xff]  }
 0x2e3   : > { %v3108_v23 = vmul.f32 %v2959_v39, %v2884_v1  ;;  %v2885_v56 = vmax.f32 %v2767_v41, 0.0  ;;  %8416 = vmatpush3.bf16.msra.mxu1 %v8940_v43 }
 0x2e4   : > { %v3106_v55 = vmul.f32 %v2949_v58, %v2882_v14  ;;  %v2883_v36 = vmax.f32 %v2759_v9, 0.0  ;;  %v2614_v58 = vadd.f32 %v10547_v42, %v10609_v15  ;;  %v2627_v42 = vadd.f32 %v10572_v62, %v10609_v15 }
 0x2e5   : > { %v8198_v20 = vpack.c.bf16 %v3108_v23, %v3108_v23  ;;  %v3109_v54 = vmul.f32 %v2964_v63, %v2885_v56  ;;  %v2622_v63 = vadd.f32 %v10560_v61, %v10609_v15 }
 0x2e6   : > { %v8196_v21 = vpack.c.bf16 %v3106_v55, %v3106_v55  ;;  %v3107_v37 = vmul.f32 %v2954_v57, %v2883_v36  ;;  %v8657_v45 = vpop.f32.mrb[120].mxu0  ;;  %v10649_v57 = vpop.permute.xlu0 %3003  ;;  %v10686_v55 = vadd.f32 %v10592_v33, %v10609_v15  ;;  %v10690_v36 = vadd.f32 %v10594_v7, %v10609_v15 }
 0x2e7   : > { %3268 = vst.msk [vmem:[#allocation3 + $0x8] sm:$0xf] %vm1417_vm2, %v8198_v20  ;;  %v8199_v39 = vpack.c.bf16 %v3109_v54, %v3109_v54  ;;  %v2780_v13 = vadd.f32 %v8657_v45, %v2619_v11  ;;  %v2771_v18 = vpop.f32.mrb[121].mxu0  ;;  %v10699_v54 = vadd.f32 %v10598_v19, %v10609_v15  ;;  %v10704_v45 = vadd.f32 %v10602_v27, %v10609_v15 }
 0x2e8   : > { %3266 = vst.msk [vmem:[#allocation3] sm:$0xf] %vm1417_vm2, %v8196_v21  ;;  %v8197_v16 = vpack.c.bf16 %v3107_v37, %v3107_v37  ;;  %v2772_v24 = vadd.f32 %v2771_v18, %v2611_v60  ;;  %v8658_v29 = vpop.f32.mrb[122].mxu0  ;;  %v10708_v60 = vadd.f32 %v10604_v6, %v10609_v15 }
 0x2e9   : > { %3269 = vst.msk [vmem:[#allocation3 + $0xc] sm:$0xf] %vm1417_vm2, %v8199_v39  ;;  %v2888_v61 = vmax.f32 %v2780_v13, 0.0  ;;  %v2783_v38 = vadd.f32 %v8658_v29, %v2622_v63  ;;  %v2774_v26 = vpop.f32.mrb[123].mxu0  ;;  %v10716_v29 = vpop.permute.xlu1 %3018 }
 0x2ea   : > { %3267 = vst.msk [vmem:[#allocation3 + $0x4] sm:$0xf] %vm1417_vm2, %v8197_v16  ;;  %v2886_v59 = vmax.f32 %v2772_v24, 0.0  ;;  %v2775_v34 = vadd.f32 %v2774_v26, %v2614_v58 }
 0x2eb   : > { %v3112_v8 = vmul.f32 %v2979_v17, %v2888_v61  ;;  %v2889_v0 = vmax.f32 %v2783_v38, 0.0  ;;  %v8357_v4 = vpop.f32.mrb[0].mxu1  ;;  %v10670_v17 = vadd.f32 %v10588_v35, %v10609_v15 }
 0x2ec   : > { %v3110_v49 = vmul.f32 %v10596_v5, %v2886_v59  ;;  %v2887_v1 = vmax.f32 %v2775_v34, 0.0  ;;  %v8358_v62 = vpop.f32.mrb[1].mxu1 }
 0x2ed   : > { %v8202_v41 = vpack.c.bf16 %v3112_v8, %v3112_v8  ;;  %v3113_v5 = vmul.f32 %v10611_v12, %v2889_v0  ;;  %v8359_v47 = vadd.f32 %v8358_v62, %v8357_v4  ;;  %v8360_v14 = vpop.f32.mrb[2].mxu1  ;;  %v10692_v12 = vpop.permute.xlu0 %3013  ;;  %v8941_v62 = vld [vmem:[%s12659_s7 + $0x58] sm:$0xff]  }
 0x2ee   : > { %v8200_v9 = vpack.c.bf16 %v3110_v49, %v3110_v49  ;;  %v3111_v35 = vmul.f32 %v10600_v25, %v2887_v1  ;;  %v8361_v23 = vpop.f32.mrb[3].mxu1  ;;  %v8661_v56 = vpop.f32.mrb[124].mxu0  ;;  %v3305_v20 = vld [vmem:[#allocation3 + $0x8] sm:$0xf]  ;;  %8417 = vmatprep.subr.bf16.mxu1 %v8941_v62 }
 0x2ef   : > { %3272 = vst.msk [vmem:[#allocation3 + $0x18] sm:$0xf] %vm1417_vm2, %v8202_v41  ;;  %v8203_v48 = vpack.c.bf16 %v3113_v5, %v3113_v5  ;;  %v10695_v50 = vadd.f32 %v8361_v23, %v8360_v14  ;;  %v2796_v40 = vadd.f32 %v8661_v56, %v2635_v22  ;;  %v2787_v25 = vpop.f32.mrb[125].mxu0  ;;  %v3335_v37 = vld [vmem:[#allocation3] sm:$0xe]  ;;  %v10714_v24 = vadd.f32 %v8359_v47, %v10609_v15 }
 0x2f0   : > { %3270 = vst.msk [vmem:[#allocation3 + $0x10] sm:$0xf] %vm1417_vm2, %v8200_v9  ;;  %v8201_v33 = vpack.c.bf16 %v3111_v35, %v3111_v35  ;;  %v2788_v7 = vadd.f32 %v2787_v25, %v2627_v42  ;;  %v8662_v11 = vpop.f32.mrb[126].mxu0  ;;  %v3306_v21 = vld [vmem:[#allocation3 + $0xc] sm:$0xf]  ;;  %v10750_v25 = vpop.permute.xlu1 %3028 }
 0x2f1   : > { %3273 = vst.msk [vmem:[#allocation3 + $0x1c] sm:$0xf] %vm1417_vm2, %v8203_v48  ;;  %v2892_v19 = vmax.f32 %v2796_v40, 0.0  ;;  %v2799_v39 = vadd.f32 %v8662_v11, %v2638_v28  ;;  %v2790_v13 = vpop.f32.mrb[127].mxu0  ;;  %v3304_v18 = vld [vmem:[#allocation3 + $0x4] sm:$0xf]  ;;  %v10711_v63 = vcombine.low %v3305_v20, %v3306_v21  ;;  %v10727_v22 = vpop.permute.xlu0 %3023 }
 0x2f2   : > { %v3303_v16 = vld [vmem:[#allocation3] sm:$0xf]  ;;  %3271 = vst.msk [vmem:[#allocation3 + $0x14] sm:$0xf] %vm1417_vm2, %v8201_v33  ;;  %v2890_v27 = vmax.f32 %v2788_v7, 0.0  ;;  %v2791_v58 = vadd.f32 %v2790_v13, %v2630_v31  ;;  %v7960_v6 = vcombine.low %v3335_v37, %v3304_v18  ;;  %v8944_v37 = vld [vmem:[%s12659_s7 + $0x20] sm:$0xff]  }
 0x2f3   : > { %v10719_v44 = vcombine.low %v3303_v16, %v3304_v18  ;;  %v3116_v46 = vmul.f32 %v10633_v2, %v2892_v19  ;;  %v2893_v61 = vmax.f32 %v2799_v39, 0.0  ;;  %v3592_v38 = vrot.slane %v10711_v63, 1  ;;  %v3339_v59 = vld [vmem:[#allocation3 + $0x8] sm:$0xe] }
 0x2f4   : > { %v3434_v26 = vshll.u32 %v10711_v63, 16  ;;  %v3114_v34 = vmul.f32 %v10619_v3, %v2890_v27  ;;  %v2891_v42 = vmax.f32 %v2791_v58, 0.0  ;;  %v8363_v8 = vpop.f32.mrb[4].mxu1  ;;  %v3591_v0 = vrot.slane %v7960_v6, 1  ;;  %v8942_v3 = vld [vmem:[%s12659_s7 + $0x18] sm:$0xff]   ;;  %v3039_v62 = vpop.permute.xlu1 %3038 }
 0x2f5   : > { %v10725_v4 = vcombine.low %v3339_v59, %v3306_v21  ;;  %v8206_v31 = vpack.c.bf16 %v3116_v46, %v3116_v46  ;;  %v3117_v28 = vmul.f32 %v10649_v57, %v2893_v61  ;;  %v8364_v49 = vpop.f32.mrb[5].mxu1  ;;  %v3427_v2 = vshrl.u32 %v10719_v44, 16  ;;  %8418 = vmatpush3.bf16.msra.mxu1 %v8942_v3 }
 0x2f6   : > { %v3429_v1 = vshll.u32 %v10719_v44, 16  ;;  %v8204_v43 = vpack.c.bf16 %v3114_v34, %v3114_v34  ;;  %v3115_v57 = vmul.f32 %v10623_v10, %v2891_v42  ;;  %v8365_v41 = vadd.f32 %v8364_v49, %v8363_v8  ;;  %v8366_v5 = vpop.f32.mrb[6].mxu1  ;;  %v8665_v47 = vpop.f32.mrb[128].mxu0  ;;  %8419 = vmatprep.subr.bf16.mxu1 %v8943_v53 }
 0x2f7   : > { %v3593_v14 = vsel %vm1749_vm5, %v3591_v0, %v3592_v38  ;;  %3276 = vst.msk [vmem:[#allocation3 + $0x28] sm:$0xf] %vm1417_vm2, %v8206_v31  ;;  %v8207_v9 = vpack.c.bf16 %v3117_v28, %v3117_v28  ;;  %v2812_v35 = vadd.f32 %v8665_v47, %v10681_v30  ;;  %v8367_v23 = vpop.f32.mrb[7].mxu1  ;;  %v2803_v56 = vpop.f32.mrb[129].mxu0  ;;  %v10748_v40 = vrot.slane %v3434_v26, 1 }
 0x2f8   : > { %3622 = vrot.lane.b32.xlu0 %v3593_v14, %s12683_s22  ;;  %v3431_v48 = vrot.slane %v3429_v1, 1  ;;  %v3307_v10 = vld [vmem:[#allocation3 + $0x10] sm:$0xf]  ;;  %3274 = vst.msk [vmem:[#allocation3 + $0x20] sm:$0xf] %vm1417_vm2, %v8204_v43  ;;  %v8205_v20 = vpack.c.bf16 %v3115_v57, %v3115_v57  ;;  %v10753_v33 = vadd.f32 %v8367_v23, %v8366_v5  ;;  %v2804_v7 = vadd.f32 %v2803_v56, %v10666_v51  ;;  %v8666_v11 = vpop.f32.mrb[130].mxu0  ;;  %v10783_v28 = vpop.permute.xlu0 %3033 }
 0x2f9   : > { %v10756_v30 = vld [vmem:[#allocation3 + $0x18] sm:$0xff]   ;;  %v3718_v21 = vshrl.u32 %v10725_v4, 16  ;;  %3277 = vst.msk [vmem:[#allocation3 + $0x2c] sm:$0xf] %vm1417_vm2, %v8207_v9  ;;  %v2896_v19 = vmax.f32 %v2812_v35, 0.0  ;;  %v2815_v39 = vadd.f32 %v8666_v11, %v10686_v55  ;;  %v2806_v13 = vpop.f32.mrb[131].mxu0  ;;  %v10765_v51 = vadd.f32 %v8365_v41, %v10609_v15  ;;  %8420 = vmatpush3.bf16.msra.mxu1 %v8944_v37 }
 0x2fa   : > { %v3432_v18 = vor.u32 %v3431_v48, %v3427_v2  ;;  %v3308_v16 = vld [vmem:[#allocation3 + $0x14] sm:$0xf]  ;;  %v3344_v27 = vld [vmem:[#allocation3 + $0x10] sm:$0xc]  ;;  %3275 = vst.msk [vmem:[#allocation3 + $0x24] sm:$0xf] %vm1417_vm2, %v8205_v20  ;;  %v2807_v6 = vadd.f32 %v2806_v13, %v10670_v17 }
 0x2fb   : > { %v2894_v58 = vmax.f32 %v2804_v7, 0.0  ;;  %v10769_v46 = vcombine.low %v3307_v10, %v3308_v16  ;;  %v7967_v61 = vcombine.low %v3344_v27, %v3308_v16  ;;  %v3120_v26 = vmul.f32 %v10716_v29, %v2896_v19  ;;  %v3341_v31 = vld [vmem:[#allocation3 + $0x10] sm:$0xe]  ;;  %v8946_v29 = vld [vmem:[%s12659_s7 + $0x68] sm:$0xff]   ;;  %v8948_v5 = vld [vmem:[%s12659_s7 + $0x70] sm:$0xff]  }
 0x2fc   : > { %v2897_v59 = vmax.f32 %v2815_v39, 0.0  ;;  %v3437_v55 = vsel %vm1583_vm6, %v3432_v18, %v10748_v40  ;;  %v3899_v34 = vrot.slane %v10756_v30, 2  ;;  %v2895_v8 = vmax.f32 %v2807_v6, 0.0  ;;  %8421 = vmatprep.subr.bf16.mxu1 %v8946_v29  ;;  %v8949_v23 = vld [vmem:[%s12659_s7 + $0x30] sm:$0xff]  }
 0x2fd   : > { %v3118_v42 = vmul.f32 %v10661_v52, %v2894_v58  ;;  %3553 = vrot.lane.b32.xlu0 %v3437_v55, %s12699_s26  ;;  %v3898_v0 = vrot.slane %v7967_v61, 2  ;;  %v10778_v17 = vrot.slane %v10756_v30, 1  ;;  %v8210_v49 = vpack.c.bf16 %v3120_v26, %v3120_v26  ;;  %v3049_v26 = vpop.permute.xlu1 %3048 }
 0x2fe   : > { %v3121_v2 = vmul.f32 %v10727_v22, %v2897_v59  ;;  %v10786_v1 = vcombine.low %v3341_v31, %v3308_v16  ;;  %v10789_v52 = vrot.slane %v10769_v46, 1  ;;  %v3119_v53 = vmul.f32 %v10692_v12, %v2895_v8  ;;  %v8669_v43 = vpop.f32.mrb[132].mxu0  ;;  %v8947_v22 = vld [vmem:[%s12659_s7 + $0x28] sm:$0xff]  }
 0x2ff   : > { %v8208_v3 = vpack.c.bf16 %v3118_v42, %v3118_v42  ;;  %v3900_v57 = vsel %vm2058_vm12, %v3898_v0, %v3899_v34  ;;  %v3442_v41 = vshll.u32 %v10769_v46, 16  ;;  %3280 = vst.msk [vmem:[#allocation3 + $0x38] sm:$0xf] %vm1417_vm2, %v8210_v49  ;;  %v2828_v12 = vadd.f32 %v8669_v43, %v10704_v45  ;;  %v2819_v14 = vpop.f32.mrb[133].mxu0  ;;  %8422 = vmatpush3.bf16.msra.mxu1 %v8947_v22 }
 0x300   : > { %v8211_v47 = vpack.c.bf16 %v3121_v2, %v3121_v2  ;;  %8687 = vmatprep.mubr.msk.bf16.mxu0 %vm730_vm1, %v3900_v57  ;;  %v3830_v9 = vrot.slane %v10786_v1, 1  ;;  %v3595_v35 = vsel %vm1749_vm5, %v3592_v38, %v10789_v52  ;;  %v8209_v56 = vpack.c.bf16 %v3119_v53, %v3119_v53  ;;  %v8670_v45 = vpop.f32.mrb[134].mxu0  ;;  %v8950_v38 = vld [vmem:[%s12659_s7 + $0x78] sm:$0xff]   ;;  %8423 = vmatprep.subr.bf16.mxu1 %v8948_v5 }
 0x301   : > { %3278 = vst.msk [vmem:[#allocation3 + $0x30] sm:$0xf] %vm1417_vm2, %v8208_v3  ;;  %v2820_v48 = vadd.f32 %v2819_v14, %v10690_v36  ;;  %3624 = vrot.lane.b32.xlu0 %v3595_v35, %s12683_s22  ;;  %v3446_v10 = vshrl.u32 %v10769_v46, 16  ;;  %v3720_v20 = vrot.slane %v3718_v21, 1  ;;  %v2900_v7 = vmax.f32 %v2828_v12, 0.0  ;;  %v2822_v36 = vpop.f32.mrb[135].mxu0 }
 0x302   : > { %3281 = vst.msk [vmem:[#allocation3 + $0x3c] sm:$0xf] %vm1417_vm2, %v8211_v47  ;;  %v3831_v11 = vsel %vm1749_vm5, %v3830_v9, %v10778_v17  ;;  %v2831_v37 = vadd.f32 %v8670_v45, %v10708_v60  ;;  %v3721_v19 = vshll.u32 %v10725_v4, 16  ;;  %v10825_v39 = vld [vmem:[#allocation3 + $0x20] sm:$0xff]   ;;  %3279 = vst.msk [vmem:[#allocation3 + $0x34] sm:$0xf] %vm1417_vm2, %v8209_v56  ;;  %v2823_v13 = vadd.f32 %v2822_v36, %v10699_v54  ;;  %v3044_v60 = vpop.permute.xlu0 %3043 }
 0x303   : > { %v2898_v21 = vmax.f32 %v2820_v48, 0.0  ;;  %3834 = vrot.lane.b32.xlu1 %v3831_v11, %s12683_s22  ;;  %v3725_v18 = vrot.slane %v3446_v10, 1  ;;  %v3726_v16 = vrot.slane %v3442_v41, 2  ;;  %v3124_v27 = vmul.f32 %v3039_v62, %v2900_v7  ;;  %8424 = vmatpush3.bf16.msra.mxu1 %v8949_v23  ;;  %v8951_v53 = vld [vmem:[%s12659_s7 + $0x38] sm:$0xff]  }
 0x304   : > { %v2901_v58 = vmax.f32 %v2831_v37, 0.0  ;;  %v3723_v6 = vrot.slane %v3721_v19, 2  ;;  %v10837_v61 = vsel %vm1749_vm5, %v10789_v52, %v10778_v17  ;;  %v2899_v55 = vmax.f32 %v2823_v13, 0.0  ;;  %8425 = vmatprep.subr.bf16.mxu1 %v8950_v38  ;;  %v10861_v5 = vld [vmem:[#allocation3 + $0x28] sm:$0xff]  }
 0x305   : > { %v3122_v59 = vmul.f32 %v10750_v25, %v2898_v21  ;;  %v10840_v54 = vor.u32 %v3726_v16, %v3725_v18  ;;  %3626 = vrot.lane.b32.xlu0 %v10837_v61, %s12683_s22  ;;  %v3901_v42 = vrot.slane %v10825_v39, 2  ;;  %v8214_v8 = vpack.c.bf16 %v3124_v27, %v3124_v27 }
 0x306   : > { %v3125_v0 = vmul.f32 %v3044_v60, %v2901_v58  ;;  %v3724_v31 = vor.u32 %v3723_v6, %v3720_v20  ;;  %v3450_v29 = vshll.u32 %v10756_v30, 16  ;;  %v3123_v2 = vmul.f32 %v10783_v28, %v2899_v55  ;;  %v8673_v62 = vpop.f32.mrb[136].mxu0  ;;  %v3054_v35 = vpop.permute.xlu0 %3053 }
 0x307   : > { %v8212_v49 = vpack.c.bf16 %v3122_v59, %v3122_v59  ;;  %v3902_v25 = vsel %vm2058_vm12, %v3899_v34, %v3901_v42  ;;  %v3454_v3 = vshrl.u32 %v10756_v30, 16  ;;  %3284 = vst.msk [vmem:[#allocation3 + $0x48] sm:$0xf] %vm1417_vm2, %v8214_v8  ;;  %v2844_v22 = vadd.f32 %v8673_v62, %v10765_v51  ;;  %v2835_v28 = vpop.f32.mrb[137].mxu0  ;;  %8426 = vmatpush3.bf16.msra.mxu1 %v8951_v53 }
 0x308   : > { %v8215_v43 = vpack.c.bf16 %v3125_v0, %v3125_v0  ;;  %v3728_v57 = vsel %vm1876_vm7, %v3724_v31, %v10840_v54  ;;  %8688 = vmatmul.mubr.msk.bf16.vlgmr.msra.gmra.mrb[148].mxu0 %vm730_vm1, %v3902_v25  ;;  %v3730_v34 = vrot.slane %v3450_v29, 2  ;;  %v8213_v47 = vpack.c.bf16 %v3123_v2, %v3123_v2  ;;  %v8674_v9 = vpop.f32.mrb[138].mxu0 }
 0x309   : > { %3282 = vst.msk [vmem:[#allocation3 + $0x40] sm:$0xf] %vm1417_vm2, %v8212_v49  ;;  %3790 = vrot.lane.b32.xlu1 %v3728_v57, %s12699_s26  ;;  %v2836_v12 = vadd.f32 %v2835_v28, %v10714_v24  ;;  %v3729_v14 = vrot.slane %v3454_v3, 1  ;;  %v3843_v51 = vshrl.u32 %v10786_v1, 16  ;;  %v2904_v23 = vmax.f32 %v2844_v22, 0.0  ;;  %v2838_v20 = vpop.f32.mrb[139].mxu0  ;;  %v3059_v24 = vpop.permute.xlu1 %3058 }
 0x30a   : > { %3285 = vst.msk [vmem:[#allocation3 + $0x4c] sm:$0xf] %vm1417_vm2, %v8215_v43  ;;  %v3846_v56 = vshll.u32 %v10786_v1, 16  ;;  %v3438_v48 = vshrl.u32 %v10711_v63, 16  ;;  %v3444_v45 = vrot.slane %v3442_v41, 1  ;;  %v2686_v11 = vadd.f32 %v10753_v33, %v10609_v15  ;;  %v10879_v36 = vld [vmem:[#allocation3 + $0x30] sm:$0xff]   ;;  %v3064_v0 = vpop.permute.xlu0 %3063 }
 0x30b   : > { %3283 = vst.msk [vmem:[#allocation3 + $0x44] sm:$0xf] %vm1417_vm2, %v8213_v47  ;;  %v2902_v38 = vmax.f32 %v2836_v12, 0.0  ;;  %v3845_v7 = vrot.slane %v3843_v51, 1  ;;  %v2678_v37 = vadd.f32 %v10695_v50, %v10609_v15  ;;  %v3128_v1 = vmul.f32 %v3059_v24, %v2904_v23  ;;  %v10883_v13 = vld [vmem:[#allocation3 + $0x38] sm:$0xff]  }
 0x30c   : > { %v3848_v19 = vrot.slane %v3846_v56, 2  ;;  %v3440_v21 = vor.u32 %v3438_v48, %v10748_v40  ;;  %v3903_v41 = vrot.slane %v10861_v5, 2  ;;  %v10885_v16 = vor.u32 %v3730_v34, %v3729_v14 }
 0x30d   : > { %v3126_v18 = vmul.f32 %v3049_v26, %v2902_v38  ;;  %v2847_v60 = vadd.f32 %v8674_v9, %v2686_v11  ;;  %v2839_v27 = vadd.f32 %v2838_v20, %v2678_v37  ;;  %v8218_v58 = vpack.c.bf16 %v3128_v1, %v3128_v1 }
 0x30e   : > { %v3849_v33 = vor.u32 %v3848_v19, %v3845_v7  ;;  %v3445_v6 = vsel %vm1583_vm6, %v3440_v21, %v3444_v45  ;;  %v3904_v50 = vsel %vm2058_vm12, %v3901_v42, %v3903_v41  ;;  %v10891_v8 = vpop.f32.mrb[140].mxu0  ;;  %v3905_v26 = vrot.slane %v10879_v36, 2 }
 0x30f   : > { %v8216_v59 = vpack.c.bf16 %v3126_v18, %v3126_v18  ;;  %3675 = vrot.lane.b32.xlu0 %v3445_v6, %s12700_s29  ;;  %v2905_v55 = vmax.f32 %v2847_v60, 0.0  ;;  %8691 = vmatprep.mubr.msk.bf16.mxu0 %vm730_vm1, %v3904_v50  ;;  %v2903_v40 = vmax.f32 %v2839_v27, 0.0  ;;  %3288 = vst.msk [vmem:[#allocation3 + $0x58] sm:$0xf] %vm1417_vm2, %v8218_v58  ;;  %v10897_v49 = vpop.f32.mrb[141].mxu0  ;;  %v3907_v42 = vrot.slane %v10883_v13, 2 }
 0x310   : > { %v3850_v31 = vsel %vm1876_vm7, %v3849_v33, %v10885_v16  ;;  %v3906_v25 = vsel %vm2058_vm12, %v3903_v41, %v3905_v26  ;;  %v10903_v53 = vpop.f32.mrb[142].mxu0  ;;  %v3448_v57 = vor.u32 %v3446_v10, %v3444_v45  ;;  %v3458_v34 = vshll.u32 %v10825_v39, 16 }
 0x311   : > { %3286 = vst.msk [vmem:[#allocation3 + $0x50] sm:$0xf] %vm1417_vm2, %v8216_v59  ;;  %3860 = vrot.lane.b32.xlu1 %v3850_v31, %s12700_s29  ;;  %v3129_v2 = vmul.f32 %v3064_v0, %v2905_v55  ;;  %v3127_v62 = vmul.f32 %v3054_v35, %v2903_v40  ;;  %v10905_v43 = vld [vmem:[#allocation3 + $0x48] sm:$0xff]   ;;  %8692 = vmatmul.mubr.msk.bf16.gmra.mrb[152].mxu0 %vm730_vm1, %v3906_v25  ;;  %v10911_v28 = vpop.f32.mrb[143].mxu0  ;;  %v3452_v10 = vrot.slane %v3450_v29, 1  ;;  %v3462_v29 = vshrl.u32 %v10825_v39, 16 }
 0x312   : > { %v3908_v22 = vsel %vm2058_vm12, %v3905_v26, %v3907_v42  ;;  %v10914_v47 = vld [vmem:[#allocation3 + $0x40] sm:$0xff]   ;;  %v3732_v51 = vsel %vm1876_vm7, %v10840_v54, %v10885_v16  ;;  %v3911_v35 = vrot.slane %v10905_v43, 2  ;;  %v3460_v56 = vrot.slane %v3458_v34, 1 }
 0x313   : > { %v8219_v12 = vpack.c.bf16 %v3129_v2, %v3129_v2  ;;  %v8217_v14 = vpack.c.bf16 %v3127_v62, %v3127_v62  ;;  %3555 = vrot.lane.b32.xlu0 %v3445_v6, %s12699_s26  ;;  %8695 = vmatprep.mubr.msk.bf16.mxu0 %vm730_vm1, %v3908_v22  ;;  %v3909_v9 = vrot.slane %v10914_v47, 2  ;;  %v3453_v23 = vsel %vm1583_vm6, %v3448_v57, %v3452_v10 }
 0x314   : > { %v3598_v45 = vrot.slane %v10825_v39, 1  ;;  %v3456_v20 = vor.u32 %v3454_v3, %v3452_v10  ;;  %v3600_v39 = vrot.slane %v10861_v5, 1  ;;  %v3733_v30 = vrot.slane %v3462_v29, 1 }
 0x315   : > { %3289 = vst.msk [vmem:[#allocation3 + $0x5c] sm:$0xf] %vm1417_vm2, %v8219_v12  ;;  %3287 = vst.msk [vmem:[#allocation3 + $0x54] sm:$0xf] %vm1417_vm2, %v8217_v14  ;;  %3792 = vrot.lane.b32.xlu1 %v3732_v51, %s12699_s26  ;;  %v3910_v54 = vsel %vm2058_vm12, %v3907_v42, %v3909_v9  ;;  %v3912_v38 = vsel %vm2058_vm12, %v3909_v9, %v3911_v35  ;;  %v3734_v3 = vrot.slane %v3458_v34, 2  ;;  %v3466_v21 = vshll.u32 %v10861_v5, 16 }
 0x316   : > { %v10930_v48 = vpop.f32.mrb[144].mxu0  ;;  %v3461_v11 = vsel %vm1583_vm6, %v3456_v20, %v3460_v56  ;;  %v10952_v1 = vsel %vm1749_vm5, %v10778_v17, %v3598_v45  ;;  %v3602_v18 = vrot.slane %v10879_v36, 1  ;;  %v3604_v60 = vrot.slane %v10883_v13, 1 }
 0x317   : > { %3557 = vrot.lane.b32.xlu0 %v3453_v23, %s12699_s26  ;;  %v10937_v24 = vpop.f32.mrb[145].mxu0  ;;  %v3474_v58 = vshll.u32 %v10879_v36, 16  ;;  %v10968_v17 = vsel %vm1749_vm5, %v3598_v45, %v3600_v39  ;;  %v3735_v6 = vor.u32 %v3734_v3, %v3733_v30  ;;  %v3468_v59 = vrot.slane %v3466_v21, 1 }
 0x318   : > { %v10941_v7 = vpop.f32.mrb[146].mxu0  ;;  %v3470_v55 = vshrl.u32 %v10861_v5, 16  ;;  %v10982_v26 = vsel %vm1749_vm5, %v3602_v18, %v3604_v60  ;;  %v3478_v31 = vshrl.u32 %v10879_v36, 16  ;;  %v3738_v25 = vrot.slane %v3466_v21, 2 }
 0x319   : > { %3677 = vrot.lane.b32.xlu1 %v3453_v23, %s12700_s29  ;;  %8696 = vmatmul.mubr.msk.bf16.gmra.mrb[156].mxu0 %vm730_vm1, %v3910_v54  ;;  %v10945_v37 = vpop.f32.mrb[147].mxu0  ;;  %v3476_v0 = vrot.slane %v3474_v58, 1  ;;  %v3736_v42 = vsel %vm1876_vm7, %v10885_v16, %v3735_v6  ;;  %v3742_v34 = vrot.slane %v3474_v58, 2  ;;  %v3713_v12 = vrot.slane %v10725_v4, 1 }
 0x31a   : > { %8699 = vmatprep.mubr.msk.bf16.mxu0 %vm730_vm1, %v3912_v38  ;;  %v3472_v2 = vor.u32 %v3470_v55, %v3468_v59  ;;  %v3737_v62 = vrot.slane %v3470_v55, 1  ;;  %v3741_v22 = vrot.slane %v3478_v31, 1  ;;  %v3464_v9 = vor.u32 %v3462_v29, %v3460_v56 }
 0x31b   : > { %3679 = vrot.lane.b32.xlu0 %v3461_v11, %s12700_s29  ;;  %v10999_v16 = vsel %vm1749_vm5, %v3713_v12, %v10789_v52  ;;  %v3606_v4 = vrot.slane %v10914_v47, 1  ;;  %v3608_v23 = vrot.slane %v10905_v43, 1  ;;  %v3490_v52 = vshll.u32 %v10914_v47, 16  ;;  %v3074_v12 = vpop.permute.xlu0 %3073 }
 0x31c   : > { %v10954_v19 = vld [vmem:[#allocation3 + $0x50] sm:$0xff]   ;;  %v10959_v41 = vld [vmem:[#allocation3 + $0x58] sm:$0xff]   ;;  %v3477_v57 = vsel %vm1583_vm6, %v3472_v2, %v3476_v0  ;;  %v3739_v36 = vor.u32 %v3738_v25, %v3737_v62  ;;  %v3743_v14 = vor.u32 %v3742_v34, %v3741_v22  ;;  %v3469_v54 = vsel %vm1583_vm6, %v3464_v9, %v3468_v59 }
 0x31d   : > { %3628 = vrot.lane.b32.xlu1 %v10952_v1, %s12683_s22  ;;  %v3913_v27 = vrot.slane %v10954_v19, 2  ;;  %v3915_v33 = vrot.slane %v10959_v41, 2  ;;  %v3486_v20 = vshrl.u32 %v10883_v13, 16  ;;  %v11017_v56 = vsel %vm1749_vm5, %v3606_v4, %v3608_v23 }
 0x31e   : > { %v3740_v51 = vsel %vm1876_vm7, %v3735_v6, %v3739_v36  ;;  %v3744_v10 = vsel %vm1876_vm7, %v3739_v36, %v3743_v14  ;;  %v3492_v29 = vrot.slane %v3490_v52, 1  ;;  %v3494_v38 = vshrl.u32 %v10914_v47, 16 }
 0x31f   : > { %3559 = vrot.lane.b32.xlu0 %v3461_v11, %s12699_s26  ;;  %v3914_v50 = vsel %vm2058_vm12, %v3911_v35, %v3913_v27  ;;  %v3916_v40 = vsel %vm2058_vm12, %v3913_v27, %v3915_v33  ;;  %v3482_v35 = vshll.u32 %v10883_v13, 16  ;;  %v3745_v30 = vrot.slane %v3486_v20, 1 }
 0x320   : > { %v3749_v27 = vrot.slane %v3494_v38, 1  ;;  %v3750_v58 = vrot.slane %v3490_v52, 2  ;;  %v11028_v6 = vsel %vm1749_vm5, %v3600_v39, %v3602_v18  ;;  %v3498_v5 = vshll.u32 %v10905_v43, 16 }
 0x321   : > { %3630 = vrot.lane.b32.xlu1 %v10968_v17, %s12683_s22  ;;  %8700 = vmatmul.mubr.msk.bf16.gmra.mrb[160].mxu0 %vm730_vm1, %v3914_v50  ;;  %v3484_v45 = vrot.slane %v3482_v35, 1  ;;  %v3746_v3 = vrot.slane %v3482_v35, 2  ;;  %v3610_v39 = vrot.slane %v10954_v19, 1  ;;  %v3612_v18 = vrot.slane %v10959_v41, 1 }
 0x322   : > { %8703 = vmatprep.mubr.msk.bf16.mxu0 %vm730_vm1, %v3916_v40  ;;  %v3751_v50 = vor.u32 %v3750_v58, %v3749_v27  ;;  %v3480_v40 = vor.u32 %v3478_v31, %v3476_v0  ;;  %v3500_v62 = vrot.slane %v3498_v5, 1  ;;  %v3502_v25 = vshrl.u32 %v10905_v43, 16 }
 0x323   : > { %3634 = vrot.lane.b32.xlu0 %v10982_v26, %s12683_s22  ;;  %v3488_v11 = vor.u32 %v3486_v20, %v3484_v45  ;;  %v3747_v47 = vor.u32 %v3746_v3, %v3745_v30  ;;  %v11051_v0 = vsel %vm1749_vm5, %v3610_v39, %v3612_v18  ;;  %v3754_v36 = vrot.slane %v3498_v5, 2  ;;  %v11072_v20 = vpop.permute.xlu0 %3083 }
 0x324   : > { %v3485_v2 = vsel %vm1583_vm6, %v3480_v40, %v3484_v45  ;;  %v3504_v22 = vor.u32 %v3502_v25, %v3500_v62  ;;  %v3753_v34 = vrot.slane %v3502_v25, 1  ;;  %v11067_v9 = vsel %vm1749_vm5, %v3604_v60, %v3606_v4  ;;  %v3069_v40 = vpop.permute.xlu1 %3068 }
 0x325   : > { %3862 = vrot.lane.b32.xlu1 %v3736_v42, %s12700_s29  ;;  %v3493_v21 = vsel %vm1583_vm6, %v3488_v11, %v3492_v29  ;;  %v3748_v59 = vsel %vm1876_vm7, %v3743_v14, %v3747_v47  ;;  %v3752_v55 = vsel %vm1876_vm7, %v3747_v47, %v3751_v50  ;;  %v3496_v58 = vor.u32 %v3494_v38, %v3492_v29 }
 0x326   : > { %v3755_v35 = vor.u32 %v3754_v36, %v3753_v34  ;;  %v3514_v5 = vshll.u32 %v10959_v41, 16 }
 0x327   : > { %3683 = vrot.lane.b32.xlu0 %v3477_v57, %s12700_s29 }
 0x328   : > { %v3756_v11 = vsel %vm1876_vm7, %v3751_v50, %v3755_v35  ;;  %v11082_v50 = vpop.permute.xlu0 %3093  ;;  %v3762_v34 = vrot.slane %v3514_v5, 2 }
 0x329   : > { %3794 = vrot.lane.b32.xlu1 %v3736_v42, %s12699_s26  ;;  %v3506_v42 = vshll.u32 %v10954_v19, 16 }
 0x32b   : > { %3563 = vrot.lane.b32.xlu0 %v3477_v57, %s12699_s26  ;;  %v11053_v31 = vrot.slane %v3506_v42, 1  ;;  %v3510_v57 = vshrl.u32 %v10954_v19, 16 }
 0x32c   : > { %v11090_v38 = vpop.permute.xlu0 %3103 }
 0x32d   : > { %3864 = vrot.lane.b32.xlu1 %v3740_v51, %s12700_s29  ;;  %v3509_v14 = vsel %vm1583_vm6, %v3504_v22, %v11053_v31 }
 0x32f   : > { %3866 = vrot.lane.b32.xlu0 %v3744_v10, %s12700_s29 }
 0x331   : > { %3796 = vrot.lane.b32.xlu1 %v3740_v51, %s12699_s26  ;;  %v3757_v51 = vrot.slane %v3510_v57, 1 }
 0x333   : > { %3798 = vrot.lane.b32.xlu0 %v3744_v10, %s12699_s26  ;;  %v3758_v10 = vrot.slane %v3506_v42, 2 }
 0x335   : > { %3681 = vrot.lane.b32.xlu1 %v3469_v54, %s12700_s29  ;;  %v3759_v52 = vor.u32 %v3758_v10, %v3757_v51 }
 0x337   : > { %3638 = vrot.lane.b32.xlu0 %v11017_v56, %s12683_s22  ;;  %v3760_v60 = vsel %vm1876_vm7, %v3755_v35, %v3759_v52 }
 0x339   : > { %3561 = vrot.lane.b32.xlu1 %v3469_v54, %s12699_s26 }
 0x33b   : > { %3687 = vrot.lane.b32.xlu0 %v3493_v21, %s12700_s29 }
 0x33d   : > { %3632 = vrot.lane.b32.xlu1 %v11028_v6, %s12683_s22 }
 0x33f   : > { %3567 = vrot.lane.b32.xlu0 %v3493_v21, %s12699_s26 }
 0x341   : > { %3868 = vrot.lane.b32.xlu1 %v3748_v59, %s12700_s29 }
 0x343   : > { %3870 = vrot.lane.b32.xlu0 %v3752_v55, %s12700_s29 }
 0x345   : > { %3800 = vrot.lane.b32.xlu1 %v3748_v59, %s12699_s26 }
 0x347   : > { %3802 = vrot.lane.b32.xlu0 %v3752_v55, %s12699_s26 }
 0x349   : > { %3685 = vrot.lane.b32.xlu1 %v3485_v2, %s12700_s29 }
 0x34b   : > { %3642 = vrot.lane.b32.xlu0 %v11051_v0, %s12683_s22 }
 0x34d   : > { %3565 = vrot.lane.b32.xlu1 %v3485_v2, %s12699_s26  ;;  %v3501_v2 = vsel %vm1583_vm6, %v3496_v58, %v3500_v62  ;;  %v11102_v62 = vsel %vm1749_vm5, %v3608_v23, %v3610_v39  ;;  %v11118_v23 = vld [vmem:[%s12657_s5] ss:$0 sm:$0xff]  ;;  %v11135_v58 = vrot.slane %v3514_v5, 1 }
 0x34f   : > { %3691 = vrot.lane.b32.xlu0 %v3509_v14, %s12700_s29 }
 0x351   : > { %3636 = vrot.lane.b32.xlu1 %v11067_v9, %s12683_s22 }
 0x352   : > { %v8369_v54 = vpop.f32.mrb[8].mxu1 }
 0x353   : > { %3571 = vrot.lane.b32.xlu0 %v3509_v14, %s12699_s26  ;;  %v8370_v45 = vpop.f32.mrb[9].mxu1 }
 0x354   : > { %v8371_v30 = vadd.f32 %v8370_v45, %v8369_v54  ;;  %v8372_v3 = vpop.f32.mrb[10].mxu1 }
 0x355   : > { %3872 = vrot.lane.b32.xlu1 %v3756_v11, %s12700_s29  ;;  %v8373_v13 = vpop.f32.mrb[11].mxu1 }
 0x356   : > { %v2691_v4 = vadd.f32 %v8371_v30, %v10609_v15  ;;  %v8374_v21 = vadd.f32 %v8373_v13, %v8372_v3  ;;  %v3512_v13 = vor.u32 %v3510_v57, %v11053_v31 }
 0x357   : > { %3874 = vrot.lane.b32.xlu0 %v3760_v60, %s12700_s29 }
 0x358   : > { %v2852_v27 = vadd.f32 %v10897_v49, %v2691_v4  ;;  %v2694_v47 = vadd.f32 %v8374_v21, %v10609_v15  ;;  %v3518_v49 = vshrl.u32 %v10959_v41, 16  ;;  %v3079_v4 = vpop.permute.xlu1 %3078 }
 0x359   : > { %3804 = vrot.lane.b32.xlu1 %v3756_v11, %s12699_s26 }
 0x35a   : > { %v2906_v59 = vmax.f32 %v2852_v27, 0.0  ;;  %v2855_v55 = vadd.f32 %v10911_v28, %v2694_v47  ;;  %v3761_v22 = vrot.slane %v3518_v49, 1  ;;  %v3517_v47 = vsel %vm1583_vm6, %v3512_v13, %v11135_v58 }
 0x35b   : > { %3806 = vrot.lane.b32.xlu0 %v3760_v60, %s12699_s26 }
 0x35c   : > { %v3130_v42 = vmul.f32 %v3069_v40, %v2906_v59  ;;  %v2907_v25 = vmax.f32 %v2855_v55, 0.0  ;;  %v11104_v36 = vor.u32 %v3762_v34, %v3761_v22 }
 0x35d   : > { %3689 = vrot.lane.b32.xlu1 %v3501_v2, %s12700_s29 }
 0x35e   : > { %v8220_v15 = vpack.c.bf16 %v3130_v42, %v3130_v42  ;;  %v3131_v29 = vmul.f32 %v3074_v12, %v2907_v25  ;;  %v11108_v12 = vpop.permute.xlu0 %3098  ;;  %v3764_v10 = vsel %vm1876_vm7, %v3759_v52, %v11104_v36  ;;  %v3089_v25 = vpop.permute.xlu1 %3088 }
 0x360   : > { %3290 = vst.msk [vmem:[#allocation3 + $0x60] sm:$0xf] %vm1417_vm2, %v8220_v15  ;;  %v8221_v28 = vpack.c.bf16 %v3131_v29, %v3131_v29 }
 0x361   : > { %3569 = vrot.lane.b32.xlu1 %v3501_v2, %s12699_s26 }
 0x362   : > { %3291 = vst.msk [vmem:[#allocation3 + $0x64] sm:$0xf] %vm1417_vm2, %v8221_v28 }
 0x365   : > { %3640 = vrot.lane.b32.xlu1 %v11102_v62, %s12683_s22  ;;  %v8375_v14 = vpop.f32.mrb[12].mxu1 }
 0x366   : > { %v8376_v51 = vpop.f32.mrb[13].mxu1 }
 0x367   : > { %v8377_v35 = vadd.f32 %v8376_v51, %v8375_v14  ;;  %v8378_v54 = vpop.f32.mrb[14].mxu1 }
 0x368   : > { %v8379_v43 = vpop.f32.mrb[15].mxu1 }
 0x369   : > { %3876 = vrot.lane.b32.xlu1 %v3764_v10, %s12700_s29  ;;  %v11113_v45 = vld [vmem:[#allocation3 + $0x60] sm:$0xff]   ;;  %v2699_v39 = vadd.f32 %v11118_v23, %v8377_v35  ;;  %v8380_v11 = vadd.f32 %v8379_v43, %v8378_v54 }
 0x36a   : > { %v11121_v30 = vpop.permute.xlu0 %3622  ;;  %v3917_v3 = vrot.slane %v11113_v45, 2  ;;  %v3614_v28 = vrot.slane %v11113_v45, 1 }
 0x36b   : > { %v2860_v52 = vadd.f32 %v10891_v8, %v2699_v39  ;;  %v2702_v60 = vadd.f32 %v11118_v23, %v8380_v11  ;;  %v3522_v11 = vshll.u32 %v11113_v45, 16 }
 0x36c   : > { %v3918_v21 = vsel %vm2058_vm12, %v3915_v33, %v3917_v3  ;;  %v11156_v35 = vsel %vm1749_vm5, %v3612_v18, %v3614_v28 }
 0x36d   : > { %3808 = vrot.lane.b32.xlu1 %v3764_v10, %s12699_s26  ;;  %v2908_v27 = vmax.f32 %v2860_v52, 0.0  ;;  %v2863_v8 = vadd.f32 %v10903_v53, %v2702_v60  ;;  %8704 = vmatmul.mubr.msk.bf16.gmra.mrb[164].mxu0 %vm730_vm1, %v3918_v21  ;;  %v3526_v52 = vshrl.u32 %v11113_v45, 16 }
 0x36e   : > { %v8381_v31 = vpop.f32.mrb[16].mxu1 }
 0x36f   : > { %v3554_v19 = vpop.permute.xlu0 %3553  ;;  %v3132_v57 = vmul.f32 %v3079_v4, %v2908_v27  ;;  %v2909_v59 = vmax.f32 %v2863_v8, 0.0  ;;  %v8382_v55 = vpop.f32.mrb[17].mxu1 }
 0x370   : > { %v8383_v40 = vadd.f32 %v8382_v55, %v8381_v31  ;;  %v8384_v42 = vpop.f32.mrb[18].mxu1  ;;  %v3766_v55 = vrot.slane %v3522_v11, 2 }
 0x371   : > { %3693 = vrot.lane.b32.xlu1 %v3517_v47, %s12700_s29  ;;  %v8222_v33 = vpack.c.bf16 %v3132_v57, %v3132_v57  ;;  %v3133_v5 = vmul.f32 %v11072_v20, %v2909_v59  ;;  %v8385_v2 = vpop.f32.mrb[19].mxu1  ;;  %v3932_v59 = vsel %vm730_vm1, %v10719_v44, %v3554_v19 }
 0x372   : > { %v2707_v53 = vadd.f32 %v11118_v23, %v8383_v40  ;;  %v8386_v15 = vadd.f32 %v8385_v2, %v8384_v42 }
 0x373   : > { %3292 = vst.msk [vmem:[#allocation3 + $0x68] sm:$0xf] %vm1417_vm2, %v8222_v33  ;;  %v8223_v29 = vpack.c.bf16 %v3133_v5, %v3133_v5  ;;  %v11149_v14 = vpop.permute.xlu0 %3624 }
 0x374   : > { %v2868_v22 = vadd.f32 %v10937_v24, %v2707_v53  ;;  %v2710_v34 = vadd.f32 %v11118_v23, %v8386_v15 }
 0x375   : > { %3573 = vrot.lane.b32.xlu1 %v3517_v47, %s12699_s26  ;;  %3293 = vst.msk [vmem:[#allocation3 + $0x6c] sm:$0xf] %vm1417_vm2, %v8223_v29  ;;  %v3835_v10 = vpop.permute.xlu1 %3834 }
 0x376   : > { %v2910_v20 = vmax.f32 %v2868_v22, 0.0  ;;  %v2871_v51 = vadd.f32 %v10945_v37, %v2710_v34 }
 0x377   : > { %v11163_v60 = vpop.permute.xlu0 %3626 }
 0x378   : > { %v3134_v54 = vmul.f32 %v3089_v25, %v2910_v20  ;;  %v2911_v24 = vmax.f32 %v2871_v51, 0.0  ;;  %v8387_v43 = vpop.f32.mrb[20].mxu1  ;;  %v3524_v25 = vrot.slane %v3522_v11, 1 }
 0x379   : > { %3644 = vrot.lane.b32.xlu1 %v11156_v35, %s12683_s22  ;;  %v8388_v39 = vpop.f32.mrb[21].mxu1 }
 0x37a   : > { %v8224_v13 = vpack.c.bf16 %v3134_v54, %v3134_v54  ;;  %v3135_v37 = vmul.f32 %v11082_v50, %v2911_v24  ;;  %v8389_v4 = vadd.f32 %v8388_v39, %v8387_v43  ;;  %v8390_v21 = vpop.f32.mrb[22].mxu1  ;;  %v3765_v50 = vrot.slane %v3526_v52, 1 }
 0x37b   : > { %v8391_v18 = vpop.f32.mrb[23].mxu1  ;;  %v3791_v8 = vpop.permute.xlu1 %3790 }
 0x37c   : > { %3294 = vst.msk [vmem:[#allocation3 + $0x70] sm:$0xf] %vm1417_vm2, %v8224_v13  ;;  %v8225_v27 = vpack.c.bf16 %v3135_v37, %v3135_v37  ;;  %v2715_v31 = vadd.f32 %v11118_v23, %v8389_v4  ;;  %v8392_v57 = vadd.f32 %v8391_v18, %v8390_v21  ;;  %v11167_v47 = vld [vmem:[#allocation3 + $0x68] sm:$0xff]   ;;  %v4045_v2 = vsel %vm730_vm1, %v10999_v16, %v3791_v8  ;;  %v3300_v13 = vld [vmem:[#allocation3 + $0x7c] sm:$0x7] }
 0x37d   : > { %v3919_v33 = vrot.slane %v11167_v47, 2  ;;  %v3616_v5 = vrot.slane %v11167_v47, 1  ;;  %v3530_v44 = vshll.u32 %v11167_v47, 16  ;;  %v3534_v19 = vshrl.u32 %v11167_v47, 16 }
 0x37e   : > { %3295 = vst.msk [vmem:[#allocation3 + $0x74] sm:$0xf] %vm1417_vm2, %v8225_v27  ;;  %v2876_v40 = vadd.f32 %v10930_v48, %v2715_v31  ;;  %v2718_v42 = vadd.f32 %v11118_v23, %v8392_v57  ;;  %v3964_v16 = vsel %vm2124_vm4, %v3932_v59, %v11121_v30  ;;  %v4092_v30 = vsel %vm2124_vm4, %v4045_v2, %v3835_v10  ;;  %v11229_v57 = vld [vmem:[#allocation3 + $0x80] sm:$0xf]  ;;  %v3340_v59 = vld [vmem:[#allocation3 + $0x84] sm:$0xf] }
 0x37f   : > { %v3920_v48 = vsel %vm2058_vm12, %v3917_v3, %v3919_v33  ;;  %v11189_v23 = vsel %vm1749_vm5, %v3614_v28, %v3616_v5  ;;  %v3770_v22 = vrot.slane %v3530_v44, 2  ;;  %v3520_v3 = vor.u32 %v3518_v49, %v11135_v58 }
 0x380   : > { %v2912_v53 = vmax.f32 %v2876_v40, 0.0  ;;  %v2879_v29 = vadd.f32 %v10941_v7, %v2718_v42  ;;  %8707 = vmatprep.mubr.msk.bf16.mxu0 %vm730_vm1, %v3920_v48  ;;  %3646 = vrot.lane.b32.xlu0 %v11189_v23, %s12683_s22  ;;  %v3769_v7 = vrot.slane %v3534_v19, 1  ;;  %v3767_v24 = vor.u32 %v3766_v55, %v3765_v50 }
 0x381   : > { %v3676_v15 = vpop.permute.xlu0 %3675  ;;  %v3525_v49 = vsel %vm1583_vm6, %v3520_v3, %v3524_v25  ;;  %v11225_v8 = vrot.slane %v3530_v44, 1  ;;  %v3528_v50 = vor.u32 %v3526_v52, %v3524_v25  ;;  %v11240_v42 = vcombine.low %v11229_v57, %v3340_v59 }
 0x382   : > { %v3136_v34 = vmul.f32 %v11108_v12, %v2912_v53  ;;  %v3996_v20 = vsel %vm2157_vm8, %v3964_v16, %v3676_v15  ;;  %v2913_v51 = vmax.f32 %v2879_v29, 0.0  ;;  %v11205_v43 = vor.u32 %v3770_v22, %v3769_v7 }
 0x383   : > { %v3861_v28 = vpop.permute.xlu1 %3860  ;;  %v3768_v18 = vsel %vm1876_vm7, %v11104_v36, %v3767_v24  ;;  %v3533_v36 = vsel %vm1583_vm6, %v3528_v50, %v11225_v8  ;;  %v3925_v48 = vrot.slane %v11240_v42, 2 }
 0x384   : > { %v4112_v54 = vsel %vm2157_vm8, %v4092_v30, %v3861_v28  ;;  %v8226_v39 = vpack.c.bf16 %v3136_v34, %v3136_v34  ;;  %v3137_v11 = vmul.f32 %v11090_v38, %v2913_v51  ;;  %v3772_v12 = vsel %vm1876_vm7, %v3767_v24, %v11205_v43  ;;  %3695 = vrot.lane.b32.xlu0 %v3525_v49, %s12700_s29 }
 0x385   : > { %4432 = vmatprep.mubr.bf16.mxu1 %v4112_v54  ;;  %v3556_v41 = vpop.permute.xlu0 %3555  ;;  %v11214_v58 = vld [vmem:[#allocation3 + $0x70] sm:$0xff]   ;;  %3880 = vrot.lane.b32.xlu1 %v3772_v12, %s12700_s29 }
 0x386   : > { %4433 = vmatmul.mubr.bf16.vlgmr.msra.gmra.mrb[24].mxu1 %v3996_v20  ;;  %3296 = vst.msk [vmem:[#allocation3 + $0x78] sm:$0xf] %vm1417_vm2, %v8226_v39  ;;  %v8227_v10 = vpack.c.bf16 %v3137_v11, %v3137_v11  ;;  %v3921_v37 = vrot.slane %v11214_v58, 2  ;;  %v3618_v40 = vrot.slane %v11214_v58, 1  ;;  %v3538_v2 = vshll.u32 %v11214_v58, 16 }
 0x387   : > { %v3793_v38 = vpop.permute.xlu1 %3792  ;;  %v3542_v52 = vshrl.u32 %v11214_v58, 16  ;;  %v3934_v51 = vsel %vm730_vm1, %v10711_v63, %v3556_v41  ;;  %vm5074_vm2 = vcmask 1040384  }
 0x388   : > { %v3301_v4 = vsel %vm3299_vm10, %v8227_v10, %v3300_v13  ;;  %3878 = vrot.lane.b32.xlu0 %v3768_v18, %s12700_s29  ;;  %v3922_v27 = vsel %vm2058_vm12, %v3919_v33, %v3921_v37  ;;  %v11254_v15 = vsel %vm1749_vm5, %v3616_v5, %v3618_v40  ;;  %v3774_v22 = vrot.slane %v3538_v2, 2 }
 0x389   : > { %v11219_v21 = vpop.permute.xlu0 %3557  ;;  %3302 = vst [vmem:[#allocation3 + $0x7c] sm:$0x7] %v3301_v4  ;;  %3812 = vrot.lane.b32.xlu1 %v3772_v12, %s12699_s26  ;;  %8708 = vmatmul.mubr.msk.bf16.gmra.mrb[168].mxu0 %vm730_vm1, %v3922_v27  ;;  %v3773_v7 = vrot.slane %v3542_v52, 1  ;;  %v4048_v20 = vsel %vm730_vm1, %v10837_v61, %v3793_v38  ;;  %v3966_v12 = vsel %vm2124_vm4, %v3934_v51, %v11149_v14  ;;  %v11306_v14 = vrot.slane %v11240_v42, 1 }
 0x38a   : > { %vm5305_vm10 = vcmask 89088  }
 0x38b   : > { %v3678_v31 = vpop.permute.xlu1 %3677  ;;  %v3775_v63 = vor.u32 %v3774_v22, %v3773_v7  ;;  %v3785_v7 = vshll.u32 %v11240_v42, 16 }
 0x38c   : > { %3810 = vrot.lane.b32.xlu0 %v3768_v18, %s12699_s26  ;;  %v3999_v10 = vsel %vm2157_vm8, %v3966_v12, %v3678_v31  ;;  %v3936_v31 = vsel %vm730_vm1, %v10769_v46, %v11219_v21  ;;  %v4755_v12 = vld [vmem:[%s12661_s9 + $0x8] sm:$0xff] }
 0x38d   : > { %v11233_v55 = vpop.permute.xlu0 %3679  ;;  %3697 = vrot.lane.b32.xlu1 %v3533_v36, %s12700_s29  ;;  %v11249_v25 = vld [vmem:[#allocation3 + $0x78] sm:$0xf]  ;;  %v3776_v27 = vsel %vm1876_vm7, %v11205_v43, %v3775_v63  ;;  %v3968_v46 = vsel %vm2124_vm4, %v3936_v31, %v11163_v60 }
 0x38e   : > { %v4002_v21 = vsel %vm2157_vm8, %v3968_v46, %v11233_v55 }
 0x38f   : > { %v11242_v33 = vpop.permute.xlu1 %3628 }
 0x390   : > { %v3336_v53 = vld [vmem:[#allocation3 + $0x7c] sm:$0xf]  ;;  %3575 = vrot.lane.b32.xlu0 %v3525_v49, %s12699_s26  ;;  %v4093_v61 = vsel %vm2124_vm4, %v4048_v20, %v11242_v33 }
 0x391   : > { %v11247_v44 = vpop.permute.xlu0 %3559  ;;  %v11258_v29 = vcombine.low %v11249_v25, %v3336_v53  ;;  %3648 = vrot.lane.b32.xlu1 %v11254_v15, %s12683_s22  ;;  %v3540_v53 = vrot.slane %v3538_v2, 1  ;;  %v3536_v2 = vor.u32 %v3534_v19, %v11225_v8 }
 0x393   : > { %v11261_v16 = vpop.permute.xlu1 %3630  ;;  %v3923_v3 = vrot.slane %v11258_v29, 2  ;;  %v11269_v5 = vrot.slane %v11258_v29, 1  ;;  %v3660_v34 = vshll.u32 %v11258_v29, 16  ;;  %v3664_v28 = vshrl.u32 %v11258_v29, 16 }
 0x394   : > { %v3541_v51 = vsel %vm1583_vm6, %v3536_v2, %v3540_v53  ;;  %v11344_v55 = vor.u32 %v3542_v52, %v3540_v53 }
 0x395   : > { %v11277_v30 = vpop.permute.xlu0 %3634  ;;  %v3924_v54 = vsel %vm2058_vm12, %v3921_v37, %v3923_v3  ;;  %v11282_v24 = vsel %vm1749_vm5, %v3618_v40, %v11269_v5  ;;  %v3926_v39 = vsel %vm2058_vm12, %v3923_v3, %v3925_v48  ;;  %v3777_v11 = vrot.slane %v3664_v28, 1  ;;  %3577 = vrot.lane.b32.xlu1 %v3533_v36, %s12699_s26 }
 0x396   : > { %8711 = vmatprep.mubr.msk.bf16.mxu0 %vm730_vm1, %v3924_v54  ;;  %v3778_v41 = vrot.slane %v3660_v34, 2  ;;  %3650 = vrot.lane.b32.xlu0 %v11282_v24, %s12683_s22  ;;  %v3782_v36 = vshrl.u32 %v11240_v42, 16  ;;  %v11338_v54 = vrot.slane %v3660_v34, 1 }
 0x397   : > { %v3863_v13 = vpop.permute.xlu1 %3862  ;;  %8712 = vmatmul.mubr.msk.bf16.gmra.mrb[172].mxu0 %vm730_vm1, %v3926_v39  ;;  %v3787_v39 = vrot.slane %v3785_v7, 2  ;;  %v9102_v7 = vld [vmem:[#allocation3 + $0x20] sm:$0xff]  }
 0x398   : > { %v4115_v49 = vsel %vm2157_vm8, %v4093_v61, %v3863_v13  ;;  %v3779_v37 = vor.u32 %v3778_v41, %v3777_v11  ;;  %v3784_v60 = vrot.slane %v3782_v36, 1  ;;  %v3663_v19 = vsel %vm1583_vm6, %v11344_v55, %v11338_v54  ;;  %v4756_v13 = vld [vmem:[%s12661_s9 + $0x10] sm:$0xff] }
 0x399   : > { %4440 = vmatprep.mubr.bf16.mxu1 %v4115_v49  ;;  %v11300_v38 = vpop.permute.xlu0 %3683  ;;  %v4758_v49 = vld [vmem:[%s12661_s9 + $0x20] sm:$0xff] }
 0x39a   : > { %4441 = vmatmul.mubr.bf16.gmra.mrb[28].mxu1 %v3999_v10  ;;  %v3780_v18 = vsel %vm1876_vm7, %v3775_v63, %v3779_v37  ;;  %3882 = vrot.lane.b32.xlu0 %v3776_v27, %s12700_s29  ;;  %v11349_v8 = vor.u32 %v3787_v39, %v3784_v60  ;;  %v9101_v10 = vld [vmem:[#allocation3 + $0x18] sm:$0xff]  }
 0x39b   : > { %v3795_v4 = vpop.permute.xlu1 %3794  ;;  %3884 = vrot.lane.b32.xlu1 %v3780_v18, %s12700_s29  ;;  %v4764_v60 = vld [vmem:[%s12661_s9 + $0x50] sm:$0xff] }
 0x39c   : > { %v4051_v59 = vsel %vm730_vm1, %v10952_v1, %v3795_v4  ;;  %v11323_v1 = vsel %vm1749_vm5, %v11269_v5, %v11306_v14  ;;  %v11360_v52 = vsel %vm1876_vm7, %v3779_v37, %v11349_v8  ;;  %v3938_v4 = vsel %vm730_vm1, %v9101_v10, %v11247_v44  ;;  %v4760_v39 = vld [vmem:[%s12661_s9 + $0x30] sm:$0xff] }
 0x39d   : > { %v11315_v50 = vpop.permute.xlu0 %3563  ;;  %v4094_v43 = vsel %vm2124_vm4, %v4051_v59, %v11261_v16  ;;  %v3970_v36 = vsel %vm2124_vm4, %v3938_v4, %v11242_v33  ;;  %v4767_v4 = vld [vmem:[%s12661_s9 + $0x68] sm:$0xff] }
 0x39e   : > { %3814 = vrot.lane.b32.xlu0 %v3776_v27, %s12699_s26 }
 0x39f   : > { %v3865_v40 = vpop.permute.xlu1 %3864  ;;  %3836 = vrot.lane.b32.xlu1 %v11323_v1, %s12683_s22 }
 0x3a0   : > { %v4118_v22 = vsel %vm2157_vm8, %v4094_v43, %v3865_v40 }
 0x3a1   : > { %4448 = vmatprep.mubr.bf16.mxu1 %v4118_v22  ;;  %v3867_v3 = vpop.permute.xlu0 %3866 }
 0x3a2   : > { %4449 = vmatmul.mubr.bf16.gmra.mrb[32].mxu1 %v4002_v21  ;;  %3699 = vrot.lane.b32.xlu0 %v3541_v51, %s12700_s29  ;;  %v4761_v21 = vld [vmem:[%s12661_s9 + $0x38] sm:$0xff] }
 0x3a3   : > { %v3797_v20 = vpop.permute.xlu1 %3796  ;;  %3816 = vrot.lane.b32.xlu1 %v3780_v18, %s12699_s26 }
 0x3a4   : > { %v4054_v37 = vsel %vm730_vm1, %v10968_v17, %v3797_v20  ;;  %v4754_v17 = vld [vmem:[%s12661_s9] sm:$0xff] }
 0x3a5   : > { %v3799_v11 = vpop.permute.xlu0 %3798 }
 0x3a6   : > { %3579 = vrot.lane.b32.xlu0 %v3541_v51, %s12699_s26  ;;  %v4057_v27 = vsel %vm730_vm1, %v11028_v6, %v3799_v11  ;;  %v4757_v6 = vld [vmem:[%s12661_s9 + $0x18] sm:$0xff] }
 0x3a7   : > { %v3682_v61 = vpop.permute.xlu1 %3681  ;;  %3701 = vrot.lane.b32.xlu1 %v3663_v19, %s12700_s29  ;;  %v4096_v53 = vsel %vm2124_vm4, %v4057_v27, %v11277_v30  ;;  %v11414_v19 = vld [vmem:[#allocation3 + $0x88] sm:$0xff]  }
 0x3a8   : > { %v4005_v44 = vsel %vm2157_vm8, %v3970_v36, %v3682_v61  ;;  %v3832_v10 = vrot.slane %v11414_v19, 1  ;;  %v3852_v27 = vshrl.u32 %v11414_v19, 16 }
 0x3a9   : > { %v11353_v34 = vpop.permute.xlu0 %3638 }
 0x3aa   : > { %3886 = vrot.lane.b32.xlu0 %v11360_v52, %s12700_s29 }
 0x3ab   : > { %v3562_v63 = vpop.permute.xlu1 %3561  ;;  %4798 = vperm.xlu1 %8875, %v4756_v13   ;;  %v3334_v13 = vld [vmem:[#allocation3 + $0x7c] sm:$0x7] }
 0x3ac   : > { %v3940_v33 = vsel %vm730_vm1, %v9102_v7, %v3562_v63  ;;  %v4762_v63 = vld [vmem:[%s12661_s9 + $0x40] sm:$0xff] }
 0x3ad   : > { %v11364_v41 = vpop.permute.xlu0 %3687  ;;  %v3972_v20 = vsel %vm2124_vm4, %v3940_v33, %v11261_v16 }
 0x3ae   : > { %4793 = vperm.xlu0 %8874, %v4755_v12   ;;  %v4008_v11 = vsel %vm2157_vm8, %v3972_v20, %v11300_v38  ;;  %v11425_v12 = vcombine.low %v11249_v25, %v3334_v13 }
 0x3af   : > { %v11376_v18 = vpop.permute.xlu1 %3632  ;;  %4808 = vperm.xlu1 %8875, %v4758_v49   ;;  %v4763_v49 = vld [vmem:[%s12661_s9 + $0x48] sm:$0xff] }
 0x3b0   : > { %v4095_v59 = vsel %vm2124_vm4, %v4054_v37, %v11376_v18  ;;  %v4765_v37 = vld [vmem:[%s12661_s9 + $0x58] sm:$0xff]  ;;  %v3546_v25 = vshll.u32 %v11425_v12, 16 }
 0x3b1   : > { %v4121_v31 = vsel %vm2157_vm8, %v4095_v59, %v3867_v3  ;;  %v11385_v40 = vpop.permute.xlu0 %3567  ;;  %v4759_v3 = vld [vmem:[%s12661_s9 + $0x28] sm:$0xff]  ;;  %v3855_v59 = vshll.u32 %v11414_v19, 16 }
 0x3b2   : > { %4456 = vmatprep.mubr.bf16.mxu1 %v4121_v31  ;;  %4803 = vperm.xlu0 %8874, %v4757_v6   ;;  %v3833_v6 = vsel %vm1749_vm5, %v11306_v14, %v3832_v10  ;;  %v11457_v20 = vrot.slane %v3546_v25, 1 }
 0x3b3   : > { %v3869_v43 = vpop.permute.xlu1 %3868  ;;  %4457 = vmatmul.mubr.bf16.gmra.mrb[36].mxu1 %v4005_v44  ;;  %4788 = vperm.xlu1 %8875, %v4754_v17   ;;  %v3338_v44 = vld [vmem:[#allocation3 + $0x84] sm:$0x7] }
 0x3b4   : > { %v4124_v22 = vsel %vm2157_vm8, %v4096_v53, %v3869_v43  ;;  %v9103_v43 = vld [vmem:[#allocation3 + $0x28] sm:$0xff]  }
 0x3b5   : > { %4464 = vmatprep.mubr.bf16.mxu1 %v4124_v22  ;;  %v3871_v46 = vpop.permute.xlu0 %3870  ;;  %v3942_v53 = vsel %vm730_vm1, %v9103_v43, %v11315_v50 }
 0x3b6   : > { %4813 = vperm.xlu0 %8874, %v4759_v3   ;;  %v3854_v3 = vrot.slane %v3852_v27, 1 }
 0x3b7   : > { %v3801_v2 = vpop.permute.xlu1 %3800  ;;  %4823 = vperm.xlu1 %8875, %v4761_v21   ;;  %v4766_v21 = vld [vmem:[%s12661_s9 + $0x60] sm:$0xff] }
 0x3b8   : > { %v4060_v31 = vsel %vm730_vm1, %v10982_v26, %v3801_v2  ;;  %v3974_v26 = vsel %vm2124_vm4, %v3942_v53, %v11376_v18  ;;  %v3857_v2 = vrot.slane %v3855_v59, 2 }
 0x3b9   : > { %v3803_v51 = vpop.permute.xlu0 %3802 }
 0x3ba   : > { %4818 = vperm.xlu0 %8874, %v4760_v39   ;;  %v4063_v7 = vsel %vm730_vm1, %v11067_v9, %v3803_v51  ;;  %v7962_v9 = vcombine.low %v11229_v57, %v3338_v44  ;;  %v4768_v57 = vld [vmem:[%s12661_s9 + $0x70] sm:$0xff]  ;;  %v3858_v13 = vor.u32 %v3857_v2, %v3854_v3 }
 0x3bb   : > { %v3686_v61 = vpop.permute.xlu1 %3685  ;;  %4465 = vmatmul.mubr.bf16.gmra.mrb[40].mxu1 %v4008_v11  ;;  %4838 = vperm.xlu1 %8875, %v4764_v60   ;;  %v4098_v18 = vsel %vm2124_vm4, %v4063_v7, %v11353_v34  ;;  %v9104_v60 = vld [vmem:[#allocation3 + $0x30] sm:$0xff]   ;;  %v3550_v11 = vshrl.u32 %v11425_v12, 16  ;;  %v3666_v7 = vor.u32 %v3664_v28, %v11338_v54  ;;  %v4772_v2 = vld [vmem:[%s12661_s9 + $0x90] sm:$0xff] }
 0x3bc   : > { %v4011_v50 = vsel %vm2157_vm8, %v3974_v26, %v3686_v61  ;;  %v3859_v27 = vsel %vm1876_vm7, %v11349_v8, %v3858_v13  ;;  %vm5075_vm7 = vcmask 1044484  }
 0x3bd   : > { %v11416_v16 = vpop.permute.xlu0 %3642  ;;  %vm11742_vm13 = vmor %vm5074_vm2, %vm5075_vm7  ;;  %vm5465_vm2 = vcmask 1043456   ;;  %vm5623_vm7 = vcmask 1041408  }
 0x3be   : > { %4833 = vperm.xlu0 %8874, %v4763_v49   ;;  %v3668_v49 = vshll.u32 %v7962_v9, 16 }
 0x3bf   : > { %v3566_v38 = vpop.permute.xlu1 %3565  ;;  %4828 = vperm.xlu1 %8875, %v4762_v63   ;;  %v3552_v63 = vor.u32 %v3550_v11, %v11457_v20 }
 0x3c0   : > { %v3670_v25 = vrot.slane %v3668_v49, 1  ;;  %v4777_v49 = vld [vmem:[%s12661_s9 + $0xb8] sm:$0xff] }
 0x3c1   : > { %v11439_v17 = vpop.permute.xlu0 %3691 }
 0x3c2   : > { %4843 = vperm.xlu0 %8874, %v4765_v37   ;;  %v3672_v37 = vshrl.u32 %v7962_v9, 16 }
 0x3c3   : > { %v3637_v36 = vpop.permute.xlu1 %3636  ;;  %4853 = vperm.xlu1 %8875, %v4767_v4  }
 0x3c4   : > { %v4097_v33 = vsel %vm2124_vm4, %v4060_v31, %v3637_v36 }
 0x3c5   : > { %v4127_v22 = vsel %vm2157_vm8, %v4097_v33, %v3871_v46  ;;  %v3944_v46 = vsel %vm730_vm1, %v9104_v60, %v3566_v38  ;;  %v11466_v61 = vpop.permute.xlu0 %3571  ;;  %v4769_v60 = vld [vmem:[%s12661_s9 + $0x78] sm:$0xff] }
 0x3c6   : > { %4472 = vmatprep.mubr.bf16.mxu1 %v4127_v22  ;;  %4848 = vperm.xlu0 %8874, %v4766_v21   ;;  %v3976_v38 = vsel %vm2124_vm4, %v3944_v46, %v11277_v30  ;;  %v3674_v30 = vor.u32 %v3672_v37, %v3670_v25  ;;  %v9106_v22 = vld [vmem:[#allocation3 + $0x40] sm:$0xff]   ;;  %v4770_v37 = vld [vmem:[%s12661_s9 + $0x80] sm:$0xff] }
 0x3c7   : > { %v3873_v51 = vpop.permute.xlu1 %3872  ;;  %4473 = vmatmul.mubr.bf16.gmra.mrb[44].mxu1 %v4011_v50  ;;  %3838 = vrot.lane.b32.xlu1 %v3833_v6, %s12683_s22  ;;  %v4014_v59 = vsel %vm2157_vm8, %v3976_v38, %v11364_v41  ;;  %v4775_v38 = vld [vmem:[%s12661_s9 + $0xa8] sm:$0xff] }
 0x3c8   : > { %v4130_v39 = vsel %vm2157_vm8, %v4098_v18, %v3873_v51  ;;  %v3549_v51 = vsel %vm1583_vm6, %v11344_v55, %v11457_v20  ;;  %v4776_v18 = vld [vmem:[%s12661_s9 + $0xb0] sm:$0xff]  ;;  %v4778_v55 = vld [vmem:[%s12661_s9 + $0xc0] sm:$0xff]  ;;  %v4773_v20 = vld [vmem:[%s12661_s9 + $0x98] sm:$0xff] }
 0x3c9   : > { %4480 = vmatprep.mubr.bf16.mxu1 %v4130_v39  ;;  %v3875_v31 = vpop.permute.xlu0 %3874 }
 0x3ca   : > { %4858 = vperm.xlu0 %8874, %v4768_v57  }
 0x3cb   : > { %v3805_v4 = vpop.permute.xlu1 %3804  ;;  %3583 = vrot.lane.b32.xlu1 %v3552_v63, %s12699_s26  ;;  %v4771_v63 = vld [vmem:[%s12661_s9 + $0x88] sm:$0xff] }
 0x3cc   : > { %v4066_v41 = vsel %vm730_vm1, %v11017_v56, %v3805_v4 }
 0x3cd   : > { %v3807_v43 = vpop.permute.xlu0 %3806 }
 0x3ce   : > { %3888 = vrot.lane.b32.xlu0 %v3859_v27, %s12700_s29  ;;  %v4069_v26 = vsel %vm730_vm1, %v11102_v62, %v3807_v43 }
 0x3cf   : > { %v3690_v6 = vpop.permute.xlu1 %3689  ;;  %4481 = vmatmul.mubr.bf16.gmra.mrb[48].mxu1 %v4014_v59  ;;  %3652 = vrot.lane.b32.xlu1 %v11269_v5, %s12683_s22  ;;  %v9105_v5 = vld [vmem:[#allocation3 + $0x38] sm:$0xff]   ;;  %v4100_v62 = vsel %vm2124_vm4, %v4069_v26, %v11416_v16 }
 0x3d0   : > { %v3946_v33 = vsel %vm730_vm1, %v9105_v5, %v11385_v40  ;;  %v4779_v5 = vld [vmem:[%s12661_s9 + $0xc8] sm:$0xff] }
 0x3d1   : > { %v3978_v56 = vsel %vm2124_vm4, %v3946_v33, %v3637_v36 }
 0x3d2   : > { %3820 = vrot.lane.b32.xlu0 %v11349_v8, %s12699_s26  ;;  %v4017_v28 = vsel %vm2157_vm8, %v3978_v56, %v3690_v6  ;;  %v4780_v6 = vld [vmem:[%s12661_s9 + $0xd0] sm:$0xff] }
 0x3d3   : > { %v3570_v44 = vpop.permute.xlu1 %3569  ;;  %3705 = vrot.lane.b32.xlu1 %v3674_v30, %s12700_s29  ;;  %v4774_v30 = vld [vmem:[%s12661_s9 + $0xa0] sm:$0xff] }
 0x3d4   : > { %v3948_v21 = vsel %vm730_vm1, %v9106_v22, %v3570_v44 }
 0x3d5   : > { %v3980_v9 = vsel %vm2124_vm4, %v3948_v21, %v11353_v34 }
 0x3d6   : > { %3840 = vrot.lane.b32.xlu0 %v3832_v10, %s12683_s22  ;;  %v4020_v46 = vsel %vm2157_vm8, %v3980_v9, %v11439_v17  ;;  %s9128_s22 = smov 112  }
 0x3d7   : > { %v11487_v53 = vpop.permute.xlu1 %3640  ;;  %3818 = vrot.lane.b32.xlu1 %v11360_v52, %s12699_s26  ;;  %v3671_v52 = vsel %vm1583_vm6, %v3666_v7, %v3670_v25  ;;  %v6271_v7 = vld [vmem:[%s12664_s12] sm:$0xff] }
 0x3d8   : > { %v4099_v8 = vsel %vm2124_vm4, %v4066_v41, %v11487_v53 }
 0x3d9   : > { %v4133_v29 = vsel %vm2157_vm8, %v4099_v8, %v3875_v31 }
 0x3da   : > { %4488 = vmatprep.mubr.bf16.mxu1 %v4133_v29  ;;  %3890 = vrot.lane.b32.xlu0 %v3858_v13, %s12700_s29 }
 0x3db   : > { %v3877_v54 = vpop.permute.xlu1 %3876  ;;  %4489 = vmatmul.mubr.bf16.gmra.mrb[52].mxu1 %v4017_v28  ;;  %v11508_v40 = vpop.f32.mrb[148].mxu0  ;;  %3703 = vrot.lane.b32.xlu1 %v3671_v52, %s12700_s29  ;;  %v6273_v28 = vld [vmem:[%s12664_s12 + $0x10] sm:$0xff]  ;;  %v9107_v52 = vld [vmem:[#allocation3 + $0x48] sm:$0xff]  }
 0x3dc   : > { %v4136_v10 = vsel %vm2157_vm8, %v4100_v62, %v3877_v54  ;;  %v11515_v36 = vpop.f32.mrb[149].mxu0  ;;  %v4781_v54 = vld [vmem:[%s12661_s9 + $0xd8] sm:$0xff]  ;;  %v3950_v22 = vsel %vm730_vm1, %v9107_v52, %v11466_v61 }
 0x3dd   : > { %4496 = vmatprep.mubr.bf16.mxu1 %v4136_v10  ;;  %v11517_v3 = vpop.f32.mrb[150].mxu0 }
 0x3de   : > { %v11522_v50 = vpop.f32.mrb[151].mxu0  ;;  %3581 = vrot.lane.b32.xlu0 %v3549_v51, %s12699_s26  ;;  %v6275_v51 = vld [vmem:[%s12664_s12 + $0x20] sm:$0xff] }
 0x3df   : > { %4878 = vperm.xlu1 %8875, %v4772_v2   ;;  %v3809_v39 = vpop.permute.xlu1 %3808  ;;  %v3982_v2 = vsel %vm2124_vm4, %v3950_v22, %v11487_v53 }
 0x3e0   : > { %v4072_v62 = vsel %vm730_vm1, %v11051_v0, %v3809_v39  ;;  %v6272_v0 = vld [vmem:[%s12664_s12 + $0x8] sm:$0xff] }
 0x3e2   : > { %4863 = vperm.xlu0 %8874, %v4769_v60   ;;  %v3927_v60 = vrot.slane %v11414_v19, 2  ;;  %v6274_v19 = vld [vmem:[%s12664_s12 + $0x18] sm:$0xff] }
 0x3e3   : > { %4497 = vmatmul.mubr.bf16.gmra.mrb[56].mxu1 %v4020_v46  ;;  %4898 = vperm.xlu1 %8875, %v4776_v18   ;;  %v3694_v17 = vpop.permute.xlu1 %3693  ;;  %v8959_v46 = vld [vmem:[#allocation3 + $0x90] ss:$0 sps:$4 sm:$0x11]  }
 0x3e4   : > { %v11538_v34 = vpop.f32.mrb[152].mxu0  ;;  %v4023_v18 = vsel %vm2157_vm8, %v3982_v2, %v3694_v17  ;;  %v3928_v39 = vsel %vm2058_vm12, %v3925_v48, %v3927_v60  ;;  %v6277_v17 = vld [vmem:[%s12664_s12 + $0x30] sm:$0xff] }
 0x3e5   : > { %v11546_v11 = vpop.f32.mrb[153].mxu0  ;;  %8715 = vmatprep.mubr.msk.bf16.mxu0 %vm730_vm1, %v3928_v39 }
 0x3e6   : > { %v11548_v57 = vpop.f32.mrb[154].mxu0  ;;  %4883 = vperm.xlu0 %8874, %v4773_v20  }
 0x3e7   : > { %v11550_v13 = vpop.f32.mrb[155].mxu0  ;;  %4908 = vperm.xlu1 %8875, %v4778_v55   ;;  %v3574_v59 = vpop.permute.xlu1 %3573  ;;  %v3929_v55 = vrot.slane %v8959_v46, 2 }
 0x3ea   : > { %4903 = vperm.xlu0 %8874, %v4777_v49   ;;  %v9108_v49 = vld [vmem:[#allocation3 + $0x50] sm:$0xff]  }
 0x3eb   : > { %4873 = vperm.xlu1 %8875, %v4771_v63   ;;  %v11580_v43 = vpop.permute.xlu1 %3644  ;;  %v3952_v42 = vsel %vm730_vm1, %v9108_v49, %v3574_v59 }
 0x3ec   : > { %v11558_v4 = vpop.f32.mrb[156].mxu0  ;;  %v4101_v21 = vsel %vm2124_vm4, %v4072_v62, %v11580_v43  ;;  %v3984_v59 = vsel %vm2124_vm4, %v3952_v42, %v11416_v16 }
 0x3ed   : > { %v11566_v27 = vpop.f32.mrb[157].mxu0 }
 0x3ee   : > { %v11568_v25 = vpop.f32.mrb[158].mxu0  ;;  %4868 = vperm.xlu0 %8874, %v4770_v37  }
 0x3ef   : > { %v11570_v31 = vpop.f32.mrb[159].mxu0  ;;  %4893 = vperm.xlu1 %8875, %v4775_v38   ;;  %v3930_v38 = vsel %vm2058_vm12, %v3927_v60, %v3929_v55 }
 0x3f0   : > { %8716 = vmatmul.mubr.msk.bf16.gmra.mrb[176].mxu0 %vm730_vm1, %v3930_v38 }
 0x3f2   : > { %4888 = vperm.xlu0 %8874, %v4774_v30   ;;  %v11578_v44 = vpop.permute.xlu0 %3646  ;;  %v6276_v30 = vld [vmem:[%s12664_s12 + $0x28] sm:$0xff] }
 0x3f3   : > { %4918 = vperm.xlu1 %8875, %v4780_v6  }
 0x3f4   : > { %v11582_v41 = vpop.f32.mrb[160].mxu0 }
 0x3f5   : > { %v11590_v33 = vpop.f32.mrb[161].mxu0 }
 0x3f6   : > { %v11592_v26 = vpop.f32.mrb[162].mxu0  ;;  %4913 = vperm.xlu0 %8874, %v4779_v5   ;;  %v3696_v56 = vpop.permute.xlu0 %3695 }
 0x3f7   : > { %v11594_v8 = vpop.f32.mrb[163].mxu0  ;;  %6281 = vperm.xlu1 %8875, %v6271_v7   ;;  %v3881_v29 = vpop.permute.xlu1 %3880  ;;  %v12701_v7 = vmov 0.0   ;;  %v4026_v5 = vsel %vm2157_vm8, %v3984_v59, %v3696_v56 }
 0x3f8   : > { %8723 = vmatprep.mubr.msk.f32.mxu0 %vm9120_vm0, %v12701_v7 }
 0x3fa   : > { %4923 = vperm.xlu0 %8874, %v4781_v54   ;;  %v3879_v10 = vpop.permute.xlu0 %3878  ;;  %v9109_v54 = vld [vmem:[#allocation3 + $0x58] sm:$0xff]  }
 0x3fb   : > { %6291 = vperm.xlu1 %8875, %v6273_v28   ;;  %v3813_v9 = vpop.permute.xlu1 %3812  ;;  %v4139_v61 = vsel %vm2157_vm8, %v4101_v21, %v3879_v10  ;;  %v6278_v28 = vld [vmem:[%s12664_s12 + $0x38] sm:$0xff] }
 0x3fc   : > { %4504 = vmatprep.mubr.bf16.mxu1 %v4139_v61  ;;  %v4078_v16 = vsel %vm730_vm1, %v11189_v23, %v3813_v9 }
 0x3fd   : > { %4505 = vmatmul.mubr.bf16.gmra.mrb[60].mxu1 %v4023_v18 }
 0x3fe   : > { %6286 = vperm.xlu0 %8874, %v6272_v0   ;;  %v3811_v53 = vpop.permute.xlu0 %3810 }
 0x3ff   : > { %6301 = vperm.xlu1 %8875, %v6275_v51   ;;  %v3698_v20 = vpop.permute.xlu1 %3697  ;;  %v4075_v63 = vsel %vm730_vm1, %v11156_v35, %v3811_v53 }
 0x400   : > { %v4102_v48 = vsel %vm2124_vm4, %v4075_v63, %v11578_v44 }
 0x401   : > { %v4142_v35 = vsel %vm2157_vm8, %v4102_v48, %v3881_v29 }
 0x402   : > { %6296 = vperm.xlu0 %8874, %v6274_v19   ;;  %v3576_v37 = vpop.permute.xlu0 %3575  ;;  %4512 = vmatprep.mubr.bf16.mxu1 %v4142_v35 }
 0x403   : > { %6311 = vperm.xlu1 %8875, %v6277_v17   ;;  %v3649_v6 = vpop.permute.xlu1 %3648  ;;  %v3954_v62 = vsel %vm730_vm1, %v9109_v54, %v3576_v37  ;;  %v9125_v54 = vmov 0.0|0.0  }
 0x404   : > { %v3986_v22 = vsel %vm2124_vm4, %v3954_v62, %v11580_v43  ;;  %v4103_v56 = vsel %vm2124_vm4, %v4078_v16, %v3649_v6  ;;  %8777 = vmatprep.subr.bf16.mxu0 %v9125_v54  ;;  %8781 = vmatprep.subr.bf16.mxu1 %v9125_v54 }
 0x405   : > { %4513 = vmatmul.mubr.bf16.gmra.mrb[64].mxu1 %v4026_v5  ;;  %v4029_v51 = vsel %vm2157_vm8, %v3986_v22, %v3698_v20 }
 0x406   : > { %6306 = vperm.xlu0 %8874, %v6276_v30  }
 0x407   : > { %v3578_v29 = vpop.permute.xlu1 %3577 }
 0x408   : > { %v11649_v52 = vpop.permute.xlu0 %3650  ;;  %v3956_v18 = vsel %vm730_vm1, %v11113_v45, %v3578_v29 }
 0x409   : > { %v3988_v46 = vsel %vm2124_vm4, %v3956_v18, %v11578_v44 }
 0x40a   : > { %6316 = vperm.xlu0 %8874, %v6278_v28  }
 0x40c   : > { %v3883_v10 = vpop.permute.xlu0 %3882 }
 0x40d   : > { %v3885_v21 = vpop.permute.xlu1 %3884  ;;  %v4145_v2 = vsel %vm2157_vm8, %v4103_v56, %v3883_v10 }
 0x40e   : > { %4520 = vmatprep.mubr.bf16.mxu1 %v4145_v2 }
 0x40f   : > { %4521 = vmatmul.mubr.bf16.gmra.mrb[68].mxu1 %v4029_v51 }
 0x410   : > { %v3815_v61 = vpop.permute.xlu0 %3814 }
 0x411   : > { %v3837_v0 = vpop.permute.xlu1 %3836  ;;  %v4081_v23 = vsel %vm730_vm1, %v11254_v15, %v3815_v61 }
 0x412   : > { %v4104_v43 = vsel %vm2124_vm4, %v4081_v23, %v11649_v52 }
 0x413   : > { %v4148_v9 = vsel %vm2157_vm8, %v4104_v43, %v3885_v21 }
 0x414   : > { %4528 = vmatprep.mubr.bf16.mxu1 %v4148_v9  ;;  %v3700_v60 = vpop.permute.xlu0 %3699 }
 0x415   : > { %v4032_v53 = vsel %vm2157_vm8, %v3988_v46, %v3700_v60  ;;  %v3817_v39 = vpop.permute.xlu1 %3816 }
 0x416   : > { %v4084_v45 = vsel %vm730_vm1, %v11282_v24, %v3817_v39  ;;  %v11718_v39 = vld [vmem:[%s12660_s8] ss:$0 sm:$0xff] }
 0x417   : > { %4529 = vmatmul.mubr.bf16.gmra.mrb[72].mxu1 %v4032_v53  ;;  %v4106_v17 = vsel %vm2124_vm4, %v4084_v45, %v3837_v0 }
 0x418   : > { %v3580_v55 = vpop.permute.xlu0 %3579 }
 0x419   : > { %v3958_v15 = vsel %vm730_vm1, %v11167_v47, %v3580_v55  ;;  %v3702_v19 = vpop.permute.xlu1 %3701 }
 0x41a   : > { %v3990_v20 = vsel %vm2124_vm4, %v3958_v15, %v3649_v6 }
 0x41b   : > { %v4035_v44 = vsel %vm2157_vm8, %v3990_v20, %v3702_v19 }
 0x41c   : > { %v3887_v63 = vpop.permute.xlu0 %3886 }
 0x41d   : > { %v4151_v49 = vsel %vm2157_vm8, %v4106_v17, %v3887_v63 }
 0x41e   : > { %4536 = vmatprep.mubr.bf16.mxu1 %v4151_v49 }
 0x41f   : > { %4537 = vmatmul.mubr.bf16.gmra.mrb[76].mxu1 %v4035_v44 }
 0x42a   : > { %v11676_v42 = vpop.permute.xlu1 %4798 }
 0x42d   : > { %v4794_v24 = vpop.permute.xlu0 %4793 }
 0x42e   : > { %v11678_v48 = vpop.permute.xlu1 %4808 }
 0x431   : > { %v11680_v35 = vpop.permute.xlu0 %4803 }
 0x432   : > { %v4789_v38 = vpop.permute.xlu1 %4788 }
 0x435   : > { %v11684_v37 = vpop.permute.xlu0 %4813 }
 0x436   : > { %v11682_v47 = vpop.permute.xlu1 %4823 }
 0x439   : > { %v11688_v30 = vpop.permute.xlu0 %4818 }
 0x43a   : > { %v11686_v6 = vpop.permute.xlu1 %4838 }
 0x43d   : > { %v11692_v5 = vpop.permute.xlu0 %4833 }
 0x43e   : > { %v11690_v59 = vpop.permute.xlu1 %4828 }
 0x440   : > { %v11694_v29 = vpop.f32.mrb[164].mxu0 }
 0x441   : > { %v11696_v28 = vpop.f32.mrb[165].mxu0  ;;  %v11702_v16 = vpop.permute.xlu0 %4843 }
 0x442   : > { %v11700_v62 = vpop.permute.xlu1 %4853  ;;  %v11704_v22 = vpop.f32.mrb[166].mxu0 }
 0x443   : > { %v11706_v56 = vpop.f32.mrb[167].mxu0 }
 0x445   : > { %v11708_v10 = vpop.permute.xlu0 %4848 }
 0x446   : > { %v3839_v21 = vpop.permute.xlu1 %3838 }
 0x449   : > { %v11710_v51 = vpop.permute.xlu0 %4858 }
 0x44a   : > { %v3584_v2 = vpop.permute.xlu1 %3583 }
 0x44d   : > { %v3889_v61 = vpop.permute.xlu0 %3888 }
 0x44e   : > { %v3653_v0 = vpop.permute.xlu1 %3652 }
 0x451   : > { %v3821_v23 = vpop.permute.xlu0 %3820 }
 0x452   : > { %v3706_v18 = vpop.permute.xlu1 %3705  ;;  %v4090_v63 = vsel %vm730_vm1, %v11306_v14, %v3821_v23 }
 0x455   : > { %v3841_v9 = vpop.permute.xlu0 %3840 }
 0x456   : > { %v3819_v43 = vpop.permute.xlu1 %3818 }
 0x457   : > { %v4087_v60 = vsel %vm730_vm1, %v11323_v1, %v3819_v43 }
 0x458   : > { %v4108_v53 = vsel %vm2124_vm4, %v4087_v60, %v3839_v21  ;;  %v4110_v60 = vsel %vm2124_vm4, %v4090_v63, %v3841_v9 }
 0x459   : > { %v8427_v46 = vpop.f32.mrb[24].mxu1  ;;  %v4154_v45 = vsel %vm2157_vm8, %v4108_v53, %v3889_v61  ;;  %v3891_v19 = vpop.permute.xlu0 %3890 }
 0x45a   : > { %v8428_v55 = vpop.f32.mrb[25].mxu1  ;;  %4544 = vmatprep.mubr.bf16.mxu1 %v4154_v45 }
 0x45b   : > { %v8429_v15 = vadd.f32 %v8428_v55, %v8427_v46  ;;  %v8430_v20 = vpop.f32.mrb[26].mxu1 }
 0x45c   : > { %v8431_v17 = vpop.f32.mrb[27].mxu1  ;;  %v11724_v44 = vpop.f32.mrb[168].mxu0 }
 0x45d   : > { %v4435_v1 = vadd.f32 %v8429_v15, %v11718_v39  ;;  %v8432_v49 = vadd.f32 %v8431_v17, %v8430_v20  ;;  %v11729_v61 = vpop.f32.mrb[169].mxu0  ;;  %v3582_v46 = vpop.permute.xlu0 %3581  ;;  %v4157_v20 = vsel %vm2157_vm8, %v4110_v60, %v3891_v19 }
 0x45e   : > { %v11731_v53 = vpop.f32.mrb[170].mxu0  ;;  %v3960_v23 = vsel %vm730_vm1, %v11214_v58, %v3582_v46  ;;  %v3704_v15 = vpop.permute.xlu1 %3703 }
 0x45f   : > { %v4596_v21 = vadd.f32 %v11515_v36, %v4435_v1  ;;  %v4438_v43 = vadd.f32 %v8432_v49, %v11718_v39  ;;  %v11736_v45 = vpop.f32.mrb[171].mxu0  ;;  %v3992_v36 = vsel %vm2124_vm4, %v3960_v23, %v11649_v52  ;;  %v3962_v52 = vsel %vm730_vm1, %v11425_v12, %v3584_v2 }
 0x460   : > { %v4038_v17 = vsel %vm2157_vm8, %v3992_v36, %v3704_v15 }
 0x461   : > { %v4722_v55 = vmax.f32 %v4596_v21, 0.0  ;;  %v4599_v14 = vadd.f32 %v11522_v50, %v4438_v43  ;;  %4545 = vmatmul.mubr.bf16.gmra.mrb[80].mxu1 %v4038_v17  ;;  %v3994_v43 = vsel %vm2124_vm4, %v3962_v52, %v3653_v0 }
 0x462   : > { %4552 = vmatprep.mubr.bf16.mxu1 %v4157_v20  ;;  %v4041_v60 = vsel %vm2157_vm8, %v3994_v43, %v3706_v18 }
 0x463   : > { %v4946_v9 = vmul.f32 %v4789_v38, %v4722_v55  ;;  %v4723_v63 = vmax.f32 %v4599_v14, 0.0 }
 0x465   : > { %v8228_v1 = vpack.c.bf16 %v4946_v9, %v4946_v9  ;;  %v4947_v49 = vmul.f32 %v4794_v24, %v4723_v63 }
 0x467   : > { %v5077_v58 = vrot.slane %v8228_v1, 7  ;;  %v8229_v50 = vpack.c.bf16 %v4947_v49, %v4947_v49 }
 0x469   : > { %v5078_v38 = vrot.slane %v5077_v58, 4  ;;  %5204 = vst.msk [vmem:[#allocation2 + $0x8] sm:$0xe] %vm5203_vm11, %v5077_v58  ;;  %v5079_v19 = vrot.slane %v8229_v50, 7  ;;  %4553 = vmatmul.mubr.bf16.gmra.mrb[84].mxu1 %v4041_v60 }
 0x46a   : > { %v11752_v46 = vpop.f32.mrb[172].mxu0  ;;  %8730 = vmatprep.mubr.msk.f32.mxu1 %vm9120_vm0, %v12701_v7 }
 0x46b   : > { %v5080_v24 = vsel %vm11742_vm13, %v5078_v38, %v5079_v19  ;;  %v11755_v55 = vpop.f32.mrb[173].mxu0 }
 0x46c   : > { %5205 = vst.msk [vmem:[#allocation2 + $0xc] sm:$0xf] %vm4195_vm3, %v5080_v24  ;;  %v11757_v23 = vpop.f32.mrb[174].mxu0 }
 0x46d   : > { %v8433_v14 = vpop.f32.mrb[28].mxu1  ;;  %v11761_v2 = vpop.f32.mrb[175].mxu0 }
 0x46e   : > { %v8434_v12 = vpop.f32.mrb[29].mxu1 }
 0x46f   : > { %v8435_v0 = vadd.f32 %v8434_v12, %v8433_v14  ;;  %v8436_v15 = vpop.f32.mrb[30].mxu1 }
 0x470   : > { %v8437_v36 = vpop.f32.mrb[31].mxu1 }
 0x471   : > { %v4443_v18 = vadd.f32 %v8435_v0, %v11718_v39  ;;  %v8438_v20 = vadd.f32 %v8437_v36, %v8436_v15 }
 0x473   : > { %v4604_v9 = vadd.f32 %v11508_v40, %v4443_v18  ;;  %v4446_v63 = vadd.f32 %v8438_v20, %v11718_v39  ;;  %v5081_v40 = vrot.slane %v5079_v19, 4 }
 0x475   : > { %v4724_v17 = vmax.f32 %v4604_v9, 0.0  ;;  %v4607_v1 = vadd.f32 %v11517_v3, %v4446_v63  ;;  %v8439_v49 = vpop.f32.mrb[32].mxu1 }
 0x476   : > { %v8440_v58 = vpop.f32.mrb[33].mxu1 }
 0x477   : > { %v4948_v50 = vmul.f32 %v11676_v42, %v4724_v17  ;;  %v4725_v52 = vmax.f32 %v4607_v1, 0.0  ;;  %v8441_v38 = vadd.f32 %v8440_v58, %v8439_v49  ;;  %v8442_v43 = vpop.f32.mrb[34].mxu1 }
 0x478   : > { %v8443_v24 = vpop.f32.mrb[35].mxu1 }
 0x479   : > { %v8230_v60 = vpack.c.bf16 %v4948_v50, %v4948_v50  ;;  %v4949_v14 = vmul.f32 %v11680_v35, %v4725_v52  ;;  %v4451_v12 = vadd.f32 %v8441_v38, %v11718_v39  ;;  %v8444_v0 = vadd.f32 %v8443_v24, %v8442_v43 }
 0x47b   : > { %v5082_v15 = vrot.slane %v8230_v60, 7  ;;  %v8231_v36 = vpack.c.bf16 %v4949_v14, %v4949_v14  ;;  %v4612_v18 = vadd.f32 %v11546_v11, %v4451_v12  ;;  %v4454_v3 = vadd.f32 %v8444_v0, %v11718_v39 }
 0x47d   : > { %v5083_v42 = vsel %vm11742_vm13, %v5081_v40, %v5082_v15  ;;  %v5084_v20 = vrot.slane %v5082_v15, 4  ;;  %v5085_v9 = vrot.slane %v8231_v36, 7  ;;  %v4726_v63 = vmax.f32 %v4612_v18, 0.0 }
 0x47e   : > { %5206 = vst.msk [vmem:[#allocation2 + $0x10] sm:$0xf] %vm4195_vm3, %v5083_v42  ;;  %v4615_v35 = vadd.f32 %v11550_v13, %v4454_v3 }
 0x47f   : > { %v5086_v17 = vsel %vm11742_vm13, %v5084_v20, %v5085_v9  ;;  %v4950_v19 = vmul.f32 %v11678_v48, %v4726_v63  ;;  %v5087_v58 = vrot.slane %v5085_v9, 4 }
 0x480   : > { %5207 = vst.msk [vmem:[#allocation2 + $0x14] sm:$0xf] %vm4195_vm3, %v5086_v17  ;;  %v4727_v11 = vmax.f32 %v4615_v35, 0.0 }
 0x481   : > { %v8232_v1 = vpack.c.bf16 %v4950_v19, %v4950_v19 }
 0x482   : > { %v4951_v49 = vmul.f32 %v11684_v37, %v4727_v11 }
 0x483   : > { %v5088_v50 = vrot.slane %v8232_v1, 7 }
 0x484   : > { %v8233_v52 = vpack.c.bf16 %v4951_v49, %v4951_v49 }
 0x485   : > { %v5089_v38 = vsel %vm11742_vm13, %v5087_v58, %v5088_v50  ;;  %v5090_v43 = vrot.slane %v5088_v50, 4 }
 0x486   : > { %5208 = vst.msk [vmem:[#allocation2 + $0x18] sm:$0xf] %vm4195_vm3, %v5089_v38  ;;  %v5091_v13 = vrot.slane %v8233_v52, 7  ;;  %v8445_v24 = vpop.f32.mrb[36].mxu1 }
 0x487   : > { %v8446_v60 = vpop.f32.mrb[37].mxu1 }
 0x488   : > { %v5092_v48 = vsel %vm11742_vm13, %v5090_v43, %v5091_v13  ;;  %v8447_v14 = vadd.f32 %v8446_v60, %v8445_v24  ;;  %v8448_v12 = vpop.f32.mrb[38].mxu1 }
 0x489   : > { %5209 = vst.msk [vmem:[#allocation2 + $0x1c] sm:$0xf] %vm4195_vm3, %v5092_v48  ;;  %v8449_v37 = vpop.f32.mrb[39].mxu1  ;;  %v5247_v48 = vld [vmem:[#allocation2 + $0xc] ss:$8 sps:$4 sm:$0xff]  }
 0x48a   : > { %v4459_v0 = vadd.f32 %v8447_v14, %v11718_v39  ;;  %v8450_v40 = vadd.f32 %v8449_v37, %v8448_v12  ;;  %v5250_v12 = vld [vmem:[#allocation2 + $0x10] sm:$0xe]  ;;  %v5253_v37 = vunpack.c.h.bf16 %v5247_v48 }
 0x48c   : > { %v4620_v15 = vadd.f32 %v11538_v34, %v4459_v0  ;;  %v4462_v36 = vadd.f32 %v8450_v40, %v11718_v39  ;;  %v5093_v34 = vrot.slane %v5091_v13, 4 }
 0x48e   : > { %v4728_v18 = vmax.f32 %v4620_v15, 0.0  ;;  %v4623_v3 = vadd.f32 %v11548_v57, %v4462_v36  ;;  %v8451_v42 = vpop.f32.mrb[40].mxu1 }
 0x48f   : > { %v8452_v20 = vpop.f32.mrb[41].mxu1 }
 0x490   : > { %v4952_v9 = vmul.f32 %v11688_v30, %v4728_v18  ;;  %v4729_v63 = vmax.f32 %v4623_v3, 0.0  ;;  %v8453_v35 = vadd.f32 %v8452_v20, %v8451_v42  ;;  %v8454_v17 = vpop.f32.mrb[42].mxu1  ;;  %v5252_v18 = vunpack.c.l.bf16 %v5250_v12 }
 0x491   : > { %v8455_v19 = vpop.f32.mrb[43].mxu1 }
 0x492   : > { %v8234_v11 = vpack.c.bf16 %v4952_v9, %v4952_v9  ;;  %v4953_v1 = vmul.f32 %v11682_v47, %v4729_v63  ;;  %v4467_v49 = vadd.f32 %v8453_v35, %v11718_v39  ;;  %v8456_v58 = vadd.f32 %v8455_v19, %v8454_v17  ;;  %v5254_v9 = vld [vmem:[#allocation2 + $0x18] sm:$0xc] }
 0x493   : > { %v5264_v17 = vrot.slane %v5253_v37, 1 }
 0x494   : > { %v5094_v50 = vrot.slane %v8234_v11, 7  ;;  %v8235_v52 = vpack.c.bf16 %v4953_v1, %v4953_v1  ;;  %v4628_v38 = vadd.f32 %v11566_v27, %v4467_v49  ;;  %v4470_v57 = vadd.f32 %v8456_v58, %v11718_v39  ;;  %v5246_v58 = vld [vmem:[#allocation2 + $0x8] sm:$0xe] }
 0x496   : > { %v5095_v30 = vsel %vm11742_vm13, %v5093_v34, %v5094_v50  ;;  %v5096_v43 = vrot.slane %v5094_v50, 4  ;;  %v5097_v24 = vrot.slane %v8235_v52, 7  ;;  %v4730_v60 = vmax.f32 %v4628_v38, 0.0 }
 0x497   : > { %5210 = vst.msk [vmem:[#allocation2 + $0x20] sm:$0xf] %vm4195_vm3, %v5095_v30  ;;  %v4631_v47 = vadd.f32 %v11570_v31, %v4470_v57  ;;  %v5257_v34 = vunpack.c.l.bf16 %v5254_v9  ;;  %v5263_v52 = vrot.slane %v5252_v18, 1  ;;  %v5249_v30 = vunpack.c.l.bf16 %v5247_v48 }
 0x498   : > { %v5098_v13 = vsel %vm11742_vm13, %v5096_v43, %v5097_v24  ;;  %v4954_v14 = vmul.f32 %v11690_v59, %v4730_v60  ;;  %v5099_v3 = vrot.slane %v5097_v24, 4 }
 0x499   : > { %5211 = vst.msk [vmem:[#allocation2 + $0x24] sm:$0xf] %vm4195_vm3, %v5098_v13  ;;  %v4731_v27 = vmax.f32 %v4631_v47, 0.0  ;;  %v5265_v47 = vsel %vm1749_vm5, %v5263_v52, %v5264_v17  ;;  %v5269_v37 = vmax.f32 %v5249_v30, %v5264_v17  ;;  %v5274_v48 = vrot.slane %v5257_v34, 2 }
 0x49a   : > { %v8236_v0 = vpack.c.bf16 %v4954_v14, %v4954_v14  ;;  %v8457_v40 = vpop.f32.mrb[44].mxu1 }
 0x49b   : > { %v4955_v15 = vmul.f32 %v11692_v5, %v4731_v27  ;;  %v8458_v36 = vpop.f32.mrb[45].mxu1  ;;  %v5248_v27 = vunpack.c.l.bf16 %v5246_v58 }
 0x49c   : > { %v5100_v42 = vrot.slane %v8236_v0, 7  ;;  %v8459_v20 = vadd.f32 %v8458_v36, %v8457_v40  ;;  %v8460_v31 = vpop.f32.mrb[46].mxu1  ;;  %v11816_v0 = vld [vmem:[#allocation2 + $0x18] sm:$0xc] }
 0x49d   : > { %v8237_v63 = vpack.c.bf16 %v4955_v15, %v4955_v15  ;;  %v8461_v35 = vpop.f32.mrb[47].mxu1  ;;  %v5268_v9 = vmax.f32 %v5248_v27, %v5265_v47  ;;  %v5401_v17 = vunpack.c.l.bf16 %v11816_v0 }
 0x49e   : > { %v5101_v59 = vsel %vm11742_vm13, %v5099_v3, %v5100_v42  ;;  %v5102_v19 = vrot.slane %v5100_v42, 4  ;;  %v4475_v11 = vadd.f32 %v8459_v20, %v11718_v39  ;;  %v8462_v1 = vadd.f32 %v8461_v35, %v8460_v31  ;;  %v5256_v49 = vld [vmem:[#allocation2 + $0x20] sm:$0x1] }
 0x49f   : > { %5212 = vst.msk [vmem:[#allocation2 + $0x28] sm:$0xf] %vm4195_vm3, %v5101_v59  ;;  %v5103_v5 = vrot.slane %v8237_v63, 7  ;;  %v5259_v50 = vunpack.c.l.bf16 %v5256_v49 }
 0x4a0   : > { %v4636_v38 = vadd.f32 %v11558_v4, %v4475_v11  ;;  %v4478_v57 = vadd.f32 %v8462_v1, %v11718_v39  ;;  %v5255_v43 = vld [vmem:[#allocation2 + $0x1c] ss:$8 sps:$4 sm:$0xff]   ;;  %v5404_v4 = vld [vmem:[#allocation2 + $0x20] sm:$0xc] }
 0x4a1   : > { %v5104_v24 = vsel %vm11742_vm13, %v5102_v19, %v5103_v5  ;;  %v5258_v60 = vunpack.c.l.bf16 %v5255_v43  ;;  %v5277_v36 = vrot.slane %v5259_v50, 2  ;;  %v5408_v18 = vunpack.c.h.bf16 %v5255_v43 }
 0x4a2   : > { %5213 = vst.msk [vmem:[#allocation2 + $0x2c] sm:$0xf] %vm4195_vm3, %v5104_v24  ;;  %v4732_v13 = vmax.f32 %v4636_v38, 0.0  ;;  %v4639_v14 = vadd.f32 %v11568_v25, %v4478_v57  ;;  %v8463_v12 = vpop.f32.mrb[48].mxu1  ;;  %v5407_v59 = vunpack.c.l.bf16 %v5404_v4  ;;  %v5105_v58 = vrot.slane %v5103_v5, 4 }
 0x4a3   : > { %v8464_v40 = vpop.f32.mrb[49].mxu1  ;;  %v5275_v15 = vrot.slane %v5258_v60, 2  ;;  %v11824_v50 = vrot.slane %v5408_v18, 1 }
 0x4a4   : > { %v4956_v3 = vmul.f32 %v11686_v6, %v4732_v13  ;;  %v4733_v42 = vmax.f32 %v4639_v14, 0.0  ;;  %v8465_v20 = vadd.f32 %v8464_v40, %v8463_v12  ;;  %v8466_v31 = vpop.f32.mrb[50].mxu1 }
 0x4a5   : > { %v8467_v63 = vpop.f32.mrb[51].mxu1  ;;  %v5276_v25 = vsel %vm2058_vm12, %v5274_v48, %v5275_v15  ;;  %v5278_v35 = vsel %vm2058_vm12, %v5275_v15, %v5277_v36  ;;  %v5400_v48 = vld [vmem:[#allocation2 + $0x20] sm:$0x1] }
 0x4a6   : > { %v8238_v19 = vpack.c.bf16 %v4956_v3, %v4956_v3  ;;  %v4957_v11 = vmul.f32 %v11702_v16, %v4733_v42  ;;  %v4483_v1 = vadd.f32 %v8465_v20, %v11718_v39  ;;  %v8468_v49 = vadd.f32 %v8467_v63, %v8466_v31  ;;  %v5406_v43 = vld [vmem:[#allocation2 + $0x28] sm:$0x1]  ;;  %v5410_v13 = vld [vmem:[#allocation2 + $0x28] sm:$0x8]  ;;  %v11838_v20 = vpop.permute.xlu0 %4863 }
 0x4a7   : > { %v5281_v6 = vmax.f32 %v5268_v9, %v5276_v25  ;;  %v5282_v34 = vmax.f32 %v5269_v37, %v5278_v35  ;;  %v5409_v15 = vunpack.c.l.bf16 %v5406_v43  ;;  %v5413_v42 = vunpack.c.l.bf16 %v5410_v13 }
 0x4a8   : > { %v5106_v52 = vrot.slane %v8238_v19, 7  ;;  %v8239_v38 = vpack.c.bf16 %v4957_v11, %v4957_v11  ;;  %v4644_v57 = vadd.f32 %v11590_v33, %v4483_v1  ;;  %v4486_v30 = vadd.f32 %v8468_v49, %v11718_v39 }
 0x4a9   : > { %v5285_v24 = vrot.slane %v5281_v6, 1  ;;  %v5286_v60 = vrot.slane %v5282_v34, 1  ;;  %v5292_v47 = vrot.slane %v5281_v6, 2  ;;  %v5293_v16 = vrot.slane %v5282_v34, 2  ;;  %v11830_v37 = vld [vmem:[#allocation2 + $0x1c] ss:$16 sps:$4 sm:$0xff]  }
 0x4aa   : > { %v5107_v5 = vsel %vm11742_vm13, %v5105_v58, %v5106_v52  ;;  %v5108_v14 = vrot.slane %v5106_v52, 4  ;;  %v5109_v12 = vrot.slane %v8239_v38, 7  ;;  %v4734_v27 = vmax.f32 %v4644_v57, 0.0  ;;  %v11844_v52 = vpop.permute.xlu1 %4878 }
 0x4ab   : > { %5214 = vst.msk [vmem:[#allocation2 + $0x30] sm:$0xf] %vm4195_vm3, %v5107_v5  ;;  %v4647_v33 = vadd.f32 %v11594_v8, %v4486_v30  ;;  %v5287_v4 = vsel %vm1749_vm5, %v5285_v24, %v5286_v60  ;;  %v5291_v40 = vmax.f32 %v5282_v34, %v5286_v60  ;;  %v5294_v9 = vsel %vm2058_vm12, %v5292_v47, %v5293_v16 }
 0x4ac   : > { %v5110_v36 = vsel %vm11742_vm13, %v5108_v14, %v5109_v12  ;;  %v4958_v18 = vmul.f32 %v11708_v10, %v4734_v27  ;;  %v5290_v3 = vmax.f32 %v5281_v6, %v5287_v4  ;;  %v5414_v63 = vunpack.c.h.bf16 %v11830_v37 }
 0x4ad   : > { %5215 = vst.msk [vmem:[#allocation2 + $0x34] sm:$0xf] %vm4195_vm3, %v5110_v36  ;;  %v4735_v31 = vmax.f32 %v4647_v33, 0.0  ;;  %v5298_v8 = vmax.f32 %v5291_v40, %v5293_v16  ;;  %v5403_v11 = vunpack.c.l.bf16 %v5400_v48  ;;  %v5419_v1 = vrot.slane %v5407_v59, 1  ;;  %v11852_v33 = vpop.permute.xlu0 %4883  ;;  %v8961_v40 = vld [vmem:[%s12662_s10 + $0x8] sm:$0xff]  }
 0x4ae   : > { %v8240_v25 = vpack.c.bf16 %v4958_v18, %v4958_v18  ;;  %v8469_v35 = vpop.f32.mrb[52].mxu1  ;;  %v5297_v19 = vmax.f32 %v5290_v3, %v5294_v9  ;;  %v5111_v49 = vrot.slane %v5109_v12, 4  ;;  %v5422_v34 = vrot.slane %v5409_v15, 1 }
 0x4af   : > { %v4959_v10 = vmul.f32 %v11700_v62, %v4735_v31  ;;  %v8470_v58 = vpop.f32.mrb[53].mxu1  ;;  %v5302_v6 = vrot.slane %v5298_v8, 2  ;;  %v5402_v24 = vunpack.c.l.bf16 %v11830_v37  ;;  %v5421_v16 = vsel %vm1749_vm5, %v5419_v1, %v11824_v50  ;;  %v11879_v1 = vld [vmem:[%s12668_s16] sm:$0x3f] }
 0x4b0   : > { %v5112_v38 = vrot.slane %v8240_v25, 7  ;;  %v8471_v57 = vadd.f32 %v8470_v58, %v8469_v35  ;;  %v8472_v30 = vpop.f32.mrb[54].mxu1  ;;  %v5301_v43 = vrot.slane %v5297_v19, 2  ;;  %v5433_v59 = vrot.slane %v5413_v42, 2  ;;  %v11870_v25 = vpop.permute.xlu1 %4898 }
 0x4b1   : > { %v8241_v60 = vpack.c.bf16 %v4959_v10, %v4959_v10  ;;  %v8473_v47 = vpop.f32.mrb[55].mxu1  ;;  %v5434_v13 = vrot.slane %v5414_v63, 2  ;;  %v5423_v15 = vsel %vm1749_vm5, %v11824_v50, %v5422_v34  ;;  %v5427_v9 = vmax.f32 %v5401_v17, %v5421_v16 }
 0x4b2   : > { %v5113_v62 = vsel %vm11742_vm13, %v5111_v49, %v5112_v38  ;;  %v5114_v5 = vrot.slane %v5112_v38, 4  ;;  %v4491_v14 = vadd.f32 %v8471_v57, %v11718_v39  ;;  %v8474_v12 = vadd.f32 %v8473_v47, %v8472_v30  ;;  %v5412_v27 = vld [vmem:[#allocation2 + $0x30] sm:$0x3]  ;;  %v11884_v38 = vpop.permute.xlu0 %4903 }
 0x4b3   : > { %5216 = vst.msk [vmem:[#allocation2 + $0x38] sm:$0xf] %vm4195_vm3, %v5113_v62  ;;  %v5115_v37 = vrot.slane %v8241_v60, 7  ;;  %v5303_v4 = vsel %vm2058_vm12, %v5301_v43, %v5302_v6  ;;  %v5415_v48 = vunpack.c.l.bf16 %v5412_v27  ;;  %v5435_v42 = vsel %vm2058_vm12, %v5433_v59, %v5434_v13 }
 0x4b4   : > { %v4652_v36 = vadd.f32 %v11582_v41, %v4491_v14  ;;  %v4494_v18 = vadd.f32 %v8474_v12, %v11718_v39  ;;  %v8778_v3 = vpack.c.bf16 %v5302_v6, %v5303_v4  ;;  %v5429_v8 = vmax.f32 %v5403_v11, %v5422_v34  ;;  %v11892_v62 = vpop.permute.xlu1 %4908  ;;  %v11896_v4 = vld [vmem:[#allocation2 + $0x2c] ss:$8 sps:$4 sm:$0xff]  }
 0x4b5   : > { %v5116_v31 = vsel %vm11742_vm13, %v5114_v5, %v5115_v37  ;;  %v5436_v63 = vrot.slane %v5415_v48, 2  ;;  %v5428_v19 = vmax.f32 %v5402_v24, %v5423_v15  ;;  %v5441_v11 = vmax.f32 %v5427_v9, %v5435_v42 }
 0x4b6   : > { %5217 = vst.msk [vmem:[#allocation2 + $0x3c] sm:$0xf] %vm4195_vm3, %v5116_v31  ;;  %v4736_v50 = vmax.f32 %v4652_v36, 0.0  ;;  %v4655_v41 = vadd.f32 %v11592_v26, %v4494_v18  ;;  %8780 = vmatpush3.bf16.msk.msra.mxu0 %vm11857_vm9, %v8778_v3  ;;  %v8475_v35 = vpop.f32.mrb[56].mxu1  ;;  %v4869_v9 = vpop.permute.xlu0 %4868 }
 0x4b7   : > { %v8476_v0 = vpop.f32.mrb[57].mxu1  ;;  %v5437_v17 = vsel %vm2058_vm12, %v5434_v13, %v5436_v63  ;;  %v5443_v49 = vmax.f32 %v5429_v8, %v5436_v63  ;;  %8785 = vmatprep.subr.bf16.mxu0 %v9125_v54  ;;  %v5446_v16 = vrot.slane %v5441_v11, 1  ;;  %v5454_v15 = vrot.slane %v5441_v11, 2 }
 0x4b8   : > { %v4960_v26 = vmul.f32 %v11710_v51, %v4736_v50  ;;  %v4737_v10 = vmax.f32 %v4655_v41, 0.0  ;;  %v8477_v58 = vadd.f32 %v8476_v0, %v8475_v35  ;;  %v8478_v6 = vpop.f32.mrb[58].mxu1  ;;  %v5442_v34 = vmax.f32 %v5428_v19, %v5437_v17  ;;  %v5562_v50 = vld [vmem:[#allocation2 + $0x30] sm:$0x8] }
 0x4b9   : > { %v8479_v57 = vpop.f32.mrb[59].mxu1  ;;  %v5457_v30 = vrot.slane %v5443_v49, 2  ;;  %8724 = vmatmul.mubr.msk.f32.vlgmr.msra.gmra.mrb[180].mxu0 %vm5305_vm10, %v11879_v1  ;;  %v5117_v51 = vrot.slane %v5115_v37, 4  ;;  %v5566_v41 = vunpack.c.h.bf16 %v11896_v4 }
 0x4ba   : > { %v8242_v43 = vpack.c.bf16 %v4960_v26, %v4960_v26  ;;  %v4961_v24 = vmul.f32 %v11838_v20, %v4737_v10  ;;  %v4499_v60 = vadd.f32 %v8477_v58, %v11718_v39  ;;  %v8480_v47 = vadd.f32 %v8479_v57, %v8478_v6  ;;  %8737 = vmatprep.mubr.msk.f32.mxu0 %vm9120_vm0, %v12701_v7  ;;  %v5564_v37 = vld [vmem:[#allocation2 + $0x38] sm:$0x3]  ;;  %v4874_v58 = vpop.permute.xlu1 %4873 }
 0x4bb   : > { %v5447_v59 = vrot.slane %v5442_v34, 1  ;;  %v5455_v13 = vrot.slane %v5442_v34, 2  ;;  %v5567_v17 = vunpack.c.l.bf16 %v5564_v37 }
 0x4bc   : > { %v5118_v5 = vrot.slane %v8242_v43, 7  ;;  %v8243_v14 = vpack.c.bf16 %v4961_v24, %v4961_v24  ;;  %v4660_v12 = vadd.f32 %v11696_v28, %v4499_v60  ;;  %v4502_v27 = vadd.f32 %v8480_v47, %v11718_v39  ;;  %v5558_v43 = vld [vmem:[#allocation2 + $0x30] sm:$0x3] }
 0x4bd   : > { %v5448_v20 = vsel %vm1749_vm5, %v5446_v16, %v5447_v59  ;;  %v5452_v48 = vmax.f32 %v5442_v34, %v5447_v59  ;;  %v5458_v36 = vsel %vm2058_vm12, %v5455_v13, %v5457_v30  ;;  %v5456_v0 = vsel %vm2058_vm12, %v5454_v15, %v5455_v13  ;;  %v5556_v16 = vld [vmem:[#allocation2 + $0x28] sm:$0x8] }
 0x4be   : > { %v5119_v18 = vsel %vm11742_vm13, %v5117_v51, %v5118_v5  ;;  %v5120_v3 = vrot.slane %v5118_v5, 4  ;;  %v5121_v42 = vrot.slane %v8243_v14, 7  ;;  %v4738_v31 = vmax.f32 %v4660_v12, 0.0 }
 0x4bf   : > { %5218 = vst.msk [vmem:[#allocation2 + $0x40] sm:$0xf] %vm4195_vm3, %v5119_v18  ;;  %v4663_v28 = vadd.f32 %v11706_v56, %v4502_v27  ;;  %v5451_v8 = vmax.f32 %v5441_v11, %v5448_v20  ;;  %v5462_v63 = vmax.f32 %v5452_v48, %v5458_v36  ;;  %v5565_v56 = vunpack.c.l.bf16 %v5562_v50 }
 0x4c0   : > { %v5122_v35 = vsel %vm11742_vm13, %v5120_v3, %v5121_v42  ;;  %v4962_v19 = vmul.f32 %v4869_v9, %v4738_v31  ;;  %v5123_v57 = vrot.slane %v5121_v42, 4  ;;  %v5576_v24 = vrot.slane %v5566_v41, 1 }
 0x4c1   : > { %5219 = vst.msk [vmem:[#allocation2 + $0x44] sm:$0xf] %vm4195_vm3, %v5122_v35  ;;  %v4739_v49 = vmax.f32 %v4663_v28, 0.0  ;;  %v5461_v26 = vmax.f32 %v5451_v8, %v5456_v0  ;;  %v5467_v10 = vrot.slane %v5462_v63, 4  ;;  %v5578_v60 = vrot.slane %v5567_v17, 1 }
 0x4c2   : > { %v8244_v6 = vpack.c.bf16 %v4962_v19, %v4962_v19  ;;  %v5575_v12 = vrot.slane %v5565_v56, 1  ;;  %v5561_v20 = vunpack.c.l.bf16 %v5558_v43  ;;  %v5559_v15 = vunpack.c.l.bf16 %v5556_v16 }
 0x4c3   : > { %v4963_v11 = vmul.f32 %v4874_v58, %v4739_v49  ;;  %v5466_v34 = vrot.slane %v5461_v26, 4  ;;  %v5579_v18 = vsel %vm1749_vm5, %v5576_v24, %v5578_v60  ;;  %v5560_v28 = vunpack.c.l.bf16 %v11896_v4 }
 0x4c4   : > { %v5124_v30 = vrot.slane %v8244_v6, 7  ;;  %v5577_v37 = vsel %vm1749_vm5, %v5575_v12, %v5576_v24  ;;  %v5585_v31 = vmax.f32 %v5561_v20, %v5578_v60 }
 0x4c5   : > { %v8245_v47 = vpack.c.bf16 %v4963_v11, %v4963_v11  ;;  %v5468_v51 = vsel %vm5465_vm2, %v5466_v34, %v5467_v10  ;;  %v5583_v8 = vmax.f32 %v5559_v15, %v5577_v37  ;;  %v5584_v41 = vmax.f32 %v5560_v28, %v5579_v18 }
 0x4c6   : > { %v5125_v59 = vsel %vm11742_vm13, %v5123_v57, %v5124_v30  ;;  %v5126_v13 = vrot.slane %v5124_v30, 4  ;;  %v8782_v5 = vpack.c.bf16 %v5467_v10, %v5468_v51  ;;  %v5569_v14 = vld [vmem:[#allocation2 + $0x40] sm:$0x7] }
 0x4c7   : > { %5220 = vst.msk [vmem:[#allocation2 + $0x48] sm:$0xf] %vm4195_vm3, %v5125_v59  ;;  %v11913_v27 = vrot.slane %v8245_v47, 7  ;;  %v5571_v48 = vunpack.c.l.bf16 %v5569_v14  ;;  %v11937_v14 = vpop.f32.mrb[176].mxu0 }
 0x4c8   : > { %8784 = vmatpush3.bf16.msk.msra.mxu1 %vm11857_vm9, %v8782_v5  ;;  %v11917_v36 = vld [vmem:[#allocation2 + $0x3c] ss:$8 sps:$4 sm:$0xff]   ;;  %v11939_v15 = vpop.f32.mrb[177].mxu0 }
 0x4c9   : > { %v5128_v3 = vsel %vm11742_vm13, %v5126_v13, %v11913_v27  ;;  %v5570_v42 = vunpack.c.l.bf16 %v11917_v36  ;;  %v5589_v9 = vrot.slane %v5571_v48, 2  ;;  %8789 = vmatprep.subr.bf16.mxu1 %v9125_v54 }
 0x4ca   : > { %5221 = vst.msk [vmem:[#allocation2 + $0x4c] sm:$0xf] %vm4195_vm3, %v5128_v3  ;;  %v11943_v3 = vpop.f32.mrb[178].mxu0 }
 0x4cb   : > { %v5588_v63 = vrot.slane %v5570_v42, 2  ;;  %v5596_v50 = vmax.f32 %v5585_v31, %v5589_v9  ;;  %8731 = vmatmul.mubr.msk.f32.vlgmr.msra.gmra.mrb[88].mxu1 %vm5305_vm10, %v11879_v1 }
 0x4cc   : > { %8744 = vmatprep.mubr.msk.f32.mxu1 %vm9120_vm0, %v12701_v7 }
 0x4cd   : > { %v5590_v35 = vsel %vm2058_vm12, %v5588_v63, %v5589_v9  ;;  %v5594_v19 = vmax.f32 %v5583_v8, %v5588_v63  ;;  %v5603_v0 = vrot.slane %v5596_v50, 1  ;;  %v5612_v4 = vrot.slane %v5596_v50, 2  ;;  %v11947_v9 = vpop.f32.mrb[179].mxu0 }
 0x4ce   : > { %v5595_v17 = vmax.f32 %v5584_v41, %v5590_v35 }
 0x4cf   : > { %v5600_v49 = vrot.slane %v5594_v19, 1  ;;  %v5610_v26 = vmax.f32 %v5596_v50, %v5603_v0 }
 0x4d0   : > { %v5601_v10 = vrot.slane %v5595_v17, 1  ;;  %v5611_v58 = vrot.slane %v5595_v17, 2  ;;  %v8481_v11 = vpop.f32.mrb[60].mxu1 }
 0x4d1   : > { %v5619_v30 = vmax.f32 %v5610_v26, %v5612_v4  ;;  %v8482_v43 = vpop.f32.mrb[61].mxu1 }
 0x4d2   : > { %v5602_v6 = vsel %vm1749_vm5, %v5600_v49, %v5601_v10  ;;  %v5604_v56 = vsel %vm1749_vm5, %v5601_v10, %v5603_v0  ;;  %v5613_v24 = vsel %vm2058_vm12, %v5611_v58, %v5612_v4  ;;  %v8483_v60 = vadd.f32 %v8482_v43, %v8481_v11  ;;  %v8484_v47 = vpop.f32.mrb[62].mxu1  ;;  %v5720_v11 = vld [vmem:[#allocation2 + $0x48] sm:$0x7] }
 0x4d3   : > { %v5608_v34 = vmax.f32 %v5594_v19, %v5602_v6  ;;  %v5609_v57 = vmax.f32 %v5595_v17, %v5604_v56  ;;  %v8485_v59 = vpop.f32.mrb[63].mxu1  ;;  %v5627_v48 = vrot.slane %v5619_v30, 6 }
 0x4d4   : > { %v4507_v13 = vadd.f32 %v8483_v60, %v11718_v39  ;;  %v8486_v5 = vadd.f32 %v8485_v59, %v8484_v47  ;;  %v5721_v59 = vunpack.c.h.bf16 %v11917_v36 }
 0x4d5   : > { %v5617_v51 = vmax.f32 %v5608_v34, %v5611_v58  ;;  %v5618_v16 = vmax.f32 %v5609_v57, %v5613_v24  ;;  %v5722_v24 = vunpack.c.l.bf16 %v5720_v11 }
 0x4d6   : > { %v4668_v37 = vadd.f32 %v11694_v29, %v4507_v13  ;;  %v4510_v18 = vadd.f32 %v8486_v5, %v11718_v39  ;;  %v4894_v13 = vpop.permute.xlu1 %4893 }
 0x4d7   : > { %v5624_v12 = vrot.slane %v5617_v51, 6  ;;  %v5625_v20 = vrot.slane %v5618_v16, 6 }
 0x4d8   : > { %v4740_v8 = vmax.f32 %v4668_v37, 0.0  ;;  %v4671_v63 = vadd.f32 %v11704_v22, %v4510_v18  ;;  %v8487_v50 = vpop.f32.mrb[64].mxu1  ;;  %v5129_v22 = vrot.slane %v11913_v27, 4  ;;  %v4889_v27 = vpop.permute.xlu0 %4888  ;;  %v5723_v37 = vld [vmem:[#allocation2 + $0x4c] sm:$0xe] }
 0x4d9   : > { %v5626_v42 = vsel %vm5623_vm7, %v5624_v12, %v5625_v20  ;;  %v5628_v31 = vsel %vm5623_vm7, %v5625_v20, %v5627_v48  ;;  %v8488_v41 = vpop.f32.mrb[65].mxu1  ;;  %v5716_v48 = vld [vmem:[#allocation2 + $0x40] sm:$0x7] }
 0x4da   : > { %v8786_v28 = vpack.c.bf16 %v5628_v31, %v5626_v42  ;;  %v4964_v29 = vmul.f32 %v11844_v52, %v4740_v8  ;;  %v4741_v35 = vmax.f32 %v4671_v63, 0.0  ;;  %v8489_v19 = vadd.f32 %v8488_v41, %v8487_v50  ;;  %v8490_v0 = vpop.f32.mrb[66].mxu1 }
 0x4db   : > { %v8491_v17 = vpop.f32.mrb[67].mxu1  ;;  %v5730_v42 = vrot.slane %v5722_v24, 1  ;;  %v5718_v41 = vunpack.c.l.bf16 %v5716_v48 }
 0x4dc   : > { %8788 = vmatpush3.bf16.msk.msra.mxu0 %vm11857_vm9, %v8786_v28  ;;  %v8246_v49 = vpack.c.bf16 %v4964_v29, %v4964_v29  ;;  %v4965_v26 = vmul.f32 %v11852_v33, %v4741_v35  ;;  %v4515_v10 = vadd.f32 %v8489_v19, %v11718_v39  ;;  %v8492_v58 = vadd.f32 %v8491_v17, %v8490_v0 }
 0x4dd   : > { %8793 = vmatprep.subr.bf16.mxu0 %v9125_v54  ;;  %v5725_v29 = vunpack.c.l.bf16 %v5723_v37  ;;  %v5729_v35 = vrot.slane %v5721_v59, 1 }
 0x4de   : > { %v5130_v4 = vrot.slane %v8246_v49, 7  ;;  %v8247_v6 = vpack.c.bf16 %v4965_v26, %v4965_v26  ;;  %v4676_v52 = vadd.f32 %v11729_v61, %v4515_v10  ;;  %v4518_v56 = vadd.f32 %v8492_v58, %v11718_v39 }
 0x4df   : > { %8738 = vmatmul.mubr.msk.f32.vlgmr.msra.gmra.mrb[182].mxu0 %vm5305_vm10, %v11879_v1 }
 0x4e0   : > { %8751 = vmatprep.mubr.msk.f32.mxu0 %vm9120_vm0, %v12701_v7  ;;  %v5131_v33 = vsel %vm11742_vm13, %v5129_v22, %v5130_v4  ;;  %v5132_v34 = vrot.slane %v5130_v4, 4  ;;  %v5133_v57 = vrot.slane %v8247_v6, 7  ;;  %v4742_v30 = vmax.f32 %v4676_v52, 0.0 }
 0x4e1   : > { %5222 = vst.msk [vmem:[#allocation2 + $0x50] sm:$0xf] %vm4195_vm3, %v5131_v33  ;;  %v4679_v43 = vadd.f32 %v11736_v45, %v4518_v56  ;;  %v5731_v52 = vsel %vm1749_vm5, %v5729_v35, %v5730_v42  ;;  %v5735_v56 = vmax.f32 %v5718_v41, %v5730_v42 }
 0x4e2   : > { %v5134_v61 = vsel %vm11742_vm13, %v5132_v34, %v5133_v57  ;;  %v4966_v60 = vmul.f32 %v4889_v27, %v4742_v30  ;;  %v8493_v47 = vpop.f32.mrb[68].mxu1  ;;  %v5135_v31 = vrot.slane %v5133_v57, 4  ;;  %v5738_v34 = vrot.slane %v5725_v29, 2 }
 0x4e3   : > { %5223 = vst.msk [vmem:[#allocation2 + $0x54] sm:$0xf] %vm4195_vm3, %v5134_v61  ;;  %v4743_v51 = vmax.f32 %v4679_v43, 0.0  ;;  %v8494_v16 = vpop.f32.mrb[69].mxu1 }
 0x4e4   : > { %v8248_v5 = vpack.c.bf16 %v4966_v60, %v4966_v60  ;;  %v8495_v12 = vadd.f32 %v8494_v16, %v8493_v47  ;;  %v8496_v20 = vpop.f32.mrb[70].mxu1 }
 0x4e5   : > { %v4967_v18 = vmul.f32 %v4894_v13, %v4743_v51  ;;  %v8497_v45 = vpop.f32.mrb[71].mxu1 }
 0x4e6   : > { %v5136_v28 = vrot.slane %v8248_v5, 7  ;;  %v4523_v8 = vadd.f32 %v8495_v12, %v11718_v39  ;;  %v8498_v63 = vadd.f32 %v8497_v45, %v8496_v20 }
 0x4e7   : > { %v8249_v50 = vpack.c.bf16 %v4967_v18, %v4967_v18 }
 0x4e8   : > { %v5137_v36 = vsel %vm11742_vm13, %v5135_v31, %v5136_v28  ;;  %v5138_v19 = vrot.slane %v5136_v28, 4  ;;  %v4684_v0 = vadd.f32 %v11724_v44, %v4523_v8  ;;  %v4526_v17 = vadd.f32 %v8498_v63, %v11718_v39  ;;  %v5715_v49 = vld [vmem:[#allocation2 + $0x3c] ss:$20 sps:$4 sm:$0xff]  }
 0x4e9   : > { %5224 = vst.msk [vmem:[#allocation2 + $0x58] sm:$0xf] %vm4195_vm3, %v5137_v36  ;;  %v5139_v26 = vrot.slane %v8249_v50, 7  ;;  %v5717_v10 = vunpack.c.l.bf16 %v5715_v49  ;;  %v5726_v58 = vunpack.c.h.bf16 %v5715_v49 }
 0x4ea   : > { %v4744_v22 = vmax.f32 %v4684_v0, 0.0  ;;  %v4687_v4 = vadd.f32 %v11731_v53, %v4526_v17  ;;  %v8499_v6 = vpop.f32.mrb[72].mxu1 }
 0x4eb   : > { %v5140_v11 = vsel %vm11742_vm13, %v5138_v19, %v5139_v26  ;;  %v8500_v33 = vpop.f32.mrb[73].mxu1  ;;  %v5734_v44 = vmax.f32 %v5717_v10, %v5731_v52  ;;  %v5739_v57 = vrot.slane %v5726_v58, 2  ;;  %v5141_v13 = vrot.slane %v5139_v26, 4  ;;  %v4914_v26 = vpop.permute.xlu0 %4913 }
 0x4ec   : > { %5225 = vst.msk [vmem:[#allocation2 + $0x5c] sm:$0xf] %vm4195_vm3, %v5140_v11  ;;  %v4968_v30 = vmul.f32 %v11870_v25, %v4744_v22  ;;  %v4745_v27 = vmax.f32 %v4687_v4, 0.0  ;;  %v8501_v43 = vadd.f32 %v8500_v33, %v8499_v6  ;;  %v8502_v24 = vpop.f32.mrb[74].mxu1 }
 0x4ed   : > { %v8503_v61 = vpop.f32.mrb[75].mxu1  ;;  %v5740_v53 = vsel %vm2058_vm12, %v5738_v34, %v5739_v57  ;;  %v5744_v60 = vmax.f32 %v5735_v56, %v5739_v57 }
 0x4ee   : > { %v8250_v47 = vpack.c.bf16 %v4968_v30, %v4968_v30  ;;  %v4969_v51 = vmul.f32 %v11884_v38, %v4745_v27  ;;  %v4531_v16 = vadd.f32 %v8501_v43, %v11718_v39  ;;  %v8504_v59 = vadd.f32 %v8503_v61, %v8502_v24 }
 0x4ef   : > { %v5743_v5 = vmax.f32 %v5734_v44, %v5740_v53  ;;  %v5748_v12 = vrot.slane %v5744_v60, 1  ;;  %v5755_v42 = vrot.slane %v5744_v60, 2  ;;  %v5850_v53 = vld [vmem:[#allocation2 + $0x54] sm:$0xe] }
 0x4f0   : > { %v5142_v20 = vrot.slane %v8250_v47, 7  ;;  %v8251_v48 = vpack.c.bf16 %v4969_v51, %v4969_v51  ;;  %v4692_v25 = vadd.f32 %v11755_v55, %v4531_v16  ;;  %v4534_v37 = vadd.f32 %v8504_v59, %v11718_v39  ;;  %v5847_v34 = vld [vmem:[#allocation2 + $0x50] ss:$8 sps:$4 sm:$0xff]   ;;  %v4924_v59 = vpop.permute.xlu0 %4923 }
 0x4f1   : > { %v5747_v18 = vrot.slane %v5743_v5, 1  ;;  %v5754_v45 = vrot.slane %v5743_v5, 2  ;;  %v5753_v55 = vmax.f32 %v5744_v60, %v5748_v12  ;;  %v4919_v60 = vpop.permute.xlu1 %4918 }
 0x4f2   : > { %v5143_v31 = vsel %vm11742_vm13, %v5141_v13, %v5142_v20  ;;  %v5144_v28 = vrot.slane %v5142_v20, 4  ;;  %v5145_v38 = vrot.slane %v8251_v48, 7  ;;  %v4746_v8 = vmax.f32 %v4692_v25, 0.0  ;;  %v8505_v63 = vpop.f32.mrb[76].mxu1 }
 0x4f3   : > { %5226 = vst.msk [vmem:[#allocation2 + $0x60] sm:$0xf] %vm4195_vm3, %v5143_v31  ;;  %v4695_v50 = vadd.f32 %v11761_v2, %v4534_v37  ;;  %v8506_v41 = vpop.f32.mrb[77].mxu1  ;;  %v5749_v29 = vsel %vm1749_vm5, %v5747_v18, %v5748_v12  ;;  %v12000_v2 = vld [vmem:[%s12660_s8] ss:$0 sm:$0xff]  ;;  %v5756_v4 = vsel %vm2058_vm12, %v5754_v45, %v5755_v42  ;;  %v5760_v52 = vmax.f32 %v5753_v55, %v5755_v42 }
 0x4f4   : > { %v5146_v39 = vsel %vm11742_vm13, %v5144_v28, %v5145_v38  ;;  %v4970_v35 = vmul.f32 %v11892_v62, %v4746_v8  ;;  %v8507_v36 = vadd.f32 %v8506_v41, %v8505_v63  ;;  %v8508_v19 = vpop.f32.mrb[78].mxu1  ;;  %v5752_v49 = vmax.f32 %v5743_v5, %v5749_v29  ;;  %v5854_v20 = vld [vmem:[#allocation2 + $0x5c] sm:$0xc]  ;;  %v5846_v45 = vld [vmem:[#allocation2 + $0x4c] sm:$0xe] }
 0x4f5   : > { %5227 = vst.msk [vmem:[#allocation2 + $0x64] sm:$0xf] %vm4195_vm3, %v5146_v39  ;;  %v4747_v0 = vmax.f32 %v4695_v50, 0.0  ;;  %v8509_v17 = vpop.f32.mrb[79].mxu1  ;;  %v5147_v56 = vrot.slane %v5145_v38, 4  ;;  %v5852_v5 = vunpack.c.l.bf16 %v5850_v53  ;;  %v5857_v42 = vunpack.c.l.bf16 %v5854_v20 }
 0x4f6   : > { %v8252_v10 = vpack.c.bf16 %v4970_v35, %v4970_v35  ;;  %v4539_v58 = vadd.f32 %v12000_v2, %v8507_v36  ;;  %v8510_v22 = vadd.f32 %v8509_v17, %v8508_v19  ;;  %v5759_v6 = vmax.f32 %v5752_v49, %v5756_v4 }
 0x4f7   : > { %v4971_v62 = vmul.f32 %v4914_v26, %v4747_v0  ;;  %v5862_v28 = vrot.slane %v5852_v5, 1  ;;  %v5848_v36 = vunpack.c.l.bf16 %v5846_v45  ;;  %v5849_v19 = vunpack.c.l.bf16 %v5847_v34 }
 0x4f8   : > { %v5148_v11 = vrot.slane %v8252_v10, 7  ;;  %v4700_v33 = vadd.f32 %v11752_v46, %v4539_v58  ;;  %v4542_v44 = vadd.f32 %v12000_v2, %v8510_v22  ;;  %v8790_v30 = vpack.c.bf16 %v5760_v52, %v5759_v6 }
 0x4f9   : > { %v8253_v57 = vpack.c.bf16 %v4971_v62, %v4971_v62  ;;  %v5853_v46 = vunpack.c.h.bf16 %v5847_v34  ;;  %v5872_v0 = vrot.slane %v5857_v42, 2 }
 0x4fa   : > { %v5149_v27 = vsel %vm11742_vm13, %v5147_v56, %v5148_v11  ;;  %v5150_v43 = vrot.slane %v5148_v11, 4  ;;  %v4748_v24 = vmax.f32 %v4700_v33, 0.0  ;;  %v4703_v61 = vadd.f32 %v11757_v23, %v4542_v44  ;;  %8792 = vmatpush3.bf16.msk.msra.mxu1 %vm11857_vm9, %v8790_v30  ;;  %v5988_v44 = vld [vmem:[#allocation2 + $0x5c] sm:$0xc] }
 0x4fb   : > { %5228 = vst.msk [vmem:[#allocation2 + $0x68] sm:$0xf] %vm4195_vm3, %v5149_v27  ;;  %v5151_v47 = vrot.slane %v8253_v57, 7  ;;  %8797 = vmatprep.subr.bf16.mxu1 %v9125_v54  ;;  %v5863_v25 = vrot.slane %v5853_v46, 1 }
 0x4fc   : > { %v4972_v51 = vmul.f32 %v4919_v60, %v4748_v24  ;;  %v4749_v16 = vmax.f32 %v4703_v61, 0.0  ;;  %v5856_v48 = vld [vmem:[#allocation2 + $0x64] sm:$0x1]  ;;  %v5994_v41 = vld [vmem:[#allocation2 + $0x64] sm:$0xc] }
 0x4fd   : > { %v5152_v13 = vsel %vm11742_vm13, %v5150_v43, %v5151_v47  ;;  %8745 = vmatmul.mubr.msk.f32.vlgmr.msra.gmra.mrb[90].mxu1 %vm5305_vm10, %v11879_v1  ;;  %v5153_v37 = vrot.slane %v5151_v47, 4  ;;  %v5859_v31 = vunpack.c.l.bf16 %v5856_v48  ;;  %v5864_v55 = vsel %vm1749_vm5, %v5862_v28, %v5863_v25  ;;  %v5990_v34 = vld [vmem:[#allocation2 + $0x64] sm:$0x1] }
 0x4fe   : > { %5229 = vst.msk [vmem:[#allocation2 + $0x6c] sm:$0xf] %vm4195_vm3, %v5152_v13  ;;  %v8254_v23 = vpack.c.bf16 %v4972_v51, %v4972_v51  ;;  %v4973_v12 = vmul.f32 %v4924_v59, %v4749_v16  ;;  %8758 = vmatprep.mubr.msk.f32.mxu1 %vm9120_vm0, %v12701_v7  ;;  %v5997_v10 = vunpack.c.l.bf16 %v5994_v41  ;;  %v5867_v58 = vmax.f32 %v5848_v36, %v5864_v55 }
 0x4ff   : > { %v5875_v49 = vrot.slane %v5859_v31, 2  ;;  %v5868_v22 = vmax.f32 %v5849_v19, %v5863_v25  ;;  %v5991_v47 = vunpack.c.l.bf16 %v5988_v44  ;;  %v5993_v5 = vunpack.c.l.bf16 %v5990_v34 }
 0x500   : > { %v5154_v54 = vrot.slane %v8254_v23, 7  ;;  %v8255_v18 = vpack.c.bf16 %v4973_v12, %v4973_v12  ;;  %v6009_v30 = vrot.slane %v5997_v10, 1  ;;  %vm5392_vm0 = vcmask 523268  }
 0x502   : > { %v5155_v38 = vsel %vm11742_vm13, %v5153_v37, %v5154_v54  ;;  %v5156_v8 = vrot.slane %v5154_v54, 4  ;;  %v12022_v63 = vrot.slane %v8255_v18, 7  ;;  %v5855_v50 = vld [vmem:[#allocation2 + $0x60] ss:$8 sps:$4 sm:$0xff]  }
 0x503   : > { %5230 = vst.msk [vmem:[#allocation2 + $0x70] sm:$0xf] %vm4195_vm3, %v5155_v38  ;;  %v5858_v29 = vunpack.c.l.bf16 %v5855_v50  ;;  %v5998_v39 = vunpack.c.h.bf16 %v5855_v50 }
 0x504   : > { %v5158_v35 = vsel %vm11742_vm13, %v5156_v8, %v12022_v63 }
 0x505   : > { %5231 = vst.msk [vmem:[#allocation2 + $0x74] sm:$0xf] %vm4195_vm3, %v5158_v35  ;;  %v5873_v17 = vrot.slane %v5858_v29, 2  ;;  %v5996_v26 = vld [vmem:[#allocation2 + $0x6c] sm:$0x1]  ;;  %v6010_v56 = vrot.slane %v5998_v39, 1 }
 0x506   : > { %v5999_v4 = vunpack.c.l.bf16 %v5996_v26  ;;  %v6000_v62 = vld [vmem:[#allocation2 + $0x6c] sm:$0x8] }
 0x507   : > { %v5874_v6 = vsel %vm2058_vm12, %v5872_v0, %v5873_v17  ;;  %v5876_v52 = vsel %vm2058_vm12, %v5873_v17, %v5875_v49  ;;  %v6003_v57 = vunpack.c.l.bf16 %v6000_v62  ;;  %v6011_v51 = vsel %vm1749_vm5, %v6009_v30, %v6010_v56 }
 0x508   : > { %v5879_v11 = vmax.f32 %v5867_v58, %v5874_v6  ;;  %v5880_v33 = vmax.f32 %v5868_v22, %v5876_v52  ;;  %v6012_v27 = vrot.slane %v5999_v4, 1  ;;  %v6017_v45 = vmax.f32 %v5991_v47, %v6011_v51 }
 0x509   : > { %v6023_v48 = vrot.slane %v6003_v57, 2 }
 0x50a   : > { %v5883_v43 = vrot.slane %v5879_v11, 1  ;;  %v5884_v24 = vrot.slane %v5880_v33, 1  ;;  %v5890_v61 = vrot.slane %v5879_v11, 2  ;;  %v5891_v53 = vrot.slane %v5880_v33, 2  ;;  %v5989_v60 = vld [vmem:[#allocation2 + $0x60] ss:$16 sps:$4 sm:$0xff]  }
 0x50b   : > { %v6004_v46 = vunpack.c.h.bf16 %v5989_v60  ;;  %v5992_v13 = vunpack.c.l.bf16 %v5989_v60  ;;  %v6013_v18 = vsel %vm1749_vm5, %v6010_v56, %v6012_v27  ;;  %v6019_v31 = vmax.f32 %v5993_v5, %v6012_v27  ;;  %v8960_v60 = vld [vmem:[%s12662_s10] sm:$0xff]  }
 0x50c   : > { %v5885_v16 = vsel %vm1749_vm5, %v5883_v43, %v5884_v24  ;;  %v5889_v59 = vmax.f32 %v5880_v33, %v5884_v24  ;;  %v6002_v23 = vld [vmem:[#allocation2 + $0x74] sm:$0x3]  ;;  %v5892_v37 = vsel %vm2058_vm12, %v5890_v61, %v5891_v53 }
 0x50d   : > { %v5888_v12 = vmax.f32 %v5879_v11, %v5885_v16  ;;  %v6005_v20 = vunpack.c.l.bf16 %v6002_v23  ;;  %v6024_v25 = vrot.slane %v6004_v46, 2  ;;  %v6018_v50 = vmax.f32 %v5992_v13, %v6013_v18 }
 0x50e   : > { %v5896_v54 = vmax.f32 %v5889_v59, %v5891_v53  ;;  %v8962_v59 = vld [vmem:[%s12662_s10 + $0x10] sm:$0xff]  }
 0x50f   : > { %v5895_v42 = vmax.f32 %v5888_v12, %v5892_v37  ;;  %v6025_v28 = vsel %vm2058_vm12, %v6023_v48, %v6024_v25  ;;  %v6026_v38 = vrot.slane %v6005_v20, 2 }
 0x510   : > { %v5900_v8 = vrot.slane %v5896_v54, 2  ;;  %v6031_v41 = vmax.f32 %v6017_v45, %v6025_v28 }
 0x511   : > { %v5899_v29 = vrot.slane %v5895_v42, 2  ;;  %v6027_v55 = vsel %vm2058_vm12, %v6024_v25, %v6026_v38  ;;  %v6033_v39 = vmax.f32 %v6019_v31, %v6026_v38 }
 0x512   : > { %v6032_v35 = vmax.f32 %v6018_v50, %v6027_v55  ;;  %v6036_v17 = vrot.slane %v6031_v41, 1  ;;  %v6044_v22 = vrot.slane %v6031_v41, 2 }
 0x513   : > { %v5901_v36 = vsel %vm2058_vm12, %v5899_v29, %v5900_v8  ;;  %v6047_v19 = vrot.slane %v6033_v39, 2 }
 0x514   : > { %v8794_v0 = vpack.c.bf16 %v5900_v8, %v5901_v36  ;;  %v6037_v49 = vrot.slane %v6032_v35, 1  ;;  %v6045_v26 = vrot.slane %v6032_v35, 2  ;;  %v8984_v36 = vld [vmem:[%s12665_s13 + $0x64] ss:$8 sps:$4 sm:$0xff]  }
 0x516   : > { %8796 = vmatpush3.bf16.msk.msra.mxu0 %vm11857_vm9, %v8794_v0  ;;  %v6038_v10 = vsel %vm1749_vm5, %v6036_v17, %v6037_v49  ;;  %v6042_v58 = vmax.f32 %v6032_v35, %v6037_v49  ;;  %v6048_v4 = vsel %vm2058_vm12, %v6045_v26, %v6047_v19  ;;  %v6046_v6 = vsel %vm2058_vm12, %v6044_v22, %v6045_v26  ;;  %v5553_v19 = vld [vmem:[#allocation5 + $0x10] sm:$0xf] }
 0x517   : > { %v6041_v62 = vmax.f32 %v6031_v41, %v6038_v10  ;;  %8761 = vmatprep.subr.bf16.mxu0 %v8960_v60  ;;  %vm5393_vm12 = vsmask.f32 7442 }
 0x518   : > { %v6052_v52 = vmax.f32 %v6042_v58, %v6048_v4  ;;  %vm12080_vm11 = vmand %vm5392_vm0, %vm5393_vm12  ;;  %vm5236_vm12 = vsmask.f32 3328 }
 0x519   : > { %v6051_v56 = vmax.f32 %v6041_v62, %v6046_v6  ;;  %8752 = vmatmul.mubr.msk.f32.vlgmr.msra.gmra.mrb[184].mxu0 %vm5305_vm10, %v11879_v1  ;;  %v5712_v6 = vld [vmem:[#allocation5 + $0x10] sm:$0xf0] }
 0x51a   : > { %v6056_v11 = vrot.slane %v6052_v52, 4  ;;  %8762 = vmatpush3.bf16.msra.mxu0 %v8960_v60 }
 0x51b   : > { %v6055_v33 = vrot.slane %v6051_v56, 4  ;;  %8763 = vmatprep.subr.bf16.mxu0 %v8961_v40 }
 0x51d   : > { %v6057_v44 = vsel %vm5465_vm2, %v6055_v33, %v6056_v11 }
 0x51e   : > { %v8798_v34 = vpack.c.bf16 %v6056_v11, %v6057_v44  ;;  %8764 = vmatpush3.bf16.msra.mxu0 %v8961_v40 }
 0x51f   : > { %8765 = vmatprep.subr.bf16.mxu0 %v8962_v59 }
 0x520   : > { %8800 = vmatpush3.bf16.msk.msra.mxu1 %vm11857_vm9, %v8798_v34  ;;  %vm12089_vm9 = vmand %vm4195_vm3, %vm5551_vm15 }
 0x522   : > { %8766 = vmatpush3.bf16.msra.mxu0 %v8962_v59 }
 0x523   : > { %8759 = vmatmul.mubr.msk.f32.vlgmr.msra.gmra.mrb[92].mxu1 %vm5305_vm10, %v11879_v1  ;;  %vm6331_vm10 = vcmask 654336  }
 0x534   : > { %v8511_v57 = vpop.f32.mrb[80].mxu1 }
 0x535   : > { %v8512_v30 = vpop.f32.mrb[81].mxu1 }
 0x536   : > { %v8513_v27 = vadd.f32 %v8512_v30, %v8511_v57  ;;  %v8514_v43 = vpop.f32.mrb[82].mxu1 }
 0x537   : > { %v8515_v24 = vpop.f32.mrb[83].mxu1 }
 0x538   : > { %v8516_v61 = vadd.f32 %v8515_v24, %v8514_v43  ;;  %v4547_v53 = vadd.f32 %v12000_v2, %v8513_v27  ;;  %v5843_v43 = vld [vmem:[#allocation5 + $0x20] sm:$0xf] }
 0x53a   : > { %v12059_v47 = vadd.f32 %v11939_v15, %v4547_v53  ;;  %v4550_v1 = vadd.f32 %v12000_v2, %v8516_v61 }
 0x53c   : > { %v12063_v46 = vadd.f32 %v11947_v9, %v4550_v1  ;;  %v8517_v51 = vpop.f32.mrb[84].mxu1  ;;  %v8963_v9 = vld [vmem:[%s12662_s10 + $0x18] sm:$0xff]  }
 0x53d   : > { %v8518_v16 = vpop.f32.mrb[85].mxu1  ;;  %8767 = vmatprep.subr.bf16.mxu0 %v8963_v9 }
 0x53e   : > { %v8519_v13 = vadd.f32 %v8518_v16, %v8517_v51  ;;  %v8520_v5 = vpop.f32.mrb[86].mxu1  ;;  %8768 = vmatpush3.bf16.msra.mxu0 %v8963_v9 }
 0x53f   : > { %v8521_v23 = vpop.f32.mrb[87].mxu1 }
 0x540   : > { %v4555_v15 = vadd.f32 %v12000_v2, %v8519_v13  ;;  %v8522_v12 = vadd.f32 %v8521_v23, %v8520_v5  ;;  %v5985_v13 = vld [vmem:[#allocation5 + $0x20] sm:$0xf0] }
 0x542   : > { %v4558_v20 = vadd.f32 %v12000_v2, %v8522_v12  ;;  %v12074_v48 = vadd.f32 %v11937_v14, %v4555_v15  ;;  %v5395_v14 = vld [vmem:[#allocation5] sm:$0xf0]  ;;  %v8964_v2 = vld [vmem:[%s12665_s13] ss:$8 sps:$4 sm:$0xff]  }
 0x544   : > { %v12077_v25 = vadd.f32 %v11943_v3, %v4558_v20 }
 0x58c   : > { %v5378_v37 = vpop.f32.mrb[180].mxu0 }
 0x58d   : > { %v5382_v54 = vpack.c.bf16 %v5378_v37, %v5378_v37  ;;  %v8725_v18 = vpop.f32.mrb[181].mxu0 }
 0x58e   : > { %v6140_v18 = vld [vmem:[#allocation5 + $0x30] sm:$0xf] }
 0x58f   : > { %v5384_v45 = vshrl.u32 %v5382_v54, 16  ;;  %v5387_v42 = vshll.u32 %v5382_v54, 16 }
 0x591   : > { %v5386_v31 = vrot.slane %v5384_v45, 3  ;;  %v5389_v28 = vrot.slane %v5387_v42, 4 }
 0x593   : > { %v5390_v38 = vor.u32 %v5389_v28, %v5386_v31 }
 0x595   : > { %v5396_v3 = vsel %vm12080_vm11, %v5390_v38, %v5395_v14  ;;  %v8966_v14 = vld [vmem:[%s12665_s13 + $0x4] ss:$8 sps:$4 sm:$0xff]   ;;  %v8969_v38 = vld [vmem:[%s12665_s13 + $0x14] ss:$8 sps:$4 sm:$0xff]  }
 0x596   : > { %5397 = vst [vmem:[#allocation5] sm:$0xf0] %v5396_v3  ;;  %7111 = vmatprep.subr.bf16.mxu1 %v8966_v14  ;;  %v8972_v3 = vld [vmem:[%s12665_s13 + $0x24] ss:$8 sps:$4 sm:$0xff]  }
 0x597   : > { %7112 = vmatpush1.bf16.msra.mxu1 %v8964_v2 }
 0x598   : > { %7113 = vmatprep.subr.bf16.mxu1 %v8969_v38 }
 0x59d   : > { %v6143_v8 = vld [vmem:[#allocation5] sm:$0xff] }
 0x59e   : > { %v5538_v50 = vpop.f32.mrb[88].mxu1  ;;  %8769 = vmatprep.mubr.msk.bf16.mxu0 %vm2124_vm4, %v6143_v8  ;;  %6632 = vst [vmem:[#allocation5] sm:$0xff] %v12696_v32  ;;  %v8970_v8 = vld [vmem:[%s12665_s13 + $0x20] ss:$8 sps:$4 sm:$0xff]  }
 0x59f   : > { %v5542_v41 = vpack.c.bf16 %v5538_v50, %v5538_v50  ;;  %v8732_v29 = vpop.f32.mrb[89].mxu1  ;;  %v8975_v50 = vld [vmem:[%s12665_s13 + $0x34] ss:$8 sps:$4 sm:$0xff]  }
 0x5a0   : > { %v8978_v29 = vld [vmem:[%s12665_s13 + $0x44] ss:$8 sps:$4 sm:$0xff]  }
 0x5a1   : > { %v5544_v55 = vshrl.u32 %v5542_v41, 16  ;;  %v5547_v39 = vshll.u32 %v5542_v41, 16  ;;  %v8973_v41 = vld [vmem:[%s12665_s13 + $0x30] ss:$8 sps:$4 sm:$0xff]  }
 0x5a3   : > { %v5546_v35 = vrot.slane %v5544_v55, 7  ;;  %v8976_v55 = vld [vmem:[%s12665_s13 + $0x40] ss:$8 sps:$4 sm:$0xff]  }
 0x5a5   : > { %v5549_v0 = vor.u32 %v5547_v39, %v5546_v35  ;;  %v8981_v39 = vld [vmem:[%s12665_s13 + $0x54] ss:$8 sps:$4 sm:$0xff]   ;;  %v8979_v35 = vld [vmem:[%s12665_s13 + $0x50] ss:$8 sps:$4 sm:$0xff]  }
 0x5a7   : > { %v5554_v17 = vsel %vm12089_vm9, %v5549_v0, %v5553_v19  ;;  %v8982_v19 = vld [vmem:[%s12665_s13 + $0x60] ss:$8 sps:$4 sm:$0xff]   ;;  %v8987_v0 = vld [vmem:[%s12665_s13 + $0x74] ss:$8 sps:$4 sm:$0xff]  }
 0x5a8   : > { %5555 = vst [vmem:[#allocation5 + $0x10] sm:$0xf] %v5554_v17  ;;  %v8985_v17 = vld [vmem:[%s12665_s13 + $0x70] ss:$8 sps:$4 sm:$0xff]  }
 0x5b2   : > { %v5698_v49 = vpop.f32.mrb[182].mxu0 }
 0x5b3   : > { %v5702_v26 = vpack.c.bf16 %v5698_v49, %v5698_v49  ;;  %v8739_v10 = vpop.f32.mrb[183].mxu0  ;;  %v8990_v49 = vld [vmem:[%s12665_s13 + $0x84] ss:$8 sps:$4 sm:$0xff]  }
 0x5b4   : > { %v8993_v10 = vld [vmem:[%s12665_s13 + $0x94] ss:$8 sps:$4 sm:$0xff]  }
 0x5b5   : > { %v5704_v58 = vshrl.u32 %v5702_v26, 16  ;;  %v5707_v22 = vshll.u32 %v5702_v26, 16  ;;  %v8988_v26 = vld [vmem:[%s12665_s13 + $0x80] ss:$8 sps:$4 sm:$0xff]  }
 0x5b7   : > { %v5706_v4 = vrot.slane %v5704_v58, 3  ;;  %v5709_v62 = vrot.slane %v5707_v22, 4  ;;  %v8991_v58 = vld [vmem:[%s12665_s13 + $0x90] ss:$8 sps:$4 sm:$0xff]   ;;  %v8996_v22 = vld [vmem:[%s12665_s13 + $0xa4] ss:$8 sps:$4 sm:$0xff]  }
 0x5b9   : > { %v5710_v52 = vor.u32 %v5709_v62, %v5706_v4  ;;  %v8994_v4 = vld [vmem:[%s12665_s13 + $0xa0] ss:$8 sps:$4 sm:$0xff]   ;;  %v8999_v62 = vld [vmem:[%s12665_s13 + $0xb4] ss:$8 sps:$4 sm:$0xff]  }
 0x5bb   : > { %v5713_v56 = vsel %vm12080_vm11, %v5710_v52, %v5712_v6  ;;  %v8997_v6 = vld [vmem:[%s12665_s13 + $0xb0] ss:$8 sps:$4 sm:$0xff]   ;;  %v12183_v52 = vld [vmem:[%s12663_s11] ss:$0 sm:$0xff] }
 0x5bc   : > { %5714 = vst [vmem:[#allocation5 + $0x10] sm:$0xf0] %v5713_v56  ;;  %v9002_v56 = vld [vmem:[%s12665_s13 + $0xc4] ss:$8 sps:$4 sm:$0xff]  }
 0x5c3   : > { %v6144_v11 = vld [vmem:[#allocation5 + $0x10] sm:$0xff] }
 0x5c4   : > { %8770 = vmatmul.mubr.msk.bf16.vlgmr.msra.gmra.mrb[188].mxu0 %vm2124_vm4, %v6144_v11  ;;  %v6282_v11 = vpop.permute.xlu1 %6281 }
 0x5d0   : > { %v5830_v33 = vpop.f32.mrb[90].mxu1 }
 0x5d1   : > { %v5834_v44 = vpack.c.bf16 %v5830_v33, %v5830_v33  ;;  %v8746_v34 = vpop.f32.mrb[91].mxu1  ;;  %v6287_v33 = vpop.permute.xlu0 %6286 }
 0x5d3   : > { %v5836_v57 = vshrl.u32 %v5834_v44, 16  ;;  %v5839_v30 = vshll.u32 %v5834_v44, 16 }
 0x5d5   : > { %v5838_v27 = vrot.slane %v5836_v57, 7 }
 0x5d7   : > { %v5841_v24 = vor.u32 %v5839_v30, %v5838_v27  ;;  %v9000_v30 = vld [vmem:[%s12665_s13 + $0xc0] ss:$8 sps:$4 sm:$0xff]  }
 0x5d9   : > { %v5844_v61 = vsel %vm12089_vm9, %v5841_v24, %v5843_v43  ;;  %v9005_v24 = vld [vmem:[%s12665_s13 + $0xd4] ss:$8 sps:$4 sm:$0xff]  }
 0x5da   : > { %5845 = vst [vmem:[#allocation5 + $0x20] sm:$0xf] %v5844_v61 }
 0x5ec   : > { %v5971_v53 = vpop.f32.mrb[184].mxu0 }
 0x5ed   : > { %v5975_v60 = vpack.c.bf16 %v5971_v53, %v5971_v53  ;;  %v8753_v40 = vpop.f32.mrb[185].mxu0 }
 0x5ef   : > { %v5977_v1 = vshrl.u32 %v5975_v60, 16  ;;  %v5980_v51 = vshll.u32 %v5975_v60, 16 }
 0x5f1   : > { %v5979_v16 = vrot.slane %v5977_v1, 3  ;;  %v5982_v59 = vrot.slane %v5980_v51, 4 }
 0x5f3   : > { %v5983_v5 = vor.u32 %v5982_v59, %v5979_v16  ;;  %v9003_v16 = vld [vmem:[%s12665_s13 + $0xd0] ss:$8 sps:$4 sm:$0xff]   ;;  %v6292_v59 = vpop.permute.xlu1 %6291 }
 0x5f5   : > { %v5986_v23 = vsel %vm12080_vm11, %v5983_v5, %v5985_v13  ;;  %v6297_v13 = vpop.permute.xlu0 %6296  ;;  %vm6516_vm11 = vcmask 130048  }
 0x5f6   : > { %5987 = vst [vmem:[#allocation5 + $0x20] sm:$0xf0] %v5986_v23  ;;  %v6127_v15 = vpop.f32.mrb[92].mxu1 }
 0x5f7   : > { %v6131_v12 = vpack.c.bf16 %v6127_v15, %v6127_v15  ;;  %v8760_v9 = vpop.f32.mrb[93].mxu1 }
 0x5f9   : > { %v6133_v20 = vshrl.u32 %v6131_v12, 16  ;;  %v6136_v54 = vshll.u32 %v6131_v12, 16 }
 0x5fb   : > { %v6135_v37 = vrot.slane %v6133_v20, 7 }
 0x5fd   : > { %v6138_v45 = vor.u32 %v6136_v54, %v6135_v37  ;;  %v6145_v42 = vld [vmem:[#allocation5 + $0x20] sm:$0xff] }
 0x5fe   : > { %8773 = vmatprep.mubr.msk.bf16.mxu0 %vm2124_vm4, %v6145_v42  ;;  %v9006_v37 = vld [vmem:[%s12665_s13 + $0xe0] ss:$8 sps:$4 sm:$0xff]   ;;  %v9008_v54 = vld [vmem:[%s12665_s13 + $0xe4] ss:$8 sps:$4 sm:$0xff]   ;;  %v9011_v42 = vld [vmem:[%s12665_s13 + $0xf4] ss:$8 sps:$4 sm:$0xff]  }
 0x5ff   : > { %v6141_v31 = vsel %vm12089_vm9, %v6138_v45, %v6140_v18  ;;  %v9009_v45 = vld [vmem:[%s12665_s13 + $0xf0] ss:$8 sps:$4 sm:$0xff]   ;;  %vm7441_vm9 = vmand %vm5465_vm2, %vm5236_vm12 }
 0x600   : > { %6142 = vst [vmem:[#allocation5 + $0x30] sm:$0xf] %v6141_v31 }
 0x607   : > { %v6146_v28 = vld [vmem:[#allocation5 + $0x30] sm:$0xff] }
 0x608   : > { %8774 = vmatmul.mubr.msk.bf16.gmra.mrb[192].mxu0 %vm2124_vm4, %v6146_v28  ;;  %6638 = vst [vmem:[#allocation5 + $0x30] sm:$0xff] %v12696_v32  ;;  %v8967_v32 = vld [vmem:[%s12665_s13 + $0x10] ss:$8 sps:$4 sm:$0xff]  }
 0x609   : > { %7567 = vmatprep.mubr.f32.mxu0 %v12701_v7  ;;  %7114 = vmatpush1.bf16.msra.mxu1 %v8967_v32 }
 0x60a   : > { %7115 = vmatprep.subr.bf16.mxu1 %v8972_v3 }
 0x60d   : > { %7116 = vmatpush1.bf16.msra.mxu1 %v8970_v8 }
 0x60e   : > { %7117 = vmatprep.subr.bf16.mxu1 %v8975_v50 }
 0x611   : > { %7118 = vmatpush1.bf16.msra.mxu1 %v8973_v41 }
 0x612   : > { %7119 = vmatprep.subr.bf16.mxu1 %v8978_v29 }
 0x615   : > { %7120 = vmatpush1.bf16.msra.mxu1 %v8976_v55 }
 0x616   : > { %7121 = vmatprep.subr.bf16.mxu1 %v8981_v39 }
 0x619   : > { %7122 = vmatpush1.bf16.msra.mxu1 %v8979_v35 }
 0x61a   : > { %7123 = vmatprep.subr.bf16.mxu1 %v8984_v36 }
 0x61d   : > { %7124 = vmatpush1.bf16.msra.mxu1 %v8982_v19 }
 0x61e   : > { %7125 = vmatprep.subr.bf16.mxu1 %v8987_v0 }
 0x621   : > { %7126 = vmatpush1.bf16.msra.mxu1 %v8985_v17 }
 0x622   : > { %7127 = vmatprep.subr.bf16.mxu1 %v8990_v49 }
 0x625   : > { %7128 = vmatpush1.bf16.msra.mxu1 %v8988_v26 }
 0x626   : > { %7129 = vmatprep.subr.bf16.mxu1 %v8993_v10  ;;  %v9014_v10 = vld [vmem:[%s12665_s13 + $0x104] ss:$8 sps:$4 sm:$0xff]  }
 0x629   : > { %7130 = vmatpush1.bf16.msra.mxu1 %v8991_v58 }
 0x62a   : > { %7131 = vmatprep.subr.bf16.mxu1 %v8996_v22 }
 0x62d   : > { %7132 = vmatpush1.bf16.msra.mxu1 %v8994_v4 }
 0x62e   : > { %7133 = vmatprep.subr.bf16.mxu1 %v8999_v62 }
 0x631   : > { %7134 = vmatpush1.bf16.msra.mxu1 %v8997_v6 }
 0x632   : > { %7135 = vmatprep.subr.bf16.mxu1 %v9002_v56 }
 0x635   : > { %7136 = vmatpush1.bf16.msra.mxu1 %v9000_v30 }
 0x636   : > { %7137 = vmatprep.subr.bf16.mxu1 %v9005_v24 }
 0x639   : > { %7138 = vmatpush1.bf16.msra.mxu1 %v9003_v16 }
 0x63a   : > { %7139 = vmatprep.subr.bf16.mxu1 %v9008_v54 }
 0x63d   : > { %7140 = vmatpush1.bf16.msra.mxu1 %v9006_v37 }
 0x63e   : > { %7141 = vmatprep.subr.bf16.mxu1 %v9011_v42 }
 0x641   : > { %7142 = vmatpush1.bf16.msra.mxu1 %v9009_v45 }
 0x642   : > { %7174 = vmatprep.subr.bf16.mxu1 %v9014_v10 }
 0x697   : > { %v8771_v44 = vpop.f32.mrb[188].mxu0 }
 0x698   : > { %v6241_v34 = vadd.f32 %v8771_v44, %v12183_v52  ;;  %v6232_v57 = vpop.f32.mrb[189].mxu0  ;;  %v6307_v44 = vpop.permute.xlu0 %6306 }
 0x699   : > { %v6233_v27 = vadd.f32 %v12183_v52, %v6232_v57  ;;  %v8772_v43 = vpop.f32.mrb[190].mxu0 }
 0x69a   : > { %v6265_v61 = vmax.f32 %v6241_v34, 0.0  ;;  %v6244_v53 = vadd.f32 %v8772_v43, %v12183_v52  ;;  %v6235_v60 = vpop.f32.mrb[191].mxu0 }
 0x69b   : > { %v6263_v40 = vmax.f32 %v6233_v27, 0.0  ;;  %v6236_v1 = vadd.f32 %v12183_v52, %v6235_v60 }
 0x69c   : > { %v6266_v51 = vmax.f32 %v6244_v53, 0.0  ;;  %v6321_v23 = vmul.f32 %v6292_v59, %v6265_v61  ;;  %v6317_v16 = vpop.permute.xlu0 %6316 }
 0x69d   : > { %v6264_v5 = vmax.f32 %v6236_v1, 0.0  ;;  %v6319_v12 = vmul.f32 %v6282_v11, %v6263_v40 }
 0x69e   : > { %v6322_v15 = vmul.f32 %v6297_v13, %v6266_v51 }
 0x69f   : > { %v6320_v9 = vmul.f32 %v6287_v33, %v6264_v5  ;;  %v6302_v33 = vpop.permute.xlu1 %6301 }
 0x6a0   : > { %v6328_v20 = vpack.c.bf16 %v6322_v15, %v6321_v23 }
 0x6a1   : > { %v6327_v18 = vpack.c.bf16 %v6320_v9, %v6319_v12 }
 0x6a2   : > { %6333 = vst.msk [vmem:[#allocation4 + $0x8] sm:$0xff] %vm6331_vm10, %v6328_v20 }
 0x6a3   : > { %6332 = vst.msk [vmem:[#allocation4] sm:$0xff] %vm6331_vm10, %v6327_v18  ;;  %v6312_v51 = vpop.permute.xlu1 %6311 }
 0x6a9   : > { %v12215_v31 = vld [vmem:[#allocation4 + $0x8] sm:$0xff] }
 0x6aa   : > { %v6340_v28 = vld [vmem:[#allocation4] sm:$0xfe]  ;;  %v6381_v2 = vrot.slane %v12215_v31, 1  ;;  %v6356_v3 = vshll.u32 %v12215_v31, 16  ;;  %v6360_v50 = vshrl.u32 %v12215_v31, 16  ;;  %v6395_v58 = vrot.slane %v12215_v31, 4 }
 0x6ab   : > { %v12218_v14 = vld [vmem:[#allocation4] sm:$0xff]  ;;  %v6380_v38 = vrot.slane %v6340_v28, 1 }
 0x6ac   : > { %v6351_v32 = vshll.u32 %v12218_v14, 16  ;;  %v6341_v8 = vld [vmem:[#allocation4] sm:$0xf0]  ;;  %v6349_v55 = vshrl.u32 %v12218_v14, 16  ;;  %v6415_v19 = vrot.slane %v6360_v50, 4  ;;  %v6358_v17 = vrot.slane %v6356_v3, 1 }
 0x6ad   : > { %v6408_v41 = vshrl.u32 %v6341_v8, 16  ;;  %v6382_v29 = vsel %vm1749_vm5, %v6380_v38, %v6381_v2  ;;  %v6411_v35 = vshll.u32 %v6341_v8, 16  ;;  %v6416_v26 = vrot.slane %v6356_v3, 5 }
 0x6ae   : > { %v6353_v39 = vrot.slane %v6351_v32, 1  ;;  %6385 = vrot.lane.b32.xlu0 %v6382_v29, %s12699_s26  ;;  %v6394_v4 = vrot.slane %v6341_v8, 4  ;;  %v6362_v18 = vor.u32 %v6360_v50, %v6358_v17 }
 0x6af   : > { %v6410_v36 = vrot.slane %v6408_v41, 4  ;;  %v6413_v49 = vrot.slane %v6411_v35, 5  ;;  %v12231_v6 = vor.u32 %v6416_v26, %v6415_v19 }
 0x6b0   : > { %v6354_v0 = vor.u32 %v6353_v39, %v6349_v55  ;;  %v6396_v11 = vsel %vm5465_vm2, %v6394_v4, %v6395_v58  ;;  %v6442_v39 = vrot.slane %v12215_v31, 5 }
 0x6b1   : > { %v6414_v62 = vor.u32 %v6413_v49, %v6410_v36 }
 0x6b2   : > { %v6359_v22 = vsel %vm1583_vm6, %v6354_v0, %v6358_v17 }
 0x6b3   : > { %6371 = vrot.lane.b32.xlu1 %v6359_v22, %s9127_s0  ;;  %v6418_v56 = vsel %vm5236_vm12, %v6414_v62, %v12231_v6 }
 0x6b7   : > { %6401 = vrot.lane.b32.xlu1 %v6396_v11, %s9128_s22 }
 0x6db   : > { %v8775_v34 = vpop.f32.mrb[192].mxu0 }
 0x6dc   : > { %v6257_v57 = vadd.f32 %v8775_v34, %v12183_v52  ;;  %v6248_v30 = vpop.f32.mrb[193].mxu0 }
 0x6dd   : > { %v6249_v27 = vadd.f32 %v12183_v52, %v6248_v30  ;;  %v8776_v43 = vpop.f32.mrb[194].mxu0 }
 0x6de   : > { %v6269_v24 = vmax.f32 %v6257_v57, 0.0  ;;  %v6260_v61 = vadd.f32 %v8776_v43, %v12183_v52  ;;  %v6251_v53 = vpop.f32.mrb[195].mxu0 }
 0x6df   : > { %v6267_v60 = vmax.f32 %v6249_v27, 0.0  ;;  %v6252_v40 = vadd.f32 %v12183_v52, %v6251_v53  ;;  %v7313_v53 = vld [vmem:[%s12667_s15 + $0x8] sm:$0xff] }
 0x6e0   : > { %v6270_v1 = vmax.f32 %v6260_v61, 0.0  ;;  %v6325_v13 = vmul.f32 %v6312_v51, %v6269_v24  ;;  %v7317_v51 = vld [vmem:[%s12667_s15 + $0x28] sm:$0x3f] }
 0x6e1   : > { %v6268_v59 = vmax.f32 %v6252_v40, 0.0  ;;  %v6323_v23 = vmul.f32 %v6302_v33, %v6267_v60  ;;  %v7312_v60 = vld [vmem:[%s12667_s15] sm:$0xff]  ;;  %v7315_v40 = vld [vmem:[%s12667_s15 + $0x18] sm:$0xff] }
 0x6e2   : > { %v6326_v5 = vmul.f32 %v6317_v16, %v6270_v1  ;;  %v7314_v1 = vld [vmem:[%s12667_s15 + $0x10] sm:$0xff]  ;;  %v7316_v16 = vld [vmem:[%s12667_s15 + $0x20] sm:$0xff] }
 0x6e3   : > { %v6324_v15 = vmul.f32 %v6307_v44, %v6268_v59  ;;  %v4782_v59 = vld [vmem:[%s12661_s9 + $0xe0] sm:$0xff] }
 0x6e4   : > { %v6330_v12 = vpack.c.bf16 %v6326_v5, %v6325_v13  ;;  %v4784_v13 = vld [vmem:[%s12661_s9 + $0xf0] sm:$0xff] }
 0x6e5   : > { %v6329_v9 = vpack.c.bf16 %v6324_v15, %v6323_v23  ;;  %v4785_v23 = vld [vmem:[%s12661_s9 + $0xf8] sm:$0x1f] }
 0x6e6   : > { %6335 = vst.msk [vmem:[#allocation4 + $0x18] sm:$0xff] %vm6331_vm10, %v6330_v12  ;;  %v4783_v12 = vld [vmem:[%s12661_s9 + $0xe8] sm:$0xff] }
 0x6e7   : > { %6334 = vst.msk [vmem:[#allocation4 + $0x10] sm:$0xff] %vm6331_vm10, %v6329_v9 }
 0x6ed   : > { %v6342_v28 = vld [vmem:[#allocation4 + $0x18] sm:$0x7] }
 0x6ee   : > { %v6339_v20 = vld [vmem:[#allocation4 + $0x10] sm:$0xff]  ;;  %v12249_v38 = vld [vmem:[#allocation4 + $0x18] sm:$0xff]  ;;  %v6399_v41 = vrot.slane %v6342_v28, 4 }
 0x6ef   : > { %v12244_v37 = vrot.slane %v6339_v20, 1  ;;  %v6364_v54 = vshll.u32 %v6339_v20, 16  ;;  %v6368_v42 = vshrl.u32 %v6339_v20, 16  ;;  %v6397_v8 = vrot.slane %v6339_v20, 4  ;;  %v6343_v17 = vld [vmem:[#allocation4 + $0x18] sm:$0xf] }
 0x6f0   : > { %v6479_v29 = vrot.slane %v12249_v38, 1  ;;  %v6424_v10 = vshrl.u32 %v6343_v17, 16  ;;  %v6444_v4 = vrot.slane %v6339_v20, 5  ;;  %v6446_v33 = vrot.slane %v6343_v17, 5  ;;  %v6345_v43 = vld [vmem:[#allocation4 + $0x18] sm:$0x7f] }
 0x6f1   : > { %v6384_v52 = vsel %vm1749_vm5, %v6381_v2, %v12244_v37  ;;  %v6366_v45 = vrot.slane %v6364_v54, 1  ;;  %v6344_v2 = vld [vmem:[#allocation4] sm:$0xe0]  ;;  %v6398_v50 = vsel %vm5465_vm2, %v6395_v58, %v6397_v8  ;;  %v6400_v35 = vsel %vm5465_vm2, %v6397_v8, %v6399_v41  ;;  %v9024_v41 = vld [vmem:[%s12665_s13 + $0x140] ss:$8 sps:$4 sm:$0xff]  }
 0x6f2   : > { %6387 = vrot.lane.b32.xlu1 %v6384_v52, %s12699_s26  ;;  %v12260_v55 = vsel %vm1749_vm5, %v12244_v37, %v6479_v29  ;;  %v6441_v36 = vrot.slane %v6344_v2, 5  ;;  %v6419_v19 = vrot.slane %v6368_v42, 4  ;;  %v6420_v0 = vrot.slane %v6364_v54, 5  ;;  %v9012_v54 = vld [vmem:[%s12665_s13 + $0x100] ss:$8 sps:$4 sm:$0xff]  }
 0x6f3   : > { %v6367_v32 = vsel %vm1583_vm6, %v6362_v18, %v6366_v45  ;;  %v6370_v3 = vor.u32 %v6368_v42, %v6366_v45  ;;  %v6427_v58 = vshll.u32 %v6343_v17, 16  ;;  %v6426_v62 = vrot.slane %v6424_v10, 4  ;;  %v9017_v18 = vld [vmem:[%s12665_s13 + $0x114] ss:$8 sps:$4 sm:$0xff]   ;;  %v9015_v42 = vld [vmem:[%s12665_s13 + $0x110] ss:$8 sps:$4 sm:$0xff]  }
 0x6f4   : > { %6373 = vrot.lane.b32.xlu0 %v6367_v32, %s9127_s0  ;;  %v6443_v49 = vsel %vm5309_vm14, %v6441_v36, %v6442_v39  ;;  %v6421_v26 = vor.u32 %v6420_v0, %v6419_v19  ;;  %v6445_v44 = vsel %vm5309_vm14, %v6442_v39, %v6444_v4  ;;  %v6447_v57 = vsel %vm5309_vm14, %v6444_v4, %v6446_v33  ;;  %v9020_v28 = vld [vmem:[%s12665_s13 + $0x124] ss:$8 sps:$4 sm:$0xff]   ;;  %v9029_v2 = vld [vmem:[%s12665_s13 + $0x154] ss:$8 sps:$4 sm:$0xff]   ;;  %v9033_v19 = vld [vmem:[%s12665_s13 + $0x170] ss:$8 sps:$4 sm:$0xff]  }
 0x6f5   : > { %v6429_v11 = vrot.slane %v6427_v58, 5  ;;  %v6466_v27 = vshrl.u32 %v12249_v38, 16  ;;  %v9026_v8 = vld [vmem:[%s12665_s13 + $0x144] ss:$8 sps:$4 sm:$0xff]   ;;  %v9035_v36 = vld [vmem:[%s12665_s13 + $0x174] ss:$8 sps:$4 sm:$0xff]  }
 0x6f6   : > { %6375 = vrot.lane.b32.xlu1 %v6370_v3, %s9127_s0  ;;  %v6422_v22 = vsel %vm5236_vm12, %v12231_v6, %v6421_v26  ;;  %v9032_v39 = vld [vmem:[%s12665_s13 + $0x164] ss:$8 sps:$4 sm:$0xff]   ;;  %v9036_v17 = vld [vmem:[%s12665_s13 + $0x180] ss:$8 sps:$4 sm:$0xff]   ;;  %v9045_v4 = vld [vmem:[%s12665_s13 + $0x1b0] ss:$8 sps:$4 sm:$0xff]  }
 0x6f7   : > { %v6430_v34 = vor.u32 %v6429_v11, %v6426_v62  ;;  %v9038_v0 = vld [vmem:[%s12665_s13 + $0x184] ss:$8 sps:$4 sm:$0xff]   ;;  %v9042_v58 = vld [vmem:[%s12665_s13 + $0x1a0] ss:$8 sps:$4 sm:$0xff]   ;;  %v9053_v33 = vld [vmem:[%s12665_s13 + $0x1d4] ss:$8 sps:$4 sm:$0xff]  }
 0x6f8   : > { %6403 = vrot.lane.b32.xlu0 %v6398_v50, %s9128_s22  ;;  %v9027_v50 = vld [vmem:[%s12665_s13 + $0x150] ss:$8 sps:$4 sm:$0xff]   ;;  %v9044_v10 = vld [vmem:[%s12665_s13 + $0x1a4] ss:$8 sps:$4 sm:$0xff]   ;;  %v9048_v11 = vld [vmem:[%s12665_s13 + $0x1c0] ss:$8 sps:$4 sm:$0xff]  }
 0x6f9   : > { %v6431_v6 = vsel %vm5236_vm12, %v6421_v26, %v6430_v34  ;;  %v9039_v26 = vld [vmem:[%s12665_s13 + $0x190] ss:$8 sps:$4 sm:$0xff]   ;;  %v9050_v62 = vld [vmem:[%s12665_s13 + $0x1c4] ss:$8 sps:$4 sm:$0xff]   ;;  %vm7578_vm2 = vcmask 521220  }
 0x6fa   : > { %6405 = vrot.lane.b32.xlu1 %v6400_v35, %s9128_s22  ;;  %v9030_v35 = vld [vmem:[%s12665_s13 + $0x160] ss:$8 sps:$4 sm:$0xff]   ;;  %v9056_v34 = vld [vmem:[%s12665_s13 + $0x1e4] ss:$8 sps:$4 sm:$0xff]  }
 0x6fc   : > { %6389 = vrot.lane.b32.xlu0 %v12244_v37, %s12699_s26  ;;  %s9130_s26 = smov 48  }
 0x6fe   : > { %6448 = vrot.lane.b32.xlu1 %v6443_v49, %s9129_s30  ;;  %v9041_v49 = vld [vmem:[%s12665_s13 + $0x194] ss:$8 sps:$4 sm:$0xff]  }
 0x700   : > { %6432 = vrot.lane.b32.xlu0 %v6418_v56, %s12710_s19  ;;  %v6462_v56 = vshll.u32 %v12249_v38, 16 }
 0x702   : > { %6434 = vrot.lane.b32.xlu1 %v6422_v22, %s12710_s19  ;;  %v6464_v30 = vrot.slane %v6462_v56, 1  ;;  %v9047_v22 = vld [vmem:[%s12665_s13 + $0x1b4] ss:$8 sps:$4 sm:$0xff]   ;;  %v9054_v56 = vld [vmem:[%s12665_s13 + $0x1e0] ss:$8 sps:$4 sm:$0xff]  }
 0x704   : > { %6455 = vrot.lane.b32.xlu0 %v12215_v31, %s12700_s29  ;;  %v6468_v24 = vor.u32 %v6466_v27, %v6464_v30  ;;  %v6465_v61 = vsel %vm1583_vm6, %v6370_v3, %v6464_v30  ;;  %vm6497_vm6 = vcmask 916480   ;;  %v9021_v3 = vld [vmem:[%s12665_s13 + $0x130] ss:$8 sps:$4 sm:$0xff]   ;;  %v9062_v30 = vld [vmem:[%s12665_s13 + $0x204] ss:$8 sps:$4 sm:$0xff]  }
 0x706   : > { %6457 = vrot.lane.b32.xlu1 %v6339_v20, %s12700_s29 }
 0x708   : > { %6450 = vrot.lane.b32.xlu0 %v6445_v44, %s9129_s30  ;;  %v9051_v44 = vld [vmem:[%s12665_s13 + $0x1d0] ss:$8 sps:$4 sm:$0xff]  }
 0x70a   : > { %6452 = vrot.lane.b32.xlu1 %v6447_v57, %s9129_s30  ;;  %v9059_v57 = vld [vmem:[%s12665_s13 + $0x1f4] ss:$8 sps:$4 sm:$0xff]  }
 0x70c   : > { %6436 = vrot.lane.b32.xlu0 %v6431_v6, %s12710_s19  ;;  %v9057_v6 = vld [vmem:[%s12665_s13 + $0x1f0] ss:$8 sps:$4 sm:$0xff]  }
 0x70e   : > { %6469 = vrot.lane.b32.xlu1 %v6367_v32, %s9130_s26  ;;  %v9018_v32 = vld [vmem:[%s12665_s13 + $0x120] ss:$8 sps:$4 sm:$0xff]  }
 0x710   : > { %6459 = vrot.lane.b32.xlu0 %v6345_v43, %s12700_s29  ;;  %s8158_s29 = sshll.u32 %s12718_s28, 3 }
 0x711   : > { %s575_s30 = scalar_lea.vmem %s12670_s18, %s8158_s29 }
 0x712   : > { %6473 = vrot.lane.b32.xlu1 %v6468_v24, %s9130_s26 }
 0x714   : > { %6471 = vrot.lane.b32.xlu0 %v6465_v61, %s9130_s26 }
 0x716   : > { %7325 = vperm.xlu1 %8875, %v7313_v53  }
 0x718   : > { %7320 = vperm.xlu0 %8874, %v7312_v60  }
 0x71a   : > { %7335 = vperm.xlu1 %8875, %v7315_v40  }
 0x71c   : > { %7330 = vperm.xlu0 %8874, %v7314_v1  }
 0x71e   : > { %7345 = vperm.xlu1 %8875, %v7317_v51  }
 0x720   : > { %7340 = vperm.xlu0 %8874, %v7316_v16   ;;  %v6386_v15 = vpop.permute.xlu0 %6385 }
 0x722   : > { %4928 = vperm.xlu1 %8875, %v4782_v59  }
 0x724   : > { %4938 = vperm.xlu0 %8874, %v4784_v13  }
 0x725   : > { %v6372_v5 = vpop.permute.xlu1 %6371 }
 0x726   : > { %v6492_v9 = vsel %vm730_vm1, %v6372_v5, %v6386_v15  ;;  %4943 = vperm.xlu1 %8875, %v4785_v23   ;;  %v6482_v45 = vsel %vm6331_vm10, %v12218_v14, %v6372_v5  ;;  %v9023_v14 = vld [vmem:[%s12665_s13 + $0x134] ss:$8 sps:$4 sm:$0xff]  }
 0x727   : > { %v6338_v23 = vld [vmem:[#allocation4 + $0x10] sm:$0x7f] }
 0x728   : > { %4933 = vperm.xlu0 %8874, %v4783_v12  }
 0x729   : > { %v12315_v20 = vpop.permute.xlu1 %6401 }
 0x72a   : > { %v6499_v52 = vsel %vm6497_vm6, %v6492_v9, %v12315_v20 }
 0x72b   : > { %7143 = vmatprep.mubr.bf16.mxu1 %v6499_v52 }
 0x72c   : > { %7144 = vmatmul.mubr.bf16.vlgmr.msra.gmra.mrb[96].mxu1 %v6482_v45 }
 0x72d   : > { %7175 = vmatpush1.bf16.msra.mxu1 %v9012_v54 }
 0x72e   : > { %7176 = vmatprep.subr.bf16.mxu1 %v9017_v18  ;;  %v9060_v18 = vld [vmem:[%s12665_s13 + $0x200] ss:$8 sps:$4 sm:$0xff]  }
 0x731   : > { %7177 = vmatpush1.bf16.msra.mxu1 %v9015_v42 }
 0x732   : > { %7178 = vmatprep.subr.bf16.mxu1 %v9020_v28  ;;  %v9065_v28 = vld [vmem:[%s12665_s13 + $0x214] ss:$8 sps:$4 sm:$0xff]  }
 0x735   : > { %7179 = vmatpush1.bf16.msra.mxu1 %v9018_v32 }
 0x736   : > { %7180 = vmatprep.subr.bf16.mxu1 %v9023_v14 }
 0x739   : > { %7181 = vmatpush1.bf16.msra.mxu1 %v9021_v3 }
 0x73a   : > { %7182 = vmatprep.subr.bf16.mxu1 %v9026_v8  ;;  %v9063_v8 = vld [vmem:[%s12665_s13 + $0x210] ss:$8 sps:$4 sm:$0xff]  }
 0x73d   : > { %7183 = vmatpush1.bf16.msra.mxu1 %v9024_v41  ;;  %v9068_v41 = vld [vmem:[%s12665_s13 + $0x224] ss:$8 sps:$4 sm:$0xff]  }
 0x73e   : > { %7184 = vmatprep.subr.bf16.mxu1 %v9029_v2 }
 0x741   : > { %7185 = vmatpush1.bf16.msra.mxu1 %v9027_v50 }
 0x742   : > { %7186 = vmatprep.subr.bf16.mxu1 %v9032_v39  ;;  %v9071_v39 = vld [vmem:[%s12665_s13 + $0x234] ss:$8 sps:$4 sm:$0xff]  }
 0x745   : > { %7187 = vmatpush1.bf16.msra.mxu1 %v9030_v35 }
 0x746   : > { %7188 = vmatprep.subr.bf16.mxu1 %v9035_v36 }
 0x749   : > { %7189 = vmatpush1.bf16.msra.mxu1 %v9033_v19 }
 0x74a   : > { %7190 = vmatprep.subr.bf16.mxu1 %v9038_v0  ;;  %v9069_v0 = vld [vmem:[%s12665_s13 + $0x230] ss:$8 sps:$4 sm:$0xff]  }
 0x74d   : > { %7191 = vmatpush1.bf16.msra.mxu1 %v9036_v17  ;;  %v9074_v17 = vld [vmem:[%s12665_s13 + $0x244] ss:$8 sps:$4 sm:$0xff]  }
 0x74e   : > { %7192 = vmatprep.subr.bf16.mxu1 %v9041_v49  ;;  %v6347_v49 = vld [vmem:[#allocation4 + $0x8] sm:$0xfe] }
 0x751   : > { %7193 = vmatpush1.bf16.msra.mxu1 %v9039_v26  ;;  %v9072_v26 = vld [vmem:[%s12665_s13 + $0x240] ss:$8 sps:$4 sm:$0xff]  }
 0x752   : > { %7194 = vmatprep.subr.bf16.mxu1 %v9044_v10 }
 0x755   : > { %7195 = vmatpush1.bf16.msra.mxu1 %v9042_v58  ;;  %v6477_v58 = vrot.slane %v6347_v49, 1 }
 0x756   : > { %7196 = vmatprep.subr.bf16.mxu1 %v9047_v22  ;;  %v9077_v22 = vld [vmem:[%s12665_s13 + $0x254] ss:$8 sps:$4 sm:$0xff]  }
 0x759   : > { %7197 = vmatpush1.bf16.msra.mxu1 %v9045_v4 }
 0x75a   : > { %7198 = vmatprep.subr.bf16.mxu1 %v9050_v62  ;;  %v6478_v62 = vsel %vm1749_vm5, %v6477_v58, %v12244_v37  ;;  %vm6532_vm5 = vcmask 392192  }
 0x75d   : > { %7199 = vmatpush1.bf16.msra.mxu1 %v9048_v11  ;;  %v9075_v11 = vld [vmem:[%s12665_s13 + $0x250] ss:$8 sps:$4 sm:$0xff]  }
 0x75e   : > { %7200 = vmatprep.subr.bf16.mxu1 %v9053_v33  ;;  %v9080_v33 = vld [vmem:[%s12665_s13 + $0x264] ss:$8 sps:$4 sm:$0xff]  }
 0x761   : > { %7201 = vmatpush1.bf16.msra.mxu1 %v9051_v44 }
 0x762   : > { %7202 = vmatprep.subr.bf16.mxu1 %v9056_v34  ;;  %v9078_v34 = vld [vmem:[%s12665_s13 + $0x260] ss:$8 sps:$4 sm:$0xff]  }
 0x764   : > { %v6388_v27 = vpop.permute.xlu1 %6387 }
 0x765   : > { %7203 = vmatpush1.bf16.msra.mxu1 %v9054_v56  ;;  %v9083_v56 = vld [vmem:[%s12665_s13 + $0x274] ss:$8 sps:$4 sm:$0xff]  }
 0x766   : > { %7204 = vmatprep.subr.bf16.mxu1 %v9059_v57  ;;  %v6374_v43 = vpop.permute.xlu0 %6373 }
 0x767   : > { %v6494_v61 = vsel %vm730_vm1, %v6374_v43, %v6388_v27  ;;  %v6485_v1 = vsel %vm6331_vm10, %v12215_v31, %v6374_v43  ;;  %v9086_v27 = vld [vmem:[%s12665_s13 + $0x284] ss:$8 sps:$4 sm:$0xff]  }
 0x768   : > { %v6376_v24 = vpop.permute.xlu1 %6375 }
 0x769   : > { %7205 = vmatpush1.bf16.msra.mxu1 %v9057_v6  ;;  %v6489_v15 = vsel %vm6331_vm10, %v6338_v23, %v6376_v24  ;;  %v9081_v6 = vld [vmem:[%s12665_s13 + $0x270] ss:$8 sps:$4 sm:$0xff]   ;;  %v9090_v23 = vld [vmem:[%s12665_s13 + $0x2a0] ss:$8 sps:$4 sm:$0xff]  }
 0x76a   : > { %7237 = vmatprep.subr.bf16.mxu1 %v9062_v30  ;;  %v6404_v53 = vpop.permute.xlu0 %6403 }
 0x76b   : > { %v6502_v60 = vsel %vm6497_vm6, %v6494_v61, %v6404_v53 }
 0x76c   : > { %v6406_v40 = vpop.permute.xlu1 %6405  ;;  %7153 = vmatprep.mubr.bf16.mxu1 %v6502_v60 }
 0x76d   : > { %7154 = vmatmul.mubr.bf16.gmra.mrb[100].mxu1 %v6485_v1 }
 0x76e   : > { %v6390_v51 = vpop.permute.xlu0 %6389 }
 0x76f   : > { %v6496_v16 = vsel %vm730_vm1, %v6376_v24, %v6390_v51  ;;  %v9084_v24 = vld [vmem:[%s12665_s13 + $0x280] ss:$8 sps:$4 sm:$0xff]   ;;  %v9092_v51 = vld [vmem:[%s12665_s13 + $0x2a4] ss:$8 sps:$4 sm:$0xff]   ;;  %vm12546_vm1 = vmand %vm4195_vm3, %vm5236_vm12  ;;  %vm7707_vm12 = vcmask 1043458  }
 0x770   : > { %v6449_v59 = vpop.permute.xlu1 %6448  ;;  %v6505_v13 = vsel %vm6497_vm6, %v6496_v16, %v6406_v40  ;;  %v4750_v16 = vmax.f32 %v12059_v47, 0.0  ;;  %vm7708_vm6 = vcmask 523270  }
 0x771   : > { %7163 = vmatprep.mubr.bf16.mxu1 %v6505_v13 }
 0x772   : > { %v6433_v5 = vpop.permute.xlu0 %6432 }
 0x773   : > { %v6518_v9 = vsel %vm6516_vm11, %v6433_v5, %v6449_v59  ;;  %v6508_v32 = vsel %vm2124_vm4, %v12315_v20, %v6433_v5  ;;  %v9066_v20 = vld [vmem:[%s12665_s13 + $0x220] ss:$8 sps:$4 sm:$0xff]   ;;  %v4752_v5 = vmax.f32 %v12074_v48, 0.0 }
 0x774   : > { %v6435_v12 = vpop.permute.xlu1 %6434 }
 0x775   : > { %7164 = vmatmul.mubr.bf16.gmra.mrb[104].mxu1 %v6489_v15  ;;  %v6511_v36 = vsel %vm2124_vm4, %v6404_v53, %v6435_v12  ;;  %v9089_v53 = vld [vmem:[%s12665_s13 + $0x294] ss:$8 sps:$4 sm:$0xff]  }
 0x776   : > { %v12425_v54 = vpop.permute.xlu0 %6455 }
 0x777   : > { %v6524_v31 = vsel %vm2157_vm8, %v6518_v9, %v12425_v54 }
 0x778   : > { %7206 = vmatprep.mubr.bf16.mxu1 %v6524_v31  ;;  %v12432_v45 = vpop.permute.xlu1 %6457 }
 0x77a   : > { %v6451_v52 = vpop.permute.xlu0 %6450 }
 0x77b   : > { %v6520_v42 = vsel %vm6516_vm11, %v6435_v12, %v6451_v52  ;;  %v9095_v12 = vld [vmem:[%s12665_s13 + $0x2b4] ss:$8 sps:$4 sm:$0xff]   ;;  %v4753_v52 = vmax.f32 %v12077_v25, 0.0 }
 0x77c   : > { %v6527_v14 = vsel %vm2157_vm8, %v6520_v42, %v12432_v45  ;;  %v6453_v50 = vpop.permute.xlu1 %6452 }
 0x77d   : > { %7207 = vmatmul.mubr.bf16.vlgmr.msra.gmra.mrb[96].mxu1 %v6508_v32  ;;  %v9093_v32 = vld [vmem:[%s12665_s13 + $0x2b0] ss:$8 sps:$4 sm:$0xff]  }
 0x77e   : > { %7238 = vmatpush1.bf16.msra.mxu1 %v9060_v18  ;;  %7216 = vmatprep.mubr.bf16.mxu1 %v6527_v14  ;;  %v6437_v3 = vpop.permute.xlu0 %6436  ;;  %v5159_v18 = vrot.slane %v12022_v63, 4  ;;  %v4751_v14 = vmax.f32 %v12063_v46, 0.0  ;;  %v5238_v46 = vld [vmem:[#allocation2 + $0x84] sm:$0xf] }
 0x77f   : > { %7239 = vmatprep.subr.bf16.mxu1 %v9065_v28  ;;  %v6522_v35 = vsel %vm6516_vm11, %v6437_v3, %v6453_v50  ;;  %v6514_v4 = vsel %vm2124_vm4, %v6406_v40, %v6437_v3  ;;  %v9087_v40 = vld [vmem:[%s12665_s13 + $0x290] ss:$8 sps:$4 sm:$0xff]  }
 0x780   : > { %v12469_v10 = vpop.permute.xlu1 %6469 }
 0x782   : > { %7240 = vmatpush1.bf16.msra.mxu1 %v9063_v8  ;;  %v12448_v2 = vpop.permute.xlu0 %6459  ;;  %v9098_v8 = vld [vmem:[%s12665_s13 + $0x2c4] ss:$8 sps:$4 sm:$0xff]  }
 0x783   : > { %7241 = vmatprep.subr.bf16.mxu1 %v9068_v41  ;;  %v6530_v19 = vsel %vm2157_vm8, %v6522_v35, %v12448_v2  ;;  %vm7428_vm8 = vsmask.f32 7954 }
 0x784   : > { %v12484_v44 = vpop.permute.xlu1 %6473  ;;  %vm12604_vm15 = vmand %vm5392_vm0, %vm7428_vm8  ;;  %vm7366_vm0 = vsmask.f32 4352 }
 0x785   : > { %7217 = vmatmul.mubr.bf16.gmra.mrb[100].mxu1 %v6511_v36  ;;  %v9096_v36 = vld [vmem:[%s12665_s13 + $0x2c0] ss:$8 sps:$4 sm:$0xff]   ;;  %v6540_v21 = vsel %vm6532_vm5, %v12448_v2, %v12484_v44 }
 0x786   : > { %7242 = vmatpush1.bf16.msra.mxu1 %v9066_v20  ;;  %7226 = vmatprep.mubr.bf16.mxu1 %v6530_v19  ;;  %v12489_v37 = vpop.permute.xlu0 %6471 }
 0x787   : > { %7243 = vmatprep.subr.bf16.mxu1 %v9071_v39 }
 0x78a   : > { %7244 = vmatpush1.bf16.msra.mxu1 %v9069_v0 }
 0x78b   : > { %7245 = vmatprep.subr.bf16.mxu1 %v9074_v17 }
 0x78d   : > { %7227 = vmatmul.mubr.bf16.gmra.mrb[104].mxu1 %v6514_v4  ;;  %v6534_v4 = vsel %vm6532_vm5, %v12425_v54, %v12469_v10  ;;  %v6642_v54 = vlaneseq }
 0x78e   : > { %7246 = vmatpush1.bf16.msra.mxu1 %v9072_v26  ;;  %8147 = vmatprep.mubr.msk.bf16.mxu1 %vm6331_vm10, %v6478_v62 }
 0x78f   : > { %7247 = vmatprep.subr.bf16.mxu1 %v9077_v22  ;;  %v6643_v10 = vshrl.u32 %v6642_v54, 7 }
 0x792   : > { %7248 = vmatpush1.bf16.msra.mxu1 %v9075_v11  ;;  %v6537_v11 = vsel %vm6532_vm5, %v12432_v45, %v12489_v37 }
 0x793   : > { %7249 = vmatprep.subr.bf16.mxu1 %v9080_v33  ;;  %v6644_v33 = vsub.s32 0, %v6643_v10 }
 0x795   : > { %v12494_v57 = vpop.permute.xlu1 %7325 }
 0x796   : > { %7250 = vmatpush1.bf16.msra.mxu1 %v9078_v34  ;;  %v6648_v34 = vsub.s32 1, %v6643_v10 }
 0x797   : > { %v12499_v30 = vpop.permute.xlu0 %7320  ;;  %7251 = vmatprep.subr.bf16.mxu1 %v9083_v56 }
 0x799   : > { %v12504_v43 = vpop.permute.xlu1 %7335 }
 0x79a   : > { %7252 = vmatpush1.bf16.msra.mxu1 %v9081_v6 }
 0x79b   : > { %v12509_v61 = vpop.permute.xlu0 %7330  ;;  %7253 = vmatprep.subr.bf16.mxu1 %v9086_v27 }
 0x79d   : > { %v12514_v60 = vpop.permute.xlu1 %7345 }
 0x79e   : > { %7254 = vmatpush1.bf16.msra.mxu1 %v9084_v24 }
 0x79f   : > { %v12519_v1 = vpop.permute.xlu0 %7340  ;;  %7255 = vmatprep.subr.bf16.mxu1 %v9089_v53 }
 0x7a1   : > { %v4929_v59 = vpop.permute.xlu1 %4928 }
 0x7a2   : > { %v4974_v13 = vmul.f32 %v4929_v59, %v4750_v16  ;;  %7256 = vmatpush1.bf16.msra.mxu1 %v9087_v40 }
 0x7a3   : > { %v4939_v15 = vpop.permute.xlu0 %4938  ;;  %7257 = vmatprep.subr.bf16.mxu1 %v9092_v51 }
 0x7a4   : > { %v8256_v9 = vpack.c.bf16 %v4974_v13, %v4974_v13  ;;  %v4976_v31 = vmul.f32 %v4939_v15, %v4752_v5 }
 0x7a5   : > { %v4944_v47 = vpop.permute.xlu1 %4943 }
 0x7a6   : > { %v5160_v42 = vrot.slane %v8256_v9, 7  ;;  %v8258_v28 = vpack.c.bf16 %v4976_v31, %v4976_v31  ;;  %v4977_v48 = vmul.f32 %v4944_v47, %v4753_v52  ;;  %7258 = vmatpush1.bf16.msra.mxu1 %v9090_v23 }
 0x7a7   : > { %v4934_v3 = vpop.permute.xlu0 %4933  ;;  %7259 = vmatprep.subr.bf16.mxu1 %v9095_v12 }
 0x7a8   : > { %v5161_v25 = vsel %vm11742_vm13, %v5159_v18, %v5160_v42  ;;  %v5166_v63 = vrot.slane %v8258_v28, 7  ;;  %v8259_v41 = vpack.c.bf16 %v4977_v48, %v4977_v48  ;;  %v4975_v20 = vmul.f32 %v4934_v3, %v4751_v14 }
 0x7a9   : > { %5232 = vst.msk [vmem:[#allocation2 + $0x78] sm:$0xf] %vm4195_vm3, %v5161_v25  ;;  %v5162_v17 = vrot.slane %v5160_v42, 4 }
 0x7aa   : > { %v5168_v50 = vrot.slane %v5166_v63, 4  ;;  %v5169_v35 = vrot.slane %v8259_v41, 7  ;;  %7260 = vmatpush1.bf16.msra.mxu1 %v9093_v32  ;;  %v8257_v19 = vpack.c.bf16 %v4975_v20, %v4975_v20 }
 0x7ab   : > { %7261 = vmatprep.subr.bf16.mxu1 %v9098_v8 }
 0x7ac   : > { %v5170_v0 = vsel %vm11742_vm13, %v5168_v50, %v5169_v35  ;;  %v5163_v26 = vrot.slane %v8257_v19, 7  ;;  %v7430_v50 = vld [vmem:[#allocation5] sm:$0xf0] }
 0x7ad   : > { %v5239_v49 = vsel %vm12546_vm1, %v5170_v0, %v5238_v46 }
 0x7ae   : > { %5240 = vst [vmem:[#allocation2 + $0x84] sm:$0xf] %v5239_v49  ;;  %7262 = vmatpush1.bf16.msra.mxu1 %v9096_v36  ;;  %v5164_v58 = vsel %vm11742_vm13, %v5162_v17, %v5163_v26  ;;  %v5165_v22 = vrot.slane %v5163_v26, 4  ;;  %v7434_v17 = vld [vmem:[#allocation5 + $0x8] sm:$0xf0] }
 0x7af   : > { %5233 = vst.msk [vmem:[#allocation2 + $0x7c] sm:$0xf] %vm4195_vm3, %v5164_v58 }
 0x7b0   : > { %v5167_v62 = vsel %vm11742_vm13, %v5165_v22, %v5166_v63 }
 0x7b1   : > { %7270 = vmatmul.mubr.bf16.vlgmr.msra.gmra.mrb[96].mxu1 %v6534_v4  ;;  %5234 = vst.msk [vmem:[#allocation2 + $0x80] sm:$0xf] %vm4195_vm3, %v5167_v62  ;;  %vm7427_vm3 = vcmask 1047556  }
 0x7b2   : > { %8148 = vmatprep.mubr.msk.bf16.mxu1 %vm6331_vm10, %v12260_v55  ;;  %v6640_v55 = vld [vmem:[%s12666_s14] sm:$0x3]  ;;  %vm12598_vm13 = vmand %vm7427_vm3, %vm7428_vm8 }
 0x7b3   : > { %v12580_v56 = vrot.slane %v6640_v55, %v6644_v33  ;;  %v12582_v45 = vrot.slane %v6640_v55, %v6648_v34 }
 0x7b9   : > { %7280 = vmatmul.mubr.bf16.gmra.mrb[100].mxu1 %v6537_v11 }
 0x7ba   : > { %8149 = vmatprep.mubr.msk.bf16.mxu1 %vm6331_vm10, %v6479_v29  ;;  %vm7579_vm10 = vmor %vm7578_vm2, %vm5623_vm7 }
 0x7c1   : > { %7290 = vmatmul.mubr.bf16.gmra.mrb[104].mxu1 %v6540_v21 }
 0x884   : > { %v7271_v38 = vpop.f32.mrb[96].mxu1 }
 0x885   : > { %v8817_v29 = vadd.f32 %v7271_v38, %v12580_v56  ;;  %v7273_v37 = vpop.f32.mrb[97].mxu1 }
 0x886   : > { %v8818_v6 = vadd.f32 %v7273_v37, %v12582_v45  ;;  %v7275_v2 = vpop.f32.mrb[98].mxu1 }
 0x887   : > { %v7300_v44 = vmax.f32 %v8817_v29, 0.0  ;;  %v8819_v27 = vadd.f32 %v7275_v2, %v12580_v56  ;;  %v7277_v24 = vpop.f32.mrb[99].mxu1 }
 0x888   : > { %v7301_v53 = vmax.f32 %v8818_v6, 0.0  ;;  %v8820_v40 = vadd.f32 %v7277_v24, %v12582_v45 }
 0x889   : > { %v7302_v51 = vmax.f32 %v8819_v27, 0.0  ;;  %v7348_v59 = vmul.f32 %v12499_v30, %v7300_v44 }
 0x88a   : > { %v7303_v16 = vmax.f32 %v8820_v40, 0.0  ;;  %v7349_v5 = vmul.f32 %v12499_v30, %v7301_v53 }
 0x88b   : > { %v7350_v13 = vmul.f32 %v12494_v57, %v7302_v51 }
 0x88c   : > { %v7351_v23 = vmul.f32 %v12494_v57, %v7303_v16  ;;  %v7281_v15 = vpop.f32.mrb[100].mxu1 }
 0x88d   : > { %v7360_v12 = vpack.c.bf16 %v7350_v13, %v7348_v59  ;;  %v8821_v9 = vadd.f32 %v7281_v15, %v12580_v56  ;;  %v7283_v31 = vpop.f32.mrb[101].mxu1 }
 0x88e   : > { %v7361_v52 = vpack.c.bf16 %v7351_v23, %v7349_v5  ;;  %v8822_v47 = vadd.f32 %v7283_v31, %v12582_v45  ;;  %v7285_v18 = vpop.f32.mrb[102].mxu1 }
 0x88f   : > { %v7368_v42 = vshrl.u32 %v7360_v12, 16  ;;  %v7371_v28 = vshll.u32 %v7360_v12, 16  ;;  %v7304_v48 = vmax.f32 %v8821_v9, 0.0  ;;  %v8823_v32 = vadd.f32 %v7285_v18, %v12580_v56  ;;  %v7287_v14 = vpop.f32.mrb[103].mxu1 }
 0x890   : > { %v7376_v30 = vshrl.u32 %v7361_v52, 16  ;;  %v7379_v3 = vshll.u32 %v7361_v52, 16  ;;  %v7305_v57 = vmax.f32 %v8822_v47, 0.0  ;;  %v8824_v8 = vadd.f32 %v7287_v14, %v12582_v45 }
 0x891   : > { %v7370_v25 = vrot.slane %v7368_v42, 3  ;;  %v7373_v63 = vrot.slane %v7371_v28, 4  ;;  %v7306_v41 = vmax.f32 %v8823_v32, 0.0  ;;  %v7352_v49 = vmul.f32 %v12509_v61, %v7304_v48 }
 0x892   : > { %v7378_v46 = vrot.slane %v7376_v30, 3  ;;  %v7381_v35 = vrot.slane %v7379_v3, 4  ;;  %v7307_v36 = vmax.f32 %v8824_v8, 0.0  ;;  %v7353_v22 = vmul.f32 %v12509_v61, %v7305_v57 }
 0x893   : > { %v7374_v0 = vor.u32 %v7373_v63, %v7370_v25  ;;  %v7354_v26 = vmul.f32 %v12504_v43, %v7306_v41  ;;  %v7445_v63 = vld [vmem:[#allocation5 + $0x38] sm:$0xf] }
 0x894   : > { %v7382_v58 = vor.u32 %v7381_v35, %v7378_v46  ;;  %v7355_v4 = vmul.f32 %v12504_v43, %v7307_v36  ;;  %v7291_v62 = vpop.f32.mrb[104].mxu1 }
 0x895   : > { %v7431_v11 = vsel %vm12598_vm13, %v7374_v0, %v7430_v50  ;;  %v7362_v21 = vpack.c.bf16 %v7354_v26, %v7352_v49  ;;  %v8825_v54 = vadd.f32 %v7291_v62, %v12580_v56  ;;  %v7293_v10 = vpop.f32.mrb[105].mxu1 }
 0x896   : > { %7432 = vst [vmem:[#allocation5] sm:$0xf0] %v7431_v11  ;;  %v7435_v33 = vsel %vm12604_vm15, %v7382_v58, %v7434_v17  ;;  %v7363_v55 = vpack.c.bf16 %v7355_v4, %v7353_v22  ;;  %v8826_v34 = vadd.f32 %v7293_v10, %v12582_v45  ;;  %v7295_v38 = vpop.f32.mrb[106].mxu1 }
 0x897   : > { %7436 = vst [vmem:[#allocation5 + $0x8] sm:$0xf0] %v7435_v33  ;;  %v7384_v61 = vshrl.u32 %v7362_v21, 16  ;;  %v7387_v29 = vshll.u32 %v7362_v21, 16  ;;  %v7308_v43 = vmax.f32 %v8825_v54, 0.0  ;;  %v8827_v37 = vadd.f32 %v7295_v38, %v12580_v56  ;;  %v7297_v6 = vpop.f32.mrb[107].mxu1 }
 0x898   : > { %v7393_v2 = vshrl.u32 %v7363_v55, 16  ;;  %v7396_v44 = vshll.u32 %v7363_v55, 16  ;;  %v7309_v27 = vmax.f32 %v8826_v34, 0.0  ;;  %v8828_v24 = vadd.f32 %v7297_v6, %v12582_v45 }
 0x899   : > { %v7386_v53 = vrot.slane %v7384_v61, 3  ;;  %v7389_v40 = vrot.slane %v7387_v29, 4  ;;  %v7310_v51 = vmax.f32 %v8827_v37, 0.0  ;;  %v7356_v23 = vmul.f32 %v12519_v1, %v7308_v43 }
 0x89a   : > { %v7395_v16 = vrot.slane %v7393_v2, 3  ;;  %v7398_v59 = vrot.slane %v7396_v44, 4  ;;  %v7311_v13 = vmax.f32 %v8828_v24, 0.0  ;;  %v7357_v56 = vmul.f32 %v12519_v1, %v7309_v27 }
 0x89b   : > { %v7390_v5 = vor.u32 %v7389_v40, %v7386_v53  ;;  %v7358_v15 = vmul.f32 %v12514_v60, %v7310_v51 }
 0x89c   : > { %v7399_v12 = vor.u32 %v7398_v59, %v7395_v16  ;;  %v7359_v9 = vmul.f32 %v12514_v60, %v7311_v13  ;;  %v7442_v60 = vld [vmem:[#allocation5 + $0x30] sm:$0xf] }
 0x89d   : > { %v7391_v31 = vsel %vm7366_vm0, %v7374_v0, %v7390_v5  ;;  %v7364_v45 = vpack.c.bf16 %v7358_v15, %v7356_v23  ;;  %v7449_v18 = vld [vmem:[#allocation5] sm:$0x70] }
 0x89e   : > { %7437 = vst [vmem:[#allocation5 + $0x10] sm:$0xff] %v7391_v31  ;;  %v7400_v52 = vsel %vm7366_vm0, %v7382_v58, %v7399_v12  ;;  %v7365_v47 = vpack.c.bf16 %v7359_v9, %v7357_v56  ;;  %v7450_v14 = vld [vmem:[#allocation5 + $0x8] sm:$0x70]  ;;  %v7453_v1 = vrot.slane %v7449_v18, 4 }
 0x89f   : > { %7438 = vst.msk [vmem:[#allocation5 + $0x18] sm:$0xff] %vm2124_vm4, %v7400_v52  ;;  %v7402_v42 = vshrl.u32 %v7364_v45, 16  ;;  %v7405_v28 = vshll.u32 %v7364_v45, 16  ;;  %v7454_v41 = vrot.slane %v7450_v14, 4 }
 0x8a0   : > { %v7411_v48 = vshrl.u32 %v7365_v47, 16  ;;  %v7414_v32 = vshll.u32 %v7365_v47, 16  ;;  %v7457_v35 = vunpack.c.l.bf16 %v7453_v1 }
 0x8a1   : > { %v7404_v30 = vrot.slane %v7402_v42, 3  ;;  %v7407_v3 = vrot.slane %v7405_v28, 4  ;;  %v7458_v62 = vunpack.c.l.bf16 %v7454_v41 }
 0x8a2   : > { %v7413_v57 = vrot.slane %v7411_v48, 3  ;;  %v7416_v8 = vrot.slane %v7414_v32, 4  ;;  %v7448_v48 = vld [vmem:[%s12669_s17] sm:$0x3] }
 0x8a3   : > { %v7408_v25 = vor.u32 %v7407_v3, %v7404_v30 }
 0x8a4   : > { %v7417_v20 = vor.u32 %v7416_v8, %v7413_v57 }
 0x8a5   : > { %v7409_v50 = vsel %vm7366_vm0, %v7390_v5, %v7408_v25  ;;  %v7443_v46 = vsel %vm7441_vm9, %v7408_v25, %v7442_v60  ;;  %v7459_v36 = vld [vmem:[#allocation5 + $0x10] sm:$0x7]  ;;  %v7463_v19 = vld [vmem:[#allocation5 + $0x10] sm:$0x70] }
 0x8a6   : > { %v7581_v0 = vld [vmem:[#allocation5 + $0x10] sm:$0x70]  ;;  %7439 = vst [vmem:[#allocation5 + $0x20] sm:$0xff] %v7409_v50  ;;  %7444 = vst [vmem:[#allocation5 + $0x30] sm:$0xf] %v7443_v46  ;;  %v7418_v17 = vsel %vm7366_vm0, %v7399_v12, %v7417_v20  ;;  %v7446_v49 = vsel %vm12546_vm1, %v7417_v20, %v7445_v63  ;;  %v7461_v22 = vunpack.c.l.bf16 %v7459_v36  ;;  %v7467_v4 = vrot.slane %v7463_v19, 4 }
 0x8a7   : > { %v7460_v26 = vld [vmem:[#allocation5 + $0x18] sm:$0x7]  ;;  %v7464_v58 = vld [vmem:[#allocation5 + $0x18] sm:$0x70]  ;;  %7440 = vst.msk [vmem:[#allocation5 + $0x28] sm:$0xff] %vm2124_vm4, %v7418_v17  ;;  %v7585_v61 = vrot.slane %v7581_v0, 4 }
 0x8a8   : > { %7447 = vst [vmem:[#allocation5 + $0x38] sm:$0xf] %v7446_v49  ;;  %v7462_v11 = vunpack.c.l.bf16 %v7460_v26  ;;  %v7468_v21 = vrot.slane %v7464_v58, 4  ;;  %v7582_v54 = vld [vmem:[#allocation5 + $0x18] sm:$0x70]  ;;  %v7471_v10 = vunpack.c.l.bf16 %v7467_v4  ;;  %v7473_v33 = vmax.f32 %v7457_v35, %v7461_v22 }
 0x8a9   : > { %v7586_v38 = vrot.slane %v7582_v54, 4  ;;  %v7589_v2 = vunpack.c.l.bf16 %v7585_v61  ;;  %vm7495_vm4 = vcmask 23552  }
 0x8aa   : > { %v7472_v55 = vunpack.c.l.bf16 %v7468_v21  ;;  %v7474_v34 = vmax.f32 %v7458_v62, %v7462_v11  ;;  %v7475_v29 = vmax.f32 %v7473_v33, %v7471_v10 }
 0x8ab   : > { %v7590_v6 = vunpack.c.l.bf16 %v7586_v38 }
 0x8ac   : > { %v7476_v39 = vmax.f32 %v7474_v34, %v7472_v55  ;;  %v7479_v43 = vrot.slane %v7475_v29, 1  ;;  %v7485_v53 = vrot.slane %v7475_v29, 2 }
 0x8ad   : > { %v7591_v44 = vld [vmem:[#allocation5 + $0x20] sm:$0x7]  ;;  %v7595_v27 = vld [vmem:[#allocation5 + $0x20] sm:$0x70] }
 0x8ae   : > { %v7480_v37 = vrot.slane %v7476_v39, 1  ;;  %v7483_v24 = vmax.f32 %v7475_v29, %v7479_v43  ;;  %v7592_v40 = vld [vmem:[#allocation5 + $0x28] sm:$0x7]  ;;  %v7596_v51 = vld [vmem:[#allocation5 + $0x28] sm:$0x70]  ;;  %v7593_v16 = vunpack.c.l.bf16 %v7591_v44  ;;  %v7599_v59 = vrot.slane %v7595_v27, 4 }
 0x8af   : > { %v7486_v5 = vrot.slane %v7476_v39, 2  ;;  %v7594_v23 = vunpack.c.l.bf16 %v7592_v40  ;;  %v7600_v15 = vrot.slane %v7596_v51, 4 }
 0x8b0   : > { %v7484_v13 = vmax.f32 %v7476_v39, %v7480_v37  ;;  %v7489_v12 = vmax.f32 %v7483_v24, %v7485_v53  ;;  %v7603_v56 = vunpack.c.l.bf16 %v7599_v59  ;;  %v7605_v9 = vmax.f32 %v7589_v2, %v7593_v16 }
 0x8b1   : > { %v7604_v45 = vunpack.c.l.bf16 %v7600_v15  ;;  %v7606_v52 = vmax.f32 %v7590_v6, %v7594_v23 }
 0x8b2   : > { %v7490_v31 = vmax.f32 %v7484_v13, %v7486_v5  ;;  %v7607_v47 = vmax.f32 %v7605_v9, %v7603_v56  ;;  %v7493_v28 = vrot.slane %v7489_v12, 1 }
 0x8b3   : > { %v7608_v42 = vmax.f32 %v7606_v52, %v7604_v45 }
 0x8b4   : > { %v7494_v18 = vrot.slane %v7490_v31, 1  ;;  %v7611_v32 = vrot.slane %v7607_v47, 1  ;;  %v7617_v3 = vrot.slane %v7607_v47, 2 }
 0x8b5   : > { %v7612_v14 = vrot.slane %v7608_v42, 1  ;;  %v7618_v60 = vrot.slane %v7608_v42, 2 }
 0x8b6   : > { %8150 = vmatprep.subr.msk.mxu0 %vm5309_vm14, %v7494_v18  ;;  %v7615_v30 = vmax.f32 %v7607_v47, %v7611_v32 }
 0x8b7   : > { %8151 = vmatpush1.msk.msra.mxu0 %vm5309_vm14, %v7493_v28  ;;  %v7616_v1 = vmax.f32 %v7608_v42, %v7612_v14 }
 0x8b8   : > { %8152 = vmatmul.mubr.msk.f32.vlgmr.msra.gmra.mrb[186].mxu0 %vm7495_vm4, %v7448_v48  ;;  %v7621_v57 = vmax.f32 %v7615_v30, %v7617_v3 }
 0x8b9   : > { %7695 = vmatprep.mubr.f32.mxu0 %v12701_v7  ;;  %v7622_v8 = vmax.f32 %v7616_v1, %v7618_v60 }
 0x8ba   : > { %v7625_v63 = vrot.slane %v7621_v57, 1 }
 0x8bb   : > { %v7626_v25 = vrot.slane %v7622_v8, 1 }
 0x8bd   : > { %8153 = vmatprep.subr.msk.mxu0 %vm5309_vm14, %v7626_v25 }
 0x8be   : > { %8154 = vmatpush1.msk.msra.mxu0 %vm5309_vm14, %v7625_v63  ;;  %vm7709_vm14 = vmor %vm7708_vm6, %vm7707_vm12 }
 0x8bf   : > { %8155 = vmatmul.mubr.msk.f32.vlgmr.msra.gmra.mrb[196].mxu0 %vm7495_vm4, %v7448_v48 }
 0x98b   : > { %v7569_v41 = vpop.f32.mrb[186].mxu0 }
 0x98c   : > { %v7571_v20 = vpop.f32.mrb[187].mxu0 }
 0x98d   : > { %v7576_v7 = vcombine.low %v7569_v41, %v7571_v20 }
 0x98f   : > { %7580 = vst.msk [vmem:[%s575_s30] sm:$0x33] %vm7579_vm10, %v7576_v7 }
 0x992   : > { %v7697_v50 = vpop.f32.mrb[196].mxu0 }
 0x993   : > { %v7699_v46 = vpop.f32.mrb[197].mxu0 }
 0x994   : > { %v7704_v35 = vcombine.low %v7697_v50, %v7699_v46 }
 0x996   : > { %v7705_v36 = vrot.slane %v7704_v35, 6 }
 0x998   : > { %7710 = vst.msk [vmem:[%s575_s30] sm:$0xcc] %vm7709_vm14, %v7705_v36 }
 0x999 PF: > { %s28_s27 = sadd.s32 1, %s9117_s27  }
 0x99a   : > { %p25_p4 = scmp.ge.s32.totalorder %s28_s27, 4  }
 0x99c   :  { %27 = sbr.rel (!%p25_p4) target bundleno = 4 (0x4), region = 122 }

</bundles_post_ra>
